<compile_context>
chip_gen: v5e
topology: v5e:2x2
jax: 0.10.0
libtpu: 0.0.40
codegen_flags: <defaults>
</compile_context>

<pallas_src>
import jax
import jax.numpy as jnp
from jax import lax
from jax.experimental import pallas as pl
from jax.experimental.pallas import tpu as pltpu

VOCAB = 1033        # Embeddings(1033, 50, 1033, 0)
MAX_POS = 1033
EMB_H = 50          # LSTM input size I
LSTM_H = 8          # LSTM hidden size H
GATES = 4 * LSTM_H  # 32
DEC_IN = LSTM_H * MAX_POS      # 8264 (full K, single resident block)
DEC_H = 256
OUT_F = 45
LN_EPS = 1e-12                 # PyTorch default (below f32 resolution, kept faithful)
BN_EPS = 1e-5


# ---------------------------------------------------------------------------
# Kernel 1: LSTM recurrence, lane-dense layout, one protein per grid step.
#   Grid = (2,) "parallel" over proteins (v7x: one protein per TensorCore).
#   x_ref : (T, I, S)   LayerNorm'ed embeddings of one protein (S on lanes)
#   w_ih  : (4H, I), w_hh : (4H, H), b : (4H, 1) = b_ih + b_hh (lane-broadcast)
#   y_ref : (T, H, S)   hidden-state outputs (lane-dense store)
#   The T (= module batchsize = 2) recurrence is a static unrolled loop; h and
#   c are carried as values (no scratch, no per-step staging copy).
# ---------------------------------------------------------------------------
def _lstm_kernel(x_ref, w_ih_ref, w_hh_ref, b_ref, y_ref):
    T, _, S = x_ref.shape
    w_ih = w_ih_ref[...]
    w_hh = w_hh_ref[...]
    b = b_ref[...]
    h = jnp.zeros((LSTM_H, S), jnp.float32)
    c = jnp.zeros((LSTM_H, S), jnp.float32)
    for t in range(T):                       # static unroll (T = 2)
        gates = (jnp.dot(w_ih, x_ref[t], preferred_element_type=jnp.float32)
                 + jnp.dot(w_hh, h, preferred_element_type=jnp.float32)
                 + b)                        # (4H, S), gate rows i|f|g|o
        i_g = jax.nn.sigmoid(gates[0 * LSTM_H:1 * LSTM_H])
        f_g = jax.nn.sigmoid(gates[1 * LSTM_H:2 * LSTM_H])
        g_g = jnp.tanh(gates[2 * LSTM_H:3 * LSTM_H])
        o_g = jax.nn.sigmoid(gates[3 * LSTM_H:4 * LSTM_H])
        c = f_g * c + i_g * g_g
        h = o_g * jnp.tanh(c)
        y_ref[t] = h


def lstm_forward(xs, w_ih, w_hh, bias):
    """xs: (P=2, T, I, S) f32, lane-dense.  Returns y: (P, T, H, S) f32."""
    P, T, I, S = xs.shape
    return pl.pallas_call(
        _lstm_kernel,
        out_shape=jax.ShapeDtypeStruct((P, T, LSTM_H, S), jnp.float32),
        grid=(P,),
        in_specs=[
            pl.BlockSpec((None, T, I, S), lambda p: (p, 0, 0, 0)),
            pl.BlockSpec((GATES, EMB_H), lambda p: (0, 0)),
            pl.BlockSpec((GATES, LSTM_H), lambda p: (0, 0)),
            pl.BlockSpec((GATES, 1), lambda p: (0, 0)),
        ],
        out_specs=pl.BlockSpec((None, T, LSTM_H, S), lambda p: (p, 0, 0, 0)),
        compiler_params=pltpu.CompilerParams(
            dimension_semantics=("parallel",)),   # independent proteins
    )(xs, w_ih, w_hh, bias)


# ---------------------------------------------------------------------------
# Kernel 2: protein_decoder = Linear(8264->256) -> ReLU -> BatchNorm1d
# (training batch statistics, per protein) -> Linear(256->45).
# Single grid step, full-K resident block; w1 is bf16 in HBM (halved read),
# x is cast to bf16 in-kernel so the MXU runs bf16 x bf16 -> f32.
# Per-protein BN statistics come from a tiny group-averaging matrix gmat.
# Second output = pre-BN ReLU activations (numerics validation anchor).
# ---------------------------------------------------------------------------
def _decoder_kernel(x_ref, w1_ref, b1_ref, g_ref, bt_ref, w2_ref, b2_ref,
                    gmat_ref, o_ref, h_ref):
    x_bf = x_ref[...].astype(jnp.bfloat16)                       # (M, K) tiny cast
    h = jnp.dot(x_bf, w1_ref[...], preferred_element_type=jnp.float32)
    h = jnp.maximum(h + b1_ref[...], 0.0)                        # ReLU(inplace)
    h_ref[...] = h                                               # pre-BN output
    # training-mode BatchNorm1d, statistics per protein group (biased var)
    mu = jnp.dot(gmat_ref[...], h, preferred_element_type=jnp.float32)
    hc = h - mu
    var = jnp.dot(gmat_ref[...], hc * hc, preferred_element_type=jnp.float32)
    hn = hc * lax.rsqrt(var + BN_EPS)
    hn = hn * g_ref[...] + bt_ref[...]
    o_ref[...] = (jnp.dot(hn, w2_ref[...], preferred_element_type=jnp.float32)
                  + b2_ref[...])


def decoder_forward(x, gmat, w1, b1, bn_g, bn_b, w2, b2):
    """x: (M, DEC_IN) f32; w1: (DEC_IN, 256) bf16, rows permuted to (h, n)."""
    M, K = x.shape
    return pl.pallas_call(
        _decoder_kernel,
        out_shape=(jax.ShapeDtypeStruct((M, OUT_F), jnp.float32),
                   jax.ShapeDtypeStruct((M, DEC_H), jnp.float32)),
        grid=(1,),
        in_specs=[
            pl.BlockSpec((M, K), lambda i: (0, 0)),
            pl.BlockSpec((K, DEC_H), lambda i: (0, 0)),
            pl.BlockSpec((1, DEC_H), lambda i: (0, 0)),
            pl.BlockSpec((1, DEC_H), lambda i: (0, 0)),
            pl.BlockSpec((1, DEC_H), lambda i: (0, 0)),
            pl.BlockSpec((DEC_H, OUT_F), lambda i: (0, 0)),
            pl.BlockSpec((1, OUT_F), lambda i: (0, 0)),
            pl.BlockSpec((M, M), lambda i: (0, 0)),
        ],
        out_specs=(pl.BlockSpec((M, OUT_F), lambda i: (0, 0)),
                   pl.BlockSpec((M, DEC_H), lambda i: (0, 0))),
        compiler_params=pltpu.CompilerParams(
            dimension_semantics=("arbitrary",)),
    )(x, w1, b1, bn_g, bn_b, w2, b2, gmat)


# ---------------------------------------------------------------------------
# Glue (plain JAX): embedding gathers + LayerNorm (fused by XLA), layout prep.
# ---------------------------------------------------------------------------
def embed_layernorm(kp, ids):
    """Embeddings(1033, 50, 1033, 0): word + position emb, LayerNorm (rsqrt),
    dropout(p=0) = identity."""
    ids = ids.astype(jnp.int32)                      # input_ids.type_as(LongTensor)
    B, S = ids.shape
    pos = jnp.arange(S, dtype=jnp.int32)[None, :]
    e = jnp.take(kp["word_emb"], ids, axis=0) + jnp.take(kp["pos_emb"], pos, axis=0)
    u = jnp.mean(e, axis=-1, keepdims=True)
    c = e - u
    v = jnp.mean(c * c, axis=-1, keepdims=True)
    return kp["ln_gamma"] * (c * lax.rsqrt(v + LN_EPS)) + kp["ln_beta"]


def protein_branch_full(kp, ids1, ids2):
    """Both proteins: one LSTM call (parallel grid over proteins) and one
    decoder call (BatchNorm stats stay per protein).  Also returns the
    decoder's pre-BN ReLU activations for validation."""
    B, S = ids1.shape
    e1 = embed_layernorm(kp, ids1)                   # (B, S, 50)
    e2 = embed_layernorm(kp, ids2)                   # (B, S, 50)
    # nn.LSTM default batch_first=False: dim0 (= real batch B) is the
    # recurrence axis, dim1 (= S) is the LSTM batch — reproduced exactly,
    # protein-major and lane-dense: (protein, T=B, I=50, S on lanes).
    xs = jnp.stack([jnp.transpose(e1, (0, 2, 1)),
                    jnp.transpose(e2, (0, 2, 1))], axis=0)       # (2, B, 50, S)
    y = lstm_forward(xs, kp["lstm_w_ih"], kp["lstm_w_hh"],
                     kp["lstm_bias"])                            # (2, B, 8, S)

    # FREE reshape: rows in (protein, b) order, per-row flatten in (h, n)
    # order — matches the permuted dec_w1 rows.  No pad, no concat.
    x_all = y.reshape(2 * B, LSTM_H * S)                         # (2B, 8264)

    # group-averaging matrix: per-protein BatchNorm1d training statistics
    gid = jnp.repeat(jnp.arange(2, dtype=jnp.int32), B)
    gmat = (gid[:, None] == gid[None, :]).astype(jnp.float32) / B

    out, hidden = decoder_forward(x_all, gmat, kp["dec_w1"], kp["dec_b1"],
                                  kp["bn_gamma"], kp["bn_beta"],
                                  kp["dec_w2"], kp["dec_b2"])    # (2B,45),(2B,256)
    return out[:B], out[B:], hidden


def protein_branch(kp, ids1, ids2):
    p1, p2, _ = protein_branch_full(kp, ids1, ids2)
    return p1, p2


# ---------------------------------------------------------------------------
# Parameters: PyTorch-layout init + one-time (outside jit) kernel-layout prep.
# ---------------------------------------------------------------------------
def init_params(key):
    ks = jax.random.split(key, 10)
    k_lstm = 1.0 / float(jnp.sqrt(jnp.float32(LSTM_H)))
    k_dec1 = 1.0 / float(jnp.sqrt(jnp.float32(DEC_IN)))
    k_dec2 = 1.0 / float(jnp.sqrt(jnp.float32(DEC_H)))
    u = lambda k, shape, b: jax.random.uniform(k, shape, jnp.float32, -b, b)
    return {
        "word_emb": jax.random.normal(ks[0], (VOCAB, EMB_H), jnp.float32),
        "pos_emb": jax.random.normal(ks[1], (MAX_POS, EMB_H), jnp.float32),
        "ln_gamma": jnp.ones((EMB_H,), jnp.float32),
        "ln_beta": jnp.zeros((EMB_H,), jnp.float32),
        "lstm_w_ih": u(ks[2], (GATES, EMB_H), k_lstm),     # (4H, I), gates i|f|g|o
        "lstm_w_hh": u(ks[3], (GATES, LSTM_H), k_lstm),    # (4H, H)
        "lstm_b_ih": u(ks[4], (GATES,), k_lstm),
        "lstm_b_hh": u(ks[5], (GATES,), k_lstm),
        "dec_w1": u(ks[6], (DEC_IN, DEC_H), k_dec1),       # (in, out), rows n*8+h
        "dec_b1": u(ks[7], (DEC_H,), k_dec1),
        "bn_gamma": jnp.ones((DEC_H,), jnp.float32),
        "bn_beta": jnp.zeros((DEC_H,), jnp.float32),
        "dec_w2": u(ks[8], (DEC_H, OUT_F), k_dec2),        # (in, out)
        "dec_b2": u(ks[9], (OUT_F,), k_dec2),
    }


def prepare_params(p):
    """One-time layout prep (run eagerly, not per forward call):
      * combined LSTM bias (4H, 1) for lane-broadcast,
      * dec_w1 rows permuted from PyTorch's flatten order (n*8 + h) to the
        kernel's lane-dense order (h*1033 + n) and stored bf16 (halved HBM
        read of the dominant 8.5 MB weight)."""
    w1 = p["dec_w1"].reshape(MAX_POS, LSTM_H, DEC_H)
    w1 = jnp.transpose(w1, (1, 0, 2)).reshape(DEC_IN, DEC_H)      # rows h*1033+n
    return {
        "word_emb": p["word_emb"], "pos_emb": p["pos_emb"],
        "ln_gamma": p["ln_gamma"], "ln_beta": p["ln_beta"],
        "lstm_w_ih": p["lstm_w_ih"],
        "lstm_w_hh": p["lstm_w_hh"],
        "lstm_bias": (p["lstm_b_ih"] + p["lstm_b_hh"]).reshape(GATES, 1),
        "dec_w1": w1.astype(jnp.bfloat16),
        "dec_b1": p["dec_b1"].reshape(1, DEC_H),
        "bn_gamma": p["bn_gamma"].reshape(1, DEC_H),
        "bn_beta": p["bn_beta"].reshape(1, DEC_H),
        "dec_w2": p["dec_w2"],
        "dec_b2": p["dec_b2"].reshape(1, OUT_F),
    }


# ---------------------------------------------------------------------------
# Pure-JAX reference of the original PyTorch math (layout sanity check).
# The first decoder Linear mirrors the kernel's bf16 weight/activation
# quantization so the comparison targets layout/permutation bugs, not BN-
# amplified rounding.  Returns (logits, pre-BN ReLU activations).
# ---------------------------------------------------------------------------
def reference_protein(p, ids):
    HI = jax.lax.Precision.HIGHEST
    ids = ids.astype(jnp.int32)
    B, S = ids.shape
    pos = jnp.arange(S, dtype=jnp.int32)[None, :]
    e = jnp.take(p["word_emb"], ids, axis=0) + jnp.take(p["pos_emb"], pos, axis=0)
    u = jnp.mean(e, axis=-1, keepdims=True)
    c = e - u
    v = jnp.mean(c * c, axis=-1, keepdims=True)
    e = p["ln_gamma"] * (c / jnp.sqrt(v + LN_EPS)) + p["ln_beta"]

    w_ih, w_hh = p["lstm_w_ih"], p["lstm_w_hh"]
    b = p["lstm_b_ih"] + p["lstm_b_hh"]

    def step(carry, x_t):
        h, cs = carry
        g = (jnp.dot(x_t, w_ih.T, precision=HI)
             + jnp.dot(h, w_hh.T, precision=HI) + b)
        i_g = jax.nn.sigmoid(g[:, 0:LSTM_H])
        f_g = jax.nn.sigmoid(g[:, LSTM_H:2 * LSTM_H])
        g_g = jnp.tanh(g[:, 2 * LSTM_H:3 * LSTM_H])
        o_g = jax.nn.sigmoid(g[:, 3 * LSTM_H:4 * LSTM_H])
        cs = f_g * cs + i_g * g_g
        h = o_g * jnp.tanh(cs)
        return (h, cs), h

    init = (jnp.zeros((S, LSTM_H), jnp.float32), jnp.zeros((S, LSTM_H), jnp.float32))
    _, ys = lax.scan(step, init, e)                      # (B, S, H)
    flat = ys.reshape(B, -1)                             # PyTorch (n, h) order
    h1 = jnp.dot(flat.astype(jnp.bfloat16), p["dec_w1"].astype(jnp.bfloat16),
                 preferred_element_type=jnp.float32) + p["dec_b1"]
    h1 = jnp.maximum(h1, 0.0)                            # pre-BN ReLU output
    mu = jnp.mean(h1, axis=0, keepdims=True)
    var = jnp.mean((h1 - mu) ** 2, axis=0, keepdims=True)
    hn = (h1 - mu) / jnp.sqrt(var + BN_EPS) * p["bn_gamma"] + p["bn_beta"]
    return jnp.dot(hn, p["dec_w2"], precision=HI) + p["dec_b2"], h1


if __name__ == "__main__":
    key = jax.random.PRNGKey(0)
    kp_key, k1, k2 = jax.random.split(key, 3)
    params = init_params(kp_key)
    kparams = prepare_params(params)                 # one-time, outside jit

    B, S = 2, MAX_POS                                # S fixed at 1033 by the module
    d1_protein_fts = jax.random.randint(k1, (B, S), 0, VOCAB, dtype=jnp.int32)
    d2_protein_fts = jax.random.randint(k2, (B, S), 0, VOCAB, dtype=jnp.int32)

    fwd = jax.jit(protein_branch_full)
    p1_fts, p2_fts, hidden = fwd(kparams, d1_protein_fts, d2_protein_fts)
    jax.block_until_ready((p1_fts, p2_fts, hidden))

    assert p1_fts.shape == (B, OUT_F) and p2_fts.shape == (B, OUT_F)
    assert hidden.shape == (2 * B, DEC_H)
    assert bool(jnp.all(jnp.isfinite(p1_fts))) and bool(jnp.all(jnp.isfinite(p2_fts)))
    assert bool(jnp.all(jnp.isfinite(hidden)))

    # Sanity check vs. a pure-JAX reference of the original PyTorch math.
    # Primary anchor: the pre-BatchNorm ReLU activations (tight, not amplified
    # by BN-over-batch-of-2).  Final logits use a loose tolerance because BN
    # with batch 2 amplifies tiny rounding differences on near-constant
    # channels; that check targets O(1) layout/permutation bugs.
    ref_fn = jax.jit(reference_protein)
    r1, h1_ref = ref_fn(params, d1_protein_fts)
    r2, h2_ref = ref_fn(params, d2_protein_fts)
    h_ref = jnp.concatenate([h1_ref, h2_ref], axis=0)
    err_h = float(jnp.mean(jnp.abs(hidden - h_ref)))
    err1 = float(jnp.mean(jnp.abs(p1_fts - r1)))
    err2 = float(jnp.mean(jnp.abs(p2_fts - r2)))
    assert err_h < 0.02, err_h
    assert err1 < 0.15 and err2 < 0.15, (err1, err2)

    print("KERNEL_OK")
</pallas_src>

<mosaic_0001>
module attributes {stable_mosaic.version = 11 : i64} {
  func.func @_lstm_kernel(%arg0: i32, %arg1: memref<1x2x50x1033xf32, #tpu.memory_space<vmem>>, %arg2: memref<32x50xf32, #tpu.memory_space<vmem>>, %arg3: memref<32x8xf32, #tpu.memory_space<vmem>>, %arg4: memref<32x1xf32, #tpu.memory_space<vmem>>, %arg5: memref<1x2x8x1033xf32, #tpu.memory_space<vmem>>) attributes {dimension_semantics = [#tpu.dimension_semantics<parallel>], iteration_bounds = array<i64: 2>, scalar_prefetch = 0 : i64, scratch_operands = 0 : i64, tpu.core_type = #tpu.core_type<tc>, window_params = [{transform_indices = @transform_0, window_bounds = array<i64: 1, 2, 50, 1033>}, {pipeline_mode = #tpu.pipeline_mode<synchronous>, transform_indices = @transform_1, window_bounds = array<i64: 32, 50>}, {pipeline_mode = #tpu.pipeline_mode<synchronous>, transform_indices = @transform_2, window_bounds = array<i64: 32, 8>}, {pipeline_mode = #tpu.pipeline_mode<synchronous>, transform_indices = @transform_3, window_bounds = array<i64: 32, 1>}, {transform_indices = @transform_4, window_bounds = array<i64: 1, 2, 8, 1033>}]} {
    %c0 = arith.constant 0 : index
    %c0_0 = arith.constant 0 : index
    %0 = vector.load %arg2[%c0, %c0_0] : memref<32x50xf32, #tpu.memory_space<vmem>>, vector<32x50xf32>
    %c0_1 = arith.constant 0 : index
    %c0_2 = arith.constant 0 : index
    %1 = vector.load %arg3[%c0_1, %c0_2] : memref<32x8xf32, #tpu.memory_space<vmem>>, vector<32x8xf32>
    %c0_3 = arith.constant 0 : index
    %c0_4 = arith.constant 0 : index
    %2 = vector.load %arg4[%c0_3, %c0_4] : memref<32x1xf32, #tpu.memory_space<vmem>>, vector<32x1xf32>
    %cst = arith.constant 0.000000e+00 : f32
    %3 = vector.broadcast %cst : f32 to vector<8x1033xf32>
    %cst_5 = arith.constant 0.000000e+00 : f32
    %4 = vector.broadcast %cst_5 : f32 to vector<8x1033xf32>
    %c0_6 = arith.constant 0 : index
    %c0_7 = arith.constant 0 : index
    %c0_8 = arith.constant 0 : index
    %c0_9 = arith.constant 0 : index
    %5 = vector.load %arg1[%c0_6, %c0_7, %c0_8, %c0_9] : memref<1x2x50x1033xf32, #tpu.memory_space<vmem>>, vector<1x1x50x1033xf32>
    %6 = vector.shape_cast %5 : vector<1x1x50x1033xf32> to vector<50x1033xf32>
    %cst_10 = arith.constant dense<0.000000e+00> : vector<32x1033xf32>
    %7 = tpu.matmul %0, %6, %cst_10 {dimension_numbers = #tpu.dot_dimension_numbers<[1], [0], [0], [1], [0, 0, 1, 1], [], []>} : vector<32x50xf32>, vector<50x1033xf32>, vector<32x1033xf32> -> vector<32x1033xf32>
    %cst_11 = arith.constant dense<0.000000e+00> : vector<32x1033xf32>
    %8 = tpu.matmul %1, %3, %cst_11 {dimension_numbers = #tpu.dot_dimension_numbers<[1], [0], [0], [1], [0, 0, 1, 1], [], []>} : vector<32x8xf32>, vector<8x1033xf32>, vector<32x1033xf32> -> vector<32x1033xf32>
    %9 = arith.addf %7, %8 : vector<32x1033xf32>
    %10 = vector.broadcast %2 : vector<32x1xf32> to vector<32x1033xf32>
    %11 = arith.addf %9, %10 : vector<32x1033xf32>
    %12 = vector.extract_strided_slice %11 {offsets = [0, 0], sizes = [8, 1033], strides = [1, 1]} : vector<32x1033xf32> to vector<8x1033xf32>
    %13 = arith.negf %12 : vector<8x1033xf32>
    %14 = math.exp %13 : vector<8x1033xf32>
    %cst_12 = arith.constant 1.000000e+00 : f32
    %15 = vector.broadcast %cst_12 : f32 to vector<8x1033xf32>
    %16 = arith.addf %15, %14 : vector<8x1033xf32>
    %17 = arith.divf %15, %16 : vector<8x1033xf32>
    %18 = vector.extract_strided_slice %11 {offsets = [8, 0], sizes = [8, 1033], strides = [1, 1]} : vector<32x1033xf32> to vector<8x1033xf32>
    %19 = arith.negf %18 : vector<8x1033xf32>
    %20 = math.exp %19 : vector<8x1033xf32>
    %cst_13 = arith.constant 1.000000e+00 : f32
    %21 = vector.broadcast %cst_13 : f32 to vector<8x1033xf32>
    %22 = arith.addf %21, %20 : vector<8x1033xf32>
    %23 = arith.divf %21, %22 : vector<8x1033xf32>
    %24 = vector.extract_strided_slice %11 {offsets = [16, 0], sizes = [8, 1033], strides = [1, 1]} : vector<32x1033xf32> to vector<8x1033xf32>
    %25 = math.tanh %24 : vector<8x1033xf32>
    %26 = vector.extract_strided_slice %11 {offsets = [24, 0], sizes = [8, 1033], strides = [1, 1]} : vector<32x1033xf32> to vector<8x1033xf32>
    %27 = arith.negf %26 : vector<8x1033xf32>
    %28 = math.exp %27 : vector<8x1033xf32>
    %cst_14 = arith.constant 1.000000e+00 : f32
    %29 = vector.broadcast %cst_14 : f32 to vector<8x1033xf32>
    %30 = arith.addf %29, %28 : vector<8x1033xf32>
    %31 = arith.divf %29, %30 : vector<8x1033xf32>
    %32 = arith.mulf %23, %4 : vector<8x1033xf32>
    %33 = arith.mulf %17, %25 : vector<8x1033xf32>
    %34 = arith.addf %32, %33 : vector<8x1033xf32>
    %35 = math.tanh %34 : vector<8x1033xf32>
    %36 = arith.mulf %31, %35 : vector<8x1033xf32>
    %c0_15 = arith.constant 0 : index
    %c0_16 = arith.constant 0 : index
    %c0_17 = arith.constant 0 : index
    %c0_18 = arith.constant 0 : index
    %37 = vector.load %arg5[%c0_15, %c0_16, %c0_17, %c0_18] : memref<1x2x8x1033xf32, #tpu.memory_space<vmem>>, vector<1x1x8x1033xf32>
    %38 = vector.shape_cast %37 : vector<1x1x8x1033xf32> to vector<8x1033xf32>
    %39 = vector.shape_cast %36 : vector<8x1033xf32> to vector<1x1x8x1033xf32>
    tpu.vector_store %arg5[%c0_15, %c0_16, %c0_17, %c0_18], %39 {strides = array<i32>} : memref<1x2x8x1033xf32, #tpu.memory_space<vmem>>, vector<1x1x8x1033xf32>,
    %c0_19 = arith.constant 0 : index
    %c1 = arith.constant 1 : index
    %c0_20 = arith.constant 0 : index
    %c0_21 = arith.constant 0 : index
    %40 = vector.load %arg1[%c0_19, %c1, %c0_20, %c0_21] : memref<1x2x50x1033xf32, #tpu.memory_space<vmem>>, vector<1x1x50x1033xf32>
    %41 = vector.shape_cast %40 : vector<1x1x50x1033xf32> to vector<50x1033xf32>
    %cst_22 = arith.constant dense<0.000000e+00> : vector<32x1033xf32>
    %42 = tpu.matmul %0, %41, %cst_22 {dimension_numbers = #tpu.dot_dimension_numbers<[1], [0], [0], [1], [0, 0, 1, 1], [], []>} : vector<32x50xf32>, vector<50x1033xf32>, vector<32x1033xf32> -> vector<32x1033xf32>
    %cst_23 = arith.constant dense<0.000000e+00> : vector<32x1033xf32>
    %43 = tpu.matmul %1, %36, %cst_23 {dimension_numbers = #tpu.dot_dimension_numbers<[1], [0], [0], [1], [0, 0, 1, 1], [], []>} : vector<32x8xf32>, vector<8x1033xf32>, vector<32x1033xf32> -> vector<32x1033xf32>
    %44 = arith.addf %42, %43 : vector<32x1033xf32>
    %45 = vector.broadcast %2 : vector<32x1xf32> to vector<32x1033xf32>
    %46 = arith.addf %44, %45 : vector<32x1033xf32>
    %47 = vector.extract_strided_slice %46 {offsets = [0, 0], sizes = [8, 1033], strides = [1, 1]} : vector<32x1033xf32> to vector<8x1033xf32>
    %48 = arith.negf %47 : vector<8x1033xf32>
    %49 = math.exp %48 : vector<8x1033xf32>
    %cst_24 = arith.constant 1.000000e+00 : f32
    %50 = vector.broadcast %cst_24 : f32 to vector<8x1033xf32>
    %51 = arith.addf %50, %49 : vector<8x1033xf32>
    %52 = arith.divf %50, %51 : vector<8x1033xf32>
    %53 = vector.extract_strided_slice %46 {offsets = [8, 0], sizes = [8, 1033], strides = [1, 1]} : vector<32x1033xf32> to vector<8x1033xf32>
    %54 = arith.negf %53 : vector<8x1033xf32>
    %55 = math.exp %54 : vector<8x1033xf32>
    %cst_25 = arith.constant 1.000000e+00 : f32
    %56 = vector.broadcast %cst_25 : f32 to vector<8x1033xf32>
    %57 = arith.addf %56, %55 : vector<8x1033xf32>
    %58 = arith.divf %56, %57 : vector<8x1033xf32>
    %59 = vector.extract_strided_slice %46 {offsets = [16, 0], sizes = [8, 1033], strides = [1, 1]} : vector<32x1033xf32> to vector<8x1033xf32>
    %60 = math.tanh %59 : vector<8x1033xf32>
    %61 = vector.extract_strided_slice %46 {offsets = [24, 0], sizes = [8, 1033], strides = [1, 1]} : vector<32x1033xf32> to vector<8x1033xf32>
    %62 = arith.negf %61 : vector<8x1033xf32>
    %63 = math.exp %62 : vector<8x1033xf32>
    %cst_26 = arith.constant 1.000000e+00 : f32
    %64 = vector.broadcast %cst_26 : f32 to vector<8x1033xf32>
    %65 = arith.addf %64, %63 : vector<8x1033xf32>
    %66 = arith.divf %64, %65 : vector<8x1033xf32>
    %67 = arith.mulf %58, %34 : vector<8x1033xf32>
    %68 = arith.mulf %52, %60 : vector<8x1033xf32>
    %69 = arith.addf %67, %68 : vector<8x1033xf32>
    %70 = math.tanh %69 : vector<8x1033xf32>
    %71 = arith.mulf %66, %70 : vector<8x1033xf32>
    %c0_27 = arith.constant 0 : index
    %c1_28 = arith.constant 1 : index
    %c0_29 = arith.constant 0 : index
    %c0_30 = arith.constant 0 : index
    %72 = vector.load %arg5[%c0_27, %c1_28, %c0_29, %c0_30] : memref<1x2x8x1033xf32, #tpu.memory_space<vmem>>, vector<1x1x8x1033xf32>
    %73 = vector.shape_cast %72 : vector<1x1x8x1033xf32> to vector<8x1033xf32>
    %74 = vector.shape_cast %71 : vector<8x1033xf32> to vector<1x1x8x1033xf32>
    tpu.vector_store %arg5[%c0_27, %c1_28, %c0_29, %c0_30], %74 {strides = array<i32>} : memref<1x2x8x1033xf32, #tpu.memory_space<vmem>>, vector<1x1x8x1033xf32>,
    return
  }
  func.func @transform_0(%arg0: i32) -> (i32, i32, i32, i32) {
    %c0_i32 = arith.constant 0 : i32
    %c0_i32_0 = arith.constant 0 : i32
    %c0_i32_1 = arith.constant 0 : i32
    %c0_i32_2 = arith.constant 0 : i32
    return %arg0, %c0_i32, %c0_i32_0, %c0_i32_1 : i32, i32, i32, i32
  }
  func.func @transform_1(%arg0: i32) -> (i32, i32) {
    %c0_i32 = arith.constant 0 : i32
    %c0_i32_0 = arith.constant 0 : i32
    %c0_i32_1 = arith.constant 0 : i32
    return %c0_i32, %c0_i32_0 : i32, i32
  }
  func.func @transform_2(%arg0: i32) -> (i32, i32) {
    %c0_i32 = arith.constant 0 : i32
    %c0_i32_0 = arith.constant 0 : i32
    %c0_i32_1 = arith.constant 0 : i32
    return %c0_i32, %c0_i32_0 : i32, i32
  }
  func.func @transform_3(%arg0: i32) -> (i32, i32) {
    %c0_i32 = arith.constant 0 : i32
    %c0_i32_0 = arith.constant 0 : i32
    %c0_i32_1 = arith.constant 0 : i32
    return %c0_i32, %c0_i32_0 : i32, i32
  }
  func.func @transform_4(%arg0: i32) -> (i32, i32, i32, i32) {
    %c0_i32 = arith.constant 0 : i32
    %c0_i32_0 = arith.constant 0 : i32
    %c0_i32_1 = arith.constant 0 : i32
    %c0_i32_2 = arith.constant 0 : i32
    return %arg0, %c0_i32, %c0_i32_0, %c0_i32_1 : i32, i32, i32, i32
  }
}

module attributes {stable_mosaic.version = 11 : i64} {
  func.func @_decoder_kernel(%arg0: i32, %arg1: memref<4x8264xf32, #tpu.memory_space<vmem>>, %arg2: memref<8264x256xbf16, #tpu.memory_space<vmem>>, %arg3: memref<1x256xf32, #tpu.memory_space<vmem>>, %arg4: memref<1x256xf32, #tpu.memory_space<vmem>>, %arg5: memref<1x256xf32, #tpu.memory_space<vmem>>, %arg6: memref<256x45xf32, #tpu.memory_space<vmem>>, %arg7: memref<1x45xf32, #tpu.memory_space<vmem>>, %arg8: memref<4x4xf32, #tpu.memory_space<vmem>>, %arg9: memref<4x45xf32, #tpu.memory_space<vmem>>, %arg10: memref<4x256xf32, #tpu.memory_space<vmem>>) attributes {dimension_semantics = [#tpu.dimension_semantics<arbitrary>], iteration_bounds = array<i64: 1>, scalar_prefetch = 0 : i64, scratch_operands = 0 : i64, tpu.core_type = #tpu.core_type<tc>, window_params = [{pipeline_mode = #tpu.pipeline_mode<synchronous>, transform_indices = @transform_0, window_bounds = array<i64: 4, 8264>}, {pipeline_mode = #tpu.pipeline_mode<synchronous>, transform_indices = @transform_1, window_bounds = array<i64: 8264, 256>}, {pipeline_mode = #tpu.pipeline_mode<synchronous>, transform_indices = @transform_2, window_bounds = array<i64: 1, 256>}, {pipeline_mode = #tpu.pipeline_mode<synchronous>, transform_indices = @transform_3, window_bounds = array<i64: 1, 256>}, {pipeline_mode = #tpu.pipeline_mode<synchronous>, transform_indices = @transform_4, window_bounds = array<i64: 1, 256>}, {pipeline_mode = #tpu.pipeline_mode<synchronous>, transform_indices = @transform_5, window_bounds = array<i64: 256, 45>}, {pipeline_mode = #tpu.pipeline_mode<synchronous>, transform_indices = @transform_6, window_bounds = array<i64: 1, 45>}, {pipeline_mode = #tpu.pipeline_mode<synchronous>, transform_indices = @transform_7, window_bounds = array<i64: 4, 4>}, {pipeline_mode = #tpu.pipeline_mode<synchronous>, transform_indices = @transform_8, window_bounds = array<i64: 4, 45>}, {pipeline_mode = #tpu.pipeline_mode<synchronous>, transform_indices = @transform_9, window_bounds = array<i64: 4, 256>}]} {
    %c0 = arith.constant 0 : index
    %c0_0 = arith.constant 0 : index
    %0 = vector.load %arg1[%c0, %c0_0] : memref<4x8264xf32, #tpu.memory_space<vmem>>, vector<4x8264xf32>
    %1 = arith.truncf %0 : vector<4x8264xf32> to vector<4x8264xbf16>
    %c0_1 = arith.constant 0 : index
    %c0_2 = arith.constant 0 : index
    %2 = vector.load %arg2[%c0_1, %c0_2] : memref<8264x256xbf16, #tpu.memory_space<vmem>>, vector<8264x256xbf16>
    %cst = arith.constant dense<0.000000e+00> : vector<4x256xf32>
    %3 = tpu.matmul %1, %2, %cst {dimension_numbers = #tpu.dot_dimension_numbers<[1], [0], [0], [1], [0, 0, 1, 1], [], []>} : vector<4x8264xbf16>, vector<8264x256xbf16>, vector<4x256xf32> -> vector<4x256xf32>
    %c0_3 = arith.constant 0 : index
    %c0_4 = arith.constant 0 : index
    %4 = vector.load %arg3[%c0_3, %c0_4] : memref<1x256xf32, #tpu.memory_space<vmem>>, vector<1x256xf32>
    %5 = vector.broadcast %4 : vector<1x256xf32> to vector<4x256xf32>
    %6 = arith.addf %3, %5 : vector<4x256xf32>
    %cst_5 = arith.constant 0.000000e+00 : f32
    %7 = vector.broadcast %cst_5 : f32 to vector<4x256xf32>
    %8 = arith.maximumf %6, %7 : vector<4x256xf32>
    %c0_6 = arith.constant 0 : index
    %c0_7 = arith.constant 0 : index
    %9 = vector.load %arg10[%c0_6, %c0_7] : memref<4x256xf32, #tpu.memory_space<vmem>>, vector<4x256xf32>
    tpu.vector_store %arg10[%c0_6, %c0_7], %8 {strides = array<i32>} : memref<4x256xf32, #tpu.memory_space<vmem>>, vector<4x256xf32>,
    %c0_8 = arith.constant 0 : index
    %c0_9 = arith.constant 0 : index
    %10 = vector.load %arg8[%c0_8, %c0_9] : memref<4x4xf32, #tpu.memory_space<vmem>>, vector<4x4xf32>
    %cst_10 = arith.constant dense<0.000000e+00> : vector<4x256xf32>
    %11 = tpu.matmul %10, %8, %cst_10 {dimension_numbers = #tpu.dot_dimension_numbers<[1], [0], [0], [1], [0, 0, 1, 1], [], []>} : vector<4x4xf32>, vector<4x256xf32>, vector<4x256xf32> -> vector<4x256xf32>
    %12 = arith.subf %8, %11 : vector<4x256xf32>
    %c0_11 = arith.constant 0 : index
    %c0_12 = arith.constant 0 : index
    %13 = vector.load %arg8[%c0_11, %c0_12] : memref<4x4xf32, #tpu.memory_space<vmem>>, vector<4x4xf32>
    %14 = arith.mulf %12, %12 : vector<4x256xf32>
    %cst_13 = arith.constant dense<0.000000e+00> : vector<4x256xf32>
    %15 = tpu.matmul %13, %14, %cst_13 {dimension_numbers = #tpu.dot_dimension_numbers<[1], [0], [0], [1], [0, 0, 1, 1], [], []>} : vector<4x4xf32>, vector<4x256xf32>, vector<4x256xf32> -> vector<4x256xf32>
    %cst_14 = arith.constant 9.99999974E-6 : f32
    %16 = vector.broadcast %cst_14 : f32 to vector<4x256xf32>
    %17 = arith.addf %15, %16 : vector<4x256xf32>
    %18 = math.rsqrt %17 : vector<4x256xf32>
    %19 = arith.mulf %12, %18 : vector<4x256xf32>
    %c0_15 = arith.constant 0 : index
    %c0_16 = arith.constant 0 : index
    %20 = vector.load %arg4[%c0_15, %c0_16] : memref<1x256xf32, #tpu.memory_space<vmem>>, vector<1x256xf32>
    %21 = vector.broadcast %20 : vector<1x256xf32> to vector<4x256xf32>
    %22 = arith.mulf %19, %21 : vector<4x256xf32>
    %c0_17 = arith.constant 0 : index
    %c0_18 = arith.constant 0 : index
    %23 = vector.load %arg5[%c0_17, %c0_18] : memref<1x256xf32, #tpu.memory_space<vmem>>, vector<1x256xf32>
    %24 = vector.broadcast %23 : vector<1x256xf32> to vector<4x256xf32>
    %25 = arith.addf %22, %24 : vector<4x256xf32>
    %c0_19 = arith.constant 0 : index
    %c0_20 = arith.constant 0 : index
    %26 = vector.load %arg6[%c0_19, %c0_20] : memref<256x45xf32, #tpu.memory_space<vmem>>, vector<256x45xf32>
    %cst_21 = arith.constant dense<0.000000e+00> : vector<4x45xf32>
    %27 = tpu.matmul %25, %26, %cst_21 {dimension_numbers = #tpu.dot_dimension_numbers<[1], [0], [0], [1], [0, 0, 1, 1], [], []>} : vector<4x256xf32>, vector<256x45xf32>, vector<4x45xf32> -> vector<4x45xf32>
    %c0_22 = arith.constant 0 : index
    %c0_23 = arith.constant 0 : index
    %28 = vector.load %arg7[%c0_22, %c0_23] : memref<1x45xf32, #tpu.memory_space<vmem>>, vector<1x45xf32>
    %29 = vector.broadcast %28 : vector<1x45xf32> to vector<4x45xf32>
    %30 = arith.addf %27, %29 : vector<4x45xf32>
    %c0_24 = arith.constant 0 : index
    %c0_25 = arith.constant 0 : index
    %31 = vector.load %arg9[%c0_24, %c0_25] : memref<4x45xf32, #tpu.memory_space<vmem>>, vector<4x45xf32>
    tpu.vector_store %arg9[%c0_24, %c0_25], %30 {strides = array<i32>} : memref<4x45xf32, #tpu.memory_space<vmem>>, vector<4x45xf32>,
    return
  }
  func.func @transform_0(%arg0: i32) -> (i32, i32) {
    %c0_i32 = arith.constant 0 : i32
    %c0_i32_0 = arith.constant 0 : i32
    %c0_i32_1 = arith.constant 0 : i32
    return %c0_i32, %c0_i32_0 : i32, i32
  }
  func.func @transform_1(%arg0: i32) -> (i32, i32) {
    %c0_i32 = arith.constant 0 : i32
    %c0_i32_0 = arith.constant 0 : i32
    %c0_i32_1 = arith.constant 0 : i32
    return %c0_i32, %c0_i32_0 : i32, i32
  }
  func.func @transform_2(%arg0: i32) -> (i32, i32) {
    %c0_i32 = arith.constant 0 : i32
    %c0_i32_0 = arith.constant 0 : i32
    %c0_i32_1 = arith.constant 0 : i32
    return %c0_i32, %c0_i32_0 : i32, i32
  }
  func.func @transform_3(%arg0: i32) -> (i32, i32) {
    %c0_i32 = arith.constant 0 : i32
    %c0_i32_0 = arith.constant 0 : i32
    %c0_i32_1 = arith.constant 0 : i32
    return %c0_i32, %c0_i32_0 : i32, i32
  }
  func.func @transform_4(%arg0: i32) -> (i32, i32) {
    %c0_i32 = arith.constant 0 : i32
    %c0_i32_0 = arith.constant 0 : i32
    %c0_i32_1 = arith.constant 0 : i32
    return %c0_i32, %c0_i32_0 : i32, i32
  }
  func.func @transform_5(%arg0: i32) -> (i32, i32) {
    %c0_i32 = arith.constant 0 : i32
    %c0_i32_0 = arith.constant 0 : i32
    %c0_i32_1 = arith.constant 0 : i32
    return %c0_i32, %c0_i32_0 : i32, i32
  }
  func.func @transform_6(%arg0: i32) -> (i32, i32) {
    %c0_i32 = arith.constant 0 : i32
    %c0_i32_0 = arith.constant 0 : i32
    %c0_i32_1 = arith.constant 0 : i32
    return %c0_i32, %c0_i32_0 : i32, i32
  }
  func.func @transform_7(%arg0: i32) -> (i32, i32) {
    %c0_i32 = arith.constant 0 : i32
    %c0_i32_0 = arith.constant 0 : i32
    %c0_i32_1 = arith.constant 0 : i32
    return %c0_i32, %c0_i32_0 : i32, i32
  }
  func.func @transform_8(%arg0: i32) -> (i32, i32) {
    %c0_i32 = arith.constant 0 : i32
    %c0_i32_0 = arith.constant 0 : i32
    %c0_i32_1 = arith.constant 0 : i32
    return %c0_i32, %c0_i32_0 : i32, i32
  }
  func.func @transform_9(%arg0: i32) -> (i32, i32) {
    %c0_i32 = arith.constant 0 : i32
    %c0_i32_0 = arith.constant 0 : i32
    %c0_i32_1 = arith.constant 0 : i32
    return %c0_i32, %c0_i32_0 : i32, i32
  }
}

</mosaic_0001>

<bundles_post_ra>
// kernel: eq.8
= control target key start
LH: loop header
LB: loop body
LE: loop exit
PB: predicated region body
PF: predicated region fallthrough
CT: control target
= control target key end

     0   :  { %vm7_vm0 = vcmask 15360   ;;  %vm13_vm1 = vcmask 31760   ;;  %s39_s0 = inlined_call_operand.vmem [shape: s32[2,2], index: 0, kind: input, shape index: {}]   ;;  %s40_s1 = inlined_call_operand.vmem [shape: s32[4], index: 1, kind: output, shape index: {}]  }
   0x1   :  { %v4_v0 = vld [vmem:[%s39_s0] sm:$0x3]  ;;  %s22_s0 = smov 2  }
   0x2   :  { %5 = vst [vmem:[#allocation1] sm:$0x3] %v4_v0 }
   0x9   :  { %v10_v1 = vld [vmem:[#allocation1 + $0x1] sm:$0x1]   ;;  %v6_v2 = vld [vmem:[#allocation1] sm:$0x1]  }
   0xa   :  { %11 = vrot.lane.b32.xlu0 %v10_v1, %s22_s0  ;;  %8 = vst.msk [vmem:[#allocation0] sm:$0x1] %vm7_vm0, %v6_v2  }
  0x7c   :  { %v12_v3 = vpop.permute.xlu0 %11  }
  0x7d   :  { %14 = vst.msk [vmem:[#allocation0] sm:$0x1] %vm13_vm1, %v12_v3  }
  0x84   :  { %v17_v4 = vld [vmem:[#allocation0] sm:$0x1] }
  0x85   :  { %20 = vst [vmem:[%s40_s1] sm:$0x1] %v17_v4 }

// kernel: protein_branch_full.2
= control target key start
LH: loop header
LB: loop body
LE: loop exit
PB: predicated region body
PF: predicated region fallthrough
CT: control target
= control target key end

     0   :  { %s3141_s15 = smov 0   ;;  %s5119_s0 = inlined_call_operand.vmem [shape: f32[2,2,50,1033], index: 0, kind: input, shape index: {}]   ;;  %s5120_s1 = inlined_call_operand.vmem [shape: f32[32,50], index: 1, kind: input, shape index: {}]   ;;  %s5121_s2 = inlined_call_operand.vmem [shape: f32[32,8], index: 2, kind: input, shape index: {}]   ;;  %s5122_s3 = inlined_call_operand.vmem [shape: f32[32,1], index: 3, kind: input, shape index: {}]   ;;  %s5123_s4 = inlined_call_operand.vmem [shape: f32[2,2,8,1033], index: 4, kind: output, shape index: {}]  }
   0x1 LB: > { %s2531_s16 = sadd.s32 4294967295, %s3112_s15   ;;  %p2535_p0 = scmp.ge.s32.totalorder %s3112_s15, 1  ;;  %s3112_s15 = sphi %s3141_s15, %s14_s15  }
   0x2   : > { %p162_p1 = scmp.lt.s32.totalorder %s3112_s15, 3 }
   0x4   : > { %p163_p2 = pnand %p2535_p0, %p162_p1 }
   0x6   : > { %166 = sbr.rel (%p163_p2) target bundleno = 643 (0x283), region = 36 }
   0xb   : > { %v202_v0 = vld [vmem:[%s5121_s2] sm:$0xff]  ;;  %vm273_vm0 = vcmask 64512   ;;  %p188_p3 = scmp.lt.s32.totalorder %s2531_s16, 1  ;;  %v3114_v1 = vmov 0.0   ;;  %v3115_v2 = vmov 0   ;;  %vm328_vm1 = vcmask 1041408  }
   0xc   : > { %301 = vmatpush.msra.mxu0 %v3114_v1  ;;  %2808 = vset.pattern.permute.xlu0 %v3115_v2  ;;  %v206_v3 = vld [vmem:[%s5122_s3] sm:$0xff]  ;;  %v203_v4 = vld [vmem:[%s5121_s2 + $0x8] sm:$0xff]  ;;  %v204_v21 = vld [vmem:[%s5121_s2 + $0x10] sm:$0xff]  ;;  %vm5141_vm2 = vcmask 408576  }
   0xd   : > { %2538 = vmatmul.msk.f32.vlgmr.msra.gmra.mxu0 %vm273_vm0, %v202_v0  ;;  %s5353_s16 = smov (!%p188_p3, %s2531_s16), 1  ;;  %619 = vperm.xlu0 %2808, %v206_v3   ;;  %v3202_v29 = vld [vmem:[%s5120_s1] sm:$0xff]  ;;  %v205_v35 = vld [vmem:[%s5121_s2 + $0x18] sm:$0xff]  ;;  %v207_v36 = vld [vmem:[%s5122_s3 + $0x8] sm:$0xff] }
   0xe   : > { %2809 = vset.pattern.permute.xlu1 %v3115_v2  ;;  %s2796_s21 = smul.u32 1008, %s5353_s16  ;;  %v3234_v43 = vld [vmem:[%s5120_s1 + $0x8] sm:$0xff]  ;;  %v209_v48 = vld [vmem:[%s5122_s3 + $0x18] sm:$0xff]  ;;  %v3261_v56 = vld [vmem:[%s5120_s1 + $0x10] sm:$0xff] }
   0xf   : > { %634 = vperm.xlu1 %2809, %v209_v48   ;;  %v208_v61 = vld [vmem:[%s5122_s3 + $0x10] sm:$0xff]  ;;  %v201_v3 = vld [vmem:[%s5120_s1 + $0x18] sm:$0xff] }
  0x10   : > { %s3162_s24 = scalar_lea.vmem %s5119_s0, %s2796_s21  ;;  %s2797_s21 = smul.u32 144, %s5353_s16 }
  0x11   : > { %v264_v5 = vld [vmem:[%s3162_s24 + $0x1b0] sm:$0x3]  ;;  %v265_v6 = vld [vmem:[%s3162_s24 + $0x1b8] sm:$0x3]  ;;  %v266_v7 = vld [vmem:[%s3162_s24 + $0x1c0] sm:$0x3] }
  0x12   : > { %2542 = vmatpush.msk.msra.mxu1 %vm328_vm1, %v264_v5  ;;  %2547 = vmatpush.msk.msra.mxu2 %vm328_vm1, %v265_v6  ;;  %v255_v8 = vld [vmem:[%s3162_s24 + $0x168] sm:$0xff]  ;;  %v256_v9 = vld [vmem:[%s3162_s24 + $0x170] sm:$0xff]  ;;  %v257_v10 = vld [vmem:[%s3162_s24 + $0x178] sm:$0xff]  ;;  %s4030_s23 = scalar_lea.vmem %s5123_s4, %s2797_s21 }
  0x13   : > { %2552 = vmatpush.msk.msra.mxu3 %vm328_vm1, %v266_v7  ;;  %v246_v11 = vld [vmem:[%s3162_s24 + $0x120] sm:$0xff]  ;;  %v247_v12 = vld [vmem:[%s3162_s24 + $0x128] sm:$0xff]  ;;  %v248_v13 = vld [vmem:[%s3162_s24 + $0x130] sm:$0xff] }
  0x14   : > { %366 = vmatpush.msra.mxu1 %v255_v8  ;;  %395 = vmatpush.msra.mxu2 %v256_v9  ;;  %v237_v14 = vld [vmem:[%s3162_s24 + $0xd8] sm:$0xff]  ;;  %v238_v15 = vld [vmem:[%s3162_s24 + $0xe0] sm:$0xff]  ;;  %v239_v16 = vld [vmem:[%s3162_s24 + $0xe8] sm:$0xff] }
  0x15   : > { %2539 = vmatmul.msk.f32.gmra.mxu0 %vm273_vm0, %v203_v4  ;;  %424 = vmatpush.msra.mxu3 %v257_v10  ;;  %v228_v17 = vld [vmem:[%s3162_s24 + $0x90] sm:$0xff]  ;;  %v229_v18 = vld [vmem:[%s3162_s24 + $0x98] sm:$0xff]  ;;  %v230_v19 = vld [vmem:[%s3162_s24 + $0xa0] sm:$0xff] }
  0x16   : > { %367 = vmatpush.msra.mxu1 %v246_v11  ;;  %396 = vmatpush.msra.mxu2 %v247_v12  ;;  %v267_v20 = vld [vmem:[%s3162_s24 + $0x1c8] sm:$0x3]  ;;  %v220_v23 = vld [vmem:[%s3162_s24 + $0x50] sm:$0xff]  ;;  %v221_v24 = vld [vmem:[%s3162_s24 + $0x58] sm:$0xff] }
  0x17   : > { %425 = vmatpush.msra.mxu3 %v248_v13  ;;  %v219_v22 = vld [vmem:[%s3162_s24 + $0x48] sm:$0xff]  ;;  %2557 = vmatpush.msk.msrb.mxu0 %vm328_vm1, %v267_v20  ;;  %v210_v25 = vld [vmem:[%s3162_s24] sm:$0xff]  ;;  %v212_v28 = vld [vmem:[%s3162_s24 + $0x10] sm:$0xff] }
  0x18   : > { %368 = vmatpush.msra.mxu1 %v237_v14  ;;  %397 = vmatpush.msra.mxu2 %v238_v15  ;;  %v258_v26 = vld [vmem:[%s3162_s24 + $0x180] sm:$0xff]  ;;  %v211_v27 = vld [vmem:[%s3162_s24 + $0x8] sm:$0xff]  ;;  %v249_v30 = vld [vmem:[%s3162_s24 + $0x138] sm:$0xff] }
  0x19   : > { %426 = vmatpush.msra.mxu3 %v239_v16  ;;  %453 = vmatpush.msrb.mxu0 %v258_v26  ;;  %v268_v31 = vld [vmem:[%s3162_s24 + $0x1d0] sm:$0x3]  ;;  %v269_v32 = vld [vmem:[%s3162_s24 + $0x1d8] sm:$0x3]  ;;  %v270_v34 = vld [vmem:[%s3162_s24 + $0x1e0] sm:$0x3] }
  0x1a   : > { %369 = vmatpush.msra.mxu1 %v228_v17  ;;  %398 = vmatpush.msra.mxu2 %v229_v18  ;;  %v240_v33 = vld [vmem:[%s3162_s24 + $0xf0] sm:$0xff]  ;;  %v231_v37 = vld [vmem:[%s3162_s24 + $0xa8] sm:$0xff]  ;;  %v261_v40 = vld [vmem:[%s3162_s24 + $0x198] sm:$0xff] }
  0x1b   : > { %427 = vmatpush.msra.mxu3 %v230_v19  ;;  %454 = vmatpush.msrb.mxu0 %v249_v30  ;;  %v259_v38 = vld [vmem:[%s3162_s24 + $0x188] sm:$0xff]  ;;  %v260_v39 = vld [vmem:[%s3162_s24 + $0x190] sm:$0xff]  ;;  %v222_v41 = vld [vmem:[%s3162_s24 + $0x60] sm:$0xff] }
  0x1c   : > { %370 = vmatpush.msra.mxu1 %v219_v22  ;;  %399 = vmatpush.msra.mxu2 %v220_v23  ;;  %v250_v42 = vld [vmem:[%s3162_s24 + $0x140] sm:$0xff]  ;;  %v213_v44 = vld [vmem:[%s3162_s24 + $0x18] sm:$0xff]  ;;  %v251_v45 = vld [vmem:[%s3162_s24 + $0x148] sm:$0xff] }
  0x1d   : > { %2540 = vmatmul.msk.f32.gmra.mxu0 %vm273_vm0, %v204_v21  ;;  %428 = vmatpush.msra.mxu3 %v221_v24  ;;  %v252_v46 = vld [vmem:[%s3162_s24 + $0x150] sm:$0xff]  ;;  %v241_v47 = vld [vmem:[%s3162_s24 + $0xf8] sm:$0xff]  ;;  %v242_v49 = vld [vmem:[%s3162_s24 + $0x100] sm:$0xff] }
  0x1e   : > { %371 = vmatpush.msra.mxu1 %v210_v25  ;;  %400 = vmatpush.msra.mxu2 %v211_v27  ;;  %v243_v50 = vld [vmem:[%s3162_s24 + $0x108] sm:$0xff]  ;;  %v232_v51 = vld [vmem:[%s3162_s24 + $0xb0] sm:$0xff]  ;;  %v233_v52 = vld [vmem:[%s3162_s24 + $0xb8] sm:$0xff] }
  0x1f   : > { %429 = vmatpush.msra.mxu3 %v212_v28  ;;  %2543 = vmatmul.msk.f32.vlgmr.msra.gmra.mxu1 %vm5141_vm2, %v3202_v29  ;;  %v271_v53 = vld [vmem:[%s3162_s24 + $0x1e8] sm:$0x3]  ;;  %v234_v54 = vld [vmem:[%s3162_s24 + $0xc0] sm:$0xff]  ;;  %v224_v57 = vld [vmem:[%s3162_s24 + $0x70] sm:$0xff] }
  0x20   : > { %2548 = vmatmul.msk.f32.vlgmr.msra.gmra.mxu2 %vm5141_vm2, %v3202_v29  ;;  %2553 = vmatmul.msk.f32.vlgmr.msra.gmra.mxu3 %vm5141_vm2, %v3202_v29  ;;  %v223_v55 = vld [vmem:[%s3162_s24 + $0x68] sm:$0xff]  ;;  %v225_v58 = vld [vmem:[%s3162_s24 + $0x78] sm:$0xff]  ;;  %v214_v59 = vld [vmem:[%s3162_s24 + $0x20] sm:$0xff] }
  0x21   : > { %2562 = vmatpush.msk.msrb.mxu1 %vm328_vm1, %v268_v31  ;;  %2567 = vmatpush.msk.msrb.mxu2 %vm328_vm1, %v269_v32  ;;  %v215_v60 = vld [vmem:[%s3162_s24 + $0x28] sm:$0xff]  ;;  %v216_v62 = vld [vmem:[%s3162_s24 + $0x30] sm:$0xff]  ;;  %v262_v63 = vld [vmem:[%s3162_s24 + $0x1a0] sm:$0xff] }
  0x22   : > { %455 = vmatpush.msrb.mxu0 %v240_v33  ;;  %2572 = vmatpush.msk.msrb.mxu3 %vm328_vm1, %v270_v34  ;;  %v272_v0 = vld [vmem:[%s3162_s24 + $0x1f0] sm:$0x3]  ;;  %v253_v1 = vld [vmem:[%s3162_s24 + $0x158] sm:$0xff]  ;;  %v263_v2 = vld [vmem:[%s3162_s24 + $0x1a8] sm:$0xff] }
  0x23   : > { %624 = vperm.xlu0 %2808, %v207_v36   ;;  %482 = vmatpush.msrb.mxu1 %v259_v38  ;;  %v244_v4 = vld [vmem:[%s3162_s24 + $0x110] sm:$0xff]  ;;  %v254_v5 = vld [vmem:[%s3162_s24 + $0x160] sm:$0xff]  ;;  %v235_v6 = vld [vmem:[%s3162_s24 + $0xc8] sm:$0xff] }
  0x24   : > { %456 = vmatpush.msrb.mxu0 %v231_v37  ;;  %511 = vmatpush.msrb.mxu2 %v260_v39  ;;  %v245_v7 = vld [vmem:[%s3162_s24 + $0x118] sm:$0xff]  ;;  %v226_v8 = vld [vmem:[%s3162_s24 + $0x80] sm:$0xff]  ;;  %v236_v9 = vld [vmem:[%s3162_s24 + $0xd0] sm:$0xff] }
  0x25   : > { %2541 = vmatmul.msk.f32.gmra.mxu0 %vm273_vm0, %v205_v35  ;;  %540 = vmatpush.msrb.mxu3 %v261_v40  ;;  %v217_v10 = vld [vmem:[%s3162_s24 + $0x38] sm:$0xff]  ;;  %v227_v11 = vld [vmem:[%s3162_s24 + $0x88] sm:$0xff]  ;;  %v218_v12 = vld [vmem:[%s3162_s24 + $0x40] sm:$0xff] }
  0x26   : > { %457 = vmatpush.msrb.mxu0 %v222_v41  ;;  %483 = vmatpush.msrb.mxu1 %v250_v42 }
  0x27   : > { %2544 = vmatmul.msk.f32.gmra.mxu1 %vm5141_vm2, %v3234_v43  ;;  %512 = vmatpush.msrb.mxu2 %v251_v45 }
  0x28   : > { %2549 = vmatmul.msk.f32.gmra.mxu2 %vm5141_vm2, %v3234_v43  ;;  %2554 = vmatmul.msk.f32.gmra.mxu3 %vm5141_vm2, %v3234_v43 }
  0x29   : > { %458 = vmatpush.msrb.mxu0 %v213_v44  ;;  %541 = vmatpush.msrb.mxu3 %v252_v46 }
  0x2a   : > { %484 = vmatpush.msrb.mxu1 %v241_v47  ;;  %513 = vmatpush.msrb.mxu2 %v242_v49 }
  0x2b   : > { %542 = vmatpush.msrb.mxu3 %v243_v50  ;;  %2577 = vmatpush.msk.msra.mxu0 %vm328_vm1, %v271_v53 }
  0x2c   : > { %485 = vmatpush.msrb.mxu1 %v232_v51  ;;  %514 = vmatpush.msrb.mxu2 %v233_v52 }
  0x2d   : > { %2558 = vmatmul.msk.f32.vlgmr.msrb.gmra.mxu0 %vm5141_vm2, %v3202_v29  ;;  %543 = vmatpush.msrb.mxu3 %v234_v54 }
  0x2e   : > { %486 = vmatpush.msrb.mxu1 %v223_v55  ;;  %515 = vmatpush.msrb.mxu2 %v224_v57 }
  0x2f   : > { %2545 = vmatmul.msk.f32.gmra.mxu1 %vm5141_vm2, %v3261_v56  ;;  %544 = vmatpush.msrb.mxu3 %v225_v58 }
  0x30   : > { %2550 = vmatmul.msk.f32.gmra.mxu2 %vm5141_vm2, %v3261_v56  ;;  %2555 = vmatmul.msk.f32.gmra.mxu3 %vm5141_vm2, %v3261_v56 }
  0x31   : > { %487 = vmatpush.msrb.mxu1 %v214_v59  ;;  %516 = vmatpush.msrb.mxu2 %v215_v60 }
  0x32   : > { %629 = vperm.xlu1 %2809, %v208_v61   ;;  %545 = vmatpush.msrb.mxu3 %v216_v62 }
  0x33   : > { %569 = vmatpush.msra.mxu0 %v262_v63  ;;  %2582 = vmatpush.msk.msra.mxu1 %vm328_vm1, %v272_v0 }
  0x35   : > { %2559 = vmatmul.msk.f32.gmra.mxu0 %vm5141_vm2, %v3234_v43  ;;  %598 = vmatpush.msra.mxu1 %v263_v2 }
  0x36   : > { %570 = vmatpush.msra.mxu0 %v253_v1 }
  0x37   : > { %2546 = vmatmul.msk.f32.gmra.mxu1 %vm5141_vm2, %v201_v3 }
  0x38   : > { %2551 = vmatmul.msk.f32.gmra.mxu2 %vm5141_vm2, %v201_v3  ;;  %2556 = vmatmul.msk.f32.gmra.mxu3 %vm5141_vm2, %v201_v3 }
  0x39   : > { %571 = vmatpush.msra.mxu0 %v244_v4  ;;  %599 = vmatpush.msra.mxu1 %v254_v5 }
  0x3b   : > { %572 = vmatpush.msra.mxu0 %v235_v6  ;;  %600 = vmatpush.msra.mxu1 %v245_v7 }
  0x3d   : > { %2560 = vmatmul.msk.f32.gmra.mxu0 %vm5141_vm2, %v3261_v56  ;;  %601 = vmatpush.msra.mxu1 %v236_v9 }
  0x3e   : > { %573 = vmatpush.msra.mxu0 %v226_v8 }
  0x3f   : > { %2563 = vmatmul.msk.f32.vlgmr.msrb.gmra.mxu1 %vm5141_vm2, %v3202_v29 }
  0x40   : > { %574 = vmatpush.msra.mxu0 %v217_v10  ;;  %2568 = vmatmul.msk.f32.vlgmr.msrb.gmra.mxu2 %vm5141_vm2, %v3202_v29 }
  0x41   : > { %2573 = vmatmul.msk.f32.vlgmr.msrb.gmra.mxu3 %vm5141_vm2, %v3202_v29  ;;  %602 = vmatpush.msra.mxu1 %v227_v11 }
  0x43   : > { %603 = vmatpush.msra.mxu1 %v218_v12 }
  0x45   : > { %2561 = vmatmul.msk.f32.gmra.mxu0 %vm5141_vm2, %v201_v3 }
  0x47   : > { %2564 = vmatmul.msk.f32.gmra.mxu1 %vm5141_vm2, %v3234_v43 }
  0x48   : > { %2569 = vmatmul.msk.f32.gmra.mxu2 %vm5141_vm2, %v3234_v43 }
  0x49   : > { %2574 = vmatmul.msk.f32.gmra.mxu3 %vm5141_vm2, %v3234_v43 }
  0x4d   : > { %2578 = vmatmul.msk.f32.vlgmr.msra.gmra.mxu0 %vm5141_vm2, %v3202_v29 }
  0x4f   : > { %2565 = vmatmul.msk.f32.gmra.mxu1 %vm5141_vm2, %v3261_v56 }
  0x50   : > { %2570 = vmatmul.msk.f32.gmra.mxu2 %vm5141_vm2, %v3261_v56 }
  0x51   : > { %2575 = vmatmul.msk.f32.gmra.mxu3 %vm5141_vm2, %v3261_v56 }
  0x55   : > { %2579 = vmatmul.msk.f32.gmra.mxu0 %vm5141_vm2, %v3234_v43 }
  0x57   : > { %2566 = vmatmul.msk.f32.gmra.mxu1 %vm5141_vm2, %v201_v3 }
  0x58   : > { %2571 = vmatmul.msk.f32.gmra.mxu2 %vm5141_vm2, %v201_v3 }
  0x59   : > { %2576 = vmatmul.msk.f32.gmra.mxu3 %vm5141_vm2, %v201_v3 }
  0x5d   : > { %2580 = vmatmul.msk.f32.gmra.mxu0 %vm5141_vm2, %v3261_v56 }
  0x5f   : > { %2583 = vmatmul.msk.f32.vlgmr.msra.gmra.mxu1 %vm5141_vm2, %v3202_v29 }
  0x65   : > { %2581 = vmatmul.msk.f32.gmra.mxu0 %vm5141_vm2, %v201_v3 }
  0x67   : > { %2584 = vmatmul.msk.f32.gmra.mxu1 %vm5141_vm2, %v3234_v43 }
  0x6f   : > { %2585 = vmatmul.msk.f32.gmra.mxu1 %vm5141_vm2, %v3261_v56 }
  0x77   : > { %2586 = vmatmul.msk.f32.gmra.mxu1 %vm5141_vm2, %v201_v3 }
  0x7f   : > { %v3347_v19 = vpop.permute.xlu0 %619 }
  0x80   : > { %5148 = vst [vmem:[#allocation4_spill] sm:$0xff] %v3347_v19 }
  0x81   : > { %v3368_v51 = vpop.permute.xlu1 %634 }
  0x8a   : > { %v3338_v13 = vpop.f32.mrf.mxu0 }
  0x8b   : > { %5146 = vst [vmem:[#allocation2_spill] sm:$0xff] %v3338_v13 }
  0x92   : > { %v3340_v14 = vpop.f32.mrf.mxu0 }
  0x93   : > { %5147 = vst [vmem:[#allocation3_spill] sm:$0xff] %v3340_v14 }
  0x95   : > { %v3357_v37 = vpop.permute.xlu0 %624 }
  0x96   : > { %5149 = vst [vmem:[#allocation5_spill] sm:$0xff] %v3357_v37 }
  0x9a   : > { %v3342_v15 = vpop.f32.mrf.mxu0 }
  0x9c   : > { %v373_v16 = vpop.f32.mrf.mxu1 }
  0x9d   : > { %v374_v18 = vadd.f32 %v373_v16, %v3338_v13 }
  0x9f   : > { %v637_v26 = vadd.f32 %v3347_v19, %v374_v18 }
  0xa1   : > { %v2587_v32 = vmul.f32 -1.442695, %v637_v26 }
  0xa2   : > { %v3344_v17 = vpop.f32.mrf.mxu0 }
  0xa3   : > { %v402_v20 = vpop.f32.mrf.mxu2  ;;  %v431_v22 = vpop.f32.mrf.mxu3 }
  0xa4   : > { %v403_v21 = vadd.f32 %v402_v20, %v3338_v13  ;;  %v432_v23 = vadd.f32 %v431_v22, %v3338_v13  ;;  %v376_v24 = vpop.f32.mrf.mxu1  ;;  %v3391_v10 = vpop.permute.xlu1 %629 }
  0xa5   : > { %v377_v4 = vadd.f32 %v376_v24, %v3340_v14 }
  0xa6   : > { %v638_v25 = vadd.f32 %v3347_v19, %v403_v21  ;;  %v639_v27 = vadd.f32 %v3347_v19, %v432_v23 }
  0xa7   : > { %v3402_v21 = vadd.f32 %v3357_v37, %v377_v4 }
  0xa8   : > { %v2588_v28 = vmul.f32 -1.442695, %v638_v25  ;;  %v2589_v29 = vmul.f32 -1.442695, %v639_v27 }
  0xaa   : > { %v460_v30 = vpop.f32.mrf.mxu0  ;;  %2810 = vpow2.f32 %v2588_v28 }
  0xab   : > { %v461_v31 = vadd.f32 %v460_v30, %v3338_v13  ;;  %2812 = vpow2.f32 %v2589_v29  ;;  %v405_v33 = vpop.f32.mrf.mxu2  ;;  %v434_v36 = vpop.f32.mrf.mxu3 }
  0xac   : > { %v406_v35 = vadd.f32 %v405_v33, %v3340_v14  ;;  %v435_v38 = vadd.f32 %v434_v36, %v3340_v14  ;;  %v379_v39 = vpop.f32.mrf.mxu1  ;;  %2814 = vpow2.f32 %v2587_v32 }
  0xad   : > { %v640_v34 = vadd.f32 %v3347_v19, %v461_v31  ;;  %v380_v6 = vadd.f32 %v379_v39, %v3342_v15 }
  0xae   : > { %v647_v41 = vadd.f32 %v3357_v37, %v406_v35  ;;  %v648_v42 = vadd.f32 %v3357_v37, %v435_v38 }
  0xaf   : > { %v2590_v40 = vmul.f32 -1.442695, %v640_v34  ;;  %v3409_v27 = vadd.f32 %v3391_v10, %v380_v6 }
  0xb0   : > { %v2811_v43 = vpop.eup %2810  ;;  %v2597_v44 = vmul.f32 -1.442695, %v647_v41  ;;  %v2598_v47 = vmul.f32 -1.442695, %v648_v42 }
  0xb1   : > { %2816 = vpow2.f32 %v2590_v40  ;;  %v2813_v45 = vpop.eup %2812  ;;  %v3362_v46 = vadd.f32 1.0, %v2811_v43 }
  0xb2   : > { %v463_v48 = vpop.f32.mrf.mxu0  ;;  %v3364_v49 = vadd.f32 1.0, %v2813_v45  ;;  %2818 = vpow2.f32 %v2597_v44  ;;  %v2815_v53 = vpop.eup %2814 }
  0xb3   : > { %v464_v50 = vadd.f32 %v463_v48, %v3340_v14  ;;  %2820 = vrcp.f32 %v3362_v46  ;;  %v408_v52 = vpop.f32.mrf.mxu2  ;;  %v437_v54 = vpop.f32.mrf.mxu3  ;;  %v3374_v60 = vadd.f32 1.0, %v2815_v53  ;;  %v735_v11 = vand.u32 2147483648, %v3362_v46 }
  0xb4   : > { %2822 = vrcp.f32 %v3364_v49  ;;  %v382_v57 = vpop.f32.mrf.mxu1  ;;  %v750_v20 = vand.u32 2147483648, %v3364_v49  ;;  %v3423_v39 = vadd.f32 %v408_v52, %v3342_v15  ;;  %v3426_v40 = vadd.f32 %v437_v54, %v3342_v15 }
  0xb5   : > { %2824 = vpow2.f32 %v2598_v47  ;;  %v649_v55 = vadd.f32 %v3357_v37, %v464_v50  ;;  %v383_v2 = vadd.f32 %v382_v57, %v3344_v17  ;;  %v3417_v33 = vor.u32 1.1754944e-38, %v735_v11 }
  0xb6   : > { %v3419_v38 = vor.u32 1.1754944e-38, %v750_v20  ;;  %5152 = vst [vmem:[#allocation8_spill] sm:$0xff] %v3426_v40 }
  0xb7   : > { %v2817_v56 = vpop.eup %2816  ;;  %v2599_v59 = vmul.f32 -1.442695, %v649_v55  ;;  %v664_v16 = vadd.f32 %v3368_v51, %v383_v2 }
  0xb8   : > { %v3372_v58 = vadd.f32 1.0, %v2817_v56  ;;  %v2819_v61 = vpop.eup %2818  ;;  %5151 = vst [vmem:[#allocation7_spill] sm:$0xff] %v3419_v38 }
  0xb9   : > { %v3376_v62 = vpop.eup %2820  ;;  %v3381_v1 = vadd.f32 1.0, %v2819_v61  ;;  %v2605_v36 = vmul.f32 -1.442695, %v664_v16 }
  0xba   : > { %2826 = vrcp.f32 %v3372_v58  ;;  %v466_v63 = vpop.f32.mrf.mxu0  ;;  %v3379_v0 = vpop.eup %2822  ;;  %v725_v8 = vmul.f32 %v3376_v62, %v3362_v46  ;;  %vm759_vm3 = vweird.f32 %v3372_v58  ;;  %v763_v43 = vand.u32 2147483647, %v3372_v58 }
  0xbb   : > { %2828 = vpow2.f32 %v2599_v59  ;;  %v2825_v3 = vpop.eup %2824  ;;  %v411_v5 = vpop.f32.mrf.mxu2  ;;  %v740_v12 = vmul.f32 %v3379_v0, %v3364_v49  ;;  %v467_v31 = vadd.f32 %v466_v63, %v3342_v15  ;;  %v906_v48 = vand.u32 2147483648, %v3381_v1 }
  0xbc   : > { %2830 = vrcp.f32 %v3374_v60  ;;  %v440_v7 = vpop.f32.mrf.mxu3  ;;  %v3389_v9 = vadd.f32 1.0, %v2825_v3  ;;  %v489_v26 = vpop.f32.mrf.mxu1  ;;  %v726_v29 = vsub.f32 1.0, %v725_v8  ;;  %v412_v54 = vadd.f32 %v411_v5, %v3344_v17 }
  0xbd   : > { %2832 = vrcp.f32 %v3381_v1  ;;  %v741_v34 = vsub.f32 1.0, %v740_v12  ;;  %v658_v50 = vadd.f32 %v3391_v10, %v467_v31  ;;  %v441_v61 = vadd.f32 %v440_v7, %v3344_v17 }
  0xbe   : > { %5150 = vst [vmem:[#allocation6_spill] sm:$0xff] %v3389_v9  ;;  %2834 = vrcp.f32 %v3389_v9  ;;  %v3438_v45 = vmul.f32 %v3376_v62, %v726_v29  ;;  %v490_v63 = vadd.f32 %v489_v26, %v3338_v13  ;;  %vm3459_vm6 = vcmp.eq.f32.partialorder %v763_v43, 8.507059e+37 }
  0xbf   : > { %v3444_v53 = vmul.f32 %v3379_v0, %v741_v34  ;;  %v665_v4 = vadd.f32 %v3368_v51, %v412_v54  ;;  %v765_v8 = vand.u32 2147483648, %v3372_v58  ;;  %v666_v7 = vadd.f32 %v3368_v51, %v441_v61 }
  0xc0   : > { %v3398_v18 = vpop.eup %2826  ;;  %v641_v26 = vadd.f32 %v3347_v19, %v490_v63 }
  0xc1   : > { %v2829_v22 = vpop.eup %2828  ;;  %v755_v25 = vmul.f32 %v3398_v18, %v3372_v58  ;;  %vm760_vm4 = vweird.f32 %v3398_v18 }
  0xc2   : > { %v3411_v28 = vpop.eup %2830  ;;  %v3414_v30 = vadd.f32 1.0, %v2829_v22  ;;  %v469_v32 = vpop.f32.mrf.mxu0  ;;  %vm3477_vm7 = vmor %vm759_vm3, %vm760_vm4  ;;  %v2591_v58 = vmul.f32 -1.442695, %v641_v26 }
  0xc3   : > { %v756_v35 = vsub.f32 1.0, %v755_v25  ;;  %v3428_v41 = vpop.eup %2832  ;;  %v3435_v44 = vmul.f32 %v3411_v28, %v3374_v60  ;;  %v518_v52 = vpop.f32.mrf.mxu2  ;;  %v470_v5 = vadd.f32 %v469_v32, %v3344_v17  ;;  %v2606_v25 = vmul.f32 -1.442695, %v665_v4 }
  0xc4   : > { %2836 = vrcp.f32 %v3414_v30  ;;  %v547_v55 = vpop.f32.mrf.mxu3  ;;  %v3448_v56 = vpop.eup %2834  ;;  %v3452_v57 = vmul.f32 %v3428_v41, %v3381_v1  ;;  %vm930_vm5 = vweird.f32 %v3414_v30  ;;  %v936_v2 = vand.u32 2147483648, %v3414_v30 }
  0xc5   : > { %v757_v42 = vmul.f32 %v3398_v18, %v756_v35  ;;  %2838 = vpow2.f32 %v2605_v36  ;;  %v934_v11 = vand.u32 2147483647, %v3414_v30  ;;  %v3470_v16 = vmul.f32 %v3448_v56, %v3389_v9  ;;  %v492_v29 = vpop.f32.mrf.mxu1 }
  0xc6   : > { %2840 = vtanh.f32 %v658_v50  ;;  %v2607_v32 = vmul.f32 -1.442695, %v666_v7  ;;  %v667_v34 = vadd.f32 %v3368_v51, %v470_v5  ;;  %v548_v50 = vadd.f32 %v547_v55, %v3338_v13 }
  0xc7   : > { %v758_v59 = vadd.f32 %v3398_v18, %v757_v42  ;;  %2842 = vpow2.f32 %v2606_v25  ;;  %v519_v42 = vadd.f32 %v518_v52, %v3338_v13  ;;  %v493_v54 = vadd.f32 %v492_v29, %v3340_v14 }
  0xc8   : > { %2844 = vpow2.f32 %v2607_v32  ;;  %v2608_v43 = vmul.f32 -1.442695, %v667_v34  ;;  %v937_v4 = vor.u32 1.1754944e-38, %v936_v2  ;;  %v766_v5 = vor.u32 1.1754944e-38, %v765_v8 }
  0xc9   : > { %v762_v31 = vsel %vm3477_vm7, %v3398_v18, %v758_v59  ;;  %2846 = vpow2.f32 %v2591_v58  ;;  %v642_v18 = vadd.f32 %v3347_v19, %v519_v42  ;;  %v643_v7 = vadd.f32 %v3347_v19, %v548_v50 }
  0xca   : > { %v2837_v6 = vpop.eup %2836  ;;  %v576_v12 = vpop.f32.mrf.mxu0  ;;  %vm935_vm9 = vcmp.eq.f32.partialorder %v934_v11, 8.507059e+37  ;;  %v767_v29 = vsel %vm3459_vm6, %v766_v5, %v762_v31  ;;  %2848 = vpow2.f32 %v2608_v43 }
  0xcb   : > { %v926_v20 = vmul.f32 %v2837_v6, %v3414_v30  ;;  %vm931_vm8 = vweird.f32 %v2837_v6  ;;  %v2839_v35 = vpop.eup %2838  ;;  %v577_v59 = vadd.f32 %v576_v12, %v3338_v13  ;;  %v521_v52 = vpop.f32.mrf.mxu2  ;;  %v2592_v55 = vmul.f32 -1.442695, %v642_v18 }
  0xcc   : > { %v2841_v63 = vpop.eup %2840  ;;  %v3493_v22 = vadd.f32 1.0, %v2839_v35  ;;  %v550_v26 = vpop.f32.mrf.mxu3  ;;  %vm932_vm10 = vmor %vm930_vm5, %vm931_vm8  ;;  %v2593_v2 = vmul.f32 -1.442695, %v643_v7  ;;  %v522_v35 = vadd.f32 %v521_v52, %v3340_v14  ;;  %v3525_v52 = vadd.f32 %v3376_v62, %v3438_v45 }
  0xcd   : > { %v927_v36 = vsub.f32 1.0, %v926_v20  ;;  %v650_v20 = vadd.f32 %v3357_v37, %v493_v54  ;;  %v2843_v12 = vpop.eup %2842  ;;  %2850 = vpow2.f32 %v2592_v55  ;;  %v644_v34 = vadd.f32 %v3347_v19, %v577_v59 }
  0xce   : > { %v3502_v42 = vadd.f32 1.0, %v2843_v12  ;;  %2852 = vpow2.f32 %v2593_v2  ;;  %v551_v3 = vadd.f32 %v550_v26, %v3340_v14  ;;  %v1207_v43 = vmul.f32 %v2841_v63, %v767_v29  ;;  %v495_v29 = vpop.f32.mrf.mxu1 }
  0xcf   : > { %v928_v61 = vmul.f32 %v2837_v6, %v927_v36  ;;  %v2600_v8 = vmul.f32 -1.442695, %v650_v20  ;;  %v2845_v36 = vpop.eup %2844  ;;  %v2594_v59 = vmul.f32 -1.442695, %v644_v34  ;;  %v3518_v63 = vor.u32 1.1754944e-38, %v906_v48 }
  0xd0   : > { %v2847_v30 = vpop.eup %2846  ;;  %v3505_v50 = vadd.f32 1.0, %v2845_v36  ;;  %v652_v7 = vadd.f32 %v3357_v37, %v551_v3  ;;  %v921_v55 = vand.u32 2147483648, %v3389_v9  ;;  %v3532_v48 = vadd.f32 %v3379_v0, %v3444_v53 }
  0xd1   : > { %v929_v25 = vadd.f32 %v2837_v6, %v928_v61  ;;  %2854 = vpow2.f32 %v2600_v8  ;;  %v3509_v54 = vadd.f32 1.0, %v2847_v30  ;;  %v2849_v5 = vpop.eup %2848  ;;  %v711_v9 = vsub.f32 1.0, %v3435_v44 }
  0xd2   : > { %v579_v11 = vpop.f32.mrf.mxu0  ;;  %5157 = vst [vmem:[#allocation9_spill] sm:$0xff] %v3505_v50  ;;  %2856 = vrcp.f32 %v3493_v22  ;;  %v2602_v36 = vmul.f32 -1.442695, %v652_v7  ;;  %v3549_v3 = vor.u32 1.1754944e-38, %v921_v55  ;;  %v3551_v30 = vadd.f32 1.0, %v2849_v5 }
  0xd3   : > { %v933_v32 = vsel %vm932_vm10, %v2837_v6, %v929_v25  ;;  %v897_v6 = vsub.f32 1.0, %v3452_v57  ;;  %v580_v61 = vadd.f32 %v579_v11, %v3340_v14  ;;  %2858 = vrcp.f32 %v3502_v42  ;;  %v2851_v20 = vpop.eup %2850  ;;  %5159 = vst [vmem:[#allocation11_spill] sm:$0xff] %v3532_v48  ;;  %v524_v34 = vpop.f32.mrf.mxu2 }
  0xd4   : > { %v938_v58 = vsel %vm935_vm9, %v937_v4, %v933_v32  ;;  %v651_v4 = vadd.f32 %v3357_v37, %v522_v35  ;;  %v912_v57 = vsub.f32 1.0, %v3470_v16  ;;  %2860 = vrcp.f32 %v3509_v54  ;;  %v2853_v26 = vpop.eup %2852  ;;  %5160 = vst [vmem:[#allocation12_spill] sm:$0xff] %v3549_v3 }
  0xd5   : > { %v1198_v31 = vmul.f32 0.0, %v938_v58  ;;  %2862 = vrcp.f32 %v3505_v50  ;;  %v3535_v16 = vadd.f32 1.0, %v2851_v20  ;;  %v653_v2 = vadd.f32 %v3357_v37, %v580_v61  ;;  %5161 = vst [vmem:[#allocation13_spill] sm:$0xff] %v3551_v30 }
  0xd6   : > { %v898_v8 = vmul.f32 %v3428_v41, %v897_v6  ;;  %v3539_v12 = vadd.f32 1.0, %v2853_v26  ;;  %v2601_v32 = vmul.f32 -1.442695, %v651_v4  ;;  %v913_v53 = vmul.f32 %v3448_v56, %v912_v57 }
  0xd7   : > { %v3512_v18 = vadd.f32 %v1207_v43, %v1198_v31  ;;  %v2855_v45 = vpop.eup %2854  ;;  %v496_v31 = vadd.f32 %v495_v29, %v3342_v15  ;;  %v553_v43 = vpop.f32.mrf.mxu3  ;;  %v780_v61 = vand.u32 2147483648, %v3509_v54  ;;  %v525_v4 = vadd.f32 %v524_v34, %v3342_v15 }
  0xd8   : > { %v3541_v35 = vpop.eup %2856  ;;  %v3545_v11 = vadd.f32 1.0, %v2855_v45  ;;  %v3563_v7 = vadd.f32 %v3428_v41, %v898_v8  ;;  %v778_v20 = vand.u32 2147483647, %v3509_v54  ;;  %v3571_v26 = vadd.f32 %v3448_v56, %v913_v53 }
  0xd9   : > { %5158 = vst [vmem:[#allocation10_spill] sm:$0xff] %v3512_v18  ;;  %2864 = vtanh.f32 %v3512_v18  ;;  %v3547_v58 = vpop.eup %2858  ;;  %v3575_v29 = vmul.f32 %v3541_v35, %v3493_v22  ;;  %vm774_vm11 = vweird.f32 %v3509_v54  ;;  %v781_v25 = vor.u32 1.1754944e-38, %v780_v61 }
  0xda   : > { %2866 = vpow2.f32 %v2594_v59  ;;  %v3555_v6 = vpop.eup %2860  ;;  %v2603_v59 = vmul.f32 -1.442695, %v653_v2  ;;  %5164 = vst [vmem:[#allocation16_spill] sm:$0xff] %v3571_v26  ;;  %v554_v2 = vadd.f32 %v553_v43, %v3342_v15  ;;  %v660_v53 = vadd.f32 %v3391_v10, %v525_v4 }
  0xdb   : > { %2868 = vrcp.f32 %v3535_v16  ;;  %v3560_v57 = vpop.eup %2862  ;;  %v770_v5 = vmul.f32 %v3555_v6, %v3509_v54  ;;  %v793_v24 = vand.u32 2147483647, %v3535_v16  ;;  %vm3596_vm12 = vcmp.eq.f32.partialorder %v778_v20, 8.507059e+37 }
  0xdc   : > { %2870 = vrcp.f32 %v3539_v12  ;;  %5162 = vst [vmem:[#allocation14_spill] sm:$0xff] %v3560_v57  ;;  %v3604_v4 = vmul.f32 %v3560_v57, %v3505_v50  ;;  %v951_v23 = vand.u32 2147483648, %v3545_v11  ;;  %v795_v18 = vand.u32 2147483648, %v3535_v16 }
  0xdd   : > { %2872 = vrcp.f32 %v3545_v11  ;;  %v771_v8 = vsub.f32 1.0, %v770_v5  ;;  %vm775_vm13 = vweird.f32 %v3555_v6  ;;  %vm789_vm14 = vweird.f32 %v3535_v16 }
  0xde   : > { %2874 = vpow2.f32 %v2601_v32  ;;  %v659_v32 = vadd.f32 %v3391_v10, %v496_v31  ;;  %5168 = vst [vmem:[#allocation18_spill] sm:$0xff] %v3604_v4  ;;  %vm945_vm15 = vweird.f32 %v3545_v11  ;;  %v952_v4 = vor.u32 1.1754944e-38, %v951_v23  ;;  %vm3632_vm3 = vmor %vm774_vm11, %vm775_vm13 }
  0xdf   : > { %v3568_v55 = vpop.eup %2864  ;;  %2876 = vpow2.f32 %v2602_v36  ;;  %v3589_v36 = vmul.f32 %v3547_v58, %v3502_v42  ;;  %v772_v5 = vmul.f32 %v3555_v6, %v771_v8  ;;  %vm3643_vm5 = vcmp.eq.f32.partialorder %v793_v24, 8.507059e+37 }
  0xe0   : > { %5163 = vst [vmem:[#allocation15_spill] sm:$0xff] %v3568_v55  ;;  %v2867_v45 = vpop.eup %2866  ;;  %2878 = vrcp.f32 %v3551_v30  ;;  %v3609_v55 = vadd.f32 %v3391_v10, %v554_v2  ;;  %vm804_vm9 = vweird.f32 %v3539_v12 }
  0xe1   : > { %v3581_v34 = vpop.eup %2868  ;;  %2880 = vpow2.f32 %v2603_v59  ;;  %5165 = vst [vmem:[#allocation17_spill] sm:$0xff] %v3589_v36  ;;  %v3593_v31 = vadd.f32 1.0, %v2867_v45  ;;  %v773_v8 = vadd.f32 %v3555_v6, %v772_v5 }
  0xe2   : > { %v3585_v47 = vpop.eup %2870  ;;  %v785_v43 = vmul.f32 %v3581_v34, %v3535_v16  ;;  %2882 = vtanh.f32 %v659_v32  ;;  %v949_v32 = vand.u32 2147483647, %v3545_v11  ;;  %vm790_vm6 = vweird.f32 %v3581_v34 }
  0xe3   : > { %v3600_v59 = vpop.eup %2872  ;;  %v800_v57 = vmul.f32 %v3585_v47, %v3539_v12  ;;  %2884 = vrcp.f32 %v3593_v31  ;;  %vm805_vm10 = vweird.f32 %v3585_v47  ;;  %vm3685_vm13 = vmor %vm789_vm14, %vm790_vm6  ;;  %vm730_vm14 = vweird.f32 %v3376_v62 }
  0xe4   : > { %v2875_v45 = vpop.eup %2874  ;;  %v786_v37 = vsub.f32 1.0, %v785_v43  ;;  %v941_v20 = vmul.f32 %v3600_v59, %v3545_v11  ;;  %vm946_vm4 = vweird.f32 %v3600_v59  ;;  %vm3666_vm8 = vcmp.eq.f32.partialorder %v949_v32, 8.507059e+37 }
  0xe5   : > { %v2877_v14 = vpop.eup %2876  ;;  %v3619_v50 = vadd.f32 1.0, %v2875_v45  ;;  %v801_v26 = vsub.f32 1.0, %v800_v57  ;;  %vm3662_vm7 = vmor %vm945_vm15, %vm946_vm4  ;;  %vm901_vm4 = vweird.f32 %v3428_v41 }
  0xe6   : > { %v3621_v2 = vpop.eup %2878  ;;  %v942_v43 = vsub.f32 1.0, %v941_v20  ;;  %v3624_v3 = vadd.f32 1.0, %v2877_v14  ;;  %v787_v5 = vmul.f32 %v3581_v34, %v786_v37  ;;  %v796_v20 = vor.u32 1.1754944e-38, %v795_v18 }
  0xe7   : > { %5169 = vst [vmem:[#allocation19_spill] sm:$0xff] %v3621_v2  ;;  %v2881_v38 = vpop.eup %2880  ;;  %2886 = vrcp.f32 %v3619_v50  ;;  %v777_v37 = vsel %vm3632_vm3, %v3555_v6, %v773_v8  ;;  %v3649_v54 = vmul.f32 %v3621_v2, %v3551_v30  ;;  %v966_v48 = vand.u32 2147483648, %v3619_v50 }
  0xe8   : > { %v943_v14 = vmul.f32 %v3600_v59, %v942_v43  ;;  %2888 = vrcp.f32 %v3624_v3  ;;  %v3651_v18 = vadd.f32 1.0, %v2881_v38  ;;  %v808_v43 = vand.u32 2147483647, %v3539_v12  ;;  %v2883_v24 = vpop.eup %2882 }
  0xe9   : > { %v788_v6 = vadd.f32 %v3581_v34, %v787_v5  ;;  %v782_v8 = vsel %vm3596_vm12, %v781_v25, %v777_v37  ;;  %v3672_v5 = vpop.eup %2884  ;;  %vm960_vm11 = vweird.f32 %v3619_v50  ;;  %vm975_vm12 = vweird.f32 %v3624_v3 }
  0xea   : > { %v944_v45 = vadd.f32 %v3600_v59, %v943_v14  ;;  %2890 = vrcp.f32 %v3651_v18  ;;  %v981_v14 = vand.u32 2147483648, %v3624_v3  ;;  %v802_v32 = vmul.f32 %v3585_v47, %v801_v26 }
  0xeb   : > { %2892 = vtanh.f32 %v660_v53  ;;  %v498_v53 = vpop.f32.mrf.mxu1  ;;  %v967_v57 = vor.u32 1.1754944e-38, %v966_v48  ;;  %v1208_v30 = vmul.f32 %v2883_v24, %v782_v8  ;;  %v792_v2 = vsel %vm3685_vm13, %v3581_v34, %v788_v6 }
  0xec   : > { %v948_v25 = vsel %vm3662_vm7, %v3600_v59, %v944_v45  ;;  %v810_v59 = vand.u32 2147483648, %v3539_v12  ;;  %vm3695_vm15 = vcmp.eq.f32.partialorder %v808_v43, 8.507059e+37  ;;  %v3701_v40 = vmul.f32 %v3672_v5, %v3593_v31 }
  0xed   : > { %v2887_v11 = vpop.eup %2886  ;;  %v953_v19 = vsel %vm3666_vm8, %v952_v4, %v948_v25  ;;  %v964_v48 = vand.u32 2147483647, %v3619_v50  ;;  %v982_v8 = vor.u32 1.1754944e-38, %v981_v14  ;;  %v803_v61 = vadd.f32 %v3585_v47, %v802_v32 }
  0xee   : > { %v2889_v37 = vpop.eup %2888  ;;  %v956_v45 = vmul.f32 %v2887_v11, %v3619_v50  ;;  %v499_v34 = vadd.f32 %v498_v53, %v3344_v17  ;;  %v996_v36 = vand.u32 2147483648, %v3651_v18  ;;  %v797_v13 = vsel %vm3643_vm5, %v796_v20, %v792_v2  ;;  %vm3726_vm5 = vmor %vm804_vm9, %vm805_vm10 }
  0xef   : > { %v971_v26 = vmul.f32 %v2889_v37, %v3624_v3  ;;  %v1199_v25 = vmul.f32 0.0, %v953_v19  ;;  %vm961_vm3 = vweird.f32 %v2887_v11  ;;  %v979_v14 = vand.u32 2147483647, %v3624_v3 }
  0xf0   : > { %v957_v24 = vsub.f32 1.0, %v956_v45  ;;  %v3709_v43 = vpop.eup %2890  ;;  %vm3718_vm6 = vcmp.eq.f32.partialorder %v964_v48, 8.507059e+37  ;;  %vm976_vm7 = vweird.f32 %v2889_v37  ;;  %v668_v19 = vadd.f32 %v3368_v51, %v499_v34  ;;  %vm3741_vm10 = vmor %vm960_vm11, %vm961_vm3 }
  0xf1   : > { %v972_v6 = vsub.f32 1.0, %v971_v26  ;;  %v2893_v38 = vpop.eup %2892  ;;  %vm729_vm8 = vweird.f32 %v3362_v46  ;;  %v986_v2 = vmul.f32 %v3709_v43, %v3651_v18  ;;  %v807_v23 = vsel %vm3726_vm5, %v3585_v47, %v803_v61  ;;  %vm977_vm13 = vmor %vm975_vm12, %vm976_vm7 }
  0xf2   : > { %v958_v4 = vmul.f32 %v2887_v11, %v957_v24  ;;  %v712_v45 = vmul.f32 %v3411_v28, %v711_v9  ;;  %vm900_vm9 = vweird.f32 %v3381_v1  ;;  %v811_v26 = vor.u32 1.1754944e-38, %v810_v59  ;;  %vm3796_vm7 = vmor %vm729_vm8, %vm730_vm14 }
  0xf3   : > { %v973_v32 = vmul.f32 %v2889_v37, %v972_v6  ;;  %2894 = vtanh.f32 %v3609_v55  ;;  %v2609_v24 = vmul.f32 -1.442695, %v668_v19  ;;  %v3746_v34 = vadd.f32 %v1208_v30, %v1199_v25 }
  0xf4   : > { %v959_v20 = vadd.f32 %v2887_v11, %v958_v4  ;;  %vm980_vm5 = vcmp.eq.f32.partialorder %v979_v14, 8.507059e+37  ;;  %v2596_v9 = vmul.f32 -1.442695, %v3402_v21  ;;  %v812_v50 = vsel %vm3695_vm15, %v811_v26, %v807_v23 }
  0xf5   : > { %v974_v48 = vadd.f32 %v2889_v37, %v973_v32  ;;  %2896 = vpow2.f32 %v2609_v24  ;;  %vm714_vm11 = vweird.f32 %v3374_v60  ;;  %v5188_v30 = vand.u32 2147483647, %v3362_v46 }
  0xf6   : > { %v963_v47 = vsel %vm3741_vm10, %v2887_v11, %v959_v20  ;;  %v987_v11 = vsub.f32 1.0, %v986_v2  ;;  %v713_v61 = vadd.f32 %v3411_v28, %v712_v45  ;;  %vm715_vm12 = vweird.f32 %v3411_v28  ;;  %vm3810_vm10 = vmor %vm900_vm9, %vm901_vm4 }
  0xf7   : > { %v978_v59 = vsel %vm977_vm13, %v2889_v37, %v974_v48  ;;  %vm3759_vm3 = vcmp.eq.f32.partialorder %v5188_v30, 8.507059e+37  ;;  %v968_v3 = vsel %vm3718_vm6, %v967_v57, %v963_v47  ;;  %v5191_v21 = vand.u32 2147483647, %v3381_v1  ;;  %vm3788_vm6 = vmor %vm714_vm11, %vm715_vm12 }
  0xf8   : > { %v983_v16 = vsel %vm980_vm5, %v982_v8, %v978_v59  ;;  %v720_v6 = vand.u32 2147483648, %v3374_v60  ;;  %2898 = vpow2.f32 %v2596_v9  ;;  %v1062_v4 = vsub.f32 1.0, %v3575_v29  ;;  %v582_v59 = vpop.f32.mrf.mxu0 }
  0xf9   : > { %vm3769_vm15 = vcmp.eq.f32.partialorder %v5191_v21, 8.507059e+37  ;;  %v1107_v25 = vsub.f32 1.0, %v3649_v54  ;;  %v816_v57 = vsub.f32 1.0, %v3701_v40  ;;  %v3777_v14 = vor.u32 1.1754944e-38, %v996_v36  ;;  %v2895_v53 = vpop.eup %2894 }
  0xfa   : > { %v1209_v32 = vmul.f32 %v2893_v38, %v797_v13  ;;  %v1200_v44 = vmul.f32 0.0, %v968_v3  ;;  %v718_v19 = vand.u32 2147483647, %v3374_v60  ;;  %2900 = vtanh.f32 %v3409_v27  ;;  %v605_v3 = vpop.f32.mrf.mxu1 }
  0xfb   : > { %v1063_v8 = vmul.f32 %v3541_v35, %v1062_v4  ;;  %2902 = vtanh.f32 %v3746_v34  ;;  %v988_v2 = vmul.f32 %v3709_v43, %v987_v11  ;;  %v1201_v29 = vmul.f32 0.0, %v983_v16  ;;  %v2897_v40 = vpop.eup %2896  ;;  %v527_v16 = vpop.f32.mrf.mxu2 }
  0xfc   : > { %v1210_v20 = vmul.f32 %v2895_v53, %v812_v50  ;;  %v717_v36 = vsel %vm3788_vm6, %v3411_v28, %v713_v61  ;;  %v721_v38 = vor.u32 1.1754944e-38, %v720_v6  ;;  %v1071_v60 = vand.u32 2147483648, %v3493_v22  ;;  %v556_v6 = vpop.f32.mrf.mxu3 }
  0xfd   : > { %v656_v23 = vadd.f32 %v3391_v10, %v3423_v39  ;;  %vm990_vm14 = vweird.f32 %v3651_v18  ;;  %v3816_v45 = vadd.f32 %v3541_v35, %v1063_v8  ;;  %vm1065_vm8 = vweird.f32 %v3493_v22 }
  0xfe   : > { %vm1066_vm13 = vweird.f32 %v3541_v35  ;;  %v732_v28 = vsel %vm3796_vm7, %v3376_v62, %v3525_v52  ;;  %v2899_v39 = vpop.eup %2898  ;;  %v3824_v1 = vadd.f32 %v1209_v32, %v1200_v44  ;;  %v3826_v12 = vadd.f32 1.0, %v2897_v40 }
  0xff   : > { %vm719_vm4 = vcmp.eq.f32.partialorder %v718_v19, 8.507059e+37  ;;  %v903_v26 = vsel %vm3810_vm10, %v3428_v41, %v3563_v7  ;;  %v3832_v48 = vadd.f32 %v1210_v20, %v1201_v29  ;;  %v3834_v47 = vadd.f32 1.0, %v2899_v39  ;;  %vm3837_vm9 = vmor %vm1065_vm8, %vm1066_vm13  ;;  %v5203_v19 = vld [vmem:[#allocation6_spill] sm:$0xff] }
 0x100   : > { %v722_v24 = vsel %vm719_vm4, %v721_v38, %v717_v36  ;;  %v1069_v9 = vand.u32 2147483647, %v3493_v22  ;;  %v2901_v50 = vpop.eup %2900  ;;  %v3841_v52 = vor.u32 1.1754944e-38, %v1071_v60  ;;  %v817_v30 = vmul.f32 %v3672_v5, %v816_v57  ;;  %v5206_v36 = vld [vmem:[#allocation2_spill] sm:$0xff] }
 0x101   : > { %5200 = vst [vmem:[#allocation20_spill] sm:$0xff] %v3832_v48  ;;  %v3847_v41 = vsel %vm3759_vm3, %v3417_v33, %v732_v28  ;;  %2904 = vtanh.f32 %v656_v23  ;;  %v3849_v7 = vpop.eup %2902  ;;  %vm745_vm5 = vweird.f32 %v3379_v0  ;;  %v1068_v11 = vsel %vm3837_vm9, %v3541_v35, %v3816_v45  ;;  %v5209_v28 = vld [vmem:[#allocation17_spill] sm:$0xff] }
 0x102   : > { %2906 = vrcp.f32 %v3834_v47  ;;  %v908_v61 = vsel %vm3769_vm15, %v3518_v63, %v903_v26  ;;  %v1084_v33 = vand.u32 2147483647, %v3502_v42  ;;  %v891_v55 = vand.u32 2147483648, %v3834_v47 }
 0x103   : > { %2908 = vrcp.f32 %v3826_v12  ;;  %v583_v21 = vadd.f32 %v582_v59, %v3342_v15  ;;  %vm1081_vm11 = vweird.f32 %v3547_v58  ;;  %v1086_v4 = vand.u32 2147483648, %v3502_v42 }
 0x104   : > { %vm744_vm3 = vweird.f32 %v3364_v49  ;;  %vm916_vm12 = vweird.f32 %v3448_v56  ;;  %v3868_v37 = vmul.f32 %v2901_v50, %v722_v24  ;;  %vm820_vm15 = vweird.f32 %v3672_v5 }
 0x105   : > { %v989_v63 = vadd.f32 %v3709_v43, %v988_v2  ;;  %vm991_vm6 = vweird.f32 %v3709_v43  ;;  %v889_v57 = vand.u32 2147483647, %v3834_v47  ;;  %v662_v32 = vadd.f32 %v3391_v10, %v583_v21 }
 0x106   : > { %v818_v53 = vadd.f32 %v3672_v5, %v817_v30  ;;  %v825_v44 = vand.u32 2147483648, %v3593_v31  ;;  %vm1080_vm7 = vweird.f32 %v3502_v42  ;;  %vm915_vm10 = vweird.f32 %v5203_v19  ;;  %vm3889_vm4 = vmor %vm990_vm14, %vm991_vm6  ;;  %v5233_v30 = vld [vmem:[#allocation9_spill] sm:$0xff] }
 0x107   : > { %vm819_vm8 = vweird.f32 %v3593_v31  ;;  %v994_v8 = vand.u32 2147483647, %v3651_v18  ;;  %v528_v2 = vadd.f32 %v527_v16, %v3344_v17  ;;  %v557_v29 = vadd.f32 %v556_v6, %v3344_v17  ;;  %v2905_v20 = vpop.eup %2904 }
 0x108   : > { %vm885_vm13 = vweird.f32 %v3834_v47  ;;  %v892_v13 = vor.u32 1.1754944e-38, %v891_v55  ;;  %v823_v40 = vand.u32 2147483647, %v3593_v31  ;;  %v606_v38 = vadd.f32 %v605_v3, %v5206_v36  ;;  %v2907_v60 = vpop.eup %2906  ;;  %vm3896_vm2 = vmor %vm819_vm8, %vm820_vm15 }
 0x109   : > { %v993_v31 = vsel %vm3889_vm4, %v3709_v43, %v989_v63  ;;  %v669_v46 = vadd.f32 %v3368_v51, %v528_v2  ;;  %v670_v18 = vadd.f32 %v3368_v51, %v557_v29  ;;  %v1077_v39 = vsub.f32 1.0, %v5209_v28  ;;  %v3906_v26 = vpop.eup %2908  ;;  %v5218_v63 = vld [vmem:[#allocation4_spill] sm:$0xff]  ;;  %v5226_v28 = vld [vmem:[#allocation11_spill] sm:$0xff] }
 0x10a   : > { %v5210_v24 = vand.u32 2147483647, %v3364_v49  ;;  %v881_v59 = vmul.f32 %v2907_v60, %v3834_v47  ;;  %vm3915_vm15 = vcmp.eq.f32.partialorder %v889_v57, 8.507059e+37  ;;  %v822_v43 = vsel %vm3896_vm2, %v3672_v5, %v818_v53  ;;  %vm3936_vm2 = vmor %vm744_vm3, %vm745_vm5 }
 0x10b   : > { %v826_v3 = vor.u32 1.1754944e-38, %v825_v44  ;;  %2910 = vtanh.f32 %v662_v32  ;;  %v5215_v55 = vand.u32 2147483647, %v5203_v19  ;;  %vm995_vm8 = vcmp.eq.f32.partialorder %v994_v8, 8.507059e+37  ;;  %v608_v44 = vpop.f32.mrf.mxu1  ;;  %vm3951_vm5 = vmor %vm1080_vm7, %vm1081_vm11 }
 0x10c   : > { %vm3910_vm14 = vcmp.eq.f32.partialorder %v5210_v24, 8.507059e+37  ;;  %v2610_v16 = vmul.f32 -1.442695, %v669_v46  ;;  %v2611_v6 = vmul.f32 -1.442695, %v670_v18  ;;  %v645_v57 = vadd.f32 %v5218_v63, %v606_v38  ;;  %v5221_v38 = vld [vmem:[#allocation8_spill] sm:$0xff]  ;;  %vm3961_vm3 = vmor %vm915_vm10, %vm916_vm12 }
 0x10d   : > { %vm3924_vm6 = vcmp.eq.f32.partialorder %v5215_v55, 8.507059e+37  ;;  %v882_v2 = vsub.f32 1.0, %v881_v59  ;;  %vm886_vm4 = vweird.f32 %v2907_v60  ;;  %v998_v29 = vsel %vm995_vm8, %v3777_v14, %v993_v31  ;;  %v5227_v59 = vld [vmem:[#allocation16_spill] sm:$0xff] }
 0x10e   : > { %v1078_v27 = vmul.f32 %v3547_v58, %v1077_v39  ;;  %2912 = vpow2.f32 %v2610_v16  ;;  %v2595_v5 = vmul.f32 -1.442695, %v645_v57  ;;  %v1196_v32 = vmul.f32 0.0, %v908_v61  ;;  %vm887_vm11 = vmor %vm885_vm13, %vm886_vm4 }
 0x10f   : > { %v1205_v53 = vmul.f32 %v2905_v20, %v3847_v41  ;;  %v883_v36 = vmul.f32 %v2907_v60, %v882_v2  ;;  %2914 = vpow2.f32 %v2611_v6  ;;  %v657_v23 = vadd.f32 %v3391_v10, %v5221_v38  ;;  %v5231_v6 = vld [vmem:[#allocation7_spill] sm:$0xff] }
 0x110   : > { %v1079_v14 = vadd.f32 %v3547_v58, %v1078_v27  ;;  %v3945_v61 = vmul.f32 %v3906_v26, %v3826_v12  ;;  %vm824_vm8 = vcmp.eq.f32.partialorder %v823_v40, 8.507059e+37  ;;  %2916 = vpow2.f32 %v2595_v5  ;;  %v5234_v27 = vld [vmem:[#allocation14_spill] sm:$0xff] }
 0x111   : > { %v3955_v41 = vadd.f32 %v1205_v53, %v1196_v32  ;;  %v2911_v20 = vpop.eup %2910  ;;  %v884_v40 = vadd.f32 %v2907_v60, %v883_v36  ;;  %v827_v46 = vsel %vm824_vm8, %v826_v3, %v822_v43  ;;  %v747_v39 = vsel %vm3936_vm2, %v3379_v0, %v5226_v28  ;;  %v5228_v0 = vld [vmem:[#allocation18_spill] sm:$0xff]  ;;  %v585_v3 = vpop.f32.mrf.mxu0 }
 0x112   : > { %v1083_v18 = vsel %vm3951_vm5, %v3547_v58, %v1079_v14  ;;  %v3975_v19 = vmul.f32 0.0, %v998_v29  ;;  %v1087_v24 = vor.u32 1.1754944e-38, %v1086_v4  ;;  %v918_v58 = vsel %vm3961_vm3, %v3448_v56, %v5227_v59  ;;  %v5232_v29 = vld [vmem:[#allocation12_spill] sm:$0xff]  ;;  %v5238_v59 = vld [vmem:[#allocation13_spill] sm:$0xff] }
 0x113   : > { %2918 = vtanh.f32 %v3955_v41  ;;  %v888_v43 = vsel %vm887_vm11, %v2907_v60, %v884_v40  ;;  %vm1085_vm12 = vcmp.eq.f32.partialorder %v1084_v33, 8.507059e+37  ;;  %v1092_v47 = vsub.f32 1.0, %v5228_v0  ;;  %v4010_v32 = vpop.f32.mrf.mxu1  ;;  %v5236_v40 = vld [vmem:[#allocation19_spill] sm:$0xff] }
 0x114   : > { %2920 = vtanh.f32 %v657_v23  ;;  %v2913_v55 = vpop.eup %2912  ;;  %v893_v4 = vsel %vm3915_vm15, %v892_v13, %v888_v43  ;;  %vm3991_vm7 = vcmp.eq.f32.partialorder %v1069_v9, 8.507059e+37  ;;  %v1211_v56 = vmul.f32 %v2911_v20, %v827_v46  ;;  %v5235_v23 = vld [vmem:[#allocation3_spill] sm:$0xff] }
 0x115   : > { %v1088_v60 = vsel %vm1085_vm12, %v1087_v24, %v1083_v18  ;;  %v752_v42 = vsel %vm3910_vm14, %v5231_v6, %v747_v39  ;;  %v2915_v33 = vpop.eup %2914  ;;  %v1195_v57 = vmul.f32 0.0, %v893_v4  ;;  %v3998_v2 = vadd.f32 1.0, %v2913_v55  ;;  %v5237_v39 = vld [vmem:[#allocation5_spill] sm:$0xff] }
 0x116   : > { %v923_v13 = vsel %vm3924_vm6, %v5232_v29, %v918_v58  ;;  %vm1095_vm10 = vweird.f32 %v5233_v30  ;;  %v2917_v22 = vpop.eup %2916  ;;  %v4005_v9 = vadd.f32 1.0, %v2915_v33  ;;  %v1093_v5 = vmul.f32 %v5234_v27, %v1092_v47  ;;  %v4044_v58 = vld [vmem:[%s5121_s2] sm:$0xff] }
 0x117   : > { %vm1096_vm13 = vweird.f32 %v5234_v27  ;;  %v586_v50 = vadd.f32 %v585_v3, %v3344_v17  ;;  %v4013_v53 = vadd.f32 %v3868_v37, %v1195_v57  ;;  %2922 = vrcp.f32 %v3998_v2 }
 0x118   : > { %v4016_v21 = vadd.f32 1.0, %v2917_v22  ;;  %v1099_v8 = vand.u32 2147483647, %v5233_v30  ;;  %2924 = vrcp.f32 %v4005_v9  ;;  %v1197_v14 = vmul.f32 0.0, %v923_v13  ;;  %vm4069_vm4 = vmor %vm1095_vm10, %vm1096_vm13 }
 0x119   : > { %v2919_v36 = vpop.eup %2918  ;;  %v671_v38 = vadd.f32 %v3368_v51, %v586_v50  ;;  %v609_v49 = vadd.f32 %v608_v44, %v5235_v23  ;;  %2926 = vtanh.f32 %v4013_v53  ;;  %v1101_v37 = vand.u32 2147483648, %v5233_v30  ;;  %v5244_v30 = vld [vmem:[#allocation15_spill] sm:$0xff] }
 0x11a   : > { %v2921_v20 = vpop.eup %2920  ;;  %v1232_v31 = vmul.f32 %v2919_v36, %v1088_v60  ;;  %v1108_v46 = vmul.f32 %v5236_v40, %v1107_v25  ;;  %2928 = vrcp.f32 %v4016_v21  ;;  %v1094_v44 = vadd.f32 %v5234_v27, %v1093_v5 }
 0x11b   : > { %v1206_v18 = vmul.f32 %v2921_v20, %v752_v42  ;;  %v2612_v28 = vmul.f32 -1.442695, %v671_v38  ;;  %v654_v24 = vadd.f32 %v5237_v39, %v609_v49  ;;  %vm1110_vm14 = vweird.f32 %v5238_v59  ;;  %v614_v33 = vpop.f32.mrf.mxu1 }
 0x11c   : > { %1241 = vst [vmem:[%s4030_s23 + $0x8] sm:$0xff] %v1232_v31  ;;  %1358 = vmatpush.msra.mxu3 %v1232_v31  ;;  %v1109_v54 = vadd.f32 %v5236_v40, %v1108_v46  ;;  %vm1111_vm15 = vweird.f32 %v5236_v40  ;;  %v1114_v0 = vand.u32 2147483647, %v5238_v59  ;;  %v1116_v47 = vand.u32 2147483648, %v5238_v59 }
 0x11d   : > { %v4039_v25 = vadd.f32 %v1206_v18, %v1197_v14  ;;  %2681 = vmatmul.msk.f32.vlgmr.msra.gmra.mxu3 %vm273_vm0, %v4044_v58  ;;  %2930 = vpow2.f32 %v2612_v28  ;;  %vm4048_vm6 = vmor %vm1110_vm14, %vm1111_vm15  ;;  %v4054_v3 = vpop.eup %2922  ;;  %v1122_v55 = vsub.f32 1.0, %v3945_v61  ;;  %v1073_v4 = vsel %vm3991_vm7, %v3841_v52, %v1068_v11 }
 0x11e   : > { %v2604_v6 = vmul.f32 -1.442695, %v654_v24  ;;  %v1113_v62 = vsel %vm4048_vm6, %v5236_v40, %v1109_v54  ;;  %v4076_v61 = vpop.eup %2924  ;;  %v4079_v35 = vadd.f32 %v1211_v56, %v3975_v19  ;;  %v1098_v45 = vsel %vm4069_vm4, %v5234_v27, %v1094_v44 }
 0x11f   : > { %2932 = vtanh.f32 %v4039_v25  ;;  %v1117_v52 = vor.u32 1.1754944e-38, %v1116_v47  ;;  %v2927_v11 = vpop.eup %2926  ;;  %v1136_v16 = vmul.f32 %v4054_v3, %v3998_v2  ;;  %v1102_v42 = vor.u32 1.1754944e-38, %v1101_v37 }
 0x120   : > { %5243 = vst [vmem:[#allocation6_spill] sm:$0xff] %v4079_v35  ;;  %2934 = vpow2.f32 %v2604_v6  ;;  %vm1115_vm9 = vcmp.eq.f32.partialorder %v1114_v0, 8.507059e+37  ;;  %v4087_v57 = vpop.eup %2928  ;;  %v1231_v19 = vmul.f32 %v2927_v11, %v1073_v4  ;;  %vm1100_vm2 = vcmp.eq.f32.partialorder %v1099_v8, 8.507059e+37 }
 0x121   : > { %2936 = vtanh.f32 %v3824_v1  ;;  %v1118_v56 = vsel %vm1115_vm9, %v1117_v52, %v1113_v62  ;;  %v830_v29 = vmul.f32 %v4087_v57, %v4016_v21  ;;  %v1103_v13 = vsel %vm1100_vm2, %v1102_v42, %v1098_v45 }
 0x122   : > { %2938 = vtanh.f32 %v3832_v48  ;;  %v1234_v22 = vmul.f32 %v5244_v30, %v1118_v56  ;;  %1240 = vst [vmem:[%s4030_s23] sm:$0xff] %v1231_v19  ;;  %1329 = vmatpush.msra.mxu2 %v1231_v19  ;;  %v4098_v5 = vmul.f32 %v4076_v61, %v4005_v9  ;;  %v612_v50 = vadd.f32 %v4010_v32, %v3342_v15  ;;  %v4114_v15 = vld [vmem:[%s5121_s2 + $0x8] sm:$0xff]  ;;  %v4172_v19 = vld [vmem:[%s5121_s2 + $0x10] sm:$0xff]  ;;  %v2651_v56 = vld [vmem:[%s3162_s24 + $0x320] sm:$0xff] }
 0x123   : > { %v2931_v27 = vpop.eup %2930  ;;  %2940 = vtanh.f32 %v4079_v35  ;;  %v615_v8 = vadd.f32 %v614_v33, %v3344_v17  ;;  %2677 = vmatmul.msk.f32.vlgmr.msra.gmra.mxu2 %vm273_vm0, %v4044_v58  ;;  %v1137_v36 = vsub.f32 1.0, %v1136_v16  ;;  %v831_v14 = vsub.f32 1.0, %v830_v29 }
 0x124   : > { %v4105_v38 = vadd.f32 1.0, %v2931_v27  ;;  %1243 = vst [vmem:[%s4030_s23 + $0x18] sm:$0xff] %v1234_v22  ;;  %1416 = vmatpush.msrb.mxu1 %v1234_v22  ;;  %v1123_v23 = vmul.f32 %v3906_v26, %v1122_v55  ;;  %vm1126_vm8 = vweird.f32 %v3906_v26  ;;  %v1129_v32 = vand.u32 2147483647, %v3826_v12 }
 0x125   : > { %v2933_v49 = vpop.eup %2932  ;;  %2689 = vmatmul.msk.f32.vlgmr.msrb.gmra.mxu1 %vm273_vm0, %v4044_v58  ;;  %2682 = vmatmul.msk.f32.gmra.mxu3 %vm273_vm0, %v4114_v15  ;;  %v672_v17 = vadd.f32 %v3368_v51, %v615_v8  ;;  %v1131_v20 = vand.u32 2147483648, %v3826_v12  ;;  %vm834_vm5 = vweird.f32 %v4016_v21  ;;  %vm1125_vm3 = vweird.f32 %v3826_v12 }
 0x126   : > { %v2935_v31 = vpop.eup %2934  ;;  %v1233_v37 = vmul.f32 %v2933_v49, %v1103_v13  ;;  %2942 = vrcp.f32 %v4105_v38  ;;  %v1124_v40 = vadd.f32 %v3906_v26, %v1123_v23  ;;  %v663_v18 = vadd.f32 %v3391_v10, %v612_v50  ;;  %vm4130_vm11 = vmor %vm1125_vm3, %vm1126_vm8 }
 0x127   : > { %v2937_v46 = vpop.eup %2936  ;;  %v4126_v44 = vadd.f32 1.0, %v2935_v31  ;;  %v832_v28 = vmul.f32 %v4087_v57, %v831_v14  ;;  %v2613_v24 = vmul.f32 -1.442695, %v672_v17  ;;  %v838_v43 = vand.u32 2147483647, %v4016_v21 }
 0x128   : > { %v4134_v59 = vpop.eup %2938  ;;  %1242 = vst [vmem:[%s4030_s23 + $0x10] sm:$0xff] %v1233_v37  ;;  %1387 = vmatpush.msrb.mxu0 %v1233_v37  ;;  %v1128_v12 = vsel %vm4130_vm11, %v3906_v26, %v1124_v40  ;;  %v1132_v0 = vor.u32 1.1754944e-38, %v1131_v20  ;;  %v1138_v47 = vmul.f32 %v4054_v3, %v1137_v36  ;;  %v1152_v4 = vsub.f32 1.0, %v4098_v5 }
 0x129   : > { %v4142_v55 = vpop.eup %2940  ;;  %2685 = vmatmul.msk.f32.vlgmr.msrb.gmra.mxu0 %vm273_vm0, %v4044_v58  ;;  %2944 = vrcp.f32 %v4126_v44  ;;  %v840_v60 = vand.u32 2147483648, %v4016_v21  ;;  %vm1130_vm12 = vcmp.eq.f32.partialorder %v1129_v32, 8.507059e+37  ;;  %vm835_vm7 = vweird.f32 %v4087_v57 }
 0x12a   : > { %2946 = vpow2.f32 %v2613_v24  ;;  %v1133_v6 = vsel %vm1130_vm12, %v1132_v0, %v1128_v12  ;;  %v1139_v26 = vadd.f32 %v4054_v3, %v1138_v47  ;;  %v4152_v62 = vadd.f32 %v4087_v57, %v832_v28  ;;  %vm4192_vm4 = vmor %vm834_vm5, %vm835_vm7 }
 0x12b   : > { %2948 = vtanh.f32 %v663_v18  ;;  %v1235_v45 = vmul.f32 %v3849_v7, %v1133_v6  ;;  %vm1140_vm10 = vweird.f32 %v3998_v2  ;;  %2678 = vmatmul.msk.f32.gmra.mxu2 %vm273_vm0, %v4114_v15  ;;  %v1011_v11 = vand.u32 2147483648, %v4126_v44 }
 0x12c   : > { %v4156_v52 = vpop.eup %2942  ;;  %vm1141_vm13 = vweird.f32 %v4054_v3  ;;  %v1144_v16 = vand.u32 2147483647, %v3998_v2  ;;  %v1146_v42 = vand.u32 2147483648, %v3998_v2  ;;  %v1009_v7 = vand.u32 2147483647, %v4126_v44 }
 0x12d   : > { %v1166_v33 = vmul.f32 %v4156_v52, %v4105_v38  ;;  %2690 = vmatmul.msk.f32.gmra.mxu1 %vm273_vm0, %v4114_v15  ;;  %2683 = vmatmul.msk.f32.gmra.mxu3 %vm273_vm0, %v4172_v19  ;;  %1244 = vst [vmem:[%s4030_s23 + $0x20] sm:$0xff] %v1235_v45  ;;  %vm4177_vm14 = vmor %vm1140_vm10, %vm1141_vm13  ;;  %v1153_v2 = vmul.f32 %v4076_v61, %v1152_v4  ;;  %vm1156_vm15 = vweird.f32 %v4076_v61  ;;  %vm1155_vm6 = vweird.f32 %v4005_v9 }
 0x12e   : > { %1445 = vmatpush.msrb.mxu2 %v1235_v45  ;;  %v1143_v29 = vsel %vm4177_vm14, %v4054_v3, %v1139_v26  ;;  %v1147_v13 = vor.u32 1.1754944e-38, %v1146_v42  ;;  %v1159_v30 = vand.u32 2147483647, %v4005_v9  ;;  %vm1145_vm9 = vcmp.eq.f32.partialorder %v1144_v16, 8.507059e+37  ;;  %vm4205_vm2 = vmor %vm1155_vm6, %vm1156_vm15  ;;  %v2659_v42 = vld [vmem:[%s3162_s24 + $0x360] sm:$0xff] }
 0x12f   : > { %v2945_v22 = vpop.eup %2944  ;;  %v1167_v27 = vsub.f32 1.0, %v1166_v33  ;;  %v1154_v50 = vadd.f32 %v4076_v61, %v1153_v2  ;;  %v1161_v3 = vand.u32 2147483648, %v4005_v9  ;;  %v837_v14 = vsel %vm4192_vm4, %v4087_v57, %v4152_v62  ;;  %v2660_v33 = vld [vmem:[%s3162_s24 + $0x368] sm:$0xff] }
 0x130   : > { %v2947_v8 = vpop.eup %2946  ;;  %v1001_v36 = vmul.f32 %v2945_v22, %v4126_v44  ;;  %v1148_v23 = vsel %vm1145_vm9, %v1147_v13, %v1143_v29  ;;  %vm1160_vm8 = vcmp.eq.f32.partialorder %v1159_v30, 8.507059e+37  ;;  %vm1171_vm5 = vweird.f32 %v4156_v52  ;;  %v2641_v13 = vld [vmem:[%s3162_s24 + $0x2d0] sm:$0xff] }
 0x131   : > { %v2949_v17 = vpop.eup %2948  ;;  %2686 = vmatmul.msk.f32.gmra.mxu0 %vm273_vm0, %v4114_v15  ;;  %v4211_v9 = vadd.f32 1.0, %v2947_v8  ;;  %v1236_v32 = vmul.f32 %v2937_v46, %v1148_v23  ;;  %v1158_v20 = vsel %vm4205_vm2, %v4076_v61, %v1154_v50  ;;  %v1162_v57 = vor.u32 1.1754944e-38, %v1161_v3  ;;  %v2670_v50 = vld [vmem:[%s3162_s24 + $0x3b8] sm:$0x3]  ;;  %v2632_v3 = vld [vmem:[%s3162_s24 + $0x288] sm:$0xff] }
 0x132   : > { %v1002_v31 = vsub.f32 1.0, %v1001_v36  ;;  %v1168_v37 = vmul.f32 %v4156_v52, %v1167_v27  ;;  %v1174_v40 = vand.u32 2147483647, %v4105_v38  ;;  %vm1170_vm3 = vweird.f32 %v4105_v38  ;;  %v2642_v27 = vld [vmem:[%s3162_s24 + $0x2d8] sm:$0xff]  ;;  %v2633_v36 = vld [vmem:[%s3162_s24 + $0x290] sm:$0xff] }
 0x133   : > { %2950 = vrcp.f32 %v4211_v9  ;;  %1245 = vst [vmem:[%s4030_s23 + $0x28] sm:$0xff] %v1236_v32  ;;  %1474 = vmatpush.msrb.mxu3 %v1236_v32  ;;  %v1163_v18 = vsel %vm1160_vm8, %v1162_v57, %v1158_v20  ;;  %v1176_v46 = vand.u32 2147483648, %v4105_v38  ;;  %2679 = vmatmul.msk.f32.gmra.mxu2 %vm273_vm0, %v4172_v19  ;;  %vm1006_vm11 = vweird.f32 %v2945_v22  ;;  %v4236_v38 = vld [vmem:[%s5121_s2 + $0x18] sm:$0xff]  ;;  %vm1172_vm7 = vmor %vm1170_vm3, %vm1171_vm5  ;;  %v2624_v32 = vld [vmem:[%s3162_s24 + $0x248] sm:$0xff] }
 0x134   : > { %v1003_v28 = vmul.f32 %v2945_v22, %v1002_v31  ;;  %v1237_v61 = vmul.f32 %v4134_v59, %v1163_v18  ;;  %v1169_v24 = vadd.f32 %v4156_v52, %v1168_v37  ;;  %vm839_vm12 = vcmp.eq.f32.partialorder %v838_v43, 8.507059e+37  ;;  %v2652_v20 = vld [vmem:[%s3162_s24 + $0x328] sm:$0xff]  ;;  %v2614_v57 = vld [vmem:[%s3162_s24 + $0x1f8] sm:$0xff]  ;;  %v2615_v31 = vld [vmem:[%s3162_s24 + $0x200] sm:$0xff] }
 0x135   : > { %v841_v54 = vor.u32 1.1754944e-38, %v840_v60  ;;  %2691 = vmatmul.msk.f32.gmra.mxu1 %vm273_vm0, %v4172_v19  ;;  %2684 = vmatmul.msk.f32.gmra.mxu3 %vm273_vm0, %v4236_v38  ;;  %v1177_v59 = vor.u32 1.1754944e-38, %v1176_v46  ;;  %vm1005_vm10 = vweird.f32 %v4126_v44  ;;  %vm1175_vm13 = vcmp.eq.f32.partialorder %v1174_v40, 8.507059e+37  ;;  %v2668_v44 = vld [vmem:[%s3162_s24 + $0x3a8] sm:$0x3]  ;;  %v2643_v37 = vld [vmem:[%s3162_s24 + $0x2e0] sm:$0xff] }
 0x136   : > { %v1004_v43 = vadd.f32 %v2945_v22, %v1003_v28  ;;  %1246 = vst [vmem:[%s4030_s23 + $0x30] sm:$0xff] %v1237_v61  ;;  %1503 = vmatpush.msra.mxu0 %v1237_v61  ;;  %v1173_v21 = vsel %vm1172_vm7, %v4156_v52, %v1169_v24  ;;  %v1012_v12 = vor.u32 1.1754944e-38, %v1011_v11  ;;  %vm1007_vm14 = vmor %vm1005_vm10, %vm1006_vm11  ;;  %vm1010_vm15 = vcmp.eq.f32.partialorder %v1009_v7, 8.507059e+37  ;;  %2713 = vmatpush.msk.msra.mxu3 %vm328_vm1, %v2668_v44  ;;  %v2650_v7 = vld [vmem:[%s3162_s24 + $0x318] sm:$0xff]  ;;  %v2625_v18 = vld [vmem:[%s3162_s24 + $0x250] sm:$0xff] }
 0x137   : > { %v842_v0 = vsel %vm839_vm12, %v841_v54, %v837_v14  ;;  %v1178_v47 = vsel %vm1175_vm13, %v1177_v59, %v1173_v21  ;;  %v1189_v29 = vand.u32 2147483647, %v4211_v9  ;;  %v1191_v30 = vand.u32 2147483648, %v4211_v9  ;;  %v2661_v14 = vld [vmem:[%s3162_s24 + $0x370] sm:$0xff]  ;;  %v2634_v40 = vld [vmem:[%s3162_s24 + $0x298] sm:$0xff]  ;;  %v2616_v46 = vld [vmem:[%s3162_s24 + $0x208] sm:$0xff] }
 0x138   : > { %v1008_v4 = vsel %vm1007_vm14, %v2945_v22, %v1004_v43  ;;  %v1238_v60 = vmul.f32 %v4142_v55, %v1178_v47  ;;  %v1212_v45 = vmul.f32 %v2949_v17, %v842_v0  ;;  %v2669_v55 = vld [vmem:[%s3162_s24 + $0x3b0] sm:$0x3]  ;;  %1612 = vmatpush.msra.mxu3 %v2659_v42  ;;  %vm1185_vm4 = vweird.f32 %v4211_v9  ;;  %v2671_v28 = vld [vmem:[%s3162_s24 + $0x3c0] sm:$0x3]  ;;  %v2662_v61 = vld [vmem:[%s3162_s24 + $0x378] sm:$0xff] }
 0x139   : > { %v2951_v6 = vpop.eup %2950  ;;  %v1013_v26 = vsel %vm1010_vm15, %v1012_v12, %v1008_v4  ;;  %2687 = vmatmul.msk.f32.gmra.mxu0 %vm273_vm0, %v4172_v19  ;;  %v1192_v5 = vor.u32 1.1754944e-38, %v1191_v30  ;;  %vm1190_vm2 = vcmp.eq.f32.partialorder %v1189_v29, 8.507059e+37  ;;  %vm5145_vm8 = vcmask 72704   ;;  %v2653_v24 = vld [vmem:[%s3162_s24 + $0x330] sm:$0xff]  ;;  %v2644_v54 = vld [vmem:[%s3162_s24 + $0x2e8] sm:$0xff]  ;;  %v4333_v21 = vld [vmem:[%s5120_s1] sm:$0xff] }
 0x13a   : > { %v1203_v62 = vmul.f32 0.0, %v1013_v26  ;;  %v1181_v52 = vmul.f32 %v2951_v6, %v4211_v9  ;;  %1247 = vst [vmem:[%s4030_s23 + $0x38] sm:$0xff] %v1238_v60  ;;  %1532 = vmatpush.msra.mxu1 %v1238_v60  ;;  %2718 = vmatpush.msk.msrb.mxu0 %vm328_vm1, %v2669_v55  ;;  %vm1186_vm6 = vweird.f32 %v2951_v6  ;;  %v2623_v9 = vld [vmem:[%s3162_s24 + $0x240] sm:$0xff]  ;;  %v2672_v59 = vld [vmem:[%s3162_s24 + $0x3c8] sm:$0x3]  ;;  %vm5254_vm5 = vcmask 408576  }
 0x13b   : > { %2680 = vmatmul.msk.f32.gmra.mxu2 %vm273_vm0, %v4236_v38  ;;  %1613 = vmatpush.msra.mxu3 %v2650_v7  ;;  %vm1187_vm9 = vmor %vm1185_vm4, %vm1186_vm6  ;;  %v2673_v43 = vld [vmem:[%s3162_s24 + $0x3d0] sm:$0x3]  ;;  %v2635_v12 = vld [vmem:[%s3162_s24 + $0x2a0] sm:$0xff] }
 0x13c   : > { %v4255_v11 = vadd.f32 %v1212_v45, %v1203_v62  ;;  %v1182_v16 = vsub.f32 1.0, %v1181_v52  ;;  %1641 = vmatpush.msrb.mxu0 %v2660_v33  ;;  %2723 = vmatpush.msk.msrb.mxu1 %vm328_vm1, %v2670_v50  ;;  %v2663_v0 = vld [vmem:[%s3162_s24 + $0x380] sm:$0xff]  ;;  %v2664_v47 = vld [vmem:[%s3162_s24 + $0x388] sm:$0xff]  ;;  %v2626_v4 = vld [vmem:[%s3162_s24 + $0x258] sm:$0xff] }
 0x13d   : > { %2692 = vmatmul.msk.f32.gmra.mxu1 %vm273_vm0, %v4236_v38  ;;  %2697 = vmatmul.msk.f32.vlgmr.msrb.gmra.mxu3 %vm273_vm0, %v4044_v58  ;;  %v2654_v60 = vld [vmem:[%s3162_s24 + $0x338] sm:$0xff]  ;;  %v2617_v26 = vld [vmem:[%s3162_s24 + $0x210] sm:$0xff]  ;;  %vm5255_vm3 = vmmov %vm5254_vm5 }
 0x13e   : > { %5253 = vst [vmem:[#allocation2_spill] sm:$0xff] %v4255_v11  ;;  %2952 = vtanh.f32 %v4255_v11  ;;  %v1183_v2 = vmul.f32 %v2951_v6, %v1182_v16  ;;  %1642 = vmatpush.msrb.mxu0 %v2651_v56  ;;  %1614 = vmatpush.msra.mxu3 %v2641_v13  ;;  %v2645_v62 = vld [vmem:[%s3162_s24 + $0x2f0] sm:$0xff]  ;;  %v2646_v45 = vld [vmem:[%s3162_s24 + $0x2f8] sm:$0xff]  ;;  %v4358_v44 = vld [vmem:[%s5120_s1 + $0x8] sm:$0xff] }
 0x13f   : > { %1670 = vmatpush.msrb.mxu1 %v2661_v14  ;;  %v2674_v52 = vld [vmem:[%s3162_s24 + $0x3d8] sm:$0x3]  ;;  %vm5256_vm11 = vmmov %vm5255_vm3  ;;  %v2636_v55 = vld [vmem:[%s3162_s24 + $0x2a8] sm:$0xff] }
 0x140   : > { %v1184_v22 = vadd.f32 %v2951_v6, %v1183_v2  ;;  %1643 = vmatpush.msrb.mxu0 %v2642_v27  ;;  %1615 = vmatpush.msra.mxu3 %v2632_v3  ;;  %v2637_v16 = vld [vmem:[%s3162_s24 + $0x2b0] sm:$0xff]  ;;  %v2627_v42 = vld [vmem:[%s3162_s24 + $0x260] sm:$0xff]  ;;  %v2656_v33 = vld [vmem:[%s3162_s24 + $0x348] sm:$0xff] }
 0x141   : > { %2688 = vmatmul.msk.f32.gmra.mxu0 %vm273_vm0, %v4236_v38  ;;  %1671 = vmatpush.msrb.mxu1 %v2652_v20  ;;  %vm5257_vm12 = vmmov %vm5255_vm3  ;;  %v2628_v7 = vld [vmem:[%s3162_s24 + $0x268] sm:$0xff]  ;;  %v2618_v56 = vld [vmem:[%s3162_s24 + $0x218] sm:$0xff] }
 0x142   : > { %v1188_v8 = vsel %vm1187_vm9, %v2951_v6, %v1184_v22  ;;  %1644 = vmatpush.msrb.mxu0 %v2633_v36  ;;  %1616 = vmatpush.msra.mxu3 %v2623_v9  ;;  %v2655_v6 = vld [vmem:[%s3162_s24 + $0x340] sm:$0xff]  ;;  %vm5258_vm7 = vmmov %vm5255_vm3  ;;  %v4381_v13 = vld [vmem:[%s5120_s1 + $0x10] sm:$0xff] }
 0x143   : > { %2693 = vmatmul.msk.f32.vlgmr.msrb.gmra.mxu2 %vm273_vm0, %v4044_v58  ;;  %v1193_v49 = vsel %vm1190_vm2, %v1192_v5, %v1188_v8  ;;  %1672 = vmatpush.msrb.mxu1 %v2643_v37  ;;  %v2619_v2 = vld [vmem:[%s3162_s24 + $0x220] sm:$0xff]  ;;  %vm5259_vm10 = vmmov %vm5255_vm3  ;;  %v2638_v30 = vld [vmem:[%s3162_s24 + $0x2b8] sm:$0xff] }
 0x144   : > { %v2953_v23 = vpop.eup %2952  ;;  %1645 = vmatpush.msrb.mxu0 %v2624_v32  ;;  %1617 = vmatpush.msra.mxu3 %v2614_v57  ;;  %v2647_v29 = vld [vmem:[%s3162_s24 + $0x300] sm:$0xff]  ;;  %vm5260_vm13 = vmmov %vm5255_vm3  ;;  %v2620_v22 = vld [vmem:[%s3162_s24 + $0x228] sm:$0xff] }
 0x145   : > { %2705 = vmatmul.msk.f32.vlgmr.msra.gmra.mxu1 %vm273_vm0, %v4044_v58  ;;  %2698 = vmatmul.msk.f32.gmra.mxu3 %vm273_vm0, %v4114_v15  ;;  %v1239_v17 = vmul.f32 %v2953_v23, %v1193_v49  ;;  %v2675_v27 = vld [vmem:[%s3162_s24 + $0x3e0] sm:$0x3]  ;;  %vm5261_vm14 = vmmov %vm5255_vm3  ;;  %v4398_v5 = vld [vmem:[%s5120_s1 + $0x18] sm:$0xff] }
 0x146   : > { %1646 = vmatpush.msrb.mxu0 %v2615_v31  ;;  %1673 = vmatpush.msrb.mxu1 %v2634_v40  ;;  %vm5262_vm15 = vmmov %vm5255_vm3  ;;  %v2666_v50 = vld [vmem:[%s3162_s24 + $0x398] sm:$0xff]  ;;  %v2648_v3 = vld [vmem:[%s3162_s24 + $0x308] sm:$0xff] }
 0x147   : > { %1249 = vst.msk [vmem:[%s4030_s23 + $0x40] sm:$0xff] %vm5145_vm8, %v1239_v17  ;;  %1561 = vmatpush.msra.mxu2 %v1239_v17  ;;  %2733 = vmatpush.msk.msrb.mxu3 %vm328_vm1, %v2672_v59  ;;  %vm5263_vm6 = vmmov %vm5255_vm3  ;;  %v2676_v8 = vld [vmem:[%s3162_s24 + $0x3e8] sm:$0x3]  ;;  %v2639_v36 = vld [vmem:[%s3162_s24 + $0x2c0] sm:$0xff] }
 0x148   : > { %1674 = vmatpush.msrb.mxu1 %v2625_v18  ;;  %vm5264_vm4 = vmmov %vm5255_vm3  ;;  %v2667_v14 = vld [vmem:[%s3162_s24 + $0x3a0] sm:$0xff]  ;;  %v2630_v23 = vld [vmem:[%s3162_s24 + $0x278] sm:$0xff] }
 0x149   : > { %2701 = vmatmul.msk.f32.vlgmr.msra.gmra.mxu0 %vm273_vm0, %v4044_v58  ;;  %2728 = vmatpush.msk.msrb.mxu2 %vm328_vm1, %v2671_v28  ;;  %vm5265_vm9 = vmmov %vm5255_vm3  ;;  %v2658_v49 = vld [vmem:[%s3162_s24 + $0x358] sm:$0xff]  ;;  %v2621_v17 = vld [vmem:[%s3162_s24 + $0x230] sm:$0xff] }
 0x14a   : > { %1675 = vmatpush.msrb.mxu1 %v2616_v46  ;;  %2738 = vmatpush.msk.msra.mxu0 %vm328_vm1, %v2673_v43  ;;  %v2640_v9 = vld [vmem:[%s3162_s24 + $0x2c8] sm:$0xff]  ;;  %v2631_v32 = vld [vmem:[%s3162_s24 + $0x280] sm:$0xff]  ;;  %v2622_v20 = vld [vmem:[%s3162_s24 + $0x238] sm:$0xff] }
 0x14b   : > { %2694 = vmatmul.msk.f32.gmra.mxu2 %vm273_vm0, %v4114_v15  ;;  %1728 = vmatpush.msrb.mxu3 %v2663_v0 }
 0x14c   : > { %1699 = vmatpush.msrb.mxu2 %v2662_v61  ;;  %1757 = vmatpush.msra.mxu0 %v2664_v47 }
 0x14d   : > { %2706 = vmatmul.msk.f32.gmra.mxu1 %vm273_vm0, %v4114_v15  ;;  %2699 = vmatmul.msk.f32.gmra.mxu3 %vm273_vm0, %v4172_v19 }
 0x14e   : > { %1700 = vmatpush.msrb.mxu2 %v2653_v24  ;;  %1729 = vmatpush.msrb.mxu3 %v2654_v60 }
 0x14f   : > { %1758 = vmatpush.msra.mxu0 %v2655_v6  ;;  %2743 = vmatpush.msk.msra.mxu1 %vm328_vm1, %v2674_v52 }
 0x150   : > { %1701 = vmatpush.msrb.mxu2 %v2644_v54  ;;  %1730 = vmatpush.msrb.mxu3 %v2645_v62 }
 0x151   : > { %2702 = vmatmul.msk.f32.gmra.mxu0 %vm273_vm0, %v4114_v15 }
 0x152   : > { %1702 = vmatpush.msrb.mxu2 %v2635_v12  ;;  %1759 = vmatpush.msra.mxu0 %v2646_v45 }
 0x153   : > { %2695 = vmatmul.msk.f32.gmra.mxu2 %vm273_vm0, %v4172_v19  ;;  %1731 = vmatpush.msrb.mxu3 %v2636_v55 }
 0x154   : > { %1703 = vmatpush.msrb.mxu2 %v2626_v4  ;;  %1760 = vmatpush.msra.mxu0 %v2637_v16 }
 0x155   : > { %2707 = vmatmul.msk.f32.gmra.mxu1 %vm273_vm0, %v4172_v19  ;;  %2700 = vmatmul.msk.f32.gmra.mxu3 %vm273_vm0, %v4236_v38 }
 0x156   : > { %1704 = vmatpush.msrb.mxu2 %v2617_v26  ;;  %1732 = vmatpush.msrb.mxu3 %v2627_v42 }
 0x157   : > { %1761 = vmatpush.msra.mxu0 %v2628_v7 }
 0x158   : > { %1733 = vmatpush.msrb.mxu3 %v2618_v56 }
 0x159   : > { %2703 = vmatmul.msk.f32.gmra.mxu0 %vm273_vm0, %v4172_v19 }
 0x15a   : > { %1762 = vmatpush.msra.mxu0 %v2619_v2 }
 0x15b   : > { %2696 = vmatmul.msk.f32.gmra.mxu2 %vm273_vm0, %v4236_v38 }
 0x15d   : > { %2708 = vmatmul.msk.f32.gmra.mxu1 %vm273_vm0, %v4236_v38  ;;  %2714 = vmatmul.msk.f32.vlgmr.msra.gmra.mxu3 %vm5254_vm5, %v4333_v21 }
 0x15e   : > { %2753 = vmatpush.msk.msra.mxu3 %vm328_vm1, %v2676_v8 }
 0x160   : > { %1844 = vmatpush.msra.mxu3 %v2667_v14 }
 0x161   : > { %2704 = vmatmul.msk.f32.gmra.mxu0 %vm273_vm0, %v4236_v38 }
 0x162   : > { %1845 = vmatpush.msra.mxu3 %v2658_v49 }
 0x163   : > { %2709 = vmatmul.msk.f32.vlgmr.msra.gmra.mxu2 %vm273_vm0, %v4044_v58  ;;  %v2665_v58 = vld [vmem:[%s3162_s24 + $0x390] sm:$0xff] }
 0x164   : > { %1786 = vmatpush.msra.mxu1 %v2665_v58  ;;  %2748 = vmatpush.msk.msra.mxu2 %vm328_vm1, %v2675_v27 }
 0x165   : > { %2724 = vmatmul.msk.f32.vlgmr.msrb.gmra.mxu1 %vm5255_vm3, %v4333_v21  ;;  %2715 = vmatmul.msk.f32.gmra.mxu3 %vm5256_vm11, %v4358_v44 }
 0x166   : > { %1787 = vmatpush.msra.mxu1 %v2656_v33  ;;  %1815 = vmatpush.msra.mxu2 %v2666_v50 }
 0x168   : > { %1788 = vmatpush.msra.mxu1 %v2647_v29 }
 0x169   : > { %2719 = vmatmul.msk.f32.vlgmr.msrb.gmra.mxu0 %vm5257_vm12, %v4333_v21 }
 0x16a   : > { %1789 = vmatpush.msra.mxu1 %v2638_v30 }
 0x16b   : > { %2710 = vmatmul.msk.f32.gmra.mxu2 %vm273_vm0, %v4114_v15  ;;  %v2629_v15 = vld [vmem:[%s3162_s24 + $0x270] sm:$0xff] }
 0x16c   : > { %1790 = vmatpush.msra.mxu1 %v2629_v15 }
 0x16d   : > { %2725 = vmatmul.msk.f32.gmra.mxu1 %vm5258_vm7, %v4358_v44  ;;  %2716 = vmatmul.msk.f32.gmra.mxu3 %vm5259_vm10, %v4381_v13 }
 0x16e   : > { %1791 = vmatpush.msra.mxu1 %v2620_v22 }
 0x171   : > { %2720 = vmatmul.msk.f32.gmra.mxu0 %vm5260_vm13, %v4358_v44 }
 0x173   : > { %2711 = vmatmul.msk.f32.gmra.mxu2 %vm273_vm0, %v4172_v19  ;;  %v2657_v19 = vld [vmem:[%s3162_s24 + $0x350] sm:$0xff] }
 0x174   : > { %1816 = vmatpush.msra.mxu2 %v2657_v19 }
 0x175   : > { %2726 = vmatmul.msk.f32.gmra.mxu1 %vm5261_vm14, %v4381_v13  ;;  %2717 = vmatmul.msk.f32.gmra.mxu3 %vm5262_vm15, %v4398_v5 }
 0x176   : > { %1817 = vmatpush.msra.mxu2 %v2648_v3 }
 0x178   : > { %1818 = vmatpush.msra.mxu2 %v2639_v36 }
 0x179   : > { %2721 = vmatmul.msk.f32.gmra.mxu0 %vm5263_vm6, %v4381_v13 }
 0x17a   : > { %1819 = vmatpush.msra.mxu2 %v2630_v23 }
 0x17b   : > { %2712 = vmatmul.msk.f32.gmra.mxu2 %vm273_vm0, %v4236_v38  ;;  %vm5266_vm0 = vmmov %vm5255_vm3  ;;  %v2649_v38 = vld [vmem:[%s3162_s24 + $0x310] sm:$0xff] }
 0x17c   : > { %vm5267_vm2 = vmmov %vm5266_vm0  ;;  %1846 = vmatpush.msra.mxu3 %v2649_v38  ;;  %1820 = vmatpush.msra.mxu2 %v2621_v17 }
 0x17d   : > { %2727 = vmatmul.msk.f32.gmra.mxu1 %vm5264_vm4, %v4398_v5  ;;  %2734 = vmatmul.msk.f32.vlgmr.msrb.gmra.mxu3 %vm5265_vm9, %v4333_v21  ;;  %vm5268_vm1 = vmmov %vm5266_vm0 }
 0x17e   : > { %vm5269_vm5 = vmmov %vm5266_vm0  ;;  %1847 = vmatpush.msra.mxu3 %v2640_v9 }
 0x17f   : > { %vm5270_vm3 = vmmov %vm5266_vm0 }
 0x180   : > { %1848 = vmatpush.msra.mxu3 %v2631_v32  ;;  %vm5271_vm11 = vmmov %vm5266_vm0 }
 0x181   : > { %2722 = vmatmul.msk.f32.gmra.mxu0 %vm5266_vm0, %v4398_v5  ;;  %vm5272_vm12 = vmmov %vm5266_vm0 }
 0x182   : > { %1849 = vmatpush.msra.mxu3 %v2622_v20  ;;  %vm5273_vm7 = vmmov %vm5266_vm0 }
 0x183   : > { %2729 = vmatmul.msk.f32.vlgmr.msrb.gmra.mxu2 %vm5267_vm2, %v4333_v21  ;;  %vm5274_vm10 = vmmov %vm5266_vm0 }
 0x184   : > { %vm5275_vm13 = vmmov %vm5266_vm0 }
 0x185   : > { %2744 = vmatmul.msk.f32.vlgmr.msra.gmra.mxu1 %vm5268_vm1, %v4333_v21  ;;  %2735 = vmatmul.msk.f32.gmra.mxu3 %vm5269_vm5, %v4358_v44  ;;  %vm5276_vm14 = vmmov %vm5266_vm0 }
 0x186   : > { %vm5277_vm15 = vmmov %vm5266_vm0 }
 0x187   : > { %vm5278_vm6 = vmmov %vm5266_vm0 }
 0x188   : > { %vm5279_vm4 = vmmov %vm5266_vm0 }
 0x189   : > { %2739 = vmatmul.msk.f32.vlgmr.msra.gmra.mxu0 %vm5270_vm3, %v4333_v21  ;;  %vm5280_vm9 = vmmov %vm5266_vm0 }
 0x18a   : > { %vm5281_vm2 = vmmov %vm5266_vm0 }
 0x18b   : > { %2730 = vmatmul.msk.f32.gmra.mxu2 %vm5271_vm11, %v4358_v44  ;;  %vm5282_vm1 = vmmov %vm5266_vm0 }
 0x18c   : > { %vm5283_vm5 = vmmov %vm5266_vm0 }
 0x18d   : > { %2745 = vmatmul.msk.f32.gmra.mxu1 %vm5272_vm12, %v4358_v44  ;;  %2736 = vmatmul.msk.f32.gmra.mxu3 %vm5273_vm7, %v4381_v13  ;;  %vm5284_vm3 = vmmov %vm5266_vm0 }
 0x18e   : > { %vm5285_vm11 = vmmov %vm5266_vm0 }
 0x18f   : > { %vm5286_vm12 = vmmov %vm5266_vm0 }
 0x190   : > { %vm5287_vm7 = vmmov %vm5266_vm0 }
 0x191   : > { %2740 = vmatmul.msk.f32.gmra.mxu0 %vm5274_vm10, %v4358_v44  ;;  %vm5288_vm10 = vmmov %vm5266_vm0 }
 0x193   : > { %2731 = vmatmul.msk.f32.gmra.mxu2 %vm5275_vm13, %v4381_v13 }
 0x195   : > { %2746 = vmatmul.msk.f32.gmra.mxu1 %vm5276_vm14, %v4381_v13  ;;  %2737 = vmatmul.msk.f32.gmra.mxu3 %vm5277_vm15, %v4398_v5 }
 0x199   : > { %2741 = vmatmul.msk.f32.gmra.mxu0 %vm5278_vm6, %v4381_v13 }
 0x19b   : > { %2732 = vmatmul.msk.f32.gmra.mxu2 %vm5279_vm4, %v4398_v5 }
 0x19d   : > { %2747 = vmatmul.msk.f32.gmra.mxu1 %vm5280_vm9, %v4398_v5  ;;  %2754 = vmatmul.msk.f32.vlgmr.msra.gmra.mxu3 %vm5266_vm0, %v4333_v21 }
 0x1a0   : > { %v1360_v57 = vpop.f32.mrf.mxu3 }
 0x1a1   : > { %2742 = vmatmul.msk.f32.gmra.mxu0 %vm5281_vm2, %v4398_v5 }
 0x1a2   : > { %v4459_v31 = vpop.f32.mrf.mxu1 }
 0x1a3   : > { %2749 = vmatmul.msk.f32.vlgmr.msra.gmra.mxu2 %vm5282_vm1, %v4333_v21 }
 0x1a5   : > { %2755 = vmatmul.msk.f32.gmra.mxu3 %vm5283_vm5, %v4358_v44 }
 0x1a6   : > { %v1389_v37 = vpop.f32.mrf.mxu0  ;;  %v1331_v40 = vpop.f32.mrf.mxu2 }
 0x1a8   : > { %v1363_v18 = vpop.f32.mrf.mxu3 }
 0x1aa   : > { %v4465_v46 = vpop.f32.mrf.mxu1 }
 0x1ab   : > { %2750 = vmatmul.msk.f32.gmra.mxu2 %vm5284_vm3, %v4358_v44 }
 0x1ad   : > { %2756 = vmatmul.msk.f32.gmra.mxu3 %vm5285_vm11, %v4381_v13 }
 0x1ae   : > { %v1392_v28 = vpop.f32.mrf.mxu0  ;;  %v1334_v61 = vpop.f32.mrf.mxu2 }
 0x1b0   : > { %v4471_v24 = vpop.f32.mrf.mxu3 }
 0x1b2   : > { %v4473_v54 = vpop.f32.mrf.mxu1 }
 0x1b3   : > { %2751 = vmatmul.msk.f32.gmra.mxu2 %vm5286_vm12, %v4381_v13 }
 0x1b5   : > { %2757 = vmatmul.msk.f32.gmra.mxu3 %vm5287_vm7, %v4398_v5 }
 0x1b6   : > { %v4479_v59 = vpop.f32.mrf.mxu0  ;;  %v1337_v43 = vpop.f32.mrf.mxu2 }
 0x1b8   : > { %v4481_v21 = vpop.f32.mrf.mxu3 }
 0x1ba   : > { %v4483_v12 = vpop.f32.mrf.mxu1 }
 0x1bb   : > { %2752 = vmatmul.msk.f32.gmra.mxu2 %vm5288_vm10, %v4398_v5 }
 0x1be   : > { %v4487_v0 = vpop.f32.mrf.mxu0  ;;  %v4489_v47 = vpop.f32.mrf.mxu2 }
 0x1c0   : > { %v4491_v4 = vpop.f32.mrf.mxu3 }
 0x1c2   : > { %v4493_v60 = vpop.f32.mrf.mxu1 }
 0x1c3   : > { %5289 = vst [vmem:[#allocation17_spill] sm:$0xff] %v4493_v60 }
 0x1c6   : > { %v4495_v6 = vpop.f32.mrf.mxu0  ;;  %v4497_v26 = vpop.f32.mrf.mxu2 }
 0x1c8   : > { %v4499_v62 = vpop.f32.mrf.mxu3 }
 0x1ca   : > { %v4501_v45 = vpop.f32.mrf.mxu1 }
 0x1cb   : > { %5290 = vst [vmem:[#allocation4_spill] sm:$0xff] %v4501_v45 }
 0x1ce   : > { %v4503_v52 = vpop.f32.mrf.mxu0  ;;  %v4505_v44 = vpop.f32.mrf.mxu2 }
 0x1d0   : > { %v4507_v55 = vpop.f32.mrf.mxu3 }
 0x1d2   : > { %v4509_v58 = vpop.f32.mrf.mxu1 }
 0x1d3   : > { %5291 = vst [vmem:[#allocation8_spill] sm:$0xff] %v4509_v58 }
 0x1d6   : > { %v4511_v16 = vpop.f32.mrf.mxu0  ;;  %v4513_v42 = vpop.f32.mrf.mxu2 }
 0x1d8   : > { %v4515_v33 = vpop.f32.mrf.mxu3 }
 0x1da   : > { %v4517_v7 = vpop.f32.mrf.mxu1 }
 0x1db   : > { %5292 = vst [vmem:[#allocation11_spill] sm:$0xff] %v4517_v7 }
 0x1de   : > { %v4519_v56 = vpop.f32.mrf.mxu0  ;;  %v4521_v2 = vpop.f32.mrf.mxu2 }
 0x1df   : > { %5293 = vst [vmem:[#allocation16_spill] sm:$0xff] %v4519_v56 }
 0x1e0   : > { %v1619_v29 = vpop.f32.mrf.mxu3 }
 0x1e1   : > { %v1620_v13 = vadd.f32 %v1619_v29, %v1331_v40 }
 0x1e2   : > { %v1677_v30 = vpop.f32.mrf.mxu1 }
 0x1e3   : > { %v1863_v15 = vadd.f32 %v1620_v13, %v5218_v63  ;;  %v1678_v22 = vadd.f32 %v1677_v30, %v1389_v37 }
 0x1e5   : > { %v2758_v27 = vmul.f32 -1.442695, %v1863_v15  ;;  %v1865_v5 = vadd.f32 %v1678_v22, %v5218_v63 }
 0x1e6   : > { %v1648_v50 = vpop.f32.mrf.mxu0  ;;  %v4525_v19 = vpop.f32.mrf.mxu2 }
 0x1e7   : > { %5294 = vst [vmem:[#allocation18_spill] sm:$0xff] %v4525_v19  ;;  %v1649_v3 = vadd.f32 %v1648_v50, %v1360_v57  ;;  %2954 = vpow2.f32 %v2758_v27  ;;  %v2760_v8 = vmul.f32 -1.442695, %v1865_v5 }
 0x1e8   : > { %v1622_v36 = vpop.f32.mrf.mxu3 }
 0x1e9   : > { %v1864_v14 = vadd.f32 %v1649_v3, %v5218_v63  ;;  %2956 = vpow2.f32 %v2760_v8  ;;  %v1623_v23 = vadd.f32 %v1622_v36, %v1334_v61 }
 0x1ea   : > { %v1680_v49 = vpop.f32.mrf.mxu1 }
 0x1eb   : > { %v2759_v38 = vmul.f32 -1.442695, %v1864_v14  ;;  %v1872_v17 = vadd.f32 %v1623_v23, %v5237_v39  ;;  %v1681_v9 = vadd.f32 %v1680_v49, %v1392_v28 }
 0x1ed   : > { %v2955_v32 = vpop.eup %2954  ;;  %2958 = vpow2.f32 %v2759_v38  ;;  %v2767_v20 = vmul.f32 -1.442695, %v1872_v17  ;;  %v1874_v37 = vadd.f32 %v1681_v9, %v5237_v39 }
 0x1ee   : > { %v4530_v40 = vadd.f32 1.0, %v2955_v32  ;;  %v1651_v57 = vpop.f32.mrf.mxu0  ;;  %v4532_v13 = vpop.f32.mrf.mxu2 }
 0x1ef   : > { %v2957_v29 = vpop.eup %2956  ;;  %5295 = vst [vmem:[#allocation7_spill] sm:$0xff] %v4532_v13  ;;  %v1652_v30 = vadd.f32 %v1651_v57, %v1363_v18  ;;  %2960 = vpow2.f32 %v2767_v20  ;;  %v2769_v15 = vmul.f32 -1.442695, %v1874_v37 }
 0x1f0   : > { %2962 = vrcp.f32 %v4530_v40  ;;  %v4535_v61 = vadd.f32 1.0, %v2957_v29  ;;  %v1625_v22 = vpop.f32.mrf.mxu3  ;;  %v1944_v3 = vand.u32 2147483647, %v4530_v40  ;;  %v1946_v8 = vand.u32 2147483648, %v4530_v40 }
 0x1f1   : > { %v1873_v28 = vadd.f32 %v1652_v30, %v5237_v39  ;;  %2964 = vpow2.f32 %v2769_v15  ;;  %v1626_v50 = vadd.f32 %v1625_v22, %v1337_v43  ;;  %vm1940_vm13 = vweird.f32 %v4530_v40 }
 0x1f2   : > { %2966 = vrcp.f32 %v4535_v61  ;;  %v1683_v18 = vpop.f32.mrf.mxu1  ;;  %v1974_v17 = vand.u32 2147483647, %v4535_v61  ;;  %vm4557_vm14 = vcmp.eq.f32.partialorder %v1944_v3, 8.507059e+37  ;;  %v1947_v30 = vor.u32 1.1754944e-38, %v1946_v8 }
 0x1f3   : > { %v2959_v27 = vpop.eup %2958  ;;  %v2768_v5 = vmul.f32 -1.442695, %v1873_v28  ;;  %v1684_v43 = vadd.f32 %v1683_v18, %v4479_v59  ;;  %v1881_v57 = vadd.f32 %v1626_v50, %v3391_v10  ;;  %vm1970_vm15 = vweird.f32 %v4535_v61 }
 0x1f4   : > { %v4541_v36 = vadd.f32 1.0, %v2959_v27  ;;  %v1976_v18 = vand.u32 2147483648, %v4535_v61  ;;  %vm4593_vm0 = vcmp.eq.f32.partialorder %v1974_v17, 8.507059e+37 }
 0x1f5   : > { %v2961_v14 = vpop.eup %2960  ;;  %2968 = vpow2.f32 %v2768_v5  ;;  %v1883_v8 = vadd.f32 %v1684_v43, %v3391_v10 }
 0x1f6   : > { %v4544_v23 = vpop.eup %2962  ;;  %2970 = vrcp.f32 %v4541_v36  ;;  %v4547_v49 = vadd.f32 1.0, %v2961_v14  ;;  %v1654_v38 = vpop.f32.mrf.mxu0  ;;  %v1961_v28 = vand.u32 2147483648, %v4541_v36  ;;  %v1959_v50 = vand.u32 2147483647, %v4541_v36 }
 0x1f7   : > { %v2965_v9 = vpop.eup %2964  ;;  %v1936_v32 = vmul.f32 %v4544_v23, %v4530_v40  ;;  %v4553_v20 = vpop.f32.mrf.mxu2  ;;  %v1655_v37 = vadd.f32 %v1654_v38, %v4471_v24  ;;  %vm1955_vm6 = vweird.f32 %v4541_v36  ;;  %vm1941_vm4 = vweird.f32 %v4544_v23 }
 0x1f8   : > { %5296 = vst [vmem:[#allocation12_spill] sm:$0xff] %v4553_v20  ;;  %v4561_v15 = vpop.eup %2966  ;;  %2972 = vrcp.f32 %v4547_v49  ;;  %v2117_v59 = vand.u32 2147483648, %v4547_v49  ;;  %v4565_v22 = vadd.f32 1.0, %v2965_v9  ;;  %v1962_v35 = vor.u32 1.1754944e-38, %v1961_v28  ;;  %vm1942_vm5 = vmor %vm1940_vm13, %vm1941_vm4 }
 0x1f9   : > { %v1937_v27 = vsub.f32 1.0, %v1936_v32  ;;  %v1966_v24 = vmul.f32 %v4561_v15, %v4535_v61  ;;  %v1882_v5 = vadd.f32 %v1655_v37, %v3391_v10  ;;  %v2115_v43 = vand.u32 2147483647, %v4547_v49 }
 0x1fa   : > { %2974 = vrcp.f32 %v4565_v22  ;;  %v2147_v3 = vand.u32 2147483648, %v4565_v22  ;;  %v4577_v9 = vor.u32 1.1754944e-38, %v2117_v59  ;;  %vm4588_vm9 = vcmp.eq.f32.partialorder %v1959_v50, 8.507059e+37  ;;  %v1686_v13 = vpop.f32.mrf.mxu1 }
 0x1fb   : > { %v2969_v14 = vpop.eup %2968  ;;  %v1967_v38 = vsub.f32 1.0, %v1966_v24  ;;  %v1938_v32 = vmul.f32 %v4544_v23, %v1937_v27  ;;  %2976 = vtanh.f32 %v1881_v57  ;;  %vm2111_vm2 = vweird.f32 %v4547_v49 }
 0x1fc   : > { %v2971_v37 = vpop.eup %2970  ;;  %v4582_v11 = vadd.f32 1.0, %v2969_v14  ;;  %v4586_v58 = vor.u32 1.1754944e-38, %v2147_v3  ;;  %2978 = vtanh.f32 %v1882_v5  ;;  %vm2141_vm3 = vweird.f32 %v4565_v22 }
 0x1fd   : > { %v1951_v20 = vmul.f32 %v2971_v37, %v4541_v36  ;;  %v1939_v27 = vadd.f32 %v4544_v23, %v1938_v32  ;;  %vm1956_vm1 = vweird.f32 %v2971_v37  ;;  %v1968_v28 = vmul.f32 %v4561_v15, %v1967_v38  ;;  %v1628_v38 = vpop.f32.mrf.mxu3 }
 0x1fe   : > { %v4597_v14 = vpop.eup %2972  ;;  %2980 = vrcp.f32 %v4582_v11  ;;  %v2132_v57 = vand.u32 2147483648, %v4582_v11  ;;  %v1657_v17 = vpop.f32.mrf.mxu0  ;;  %v2130_v3 = vand.u32 2147483647, %v4582_v11  ;;  %vm4619_vm12 = vcmp.eq.f32.partialorder %v2115_v43, 8.507059e+37  ;;  %vm1957_vm4 = vmor %vm1955_vm6, %vm1956_vm1 }
 0x1ff   : > { %v1952_v5 = vsub.f32 1.0, %v1951_v20  ;;  %v2107_v50 = vmul.f32 %v4597_v14, %v4547_v49  ;;  %v1943_v32 = vsel %vm1942_vm5, %v4544_v23, %v1939_v27  ;;  %v4612_v7 = vpop.f32.mrf.mxu2  ;;  %vm2112_vm11 = vweird.f32 %v4597_v14 }
 0x200   : > { %5303 = vst [vmem:[#allocation9_spill] sm:$0xff] %v4612_v7  ;;  %v2975_v48 = vpop.eup %2974  ;;  %v4614_v19 = vor.u32 1.1754944e-38, %v2132_v57  ;;  %v1948_v40 = vsel %vm4557_vm14, %v1947_v30, %v1943_v32  ;;  %v1969_v57 = vadd.f32 %v4561_v15, %v1968_v28  ;;  %vm1971_vm10 = vweird.f32 %v4561_v15  ;;  %vm2113_vm6 = vmor %vm2111_vm2, %vm2112_vm11 }
 0x201   : > { %v2108_v45 = vsub.f32 1.0, %v2107_v50  ;;  %v2137_v60 = vmul.f32 %v2975_v48, %v4565_v22  ;;  %vm2142_vm7 = vweird.f32 %v2975_v48  ;;  %v1953_v23 = vmul.f32 %v2971_v37, %v1952_v5  ;;  %v2977_v27 = vpop.eup %2976  ;;  %vm1972_vm14 = vmor %vm1970_vm15, %vm1971_vm10 }
 0x202   : > { %v1977_v7 = vor.u32 1.1754944e-38, %v1976_v18  ;;  %v2145_v29 = vand.u32 2147483647, %v4565_v22  ;;  %v2979_v30 = vpop.eup %2978  ;;  %vm2126_vm13 = vweird.f32 %v4582_v11  ;;  %v2430_v50 = vmul.f32 %v2977_v27, %v1948_v40 }
 0x203   : > { %v2109_v43 = vmul.f32 %v4597_v14, %v2108_v45  ;;  %v2138_v32 = vsub.f32 1.0, %v2137_v60  ;;  %v1954_v56 = vadd.f32 %v2971_v37, %v1953_v23  ;;  %v1973_v18 = vsel %vm1972_vm14, %v4561_v15, %v1969_v57 }
 0x204   : > { %v2981_v5 = vpop.eup %2980  ;;  %vm4635_vm5 = vcmp.eq.f32.partialorder %v2145_v29, 8.507059e+37  ;;  %2982 = vtanh.f32 %v1883_v8  ;;  %v1658_v45 = vadd.f32 %v1657_v17, %v4481_v21  ;;  %vm4641_vm15 = vcmp.eq.f32.partialorder %v2130_v3, 8.507059e+37 }
 0x205   : > { %v2122_v60 = vmul.f32 %v2981_v5, %v4582_v11  ;;  %vm2127_vm8 = vweird.f32 %v2981_v5  ;;  %v2139_v40 = vmul.f32 %v2975_v48, %v2138_v32  ;;  %v1958_v61 = vsel %vm1957_vm4, %v2971_v37, %v1954_v56 }
 0x206   : > { %v1963_v36 = vsel %vm4588_vm9, %v1962_v35, %v1958_v61  ;;  %v2110_v15 = vadd.f32 %v4597_v14, %v2109_v43  ;;  %v1978_v27 = vsel %vm4593_vm0, %v1977_v7, %v1973_v18  ;;  %v1891_v8 = vadd.f32 %v1658_v45, %v3368_v51  ;;  %v1764_v21 = vpop.f32.mrf.mxu0  ;;  %vm2143_vm9 = vmor %vm2141_vm3, %vm2142_vm7 }
 0x207   : > { %v2123_v17 = vsub.f32 1.0, %v2122_v60  ;;  %v2431_v56 = vmul.f32 %v2979_v30, %v1963_v36  ;;  %v2140_v37 = vadd.f32 %v2975_v48, %v2139_v40  ;;  %v1629_v3 = vadd.f32 %v1628_v38, %v4489_v47  ;;  %v1706_v59 = vpop.f32.mrf.mxu2  ;;  %vm2128_vm0 = vmor %vm2126_vm13, %vm2127_vm8 }
 0x208   : > { %v2114_v35 = vsel %vm2113_vm6, %v4597_v14, %v2110_v15  ;;  %v2777_v7 = vmul.f32 -1.442695, %v1891_v8  ;;  %v1687_v24 = vadd.f32 %v1686_v13, %v4487_v0  ;;  %v1707_v57 = vadd.f32 %v1706_v59, %v4459_v31  ;;  %v1735_v13 = vpop.f32.mrf.mxu3  ;;  %v1793_v31 = vpop.f32.mrf.mxu1 }
 0x209   : > { %v2124_v29 = vmul.f32 %v2981_v5, %v2123_v17  ;;  %v2119_v49 = vsel %vm4619_vm12, %v4577_v9, %v2114_v35  ;;  %v2144_v30 = vsel %vm2143_vm9, %v2975_v48, %v2140_v37  ;;  %v1890_v47 = vadd.f32 %v1629_v3, %v3368_v51 }
 0x20a   : > { %v2983_v38 = vpop.eup %2982  ;;  %v2421_v43 = vmul.f32 %v2119_v49, %v4013_v53  ;;  %v2149_v22 = vsel %vm4635_vm5, %v4586_v58, %v2144_v30  ;;  %2984 = vpow2.f32 %v2777_v7  ;;  %v1892_v0 = vadd.f32 %v1687_v24, %v3368_v51 }
 0x20b   : > { %v2125_v14 = vadd.f32 %v2981_v5, %v2124_v29  ;;  %v2423_v32 = vmul.f32 %v2149_v22, %v4039_v25  ;;  %v2432_v20 = vmul.f32 %v2983_v38, %v1978_v27  ;;  %v2776_v9 = vmul.f32 -1.442695, %v1890_v47 }
 0x20c   : > { %v2439_v48 = vadd.f32 %v2430_v50, %v2421_v43  ;;  %v2778_v53 = vmul.f32 -1.442695, %v1892_v0  ;;  %v1866_v18 = vadd.f32 %v1707_v57, %v5218_v63  ;;  %v1765_v58 = vadd.f32 %v1764_v21, %v4491_v4 }
 0x20d   : > { %v2129_v28 = vsel %vm2128_vm0, %v2981_v5, %v2125_v14  ;;  %v2441_v45 = vadd.f32 %v2432_v20, %v2423_v32  ;;  %2986 = vpow2.f32 %v2776_v9  ;;  %v1736_v60 = vadd.f32 %v1735_v13, %v4497_v26 }
 0x20e   : > { %v2134_v25 = vsel %vm4641_vm15, %v4614_v19, %v2129_v28  ;;  %v2761_v40 = vmul.f32 -1.442695, %v1866_v18  ;;  %v1868_v61 = vadd.f32 %v1765_v58, %v5218_v63  ;;  %v1767_v11 = vpop.f32.mrf.mxu0  ;;  %2988 = vtanh.f32 %v2439_v48 }
 0x20f   : > { %v2422_v50 = vmul.f32 %v2134_v25, %v3955_v41  ;;  %v1867_v36 = vadd.f32 %v1736_v60, %v5218_v63  ;;  %v1794_v4 = vadd.f32 %v1793_v31, %v4495_v6  ;;  %v1709_v5 = vpop.f32.mrf.mxu2  ;;  %2990 = vpow2.f32 %v2778_v53 }
 0x210   : > { %v2985_v15 = vpop.eup %2984  ;;  %v2763_v27 = vmul.f32 -1.442695, %v1868_v61  ;;  %v1710_v26 = vadd.f32 %v1709_v5, %v4465_v46  ;;  %v1768_v23 = vadd.f32 %v1767_v11, %v4499_v62  ;;  %2992 = vpow2.f32 %v2761_v40  ;;  %v1738_v59 = vpop.f32.mrf.mxu3 }
 0x211   : > { %v2440_v19 = vadd.f32 %v2431_v56, %v2422_v50  ;;  %v4687_v8 = vadd.f32 1.0, %v2985_v15  ;;  %v2762_v21 = vmul.f32 -1.442695, %v1867_v36  ;;  %2994 = vtanh.f32 %v2441_v45  ;;  %v1796_v62 = vpop.f32.mrf.mxu1 }
 0x212   : > { %v1869_v41 = vadd.f32 %v1794_v4, %v5218_v63  ;;  %v1875_v17 = vadd.f32 %v1710_v26, %v5237_v39  ;;  %2996 = vpow2.f32 %v2763_v27  ;;  %v1877_v35 = vadd.f32 %v1768_v23, %v5237_v39 }
 0x213   : > { %v2987_v37 = vpop.eup %2986  ;;  %2998 = vrcp.f32 %v4687_v8  ;;  %v2310_v24 = vand.u32 2147483647, %v4687_v8  ;;  %v1739_v49 = vadd.f32 %v1738_v59, %v4505_v44  ;;  %v1797_v30 = vadd.f32 %v1796_v62, %v4503_v52 }
 0x214   : > { %v4692_v6 = vadd.f32 1.0, %v2987_v37  ;;  %v2764_v3 = vmul.f32 -1.442695, %v1869_v41  ;;  %v2770_v46 = vmul.f32 -1.442695, %v1875_v17  ;;  %v4694_v56 = vpop.eup %2988  ;;  %3000 = vpow2.f32 %v2762_v21 }
 0x215   : > { %v2991_v7 = vpop.eup %2990  ;;  %v2312_v38 = vand.u32 2147483648, %v4687_v8  ;;  %v2772_v0 = vmul.f32 -1.442695, %v1877_v35  ;;  %v1876_v31 = vadd.f32 %v1739_v49, %v5237_v39  ;;  %v1878_v14 = vadd.f32 %v1797_v30, %v5237_v39 }
 0x216   : > { %3002 = vrcp.f32 %v4692_v6  ;;  %v2993_v57 = vpop.eup %2992  ;;  %v4699_v29 = vadd.f32 1.0, %v2991_v7  ;;  %vm2306_vm8 = vweird.f32 %v4687_v8  ;;  %vm4713_vm2 = vcmp.eq.f32.partialorder %v2310_v24, 8.507059e+37 }
 0x217   : > { %3004 = vpow2.f32 %v2764_v3  ;;  %v4703_v47 = vpop.eup %2994  ;;  %v4706_v43 = vadd.f32 1.0, %v2993_v57  ;;  %v2313_v9 = vor.u32 1.1754944e-38, %v2312_v38  ;;  %v2297_v48 = vand.u32 2147483648, %v4692_v6  ;;  %v1712_v30 = vpop.f32.mrf.mxu2 }
 0x218   : > { %3006 = vpow2.f32 %v2770_v46  ;;  %v2997_v22 = vpop.eup %2996  ;;  %v2771_v18 = vmul.f32 -1.442695, %v1876_v31  ;;  %vm2291_vm1 = vweird.f32 %v4692_v6  ;;  %v2295_v25 = vand.u32 2147483647, %v4692_v6 }
 0x219   : > { %3008 = vrcp.f32 %v4699_v29  ;;  %v2999_v13 = vpop.eup %2998  ;;  %v4719_v53 = vadd.f32 1.0, %v2997_v22  ;;  %v2773_v61 = vmul.f32 -1.442695, %v1878_v14  ;;  %v2298_v15 = vor.u32 1.1754944e-38, %v2297_v48 }
 0x21a   : > { %3010 = vtanh.f32 %v2440_v19  ;;  %v3001_v44 = vpop.eup %3000  ;;  %v2302_v52 = vmul.f32 %v2999_v13, %v4687_v8  ;;  %vm2307_vm3 = vweird.f32 %v2999_v13  ;;  %v2325_v17 = vand.u32 2147483647, %v4699_v29 }
 0x21b   : > { %3012 = vrcp.f32 %v4706_v43  ;;  %v4724_v40 = vadd.f32 1.0, %v3001_v44  ;;  %vm2308_vm12 = vmor %vm2306_vm8, %vm2307_vm3  ;;  %v2327_v37 = vand.u32 2147483648, %v4699_v29  ;;  %vm2296_vm13 = vcmp.eq.f32.partialorder %v2295_v25, 8.507059e+37 }
 0x21c   : > { %v3003_v20 = vpop.eup %3002  ;;  %v2303_v28 = vsub.f32 1.0, %v2302_v52  ;;  %3014 = vpow2.f32 %v2772_v0  ;;  %vm2321_vm14 = vweird.f32 %v4699_v29  ;;  %vm2326_vm5 = vcmp.eq.f32.partialorder %v2325_v17, 8.507059e+37 }
 0x21d   : > { %v3005_v58 = vpop.eup %3004  ;;  %v2287_v45 = vmul.f32 %v3003_v20, %v4692_v6  ;;  %3016 = vpow2.f32 %v2771_v18  ;;  %vm2292_vm11 = vweird.f32 %v3003_v20  ;;  %v4755_v6 = vpop.f32.mrf.mxu3  ;;  %v2328_v14 = vor.u32 1.1754944e-38, %v2327_v37 }
 0x21e   : > { %v3007_v60 = vpop.eup %3006  ;;  %v2304_v50 = vmul.f32 %v2999_v13, %v2303_v28  ;;  %3018 = vrcp.f32 %v4719_v53  ;;  %v4732_v21 = vadd.f32 1.0, %v3005_v58  ;;  %vm2293_vm10 = vmor %vm2291_vm1, %vm2292_vm11  ;;  %v1713_v25 = vadd.f32 %v1712_v30, %v4473_v54  ;;  %v1770_v37 = vpop.f32.mrf.mxu0 }
 0x21f   : > { %v3009_v11 = vpop.eup %3008  ;;  %v2288_v36 = vsub.f32 1.0, %v2287_v45  ;;  %v4726_v4 = vadd.f32 1.0, %v3007_v60  ;;  %vm1985_vm9 = vweird.f32 %v4706_v43 }
 0x220   : > { %v3011_v5 = vpop.eup %3010  ;;  %v2317_v27 = vmul.f32 %v3009_v11, %v4699_v29  ;;  %v2305_v23 = vadd.f32 %v2999_v13, %v2304_v50  ;;  %vm2322_vm7 = vweird.f32 %v3009_v11 }
 0x221   : > { %v4730_v26 = vpop.eup %3012  ;;  %v2289_v19 = vmul.f32 %v3003_v20, %v2288_v36  ;;  %3020 = vrcp.f32 %v4726_v4  ;;  %vm2323_vm4 = vmor %vm2321_vm14, %vm2322_vm7  ;;  %v2162_v60 = vand.u32 2147483648, %v4726_v4  ;;  %vm2156_vm6 = vweird.f32 %v4726_v4 }
 0x222   : > { %v2318_v41 = vsub.f32 1.0, %v2317_v27  ;;  %3022 = vpow2.f32 %v2773_v61  ;;  %v3015_v3 = vpop.eup %3014  ;;  %v2309_v46 = vsel %vm2308_vm12, %v2999_v13, %v2305_v23  ;;  %v1981_v35 = vmul.f32 %v4730_v26, %v4706_v43  ;;  %v5326_v23 = vld [vmem:[#allocation17_spill] sm:$0xff] }
 0x223   : > { %v2290_v59 = vadd.f32 %v3003_v20, %v2289_v19  ;;  %3024 = vrcp.f32 %v4724_v40  ;;  %v2314_v62 = vsel %vm4713_vm2, %v2313_v9, %v2309_v46  ;;  %v4748_v7 = vadd.f32 1.0, %v3015_v3  ;;  %v3017_v24 = vpop.eup %3016  ;;  %v4805_v3 = vpop.f32.mrf.mxu2 }
 0x224   : > { %v2319_v8 = vmul.f32 %v3009_v11, %v2318_v41  ;;  %v2458_v57 = vmul.f32 %v3011_v5, %v2314_v62  ;;  %3026 = vrcp.f32 %v4732_v21  ;;  %v4751_v38 = vpop.eup %3018  ;;  %v1982_v32 = vsub.f32 1.0, %v1981_v35 }
 0x225   : > { %v2294_v49 = vsel %vm2293_vm10, %v3003_v20, %v2290_v59  ;;  %3028 = vrcp.f32 %v4748_v7  ;;  %v4764_v20 = vadd.f32 1.0, %v3017_v24  ;;  %v2011_v45 = vmul.f32 %v4751_v38, %v4719_v53  ;;  %v4815_v24 = vpop.f32.mrf.mxu3 }
 0x226   : > { %v2299_v22 = vsel %vm2296_vm13, %v2298_v15, %v2294_v49  ;;  %v2320_v0 = vadd.f32 %v3009_v11, %v2319_v8  ;;  %2786 = vst [vmem:[%s4030_s23 + $0x50] sm:$0xff] %v2458_v57  ;;  %vm1986_vm0 = vweird.f32 %v4730_v26  ;;  %v2163_v19 = vor.u32 1.1754944e-38, %v2162_v60 }
 0x227   : > { %v4757_v13 = vpop.eup %3020  ;;  %v2457_v31 = vmul.f32 %v4694_v56, %v2299_v22  ;;  %3030 = vrcp.f32 %v4764_v20  ;;  %v2012_v27 = vsub.f32 1.0, %v2011_v45  ;;  %v1884_v41 = vadd.f32 %v1713_v25, %v3391_v10  ;;  %vm4826_vm1 = vmor %vm1985_vm9, %vm1986_vm0 }
 0x228   : > { %v3023_v44 = vpop.eup %3022  ;;  %v2324_v52 = vsel %vm2323_vm4, %v3009_v11, %v2320_v0  ;;  %v2152_v29 = vmul.f32 %v4757_v13, %v4726_v4  ;;  %vm2157_vm15 = vweird.f32 %v4757_v13  ;;  %v2160_v17 = vand.u32 2147483647, %v4726_v4 }
 0x229   : > { %v4766_v9 = vpop.eup %3024  ;;  %2785 = vst [vmem:[%s4030_s23 + $0x48] sm:$0xff] %v2457_v31  ;;  %v2329_v48 = vsel %vm2326_vm5, %v2328_v14, %v2324_v52  ;;  %v4769_v18 = vadd.f32 1.0, %v3023_v44  ;;  %vm4799_vm8 = vmor %vm2156_vm6, %vm2157_vm15  ;;  %vm2186_vm2 = vweird.f32 %v4748_v7  ;;  %v2192_v62 = vand.u32 2147483648, %v4748_v7 }
 0x22a   : > { %v2459_v56 = vmul.f32 %v4703_v47, %v2329_v48  ;;  %v2153_v58 = vsub.f32 1.0, %v2152_v29  ;;  %v4773_v28 = vpop.eup %3026  ;;  %v1983_v47 = vmul.f32 %v4730_v26, %v1982_v32  ;;  %v1996_v50 = vmul.f32 %v4766_v9, %v4724_v40 }
 0x22b   : > { %3032 = vrcp.f32 %v4769_v18  ;;  %v4780_v61 = vpop.eup %3028  ;;  %v4794_v54 = vmul.f32 %v4773_v28, %v4732_v21  ;;  %v1991_v8 = vand.u32 2147483648, %v4706_v43  ;;  %v2177_v30 = vand.u32 2147483648, %v4764_v20 }
 0x22c   : > { %2787 = vst [vmem:[%s4030_s23 + $0x58] sm:$0xff] %v2459_v56  ;;  %v2154_v11 = vmul.f32 %v4757_v13, %v2153_v58  ;;  %v2182_v36 = vmul.f32 %v4780_v61, %v4748_v7  ;;  %v1984_v5 = vadd.f32 %v4730_v26, %v1983_v47  ;;  %v1997_v4 = vsub.f32 1.0, %v1996_v50  ;;  %v1799_v50 = vpop.f32.mrf.mxu1 }
 0x22d   : > { %v4807_v46 = vpop.eup %3030  ;;  %v1989_v0 = vand.u32 2147483647, %v4706_v43  ;;  %vm2161_vm3 = vcmp.eq.f32.partialorder %v2160_v17, 8.507059e+37  ;;  %v1771_v14 = vadd.f32 %v1770_v37, %v4507_v55  ;;  %v2013_v29 = vmul.f32 %v4751_v38, %v2012_v27  ;;  %v1822_v17 = vpop.f32.mrf.mxu2 }
 0x22e   : > { %v2155_v15 = vadd.f32 %v4757_v13, %v2154_v11  ;;  %v2183_v59 = vsub.f32 1.0, %v2182_v36  ;;  %v2167_v49 = vmul.f32 %v4807_v46, %v4764_v20  ;;  %v1988_v31 = vsel %vm4826_vm1, %v4730_v26, %v1984_v5  ;;  %v5316_v26 = vld [vmem:[#allocation10_spill] sm:$0xff] }
 0x22f   : > { %v2193_v56 = vor.u32 1.1754944e-38, %v2192_v62  ;;  %vm2171_vm11 = vweird.f32 %v4764_v20  ;;  %v1992_v43 = vor.u32 1.1754944e-38, %v1991_v8  ;;  %vm2187_vm12 = vweird.f32 %v4780_v61 }
 0x230   : > { %v2159_v35 = vsel %vm4799_vm8, %v4757_v13, %v2155_v15  ;;  %v2027_v13 = vsub.f32 1.0, %v4794_v54  ;;  %v2168_v44 = vsub.f32 1.0, %v2167_v49  ;;  %v2184_v48 = vmul.f32 %v4780_v61, %v2183_v59  ;;  %vm4857_vm14 = vmor %vm2186_vm2, %vm2187_vm12 }
 0x231   : > { %v4817_v57 = vpop.eup %3032  ;;  %v2164_v32 = vsel %vm2161_vm3, %v2163_v19, %v2159_v35  ;;  %v2178_v58 = vor.u32 1.1754944e-38, %v2177_v30  ;;  %vm1990_vm7 = vcmp.eq.f32.partialorder %v1989_v0, 8.507059e+37  ;;  %3034 = vtanh.f32 %v1884_v41 }
 0x232   : > { %v2197_v52 = vmul.f32 %v4817_v57, %v4769_v18  ;;  %vm2172_vm10 = vweird.f32 %v4807_v46  ;;  %v1993_v55 = vsel %vm1990_vm7, %v1992_v43, %v1988_v31  ;;  %v2424_v45 = vmul.f32 %v2164_v32, %v5316_v26 }
 0x233   : > { %v1886_v60 = vadd.f32 %v1771_v14, %v3391_v10  ;;  %v2169_v25 = vmul.f32 %v4807_v46, %v2168_v44  ;;  %v2014_v47 = vadd.f32 %v4751_v38, %v2013_v29  ;;  %vm2016_vm13 = vweird.f32 %v4751_v38  ;;  %vm4869_vm15 = vmor %vm2171_vm11, %vm2172_vm10 }
 0x234   : > { %v2198_v11 = vsub.f32 1.0, %v2197_v52  ;;  %v2019_v36 = vand.u32 2147483647, %v4719_v53  ;;  %v2185_v5 = vadd.f32 %v4780_v61, %v2184_v48  ;;  %v1742_v15 = vadd.f32 %v4755_v6, %v4513_v42  ;;  %v1773_v48 = vpop.f32.mrf.mxu0  ;;  %v1802_v54 = vpop.f32.mrf.mxu1 }
 0x235   : > { %v1998_v27 = vmul.f32 %v4766_v9, %v1997_v4  ;;  %vm2015_vm4 = vweird.f32 %v4719_v53  ;;  %v2021_v19 = vand.u32 2147483648, %v4719_v53  ;;  %v2190_v41 = vand.u32 2147483647, %v4748_v7  ;;  %v4876_v53 = vpop.f32.mrf.mxu3 }
 0x236   : > { %vm2001_vm5 = vweird.f32 %v4766_v9  ;;  %3036 = vtanh.f32 %v1886_v60  ;;  %v1885_v6 = vadd.f32 %v1742_v15, %v3391_v10  ;;  %vm2000_vm6 = vweird.f32 %v4724_v40  ;;  %vm4880_vm9 = vmor %vm2015_vm4, %vm2016_vm13 }
 0x237   : > { %v1999_v37 = vadd.f32 %v4766_v9, %v1998_v27  ;;  %v3035_v7 = vpop.eup %3034  ;;  %v2004_v62 = vand.u32 2147483647, %v4724_v40  ;;  %v2006_v8 = vand.u32 2147483648, %v4724_v40  ;;  %v2170_v35 = vadd.f32 %v4807_v46, %v2169_v25  ;;  %vm4896_vm8 = vmor %vm2000_vm6, %vm2001_vm5 }
 0x238   : > { %v2175_v4 = vand.u32 2147483647, %v4764_v20  ;;  %v2018_v49 = vsel %vm4880_vm9, %v4751_v38, %v2014_v47  ;;  %vm2020_vm0 = vcmp.eq.f32.partialorder %v2019_v36, 8.507059e+37  ;;  %v2189_v30 = vsel %vm4857_vm14, %v4780_v61, %v2185_v5  ;;  %v1825_v36 = vpop.f32.mrf.mxu2 }
 0x239   : > { %3038 = vtanh.f32 %v1885_v6  ;;  %v2022_v40 = vor.u32 1.1754944e-38, %v2021_v19  ;;  %v2003_v20 = vsel %vm4896_vm8, %v4766_v9, %v1999_v37  ;;  %v2174_v38 = vsel %vm4869_vm15, %v4807_v46, %v2170_v35  ;;  %v5327_v6 = vld [vmem:[#allocation4_spill] sm:$0xff]  ;;  %v5329_v35 = vld [vmem:[#allocation18_spill] sm:$0xff] }
 0x23a   : > { %vm2176_vm2 = vcmp.eq.f32.partialorder %v2175_v4, 8.507059e+37  ;;  %vm2191_vm1 = vcmp.eq.f32.partialorder %v2190_v41, 8.507059e+37  ;;  %v2007_v0 = vor.u32 1.1754944e-38, %v2006_v8  ;;  %v1800_v31 = vadd.f32 %v1799_v50, %v4511_v16 }
 0x23b   : > { %v2179_v61 = vsel %vm2176_vm2, %v2178_v58, %v2174_v38  ;;  %v2023_v14 = vsel %vm2020_vm0, %v2022_v40, %v2018_v49  ;;  %v2194_v44 = vsel %vm2191_vm1, %v2193_v56, %v2189_v30  ;;  %vm2005_vm3 = vcmp.eq.f32.partialorder %v2004_v62, 8.507059e+37 }
 0x23c   : > { %v2028_v52 = vmul.f32 %v4773_v28, %v2027_v13  ;;  %v3037_v32 = vpop.eup %3036  ;;  %v2199_v9 = vmul.f32 %v4817_v57, %v2198_v11  ;;  %vm2201_vm11 = vweird.f32 %v4769_v18  ;;  %v2433_v29 = vmul.f32 %v3035_v7, %v1993_v55  ;;  %v5328_v7 = vld [vmem:[#allocation7_spill] sm:$0xff] }
 0x23d   : > { %v2008_v46 = vsel %vm2005_vm3, %v2007_v0, %v2003_v20  ;;  %vm2202_vm12 = vweird.f32 %v4817_v57  ;;  %v2207_v43 = vand.u32 2147483648, %v4769_v18  ;;  %v2425_v16 = vmul.f32 %v2179_v61, %v3746_v34 }
 0x23e   : > { %v1716_v56 = vadd.f32 %v4805_v3, %v4483_v12  ;;  %v2442_v13 = vadd.f32 %v2433_v29, %v2424_v45  ;;  %v2426_v26 = vmul.f32 %v2194_v44, %v3824_v1  ;;  %v2435_v60 = vmul.f32 %v3037_v32, %v2023_v14  ;;  %v5325_v3 = vld [vmem:[#allocation16_spill] sm:$0xff]  ;;  %v1854_v45 = vpop.f32.mrf.mxu3  ;;  %vm4943_vm10 = vmor %vm2201_vm11, %vm2202_vm12 }
 0x23f   : > { %v3039_v58 = vpop.eup %3038  ;;  %v1887_v25 = vadd.f32 %v1800_v31, %v3391_v10  ;;  %v2029_v11 = vadd.f32 %v4773_v28, %v2028_v52  ;;  %v1774_v50 = vadd.f32 %v1773_v48, %v4515_v33  ;;  %vm2031_vm7 = vweird.f32 %v4773_v28  ;;  %v5334_v48 = vld [vmem:[#allocation20_spill] sm:$0xff] }
 0x240   : > { %v2434_v55 = vmul.f32 %v3039_v58, %v2008_v46  ;;  %v1893_v47 = vadd.f32 %v1716_v56, %v3368_v51  ;;  %v2200_v34 = vadd.f32 %v4817_v57, %v2199_v9  ;;  %v1745_v12 = vadd.f32 %v4815_v24, %v4521_v2 }
 0x241   : > { %v1803_v1 = vadd.f32 %v1802_v54, %v5325_v3  ;;  %v1895_v27 = vadd.f32 %v1774_v50, %v3368_v51  ;;  %v1823_v19 = vadd.f32 %v1822_v17, %v5326_v23  ;;  %v2205_v33 = vand.u32 2147483647, %v4769_v18 }
 0x242   : > { %v4927_v5 = vadd.f32 %v2434_v55, %v2425_v16  ;;  %v2779_v15 = vmul.f32 -1.442695, %v1893_v47  ;;  %v1894_v41 = vadd.f32 %v1745_v12, %v3368_v51  ;;  %v1826_v37 = vadd.f32 %v1825_v36, %v5327_v6 }
 0x243   : > { %v1896_v42 = vadd.f32 %v1803_v1, %v3368_v51  ;;  %3040 = vtanh.f32 %v1887_v25  ;;  %v2781_v2 = vmul.f32 -1.442695, %v1895_v27  ;;  %v1870_v24 = vadd.f32 %v1823_v19, %v5218_v63 }
 0x244   : > { %v1855_v59 = vadd.f32 %v1854_v45, %v5328_v7  ;;  %3042 = vpow2.f32 %v2779_v15  ;;  %v2780_v62 = vmul.f32 -1.442695, %v1894_v41  ;;  %v1852_v17 = vadd.f32 %v4876_v53, %v5329_v35  ;;  %v5340_v45 = vld [vmem:[#allocation8_spill] sm:$0xff] }
 0x245   : > { %v2782_v8 = vmul.f32 -1.442695, %v1896_v42  ;;  %vm2030_vm13 = vweird.f32 %v4732_v21  ;;  %v2036_v49 = vand.u32 2147483648, %v4732_v21  ;;  %3044 = vpow2.f32 %v2781_v2 }
 0x246   : > { %v1879_v30 = vadd.f32 %v1826_v37, %v5237_v39  ;;  %v2444_v22 = vadd.f32 %v2435_v60, %v2426_v26  ;;  %v2034_v40 = vand.u32 2147483647, %v4732_v21  ;;  %v2204_v53 = vsel %vm4943_vm10, %v4817_v57, %v2200_v34  ;;  %vm4956_vm14 = vmor %vm2030_vm13, %vm2031_vm7 }
 0x247   : > { %3046 = vpow2.f32 %v2780_v62  ;;  %v2208_v18 = vor.u32 1.1754944e-38, %v2207_v43  ;;  %v2765_v38 = vmul.f32 -1.442695, %v1870_v24  ;;  %v1880_v0 = vadd.f32 %v1855_v59, %v5237_v39 }
 0x248   : > { %3048 = vpow2.f32 %v2782_v8  ;;  %v2033_v21 = vsel %vm4956_vm14, %v4773_v28, %v2029_v11  ;;  %vm2206_vm4 = vcmp.eq.f32.partialorder %v2205_v33, 8.507059e+37  ;;  %v1871_v61 = vadd.f32 %v1852_v17, %v5218_v63 }
 0x249   : > { %v2774_v57 = vmul.f32 -1.442695, %v1879_v30  ;;  %v3041_v31 = vpop.eup %3040  ;;  %3050 = vtanh.f32 %v2442_v13  ;;  %v2037_v14 = vor.u32 1.1754944e-38, %v2036_v49  ;;  %v2209_v44 = vsel %vm2206_vm4, %v2208_v18, %v2204_v53  ;;  %v1828_v49 = vpop.f32.mrf.mxu2 }
 0x24a   : > { %v3043_v52 = vpop.eup %3042  ;;  %3052 = vtanh.f32 %v2444_v22  ;;  %vm2035_vm5 = vcmp.eq.f32.partialorder %v2034_v40, 8.507059e+37  ;;  %v2775_v39 = vmul.f32 -1.442695, %v1880_v0  ;;  %v2427_v28 = vmul.f32 %v2209_v44, %v5334_v48  ;;  %v1857_v44 = vpop.f32.mrf.mxu3 }
 0x24b   : > { %v3045_v32 = vpop.eup %3044  ;;  %v2038_v9 = vsel %vm2035_vm5, %v2037_v14, %v2033_v21  ;;  %v4965_v29 = vadd.f32 1.0, %v3043_v52  ;;  %3054 = vpow2.f32 %v2765_v38  ;;  %v2766_v63 = vmul.f32 -1.442695, %v1871_v61 }
 0x24c   : > { %v4968_v43 = vadd.f32 1.0, %v3045_v32  ;;  %3056 = vpow2.f32 %v2774_v57  ;;  %v2436_v56 = vmul.f32 %v3041_v31, %v2038_v9 }
 0x24d   : > { %v3047_v46 = vpop.eup %3046  ;;  %3058 = vrcp.f32 %v4965_v29  ;;  %v2340_v55 = vand.u32 2147483647, %v4965_v29  ;;  %v2342_v11 = vand.u32 2147483648, %v4965_v29  ;;  %vm2336_vm15 = vweird.f32 %v4965_v29 }
 0x24e   : > { %v3049_v16 = vpop.eup %3048  ;;  %3060 = vrcp.f32 %v4968_v43  ;;  %v4974_v58 = vadd.f32 1.0, %v3047_v46  ;;  %v2445_v60 = vadd.f32 %v2436_v56, %v2427_v28  ;;  %v2370_v50 = vand.u32 2147483647, %v4968_v43 }
 0x24f   : > { %v4972_v54 = vpop.eup %3050  ;;  %v4976_v13 = vadd.f32 1.0, %v3049_v16  ;;  %3062 = vpow2.f32 %v2775_v39  ;;  %v2372_v36 = vand.u32 2147483648, %v4968_v43  ;;  %vm2366_vm6 = vweird.f32 %v4968_v43 }
 0x250   : > { %v4978_v26 = vpop.eup %3052  ;;  %3064 = vpow2.f32 %v2766_v63  ;;  %vm4990_vm9 = vcmp.eq.f32.partialorder %v2340_v55, 8.507059e+37  ;;  %v2343_v15 = vor.u32 1.1754944e-38, %v2342_v11  ;;  %vm4997_vm0 = vcmp.eq.f32.partialorder %v2370_v50, 8.507059e+37  ;;  %v5339_v50 = vld [vmem:[#allocation11_spill] sm:$0xff] }
 0x251   : > { %v3055_v25 = vpop.eup %3054  ;;  %3066 = vrcp.f32 %v4974_v58  ;;  %v2373_v41 = vor.u32 1.1754944e-38, %v2372_v36  ;;  %vm2351_vm8 = vweird.f32 %v4974_v58  ;;  %v2355_v2 = vand.u32 2147483647, %v4974_v58  ;;  %v1831_v55 = vpop.f32.mrf.mxu2 }
 0x252   : > { %v3057_v47 = vpop.eup %3056  ;;  %3068 = vrcp.f32 %v4976_v13  ;;  %v4995_v23 = vadd.f32 1.0, %v3055_v25  ;;  %v2357_v24 = vand.u32 2147483648, %v4974_v58  ;;  %v2385_v53 = vand.u32 2147483647, %v4976_v13 }
 0x253   : > { %v3059_v34 = vpop.eup %3058  ;;  %3070 = vtanh.f32 %v4927_v5  ;;  %v5001_v42 = vadd.f32 1.0, %v3057_v47  ;;  %v2387_v38 = vand.u32 2147483648, %v4976_v13  ;;  %vm2381_vm10 = vweird.f32 %v4976_v13 }
 0x254   : > { %v3061_v12 = vpop.eup %3060  ;;  %3072 = vtanh.f32 %v2445_v60  ;;  %v2332_v3 = vmul.f32 %v3059_v34, %v4965_v29  ;;  %vm2337_vm2 = vweird.f32 %v3059_v34  ;;  %v2358_v46 = vor.u32 1.1754944e-38, %v2357_v24 }
 0x255   : > { %v3063_v1 = vpop.eup %3062  ;;  %v2362_v27 = vmul.f32 %v3061_v12, %v4968_v43  ;;  %vm2367_vm1 = vweird.f32 %v3061_v12  ;;  %3074 = vrcp.f32 %v4995_v23  ;;  %vm2338_vm3 = vmor %vm2336_vm15, %vm2337_vm2  ;;  %vm2356_vm14 = vcmp.eq.f32.partialorder %v2355_v2, 8.507059e+37  ;;  %v5342_v2 = vld [vmem:[#allocation12_spill] sm:$0xff] }
 0x256   : > { %v3065_v19 = vpop.eup %3064  ;;  %v2333_v5 = vsub.f32 1.0, %v2332_v3  ;;  %v5007_v8 = vadd.f32 1.0, %v3063_v1  ;;  %3076 = vrcp.f32 %v5001_v42  ;;  %vm2368_vm11 = vmor %vm2366_vm6, %vm2367_vm1  ;;  %v2388_v63 = vor.u32 1.1754944e-38, %v2387_v38  ;;  %v1860_v3 = vpop.f32.mrf.mxu3 }
 0x257   : > { %v3067_v6 = vpop.eup %3066  ;;  %v2363_v37 = vsub.f32 1.0, %v2362_v27  ;;  %v5016_v0 = vadd.f32 1.0, %v3065_v19  ;;  %vm2386_vm5 = vcmp.eq.f32.partialorder %v2385_v53, 8.507059e+37  ;;  %v1832_v36 = vadd.f32 %v1831_v55, %v5339_v50  ;;  %v5350_v55 = vld [vmem:[#allocation2_spill] sm:$0xff] }
 0x258   : > { %v3069_v7 = vpop.eup %3068  ;;  %v2334_v59 = vmul.f32 %v3059_v34, %v2333_v5  ;;  %v2347_v62 = vmul.f32 %v3067_v6, %v4974_v58  ;;  %vm2352_vm12 = vweird.f32 %v3067_v6  ;;  %3078 = vrcp.f32 %v5007_v8  ;;  %v5341_v5 = vld [vmem:[#allocation9_spill] sm:$0xff] }
 0x259   : > { %v3071_v35 = vpop.eup %3070  ;;  %v2364_v17 = vmul.f32 %v3061_v12, %v2363_v37  ;;  %v2377_v4 = vmul.f32 %v3069_v7, %v4976_v13  ;;  %vm2382_vm7 = vweird.f32 %v3069_v7  ;;  %vm2353_vm13 = vmor %vm2351_vm8, %vm2352_vm12  ;;  %3080 = vrcp.f32 %v5016_v0 }
 0x25a   : > { %v3073_v30 = vpop.eup %3072  ;;  %v2335_v22 = vadd.f32 %v3059_v34, %v2334_v59  ;;  %v2348_v40 = vsub.f32 1.0, %v2347_v62  ;;  %vm2383_vm4 = vmor %vm2381_vm10, %vm2382_vm7  ;;  %v1897_v19 = vadd.f32 %v1832_v36, %v3368_v51  ;;  %v1861_v33 = vadd.f32 %v1860_v3, %v5341_v5 }
 0x25b   : > { %v2365_v18 = vadd.f32 %v3061_v12, %v2364_v17  ;;  %v2378_v20 = vsub.f32 1.0, %v2377_v4  ;;  %v5028_v29 = vpop.eup %3074  ;;  %v1858_v24 = vadd.f32 %v1857_v44, %v5342_v2  ;;  %v2222_v62 = vand.u32 2147483648, %v5001_v42 }
 0x25c   : > { %v2339_v21 = vsel %vm2338_vm3, %v3059_v34, %v2335_v22  ;;  %v2349_v61 = vmul.f32 %v3067_v6, %v2348_v40  ;;  %v5034_v28 = vpop.eup %3076  ;;  %v2041_v60 = vmul.f32 %v5028_v29, %v4995_v23  ;;  %v1898_v59 = vadd.f32 %v1861_v33, %v3368_v51 }
 0x25d   : > { %v2344_v57 = vsel %vm4990_vm9, %v2343_v15, %v2339_v21  ;;  %v2369_v31 = vsel %vm2368_vm11, %v3061_v12, %v2365_v18  ;;  %v2379_v14 = vmul.f32 %v3069_v7, %v2378_v20  ;;  %v2212_v25 = vmul.f32 %v5034_v28, %v5001_v42 }
 0x25e   : > { %v2460_v52 = vmul.f32 %v4972_v54, %v2344_v57  ;;  %v2374_v32 = vsel %vm4997_vm0, %v2373_v41, %v2369_v31  ;;  %v2350_v9 = vadd.f32 %v3067_v6, %v2349_v61  ;;  %v5039_v54 = vpop.eup %3078  ;;  %v2042_v34 = vsub.f32 1.0, %v2041_v60 }
 0x25f   : > { %v2462_v39 = vmul.f32 %v4978_v26, %v2374_v32  ;;  %v2380_v48 = vadd.f32 %v3069_v7, %v2379_v14  ;;  %v5046_v11 = vpop.eup %3080  ;;  %v2227_v47 = vmul.f32 %v5039_v54, %v5007_v8  ;;  %v2213_v12 = vsub.f32 1.0, %v2212_v25 }
 0x260   : > { %2788 = vst [vmem:[%s4030_s23 + $0x60] sm:$0xff] %v2460_v52  ;;  %v2354_v43 = vsel %vm2353_vm13, %v3067_v6, %v2350_v9  ;;  %v2056_v1 = vmul.f32 %v5046_v11, %v5016_v0  ;;  %v1829_v15 = vadd.f32 %v1828_v49, %v5340_v45  ;;  %v2043_v6 = vmul.f32 %v5028_v29, %v2042_v34 }
 0x261   : > { %2790 = vst [vmem:[%s4030_s23 + $0x70] sm:$0xff] %v2462_v39  ;;  %v2359_v16 = vsel %vm2356_vm14, %v2358_v46, %v2354_v43  ;;  %v2384_v56 = vsel %vm2383_vm4, %v3069_v7, %v2380_v48  ;;  %v2228_v27 = vsub.f32 1.0, %v2227_v47  ;;  %v2214_v41 = vmul.f32 %v5034_v28, %v2213_v12 }
 0x262   : > { %v2461_v58 = vmul.f32 %v3071_v35, %v2359_v16  ;;  %v2389_v13 = vsel %vm2386_vm5, %v2388_v63, %v2384_v56  ;;  %v2057_v37 = vsub.f32 1.0, %v2056_v1  ;;  %v2783_v7 = vmul.f32 -1.442695, %v1897_v19  ;;  %v5349_v56 = vld [vmem:[#allocation6_spill] sm:$0xff] }
 0x263   : > { %v2463_v26 = vmul.f32 %v3073_v30, %v2389_v13  ;;  %v1888_v35 = vadd.f32 %v1829_v15, %v3391_v10  ;;  %v2229_v17 = vmul.f32 %v5039_v54, %v2228_v27  ;;  %vm2046_vm15 = vweird.f32 %v5028_v29 }
 0x264   : > { %2789 = vst [vmem:[%s4030_s23 + $0x68] sm:$0xff] %v2461_v58  ;;  %3082 = vpow2.f32 %v2783_v7  ;;  %v2784_v4 = vmul.f32 -1.442695, %v1898_v59  ;;  %vm2217_vm6 = vweird.f32 %v5034_v28  ;;  %v2044_v49 = vadd.f32 %v5028_v29, %v2043_v6 }
 0x265   : > { %2791 = vst [vmem:[%s4030_s23 + $0x78] sm:$0xff] %v2463_v26  ;;  %v2215_v30 = vadd.f32 %v5034_v28, %v2214_v41  ;;  %vm2045_vm9 = vweird.f32 %v4995_v23  ;;  %v1889_v51 = vadd.f32 %v1858_v24, %v3391_v10  ;;  %v2058_v22 = vmul.f32 %v5046_v11, %v2057_v37 }
 0x266   : > { %3084 = vpow2.f32 %v2784_v4  ;;  %vm2216_vm0 = vweird.f32 %v5001_v42  ;;  %vm5072_vm8 = vmor %vm2045_vm9, %vm2046_vm15  ;;  %v2051_v53 = vand.u32 2147483648, %v4995_v23  ;;  %v2220_v18 = vand.u32 2147483647, %v5001_v42 }
 0x267   : > { %3086 = vtanh.f32 %v1888_v35  ;;  %vm5078_vm2 = vmor %vm2216_vm0, %vm2217_vm6  ;;  %v2223_v38 = vor.u32 1.1754944e-38, %v2222_v62  ;;  %vm2232_vm1 = vweird.f32 %v5039_v54  ;;  %v2049_v10 = vand.u32 2147483647, %v4995_v23 }
 0x268   : > { %v2230_v21 = vadd.f32 %v5039_v54, %v2229_v17  ;;  %vm2231_vm3 = vweird.f32 %v5007_v8  ;;  %v2237_v61 = vand.u32 2147483648, %v5007_v8  ;;  %v2048_v42 = vsel %vm5072_vm8, %v5028_v29, %v2044_v49 }
 0x269   : > { %v2219_v57 = vsel %vm5078_vm2, %v5034_v28, %v2215_v30  ;;  %v2059_v14 = vadd.f32 %v5046_v11, %v2058_v22  ;;  %vm2060_vm11 = vweird.f32 %v5016_v0  ;;  %vm2061_vm12 = vweird.f32 %v5046_v11  ;;  %vm5097_vm7 = vmor %vm2231_vm3, %vm2232_vm1 }
 0x26a   : > { %v3083_v31 = vpop.eup %3082  ;;  %v2235_v23 = vand.u32 2147483647, %v5007_v8  ;;  %v2052_v52 = vor.u32 1.1754944e-38, %v2051_v53  ;;  %vm2221_vm10 = vcmp.eq.f32.partialorder %v2220_v18, 8.507059e+37  ;;  %v2066_v32 = vand.u32 2147483648, %v5016_v0  ;;  %vm2062_vm14 = vmor %vm2060_vm11, %vm2061_vm12 }
 0x26b   : > { %v2284_v9 = vadd.f32 1.0, %v3083_v31  ;;  %v2224_v39 = vsel %vm2221_vm10, %v2223_v38, %v2219_v57  ;;  %v2064_v46 = vand.u32 2147483647, %v5016_v0  ;;  %v2234_v48 = vsel %vm5097_vm7, %v5039_v54, %v2230_v21 }
 0x26c   : > { %v3085_v29 = vpop.eup %3084  ;;  %3088 = vtanh.f32 %v1889_v51  ;;  %v2238_v8 = vor.u32 1.1754944e-38, %v2237_v61  ;;  %vm2050_vm13 = vcmp.eq.f32.partialorder %v2049_v10, 8.507059e+37  ;;  %v2063_v63 = vsel %vm2062_vm14, %v5046_v11, %v2059_v14 }
 0x26d   : > { %v3087_v28 = vpop.eup %3086  ;;  %3090 = vrcp.f32 %v2284_v9  ;;  %v2053_v43 = vsel %vm2050_vm13, %v2052_v52, %v2048_v42  ;;  %vm2236_vm4 = vcmp.eq.f32.partialorder %v2235_v23, 8.507059e+37  ;;  %v2285_v16 = vadd.f32 1.0, %v3085_v29 }
 0x26e   : > { %v2428_v58 = vmul.f32 %v2224_v39, %v5349_v56  ;;  %v2067_v13 = vor.u32 1.1754944e-38, %v2066_v32  ;;  %v2239_v26 = vsel %vm2236_vm4, %v2238_v8, %v2234_v48  ;;  %vm2065_vm5 = vcmp.eq.f32.partialorder %v2064_v46, 8.507059e+37 }
 0x26f   : > { %3092 = vrcp.f32 %v2285_v16  ;;  %v2437_v54 = vmul.f32 %v3087_v28, %v2053_v43  ;;  %v2429_v47 = vmul.f32 %v2239_v26, %v5350_v55  ;;  %v2402_v1 = vand.u32 2147483648, %v2284_v9 }
 0x270   : > { %v2068_v60 = vsel %vm2065_vm5, %v2067_v13, %v2063_v63  ;;  %v2400_v27 = vand.u32 2147483647, %v2284_v9  ;;  %vm2396_vm6 = vweird.f32 %v2284_v9  ;;  %v2417_v33 = vand.u32 2147483648, %v2285_v16 }
 0x271   : > { %v2446_v0 = vadd.f32 %v2437_v54, %v2428_v58  ;;  %v2403_v41 = vor.u32 1.1754944e-38, %v2402_v1  ;;  %v2415_v37 = vand.u32 2147483647, %v2285_v16  ;;  %vm2411_vm2 = vweird.f32 %v2285_v16 }
 0x272   : > { %v3089_v25 = vpop.eup %3088  ;;  %vm2401_vm8 = vcmp.eq.f32.partialorder %v2400_v27, 8.507059e+37  ;;  %v2418_v35 = vor.u32 1.1754944e-38, %v2417_v33  ;;  %vm5351_vm11 = vcmask 72704  }
 0x273   : > { %v3091_v50 = vpop.eup %3090  ;;  %v2438_v36 = vmul.f32 %v3089_v25, %v2068_v60  ;;  %3094 = vtanh.f32 %v2446_v0  ;;  %vm2416_vm3 = vcmp.eq.f32.partialorder %v2415_v37, 8.507059e+37 }
 0x274   : > { %v2392_v34 = vmul.f32 %v3091_v50, %v2284_v9  ;;  %vm2397_vm15 = vweird.f32 %v3091_v50 }
 0x275   : > { %v3093_v12 = vpop.eup %3092  ;;  %v2447_v3 = vadd.f32 %v2438_v36, %v2429_v47  ;;  %vm2398_vm9 = vmor %vm2396_vm6, %vm2397_vm15 }
 0x276   : > { %v2393_v11 = vsub.f32 1.0, %v2392_v34  ;;  %v2407_v45 = vmul.f32 %v3093_v12, %v2285_v16  ;;  %vm2412_vm0 = vweird.f32 %v3093_v12 }
 0x277   : > { %3096 = vtanh.f32 %v2447_v3  ;;  %vm2413_vm1 = vmor %vm2411_vm2, %vm2412_vm0 }
 0x278   : > { %v2394_v15 = vmul.f32 %v3091_v50, %v2393_v11  ;;  %v2408_v19 = vsub.f32 1.0, %v2407_v45 }
 0x279   : > { %v3095_v24 = vpop.eup %3094 }
 0x27a   : > { %v2395_v5 = vadd.f32 %v3091_v50, %v2394_v15  ;;  %v2409_v6 = vmul.f32 %v3093_v12, %v2408_v19 }
 0x27c   : > { %v2399_v2 = vsel %vm2398_vm9, %v3091_v50, %v2395_v5  ;;  %v2410_v59 = vadd.f32 %v3093_v12, %v2409_v6 }
 0x27d   : > { %v2404_v7 = vsel %vm2401_vm8, %v2403_v41, %v2399_v2  ;;  %v3097_v4 = vpop.eup %3096 }
 0x27e   : > { %v2464_v62 = vmul.f32 %v3095_v24, %v2404_v7  ;;  %v2414_v17 = vsel %vm2413_vm1, %v3093_v12, %v2410_v59 }
 0x27f   : > { %v2419_v49 = vsel %vm2416_vm3, %v2418_v35, %v2414_v17 }
 0x280   : > { %2792 = vst [vmem:[%s4030_s23 + $0x80] sm:$0xff] %v2464_v62  ;;  %v2465_v30 = vmul.f32 %v3097_v4, %v2419_v49 }
 0x282   : > { %2793 = vst.msk [vmem:[%s4030_s23 + $0x88] sm:$0xff] %vm5351_vm11, %v2465_v30 }
 0x283 PF: > { %s14_s15 = sadd.s32 1, %s3112_s15  }
 0x284   : > { %p11_p4 = scmp.ge.s32.totalorder %s14_s15, 4  }
 0x286   :  { %13 = sbr.rel (!%p11_p4) target bundleno = 1 (0x1), region = 68 }

// kernel: protein_branch_full.3
= control target key start
LH: loop header
LB: loop body
LE: loop exit
PB: predicated region body
PF: predicated region fallthrough
CT: control target
= control target key end

     0   :  { %s20685_s0 = inlined_call_operand.vmem [shape: f32[4,8264], index: 0, kind: input, shape index: {}]   ;;  %s20686_s1 = inlined_call_operand.vmem [shape: bf16[8264,256], index: 1, kind: input, shape index: {}]   ;;  %s20687_s2 = inlined_call_operand.vmem [shape: f32[1,256], index: 2, kind: input, shape index: {}]   ;;  %s20688_s3 = inlined_call_operand.vmem [shape: f32[1,256], index: 3, kind: input, shape index: {}]   ;;  %s20689_s4 = inlined_call_operand.vmem [shape: f32[1,256], index: 4, kind: input, shape index: {}]   ;;  %s20690_s5 = inlined_call_operand.vmem [shape: f32[256,45], index: 5, kind: input, shape index: {}]   ;;  %s20691_s6 = inlined_call_operand.vmem [shape: f32[1,45], index: 6, kind: input, shape index: {}]   ;;  %s20692_s7 = inlined_call_operand.vmem [shape: f32[4,4], index: 7, kind: input, shape index: {}]   ;;  %s20693_s8 = inlined_call_operand.vmem [shape: f32[4,45], index: 8, kind: output, shape index: {0}]   ;;  %s20694_s9 = inlined_call_operand.hbm [shape: f32[4,256], index: 9, kind: output, shape index: {1}]  }
   0x1   :  { %v8536_v0 = vld [vmem:[%s20686_s1 + $0x70] sm:$0xf]  ;;  %v12631_v1 = vld [vmem:[%s20686_s1 + $0x74] sm:$0xf0]  ;;  %v8528_v11 = vld [vmem:[%s20686_s1 + $0x60] sm:$0xf] }
   0x2   :  { %v8600_v2 = vld [vmem:[%s20686_s1 + $0xf0] sm:$0xf]  ;;  %v8537_v3 = vor.u32 %v12631_v1, %v8536_v0  ;;  %v12647_v4 = vld [vmem:[%s20686_s1 + $0xf4] sm:$0xf0]  ;;  %v12629_v13 = vld [vmem:[%s20686_s1 + $0x64] sm:$0xf0] }
   0x3   :  { %v8664_v5 = vld [vmem:[%s20686_s1 + $0x170] sm:$0xf]  ;;  %v12663_v6 = vld [vmem:[%s20686_s1 + $0x174] sm:$0xf0]  ;;  %v8601_v7 = vor.u32 %v12647_v4, %v8600_v2  ;;  %v8592_v14 = vld [vmem:[%s20686_s1 + $0xe0] sm:$0xf]  ;;  %v8529_v16 = vor.u32 %v12629_v13, %v8528_v11 }
   0x4   :  { %v8665_v8 = vor.u32 %v12663_v6, %v8664_v5  ;;  %v8728_v9 = vld [vmem:[%s20686_s1 + $0x1f0] sm:$0xf]  ;;  %v12679_v10 = vld [vmem:[%s20686_s1 + $0x1f4] sm:$0xf0]  ;;  %6545 = vmatpush.bf16.msra.mxu0 %v8537_v3  ;;  %v12645_v15 = vld [vmem:[%s20686_s1 + $0xe4] sm:$0xf0] }
   0x5   :  { %v8729_v12 = vor.u32 %v12679_v10, %v8728_v9  ;;  %6558 = vmatpush.bf16.msra.mxu1 %v8601_v7  ;;  %v8593_v17 = vor.u32 %v12645_v15, %v8592_v14  ;;  %v8656_v18 = vld [vmem:[%s20686_s1 + $0x160] sm:$0xf]  ;;  %v12661_v19 = vld [vmem:[%s20686_s1 + $0x164] sm:$0xf0]  ;;  %v8520_v23 = vld [vmem:[%s20686_s1 + $0x50] sm:$0xf] }
   0x6   :  { %6571 = vmatpush.bf16.msra.mxu2 %v8665_v8  ;;  %v8720_v20 = vld [vmem:[%s20686_s1 + $0x1e0] sm:$0xf]  ;;  %v8657_v21 = vor.u32 %v12661_v19, %v8656_v18  ;;  %v12677_v22 = vld [vmem:[%s20686_s1 + $0x1e4] sm:$0xf0]  ;;  %v12627_v24 = vld [vmem:[%s20686_s1 + $0x54] sm:$0xf0] }
   0x7   :  { %6584 = vmatpush.bf16.msra.mxu3 %v8729_v12  ;;  %v8721_v25 = vor.u32 %v12677_v22, %v8720_v20  ;;  %v8584_v26 = vld [vmem:[%s20686_s1 + $0xd0] sm:$0xf]  ;;  %v12643_v27 = vld [vmem:[%s20686_s1 + $0xd4] sm:$0xf0]  ;;  %v8521_v29 = vor.u32 %v12627_v24, %v8520_v23  ;;  %v8512_v35 = vld [vmem:[%s20686_s1 + $0x40] sm:$0xf] }
   0x8   :  { %v8648_v28 = vld [vmem:[%s20686_s1 + $0x150] sm:$0xf]  ;;  %6546 = vmatpush.bf16.msra.mxu0 %v8529_v16  ;;  %v12659_v30 = vld [vmem:[%s20686_s1 + $0x154] sm:$0xf0]  ;;  %v8585_v33 = vor.u32 %v12643_v27, %v8584_v26  ;;  %v12625_v36 = vld [vmem:[%s20686_s1 + $0x44] sm:$0xf0] }
   0x9   :  { %v8712_v31 = vld [vmem:[%s20686_s1 + $0x1d0] sm:$0xf]  ;;  %v12675_v32 = vld [vmem:[%s20686_s1 + $0x1d4] sm:$0xf0]  ;;  %6559 = vmatpush.bf16.msra.mxu1 %v8593_v17  ;;  %v8649_v34 = vor.u32 %v12659_v30, %v8648_v28  ;;  %v8576_v37 = vld [vmem:[%s20686_s1 + $0xc0] sm:$0xf]  ;;  %v8513_v44 = vor.u32 %v12625_v36, %v8512_v35 }
   0xa   :  { %6572 = vmatpush.bf16.msra.mxu2 %v8657_v21  ;;  %v8713_v38 = vor.u32 %v12675_v32, %v8712_v31  ;;  %v12641_v39 = vld [vmem:[%s20686_s1 + $0xc4] sm:$0xf0]  ;;  %v8640_v40 = vld [vmem:[%s20686_s1 + $0x140] sm:$0xf]  ;;  %v8504_v47 = vld [vmem:[%s20686_s1 + $0x30] sm:$0xf] }
   0xb   :  { %6585 = vmatpush.bf16.msra.mxu3 %v8721_v25  ;;  %v12657_v41 = vld [vmem:[%s20686_s1 + $0x144] sm:$0xf0]  ;;  %v8704_v42 = vld [vmem:[%s20686_s1 + $0x1c0] sm:$0xf]  ;;  %v8577_v45 = vor.u32 %v12641_v39, %v8576_v37  ;;  %v12623_v48 = vld [vmem:[%s20686_s1 + $0x34] sm:$0xf0] }
   0xc   :  { %v12673_v43 = vld [vmem:[%s20686_s1 + $0x1c4] sm:$0xf0]  ;;  %6547 = vmatpush.bf16.msra.mxu0 %v8521_v29  ;;  %v8641_v46 = vor.u32 %v12657_v41, %v8640_v40  ;;  %v8568_v49 = vld [vmem:[%s20686_s1 + $0xb0] sm:$0xf]  ;;  %v12639_v51 = vld [vmem:[%s20686_s1 + $0xb4] sm:$0xf0]  ;;  %v8505_v56 = vor.u32 %v12623_v48, %v8504_v47 }
   0xd   :  { %6560 = vmatpush.bf16.msra.mxu1 %v8585_v33  ;;  %v8705_v50 = vor.u32 %v12673_v43, %v8704_v42  ;;  %v8632_v52 = vld [vmem:[%s20686_s1 + $0x130] sm:$0xf]  ;;  %v12655_v53 = vld [vmem:[%s20686_s1 + $0x134] sm:$0xf0]  ;;  %v8569_v57 = vor.u32 %v12639_v51, %v8568_v49  ;;  %v8496_v59 = vld [vmem:[%s20686_s1 + $0x20] sm:$0xf] }
   0xe   :  { %6573 = vmatpush.bf16.msra.mxu2 %v8649_v34  ;;  %v8696_v54 = vld [vmem:[%s20686_s1 + $0x1b0] sm:$0xf]  ;;  %v12671_v55 = vld [vmem:[%s20686_s1 + $0x1b4] sm:$0xf0]  ;;  %v8633_v58 = vor.u32 %v12655_v53, %v8632_v52  ;;  %v12621_v60 = vld [vmem:[%s20686_s1 + $0x24] sm:$0xf0] }
   0xf   :  { %6586 = vmatpush.bf16.msra.mxu3 %v8713_v38  ;;  %v8560_v61 = vld [vmem:[%s20686_s1 + $0xa0] sm:$0xf]  ;;  %v8697_v62 = vor.u32 %v12671_v55, %v8696_v54  ;;  %v12637_v63 = vld [vmem:[%s20686_s1 + $0xa4] sm:$0xf0]  ;;  %v8497_v4 = vor.u32 %v12621_v60, %v8496_v59  ;;  %v8488_v7 = vld [vmem:[%s20686_s1 + $0x10] sm:$0xf] }
  0x10   :  { %6548 = vmatpush.bf16.msra.mxu0 %v8513_v44  ;;  %v8624_v0 = vld [vmem:[%s20686_s1 + $0x120] sm:$0xf]  ;;  %v12653_v1 = vld [vmem:[%s20686_s1 + $0x124] sm:$0xf0]  ;;  %v8561_v5 = vor.u32 %v12637_v63, %v8560_v61  ;;  %v12619_v8 = vld [vmem:[%s20686_s1 + $0x14] sm:$0xf0] }
  0x11   :  { %6561 = vmatpush.bf16.msra.mxu1 %v8577_v45  ;;  %v8688_v2 = vld [vmem:[%s20686_s1 + $0x1a0] sm:$0xf]  ;;  %v12669_v3 = vld [vmem:[%s20686_s1 + $0x1a4] sm:$0xf0]  ;;  %v8625_v6 = vor.u32 %v12653_v1, %v8624_v0  ;;  %v8552_v9 = vld [vmem:[%s20686_s1 + $0x90] sm:$0xf]  ;;  %v8489_v16 = vor.u32 %v12619_v8, %v8488_v7 }
  0x12   :  { %6574 = vmatpush.bf16.msra.mxu2 %v8641_v46  ;;  %v8689_v10 = vor.u32 %v12669_v3, %v8688_v2  ;;  %v12635_v11 = vld [vmem:[%s20686_s1 + $0x94] sm:$0xf0]  ;;  %v8616_v12 = vld [vmem:[%s20686_s1 + $0x110] sm:$0xf]  ;;  %v8480_v17 = vld [vmem:[%s20686_s1] sm:$0xf] }
  0x13   :  { %6587 = vmatpush.bf16.msra.mxu3 %v8705_v50  ;;  %v12651_v13 = vld [vmem:[%s20686_s1 + $0x114] sm:$0xf0]  ;;  %v8680_v14 = vld [vmem:[%s20686_s1 + $0x190] sm:$0xf]  ;;  %v12617_v18 = vld [vmem:[%s20686_s1 + $0x4] sm:$0xf0]  ;;  %v8553_v19 = vor.u32 %v12635_v11, %v8552_v9 }
  0x14   :  { %6549 = vmatpush.bf16.msra.mxu0 %v8505_v56  ;;  %v12667_v15 = vld [vmem:[%s20686_s1 + $0x194] sm:$0xf0]  ;;  %v8617_v20 = vor.u32 %v12651_v13, %v8616_v12  ;;  %v8544_v21 = vld [vmem:[%s20686_s1 + $0x80] sm:$0xf]  ;;  %v12633_v22 = vld [vmem:[%s20686_s1 + $0x84] sm:$0xf0]  ;;  %v8481_v31 = vor.u32 %v12617_v18, %v8480_v17 }
  0x15   :  { %6562 = vmatpush.bf16.msra.mxu1 %v8569_v57  ;;  %v8608_v23 = vld [vmem:[%s20686_s1 + $0x100] sm:$0xf]  ;;  %v8681_v24 = vor.u32 %v12667_v15, %v8680_v14  ;;  %v12649_v25 = vld [vmem:[%s20686_s1 + $0x104] sm:$0xf0]  ;;  %v8792_v28 = vld [vmem:[%s20686_s1 + $0x270] sm:$0xf]  ;;  %v8545_v35 = vor.u32 %v12633_v22, %v8544_v21 }
  0x16   :  { %6575 = vmatpush.bf16.msra.mxu2 %v8633_v58  ;;  %v8672_v26 = vld [vmem:[%s20686_s1 + $0x180] sm:$0xf]  ;;  %v12665_v27 = vld [vmem:[%s20686_s1 + $0x184] sm:$0xf0]  ;;  %v12695_v29 = vld [vmem:[%s20686_s1 + $0x274] sm:$0xf0]  ;;  %v8609_v36 = vor.u32 %v12649_v25, %v8608_v23 }
  0x17   :  { %6588 = vmatpush.bf16.msra.mxu3 %v8697_v62  ;;  %v8856_v30 = vld [vmem:[%s20686_s1 + $0x2f0] sm:$0xf]  ;;  %v12711_v32 = vld [vmem:[%s20686_s1 + $0x2f4] sm:$0xf0]  ;;  %v8673_v39 = vor.u32 %v12665_v27, %v8672_v26  ;;  %v8793_v40 = vor.u32 %v12695_v29, %v8792_v28  ;;  %v8784_v43 = vld [vmem:[%s20686_s1 + $0x260] sm:$0xf] }
  0x18   :  { %6550 = vmatpush.bf16.msra.mxu0 %v8497_v4  ;;  %v8920_v33 = vld [vmem:[%s20686_s1 + $0x370] sm:$0xf]  ;;  %v12727_v34 = vld [vmem:[%s20686_s1 + $0x374] sm:$0xf0]  ;;  %v8857_v41 = vor.u32 %v12711_v32, %v8856_v30  ;;  %v12693_v44 = vld [vmem:[%s20686_s1 + $0x264] sm:$0xf0] }
  0x19   :  { %6563 = vmatpush.bf16.msra.mxu1 %v8561_v5  ;;  %v8984_v37 = vld [vmem:[%s20686_s1 + $0x3f0] sm:$0xf]  ;;  %v12743_v38 = vld [vmem:[%s20686_s1 + $0x3f4] sm:$0xf0]  ;;  %v8921_v42 = vor.u32 %v12727_v34, %v8920_v33  ;;  %v8848_v45 = vld [vmem:[%s20686_s1 + $0x2e0] sm:$0xf]  ;;  %v8785_v52 = vor.u32 %v12693_v44, %v8784_v43 }
  0x1a   :  { %6576 = vmatpush.bf16.msra.mxu2 %v8625_v6  ;;  %v8985_v46 = vor.u32 %v12743_v38, %v8984_v37  ;;  %v12709_v47 = vld [vmem:[%s20686_s1 + $0x2e4] sm:$0xf0]  ;;  %v8912_v48 = vld [vmem:[%s20686_s1 + $0x360] sm:$0xf]  ;;  %v8776_v55 = vld [vmem:[%s20686_s1 + $0x250] sm:$0xf] }
  0x1b   :  { %6589 = vmatpush.bf16.msra.mxu3 %v8689_v10  ;;  %v12725_v49 = vld [vmem:[%s20686_s1 + $0x364] sm:$0xf0]  ;;  %v8976_v50 = vld [vmem:[%s20686_s1 + $0x3e0] sm:$0xf]  ;;  %v8849_v53 = vor.u32 %v12709_v47, %v8848_v45  ;;  %v12691_v56 = vld [vmem:[%s20686_s1 + $0x254] sm:$0xf0] }
  0x1c   :  { %6551 = vmatpush.bf16.msra.mxu0 %v8489_v16  ;;  %v12741_v51 = vld [vmem:[%s20686_s1 + $0x3e4] sm:$0xf0]  ;;  %v8913_v54 = vor.u32 %v12725_v49, %v8912_v48  ;;  %v8840_v57 = vld [vmem:[%s20686_s1 + $0x2d0] sm:$0xf]  ;;  %v12707_v59 = vld [vmem:[%s20686_s1 + $0x2d4] sm:$0xf0]  ;;  %v8777_v1 = vor.u32 %v12691_v56, %v8776_v55 }
  0x1d   :  { %6564 = vmatpush.bf16.msra.mxu1 %v8553_v19  ;;  %v8977_v58 = vor.u32 %v12741_v51, %v8976_v50  ;;  %v8904_v60 = vld [vmem:[%s20686_s1 + $0x350] sm:$0xf]  ;;  %v12723_v61 = vld [vmem:[%s20686_s1 + $0x354] sm:$0xf0]  ;;  %v8768_v0 = vld [vmem:[%s20686_s1 + $0x240] sm:$0xf]  ;;  %v8841_v5 = vor.u32 %v12707_v59, %v8840_v57 }
  0x1e   :  { %6577 = vmatpush.bf16.msra.mxu2 %v8617_v20  ;;  %v8968_v62 = vld [vmem:[%s20686_s1 + $0x3d0] sm:$0xf]  ;;  %v12739_v63 = vld [vmem:[%s20686_s1 + $0x3d4] sm:$0xf0]  ;;  %v12689_v2 = vld [vmem:[%s20686_s1 + $0x244] sm:$0xf0]  ;;  %v8905_v6 = vor.u32 %v12723_v61, %v8904_v60 }
  0x1f   :  { %6590 = vmatpush.bf16.msra.mxu3 %v8681_v24  ;;  %v34_v3 = vld [vmem:[%s20685_s0 + $0x8] sm:$0xff]  ;;  %v33_v4 = vld [vmem:[%s20685_s0] sm:$0xff]  ;;  %v8969_v9 = vor.u32 %v12739_v63, %v8968_v62  ;;  %v8769_v14 = vor.u32 %v12689_v2, %v8768_v0  ;;  %v8760_v15 = vld [vmem:[%s20686_s1 + $0x230] sm:$0xf] }
  0x20   :  { %6552 = vmatpush.bf16.msra.mxu0 %v8481_v31  ;;  %v8832_v7 = vld [vmem:[%s20686_s1 + $0x2c0] sm:$0xf]  ;;  %v12705_v8 = vld [vmem:[%s20686_s1 + $0x2c4] sm:$0xf0]  ;;  %101 = vst [vmem:[#allocation1 + $0x10] ss:$2 sm:$0xff] %v34_v3 }
  0x21   :  { %6565 = vmatpush.bf16.msra.mxu1 %v8545_v35  ;;  %v8896_v10 = vld [vmem:[%s20686_s1 + $0x340] sm:$0xf]  ;;  %v12721_v11 = vld [vmem:[%s20686_s1 + $0x344] sm:$0xf0]  ;;  %99 = vst [vmem:[#allocation1] ss:$2 sm:$0xff] %v33_v4  ;;  %v8833_v18 = vor.u32 %v12705_v8, %v8832_v7 }
  0x22   :  { %6578 = vmatpush.bf16.msra.mxu2 %v8609_v36  ;;  %v8960_v12 = vld [vmem:[%s20686_s1 + $0x3c0] sm:$0xf]  ;;  %v12737_v13 = vld [vmem:[%s20686_s1 + $0x3c4] sm:$0xf0]  ;;  %v12687_v16 = vld [vmem:[%s20686_s1 + $0x234] sm:$0xf0]  ;;  %v8897_v19 = vor.u32 %v12721_v11, %v8896_v10 }
  0x23   :  { %6591 = vmatpush.bf16.msra.mxu3 %v8673_v39  ;;  %v8824_v17 = vld [vmem:[%s20686_s1 + $0x2b0] sm:$0xf]  ;;  %v12703_v20 = vld [vmem:[%s20686_s1 + $0x2b4] sm:$0xf0]  ;;  %v8961_v23 = vor.u32 %v12737_v13, %v8960_v12  ;;  %v38_v26 = vld [vmem:[%s20685_s0 + $0x28] sm:$0xff]  ;;  %v8761_v30 = vor.u32 %v12687_v16, %v8760_v15 }
  0x24   :  { %6597 = vmatpush.bf16.msrb.mxu0 %v8793_v40  ;;  %v8888_v21 = vld [vmem:[%s20686_s1 + $0x330] sm:$0xf]  ;;  %v12719_v22 = vld [vmem:[%s20686_s1 + $0x334] sm:$0xf0]  ;;  %v8752_v27 = vld [vmem:[%s20686_s1 + $0x220] sm:$0xf]  ;;  %v8825_v31 = vor.u32 %v12703_v20, %v8824_v17 }
  0x25   :  { %6610 = vmatpush.bf16.msrb.mxu1 %v8857_v41  ;;  %v8952_v24 = vld [vmem:[%s20686_s1 + $0x3b0] sm:$0xf]  ;;  %v12735_v25 = vld [vmem:[%s20686_s1 + $0x3b4] sm:$0xf0]  ;;  %v12685_v28 = vld [vmem:[%s20686_s1 + $0x224] sm:$0xf0]  ;;  %v8889_v37 = vor.u32 %v12719_v22, %v8888_v21 }
  0x26   :  { %6623 = vmatpush.bf16.msrb.mxu2 %v8921_v42  ;;  %v37_v29 = vld [vmem:[%s20685_s0 + $0x20] sm:$0xff]  ;;  %v12701_v33 = vld [vmem:[%s20686_s1 + $0x2a4] sm:$0xf0]  ;;  %v8953_v41 = vor.u32 %v12735_v25, %v8952_v24  ;;  %v8753_v48 = vor.u32 %v12685_v28, %v8752_v27  ;;  %v8744_v49 = vld [vmem:[%s20686_s1 + $0x210] sm:$0xf] }
  0x27   :  { %6636 = vmatpush.bf16.msrb.mxu3 %v8985_v46  ;;  %v8816_v32 = vld [vmem:[%s20686_s1 + $0x2a0] sm:$0xf]  ;;  %v108_v35 = vld.sshfl [vmem:[#allocation1 + $0x10] sm:$0xff pattern:$0x75316420]  ;;  %v36_v51 = vld [vmem:[%s20685_s0 + $0x18] sm:$0xff] }
  0x28   :  { %6598 = vmatpush.bf16.msrb.mxu0 %v8785_v52  ;;  %v8880_v34 = vld [vmem:[%s20686_s1 + $0x320] sm:$0xf]  ;;  %v109_v36 = vld.sshfl [vmem:[#allocation1 + $0x18] sm:$0xff pattern:$0x75316420]  ;;  %v14072_v38 = vpack.c.bf16 %v108_v35, %v108_v35  ;;  %v8817_v52 = vor.u32 %v12701_v33, %v8816_v32  ;;  %v35_v63 = vld [vmem:[%s20685_s0 + $0x10] sm:$0xff] }
  0x29   :  { %6611 = vmatpush.bf16.msrb.mxu1 %v8849_v53  ;;  %v106_v39 = vld.sshfl [vmem:[#allocation1] sm:$0xff pattern:$0x75316420]  ;;  %115 = vst [vmem:[#allocation1 + $0x10] ss:$2 sm:$0xff] %v38_v26  ;;  %v14074_v40 = vpack.c.bf16 %v109_v36, %v109_v36  ;;  %v39_v33 = vld [vmem:[%s20685_s0 + $0x30] sm:$0xff] }
  0x2a   :  { %6624 = vmatpush.bf16.msrb.mxu2 %v8913_v54  ;;  %v12717_v42 = vld [vmem:[%s20686_s1 + $0x324] sm:$0xf0]  ;;  %v14079_v43 = vpack.c.bf16 %v106_v39, %v106_v39  ;;  %v8944_v45 = vld [vmem:[%s20686_s1 + $0x3a0] sm:$0xf]  ;;  %v12683_v50 = vld [vmem:[%s20686_s1 + $0x214] sm:$0xf0] }
  0x2b   :  { %6637 = vmatpush.bf16.msrb.mxu3 %v8977_v58  ;;  %v107_v44 = vld.sshfl [vmem:[#allocation1 + $0x8] sm:$0xff pattern:$0x75316420]  ;;  %6579 = vmatmul.bf16.vlgmr.msra.gmra.mxu2 %v14072_v38  ;;  %v8881_v53 = vor.u32 %v12717_v42, %v8880_v34  ;;  %v8808_v54 = vld [vmem:[%s20686_s1 + $0x290] sm:$0xf]  ;;  %v8745_v0 = vor.u32 %v12683_v50, %v8744_v49 }
  0x2c   :  { %6599 = vmatpush.bf16.msrb.mxu0 %v8777_v1  ;;  %v12733_v46 = vld [vmem:[%s20686_s1 + $0x3a4] sm:$0xf0]  ;;  %6592 = vmatmul.bf16.vlgmr.msra.gmra.mxu3 %v14074_v40  ;;  %114 = vst [vmem:[#allocation1] ss:$2 sm:$0xff] %v37_v29  ;;  %v14089_v47 = vpack.c.bf16 %v107_v44, %v107_v44  ;;  %v12699_v55 = vld [vmem:[%s20686_s1 + $0x294] sm:$0xf0] }
  0x2d   :  { %6612 = vmatpush.bf16.msrb.mxu1 %v8841_v5  ;;  %v8872_v56 = vld [vmem:[%s20686_s1 + $0x310] sm:$0xf]  ;;  %v8945_v57 = vor.u32 %v12733_v46, %v8944_v45  ;;  %6553 = vmatmul.bf16.vlgmr.msra.gmra.mxu0 %v14079_v43  ;;  %v12715_v58 = vld [vmem:[%s20686_s1 + $0x314] sm:$0xf0]  ;;  %v8736_v61 = vld [vmem:[%s20686_s1 + $0x200] sm:$0xf]  ;;  %v8809_v4 = vor.u32 %v12699_v55, %v8808_v54 }
  0x2e   :  { %6625 = vmatpush.bf16.msrb.mxu2 %v8905_v6  ;;  %v8936_v59 = vld [vmem:[%s20686_s1 + $0x390] sm:$0xf]  ;;  %v12731_v60 = vld [vmem:[%s20686_s1 + $0x394] sm:$0xf0]  ;;  %6566 = vmatmul.bf16.vlgmr.msra.gmra.mxu1 %v14089_v47  ;;  %v12681_v62 = vld [vmem:[%s20686_s1 + $0x204] sm:$0xf0]  ;;  %v8873_v5 = vor.u32 %v12715_v58, %v8872_v56 }
  0x2f   :  { %6638 = vmatpush.bf16.msrb.mxu3 %v8969_v9  ;;  %105 = vst [vmem:[#allocation1 + $0x30] ss:$2 sm:$0xff] %v36_v51  ;;  %v8800_v1 = vld [vmem:[%s20686_s1 + $0x280] sm:$0xf]  ;;  %v12697_v2 = vld [vmem:[%s20686_s1 + $0x284] sm:$0xf0]  ;;  %v8937_v9 = vor.u32 %v12731_v60, %v8936_v59  ;;  %v8737_v15 = vor.u32 %v12681_v62, %v8736_v61 }
  0x30   :  { %6600 = vmatpush.bf16.msrb.mxu0 %v8769_v14  ;;  %v8864_v3 = vld [vmem:[%s20686_s1 + $0x300] sm:$0xf]  ;;  %v12713_v6 = vld [vmem:[%s20686_s1 + $0x304] sm:$0xf0]  ;;  %v9048_v10 = vld [vmem:[%s20686_s1 + $0x470] sm:$0xf] }
  0x31   :  { %6613 = vmatpush.bf16.msrb.mxu1 %v8833_v18  ;;  %v8928_v7 = vld [vmem:[%s20686_s1 + $0x380] sm:$0xf]  ;;  %v12729_v8 = vld [vmem:[%s20686_s1 + $0x384] sm:$0xf0]  ;;  %v12759_v11 = vld [vmem:[%s20686_s1 + $0x474] sm:$0xf0]  ;;  %v8865_v20 = vor.u32 %v12713_v6, %v8864_v3 }
  0x32   :  { %6626 = vmatpush.bf16.msrb.mxu2 %v8897_v19  ;;  %103 = vst [vmem:[#allocation1 + $0x20] ss:$2 sm:$0xff] %v35_v63  ;;  %v9112_v12 = vld [vmem:[%s20686_s1 + $0x4f0] sm:$0xf]  ;;  %v12775_v13 = vld [vmem:[%s20686_s1 + $0x4f4] sm:$0xf0]  ;;  %v8801_v19 = vor.u32 %v12697_v2, %v8800_v1  ;;  %v8929_v24 = vor.u32 %v12729_v8, %v8928_v7  ;;  %v9049_v25 = vor.u32 %v12759_v11, %v9048_v10 }
  0x33   :  { %6639 = vmatpush.bf16.msrb.mxu3 %v8961_v23  ;;  %v9176_v14 = vld [vmem:[%s20686_s1 + $0x570] sm:$0xf]  ;;  %v12791_v16 = vld [vmem:[%s20686_s1 + $0x574] sm:$0xf0]  ;;  %v9040_v22 = vld [vmem:[%s20686_s1 + $0x460] sm:$0xf] }
  0x34   :  { %6601 = vmatpush.bf16.msrb.mxu0 %v8761_v30  ;;  %v9240_v17 = vld [vmem:[%s20686_s1 + $0x5f0] sm:$0xf]  ;;  %v40_v18 = vld [vmem:[%s20685_s0 + $0x38] sm:$0xff]  ;;  %v12757_v23 = vld [vmem:[%s20686_s1 + $0x464] sm:$0xf0]  ;;  %v9113_v30 = vor.u32 %v12775_v13, %v9112_v12 }
  0x35   :  { %6614 = vmatpush.bf16.msrb.mxu1 %v8825_v31  ;;  %v12807_v21 = vld [vmem:[%s20686_s1 + $0x5f4] sm:$0xf0]  ;;  %v9104_v26 = vld [vmem:[%s20686_s1 + $0x4e0] sm:$0xf]  ;;  %v12773_v27 = vld [vmem:[%s20686_s1 + $0x4e4] sm:$0xf0]  ;;  %v9177_v31 = vor.u32 %v12791_v16, %v9176_v14  ;;  %v9041_v45 = vor.u32 %v12757_v23, %v9040_v22 }
  0x36   :  { %6627 = vmatpush.bf16.msrb.mxu2 %v8889_v37  ;;  %v112_v28 = vld.sshfl [vmem:[#allocation1 + $0x30] sm:$0xff pattern:$0x75316420]  ;;  %v113_v29 = vld.sshfl [vmem:[#allocation1 + $0x38] sm:$0xff pattern:$0x75316420]  ;;  %v9241_v34 = vor.u32 %v12807_v21, %v9240_v17  ;;  %v9105_v46 = vor.u32 %v12773_v27, %v9104_v26 }
  0x37   :  { %6640 = vmatpush.bf16.msrb.mxu3 %v8953_v41  ;;  %v9168_v32 = vld [vmem:[%s20686_s1 + $0x560] sm:$0xf]  ;;  %117 = vst [vmem:[#allocation1 + $0x30] ss:$2 sm:$0xff] %v40_v18  ;;  %v12789_v35 = vld [vmem:[%s20686_s1 + $0x564] sm:$0xf0]  ;;  %v14201_v39 = vpack.c.bf16 %v112_v28, %v112_v28  ;;  %v14203_v42 = vpack.c.bf16 %v113_v29, %v113_v29 }
  0x38   :  { %6602 = vmatpush.bf16.msrb.mxu0 %v8753_v48  ;;  %v9232_v36 = vld [vmem:[%s20686_s1 + $0x5e0] sm:$0xf]  ;;  %v12805_v37 = vld [vmem:[%s20686_s1 + $0x5e4] sm:$0xf0]  ;;  %v9169_v48 = vor.u32 %v12789_v35, %v9168_v32  ;;  %v9032_v49 = vld [vmem:[%s20686_s1 + $0x450] sm:$0xf] }
  0x39   :  { %6615 = vmatpush.bf16.msrb.mxu1 %v8817_v52  ;;  %v110_v41 = vld.sshfl [vmem:[#allocation1 + $0x20] sm:$0xff pattern:$0x75316420]  ;;  %v111_v44 = vld.sshfl [vmem:[#allocation1 + $0x28] sm:$0xff pattern:$0x75316420]  ;;  %v9233_v52 = vor.u32 %v12805_v37, %v9232_v36 }
  0x3a   :  { %6628 = vmatpush.bf16.msrb.mxu2 %v8881_v53  ;;  %116 = vst [vmem:[#allocation1 + $0x20] ss:$2 sm:$0xff] %v39_v33  ;;  %v12755_v50 = vld [vmem:[%s20686_s1 + $0x454] sm:$0xf0]  ;;  %v9096_v51 = vld [vmem:[%s20686_s1 + $0x4d0] sm:$0xf]  ;;  %v14224_v56 = vpack.c.bf16 %v110_v41, %v110_v41  ;;  %v14233_v59 = vpack.c.bf16 %v111_v44, %v111_v44 }
  0x3b   :  { %6641 = vmatpush.bf16.msrb.mxu3 %v8945_v57  ;;  %v12771_v53 = vld [vmem:[%s20686_s1 + $0x4d4] sm:$0xf0]  ;;  %v9160_v54 = vld [vmem:[%s20686_s1 + $0x550] sm:$0xf]  ;;  %v9033_v60 = vor.u32 %v12755_v50, %v9032_v49  ;;  %v9024_v63 = vld [vmem:[%s20686_s1 + $0x440] sm:$0xf] }
  0x3c   :  { %6603 = vmatpush.bf16.msrb.mxu0 %v8745_v0  ;;  %v12787_v55 = vld [vmem:[%s20686_s1 + $0x554] sm:$0xf0]  ;;  %v9224_v57 = vld [vmem:[%s20686_s1 + $0x5d0] sm:$0xf]  ;;  %v9097_v61 = vor.u32 %v12771_v53, %v9096_v51  ;;  %v12753_v0 = vld [vmem:[%s20686_s1 + $0x444] sm:$0xf0] }
  0x3d   :  { %6616 = vmatpush.bf16.msrb.mxu1 %v8809_v4  ;;  %v12803_v58 = vld [vmem:[%s20686_s1 + $0x5d4] sm:$0xf0]  ;;  %v9161_v62 = vor.u32 %v12787_v55, %v9160_v54  ;;  %v9088_v1 = vld [vmem:[%s20686_s1 + $0x4c0] sm:$0xf]  ;;  %v12769_v3 = vld [vmem:[%s20686_s1 + $0x4c4] sm:$0xf0]  ;;  %v9025_v8 = vor.u32 %v12753_v0, %v9024_v63 }
  0x3e   :  { %6629 = vmatpush.bf16.msrb.mxu2 %v8873_v5  ;;  %v9225_v2 = vor.u32 %v12803_v58, %v9224_v57  ;;  %v9152_v4 = vld [vmem:[%s20686_s1 + $0x540] sm:$0xf]  ;;  %v12785_v5 = vld [vmem:[%s20686_s1 + $0x544] sm:$0xf0]  ;;  %v9089_v10 = vor.u32 %v12769_v3, %v9088_v1  ;;  %v12751_v12 = vld [vmem:[%s20686_s1 + $0x434] sm:$0xf0] }
  0x3f   :  { %6642 = vmatpush.bf16.msrb.mxu3 %v8937_v9  ;;  %v9216_v6 = vld [vmem:[%s20686_s1 + $0x5c0] sm:$0xf]  ;;  %v12801_v7 = vld [vmem:[%s20686_s1 + $0x5c4] sm:$0xf0]  ;;  %v9016_v9 = vld [vmem:[%s20686_s1 + $0x430] sm:$0xf]  ;;  %v9153_v11 = vor.u32 %v12785_v5, %v9152_v4 }
  0x40   :  { %6604 = vmatpush.bf16.msrb.mxu0 %v8737_v15  ;;  %v9080_v13 = vld [vmem:[%s20686_s1 + $0x4b0] sm:$0xf]  ;;  %v12767_v14 = vld [vmem:[%s20686_s1 + $0x4b4] sm:$0xf0]  ;;  %v9217_v15 = vor.u32 %v12801_v7, %v9216_v6  ;;  %v12749_v21 = vld [vmem:[%s20686_s1 + $0x424] sm:$0xf0]  ;;  %v9017_v22 = vor.u32 %v12751_v12, %v9016_v9 }
  0x41   :  { %6617 = vmatpush.bf16.msrb.mxu1 %v8801_v19  ;;  %v9144_v16 = vld [vmem:[%s20686_s1 + $0x530] sm:$0xf]  ;;  %v12783_v17 = vld [vmem:[%s20686_s1 + $0x534] sm:$0xf0]  ;;  %v9072_v23 = vld [vmem:[%s20686_s1 + $0x4a0] sm:$0xf]  ;;  %v9081_v29 = vor.u32 %v12767_v14, %v9080_v13 }
  0x42   :  { %6630 = vmatpush.bf16.msrb.mxu2 %v8865_v20  ;;  %v9208_v18 = vld [vmem:[%s20686_s1 + $0x5b0] sm:$0xf]  ;;  %v12799_v19 = vld [vmem:[%s20686_s1 + $0x5b4] sm:$0xf0]  ;;  %v9008_v20 = vld [vmem:[%s20686_s1 + $0x420] sm:$0xf] }
  0x43   :  { %6643 = vmatpush.bf16.msrb.mxu3 %v8929_v24  ;;  %6605 = vmatmul.bf16.vlgmr.msrb.gmra.mxu0 %v14224_v56  ;;  %v12765_v24 = vld [vmem:[%s20686_s1 + $0x4a4] sm:$0xf0]  ;;  %v14303_v27 = vld.sshfl [vmem:[#allocation1] sm:$0xff pattern:$0x75316420]  ;;  %v9209_v33 = vor.u32 %v12799_v19, %v9208_v18  ;;  %v9009_v41 = vor.u32 %v12749_v21, %v9008_v20 }
  0x44   :  { %6649 = vmatpush.bf16.msra.mxu0 %v9049_v25  ;;  %6618 = vmatmul.bf16.vlgmr.msrb.gmra.mxu1 %v14233_v59  ;;  %v9136_v25 = vld [vmem:[%s20686_s1 + $0x520] sm:$0xf]  ;;  %v12781_v26 = vld [vmem:[%s20686_s1 + $0x524] sm:$0xf0]  ;;  %v9073_v44 = vor.u32 %v12765_v24, %v9072_v23  ;;  %v9064_v49 = vld [vmem:[%s20686_s1 + $0x490] sm:$0xf] }
  0x45   :  { %6662 = vmatpush.bf16.msra.mxu1 %v9113_v30  ;;  %6631 = vmatmul.bf16.vlgmr.msrb.gmra.mxu2 %v14201_v39  ;;  %v41_v28 = vld [vmem:[%s20685_s0 + $0x40] sm:$0xff]  ;;  %v9145_v30 = vor.u32 %v12783_v17, %v9144_v16  ;;  %v14310_v32 = vld.sshfl [vmem:[#allocation1 + $0x8] sm:$0xff pattern:$0x75316420]  ;;  %v12763_v51 = vld [vmem:[%s20686_s1 + $0x494] sm:$0xf0] }
  0x46   :  { %6675 = vmatpush.bf16.msra.mxu2 %v9177_v31  ;;  %6644 = vmatmul.bf16.vlgmr.msrb.gmra.mxu3 %v14203_v42  ;;  %v14308_v31 = vld.sshfl [vmem:[#allocation1 + $0x10] sm:$0xff pattern:$0x75316420]  ;;  %126 = vst [vmem:[#allocation1] ss:$2 sm:$0xff] %v41_v28 }
  0x47   :  { %6688 = vmatpush.bf16.msra.mxu3 %v9241_v34  ;;  %v42_v34 = vld [vmem:[%s20685_s0 + $0x48] sm:$0xff]  ;;  %v14315_v35 = vld.sshfl [vmem:[#allocation1 + $0x18] sm:$0xff pattern:$0x75316420]  ;;  %v9200_v36 = vld [vmem:[%s20686_s1 + $0x5a0] sm:$0xf] }
  0x48   :  { %6650 = vmatpush.bf16.msra.mxu0 %v9041_v45  ;;  %v12797_v37 = vld [vmem:[%s20686_s1 + $0x5a4] sm:$0xf0]  ;;  %127 = vst [vmem:[#allocation1 + $0x10] ss:$2 sm:$0xff] %v42_v34  ;;  %v9137_v45 = vor.u32 %v12781_v26, %v9136_v25  ;;  %v12779_v53 = vld [vmem:[%s20686_s1 + $0x514] sm:$0xf0]  ;;  %v14406_v25 = vpack.c.bf16 %v14303_v27, %v14303_v27  ;;  %v14423_v27 = vpack.c.bf16 %v14310_v32, %v14310_v32 }
  0x49   :  { %6663 = vmatpush.bf16.msra.mxu1 %v9105_v46  ;;  %v9000_v46 = vld [vmem:[%s20686_s1 + $0x410] sm:$0xf]  ;;  %v9201_v50 = vor.u32 %v12797_v37, %v9200_v36  ;;  %v12795_v55 = vld [vmem:[%s20686_s1 + $0x594] sm:$0xf0]  ;;  %v8992_v58 = vld [vmem:[%s20686_s1 + $0x400] sm:$0xf]  ;;  %v14433_v36 = vpack.c.bf16 %v14315_v35, %v14315_v35 }
  0x4a   :  { %6676 = vmatpush.bf16.msra.mxu2 %v9169_v48  ;;  %v12747_v48 = vld [vmem:[%s20686_s1 + $0x414] sm:$0xf0]  ;;  %v9192_v54 = vld [vmem:[%s20686_s1 + $0x590] sm:$0xf]  ;;  %v9056_v63 = vld [vmem:[%s20686_s1 + $0x480] sm:$0xf] }
  0x4b   :  { %6689 = vmatpush.bf16.msra.mxu3 %v9233_v52  ;;  %v9128_v52 = vld [vmem:[%s20686_s1 + $0x510] sm:$0xf]  ;;  %v9001_v57 = vor.u32 %v12747_v48, %v9000_v46  ;;  %v12761_v0 = vld [vmem:[%s20686_s1 + $0x484] sm:$0xf0]  ;;  %v9120_v1 = vld [vmem:[%s20686_s1 + $0x500] sm:$0xf] }
  0x4c   :  { %6651 = vmatpush.bf16.msra.mxu0 %v9033_v60  ;;  %v12745_v60 = vld [vmem:[%s20686_s1 + $0x404] sm:$0xf0]  ;;  %v9184_v4 = vld [vmem:[%s20686_s1 + $0x580] sm:$0xf]  ;;  %v9304_v6 = vld [vmem:[%s20686_s1 + $0x670] sm:$0xf]  ;;  %v9057_v13 = vor.u32 %v12761_v0, %v9056_v63 }
  0x4d   :  { %6664 = vmatpush.bf16.msra.mxu1 %v9097_v61  ;;  %v9065_v61 = vor.u32 %v12763_v51, %v9064_v49  ;;  %v12777_v3 = vld [vmem:[%s20686_s1 + $0x504] sm:$0xf0]  ;;  %v12823_v7 = vld [vmem:[%s20686_s1 + $0x674] sm:$0xf0]  ;;  %v8993_v9 = vor.u32 %v12745_v60, %v8992_v58  ;;  %v9296_v21 = vld [vmem:[%s20686_s1 + $0x660] sm:$0xf] }
  0x4e   :  { %6677 = vmatpush.bf16.msra.mxu2 %v9161_v62  ;;  %v9129_v62 = vor.u32 %v12779_v53, %v9128_v52  ;;  %v12793_v5 = vld [vmem:[%s20686_s1 + $0x584] sm:$0xf0]  ;;  %v12855_v12 = vld [vmem:[%s20686_s1 + $0x774] sm:$0xf0]  ;;  %v9121_v14 = vor.u32 %v12777_v3, %v9120_v1  ;;  %v9305_v18 = vor.u32 %v12823_v7, %v9304_v6  ;;  %v9360_v23 = vld [vmem:[%s20686_s1 + $0x6e0] sm:$0xf] }
  0x4f   :  { %6690 = vmatpush.bf16.msra.mxu3 %v9225_v2  ;;  %v9193_v2 = vor.u32 %v12795_v55, %v9192_v54  ;;  %v12871_v16 = vld [vmem:[%s20686_s1 + $0x7f4] sm:$0xf0]  ;;  %v9185_v17 = vor.u32 %v12793_v5, %v9184_v4  ;;  %v12837_v26 = vld [vmem:[%s20686_s1 + $0x6e4] sm:$0xf0]  ;;  %v9424_v28 = vld [vmem:[%s20686_s1 + $0x760] sm:$0xf] }
  0x50   :  { %6652 = vmatpush.bf16.msra.mxu0 %v9025_v8  ;;  %v9368_v8 = vld [vmem:[%s20686_s1 + $0x6f0] sm:$0xf]  ;;  %v12869_v34 = vld [vmem:[%s20686_s1 + $0x7e4] sm:$0xf0]  ;;  %v9361_v37 = vor.u32 %v12837_v26, %v9360_v23  ;;  %v12835_v46 = vld [vmem:[%s20686_s1 + $0x6d4] sm:$0xf0] }
  0x51   :  { %6665 = vmatpush.bf16.msra.mxu1 %v9089_v10  ;;  %v12839_v10 = vld [vmem:[%s20686_s1 + $0x6f4] sm:$0xf0]  ;;  %v9416_v48 = vld [vmem:[%s20686_s1 + $0x750] sm:$0xf]  ;;  %v9280_v53 = vld [vmem:[%s20686_s1 + $0x640] sm:$0xf] }
  0x52   :  { %6678 = vmatpush.bf16.msra.mxu2 %v9153_v11  ;;  %v9432_v11 = vld [vmem:[%s20686_s1 + $0x770] sm:$0xf]  ;;  %v9369_v19 = vor.u32 %v12839_v10, %v9368_v8  ;;  %v12851_v49 = vld [vmem:[%s20686_s1 + $0x754] sm:$0xf0]  ;;  %v12817_v54 = vld [vmem:[%s20686_s1 + $0x644] sm:$0xf0] }
  0x53   :  { %6691 = vmatpush.bf16.msra.mxu3 %v9217_v15  ;;  %v9496_v15 = vld [vmem:[%s20686_s1 + $0x7f0] sm:$0xf]  ;;  %v9433_v20 = vor.u32 %v12855_v12, %v9432_v11  ;;  %v12867_v51 = vld [vmem:[%s20686_s1 + $0x7d4] sm:$0xf0]  ;;  %v9344_v55 = vld [vmem:[%s20686_s1 + $0x6c0] sm:$0xf]  ;;  %v9417_v58 = vor.u32 %v12851_v49, %v9416_v48  ;;  %v9281_v7 = vor.u32 %v12817_v54, %v9280_v53 }
  0x54   :  { %6653 = vmatpush.bf16.msra.mxu0 %v9017_v22  ;;  %v12821_v22 = vld [vmem:[%s20686_s1 + $0x664] sm:$0xf0]  ;;  %v9497_v24 = vor.u32 %v12871_v16, %v9496_v15  ;;  %v9472_v0 = vld [vmem:[%s20686_s1 + $0x7c0] sm:$0xf]  ;;  %v9272_v3 = vld [vmem:[%s20686_s1 + $0x630] sm:$0xf] }
  0x55   :  { %6666 = vmatpush.bf16.msra.mxu1 %v9081_v29  ;;  %v12853_v29 = vld [vmem:[%s20686_s1 + $0x764] sm:$0xf0]  ;;  %v12815_v4 = vld [vmem:[%s20686_s1 + $0x634] sm:$0xf0]  ;;  %v9336_v8 = vld [vmem:[%s20686_s1 + $0x6b0] sm:$0xf] }
  0x56   :  { %6679 = vmatpush.bf16.msra.mxu2 %v9145_v30  ;;  %v14419_v30 = vpack.c.bf16 %v14308_v31, %v14308_v31  ;;  %v9297_v31 = vor.u32 %v12821_v22, %v9296_v21  ;;  %v9425_v32 = vor.u32 %v12853_v29, %v9424_v28  ;;  %v12833_v60 = vld [vmem:[%s20686_s1 + $0x6c4] sm:$0xf0]  ;;  %v14496_v5 = vld.sshfl [vmem:[#allocation1 + $0x20] sm:$0xff pattern:$0x75316420]  ;;  %v44_v11 = vld [vmem:[%s20685_s0 + $0x58] sm:$0xff] }
  0x57   :  { %6692 = vmatpush.bf16.msra.mxu3 %v9209_v33  ;;  %v9488_v33 = vld [vmem:[%s20686_s1 + $0x7e0] sm:$0xf]  ;;  %v12865_v1 = vld [vmem:[%s20686_s1 + $0x7c4] sm:$0xf0]  ;;  %v9345_v12 = vor.u32 %v12833_v60, %v9344_v55  ;;  %v9400_v16 = vld [vmem:[%s20686_s1 + $0x730] sm:$0xf] }
  0x58   :  { %6654 = vmatpush.bf16.msra.mxu0 %v9009_v41  ;;  %v9288_v41 = vld [vmem:[%s20686_s1 + $0x650] sm:$0xf]  ;;  %v9489_v35 = vor.u32 %v12869_v34, %v9488_v33  ;;  %v14506_v10 = vld.sshfl [vmem:[#allocation1 + $0x28] sm:$0xff pattern:$0x75316420]  ;;  %v9473_v15 = vor.u32 %v12865_v1, %v9472_v0 }
  0x59   :  { %6667 = vmatpush.bf16.msra.mxu1 %v9073_v44  ;;  %v12819_v44 = vld [vmem:[%s20686_s1 + $0x654] sm:$0xf0]  ;;  %v14498_v6 = vld.sshfl [vmem:[#allocation1 + $0x30] sm:$0xff pattern:$0x75316420] }
  0x5a   :  { %6680 = vmatpush.bf16.msra.mxu2 %v9137_v45  ;;  %v9352_v45 = vld [vmem:[%s20686_s1 + $0x6d0] sm:$0xf]  ;;  %v9289_v52 = vor.u32 %v12819_v44, %v9288_v41  ;;  %v9264_v23 = vld [vmem:[%s20686_s1 + $0x620] sm:$0xf]  ;;  %v12829_v29 = vld [vmem:[%s20686_s1 + $0x6a4] sm:$0xf0] }
  0x5b   :  { %6693 = vmatpush.bf16.msra.mxu3 %v9201_v50  ;;  %v9480_v50 = vld [vmem:[%s20686_s1 + $0x7d0] sm:$0xf]  ;;  %v9328_v26 = vld [vmem:[%s20686_s1 + $0x6a0] sm:$0xf]  ;;  %v12845_v34 = vld [vmem:[%s20686_s1 + $0x724] sm:$0xf0] }
  0x5c   :  { %6655 = vmatpush.bf16.msra.mxu0 %v9001_v57  ;;  %v9353_v57 = vor.u32 %v12835_v46, %v9352_v45  ;;  %v9481_v63 = vor.u32 %v12867_v51, %v9480_v50  ;;  %v9392_v33 = vld [vmem:[%s20686_s1 + $0x720] sm:$0xf]  ;;  %v9329_v41 = vor.u32 %v12829_v29, %v9328_v26  ;;  %v9256_v45 = vld [vmem:[%s20686_s1 + $0x610] sm:$0xf]  ;;  %v12827_v49 = vld [vmem:[%s20686_s1 + $0x694] sm:$0xf0] }
  0x5d   :  { %6668 = vmatpush.bf16.msra.mxu1 %v9065_v61  ;;  %v9408_v61 = vld [vmem:[%s20686_s1 + $0x740] sm:$0xf]  ;;  %v9393_v44 = vor.u32 %v12845_v34, %v9392_v33  ;;  %v9320_v46 = vld [vmem:[%s20686_s1 + $0x690] sm:$0xf]  ;;  %v12843_v51 = vld [vmem:[%s20686_s1 + $0x714] sm:$0xf0]  ;;  %v14635_v33 = vpack.c.bf16 %v14496_v5, %v14496_v5  ;;  %v14652_v5 = vpack.c.bf16 %v14506_v10, %v14506_v10 }
  0x5e   :  { %6681 = vmatpush.bf16.msra.mxu2 %v9129_v62  ;;  %v12849_v62 = vld [vmem:[%s20686_s1 + $0x744] sm:$0xf0]  ;;  %v9384_v50 = vld [vmem:[%s20686_s1 + $0x710] sm:$0xf]  ;;  %v12859_v53 = vld [vmem:[%s20686_s1 + $0x794] sm:$0xf0] }
  0x5f   :  { %6694 = vmatpush.bf16.msra.mxu3 %v9193_v2  ;;  %v43_v2 = vld [vmem:[%s20685_s0 + $0x50] sm:$0xff]  ;;  %v9248_v55 = vld [vmem:[%s20686_s1 + $0x600] sm:$0xf]  ;;  %v9385_v60 = vor.u32 %v12843_v51, %v9384_v50  ;;  %v12841_v1 = vld [vmem:[%s20686_s1 + $0x704] sm:$0xf0] }
  0x60   :  { %6656 = vmatpush.bf16.msra.mxu0 %v8993_v9  ;;  %v12831_v9 = vld [vmem:[%s20686_s1 + $0x6b4] sm:$0xf0]  ;;  %128 = vst [vmem:[#allocation1 + $0x20] ss:$2 sm:$0xff] %v43_v2  ;;  %v9440_v2 = vld [vmem:[%s20686_s1 + $0x780] sm:$0xf] }
  0x61   :  { %6669 = vmatpush.bf16.msra.mxu1 %v9057_v13  ;;  %v9409_v13 = vor.u32 %v12849_v62, %v9408_v61  ;;  %v9337_v21 = vor.u32 %v12831_v9, %v9336_v8  ;;  %v9312_v61 = vld [vmem:[%s20686_s1 + $0x680] sm:$0xf]  ;;  %v12825_v62 = vld [vmem:[%s20686_s1 + $0x684] sm:$0xf0]  ;;  %v9624_v8 = vld [vmem:[%s20686_s1 + $0x8f0] sm:$0xf] }
  0x62   :  { %6682 = vmatpush.bf16.msra.mxu2 %v9121_v14  ;;  %v14511_v14 = vld.sshfl [vmem:[#allocation1 + $0x38] sm:$0xff pattern:$0x75316420]  ;;  %v9616_v26 = vld [vmem:[%s20686_s1 + $0x8e0] sm:$0xf] }
  0x63   :  { %6695 = vmatpush.bf16.msra.mxu3 %v9185_v17  ;;  %6657 = vmatmul.bf16.vlgmr.msra.gmra.mxu0 %v14406_v25  ;;  %v12847_v17 = vld [vmem:[%s20686_s1 + $0x734] sm:$0xf0]  ;;  %129 = vst [vmem:[#allocation1 + $0x30] ss:$2 sm:$0xff] %v44_v11  ;;  %v9680_v34 = vld [vmem:[%s20686_s1 + $0x960] sm:$0xf] }
  0x64   :  { %6701 = vmatpush.bf16.msrb.mxu0 %v9305_v18  ;;  %6670 = vmatmul.bf16.vlgmr.msra.gmra.mxu1 %v14423_v27  ;;  %v9464_v18 = vld [vmem:[%s20686_s1 + $0x7b0] sm:$0xf]  ;;  %v9401_v22 = vor.u32 %v12847_v17, %v9400_v16  ;;  %v12903_v11 = vld [vmem:[%s20686_s1 + $0x8f4] sm:$0xf0] }
  0x65   :  { %6714 = vmatpush.bf16.msrb.mxu1 %v9369_v19  ;;  %6683 = vmatmul.bf16.vlgmr.msra.gmra.mxu2 %v14419_v30  ;;  %v12863_v19 = vld [vmem:[%s20686_s1 + $0x7b4] sm:$0xf0]  ;;  %v9752_v17 = vld [vmem:[%s20686_s1 + $0x9f0] sm:$0xf] }
  0x66   :  { %6727 = vmatpush.bf16.msrb.mxu2 %v9433_v20  ;;  %6696 = vmatmul.bf16.vlgmr.msra.gmra.mxu3 %v14433_v36  ;;  %v9273_v20 = vor.u32 %v12815_v4, %v9272_v3  ;;  %v9465_v28 = vor.u32 %v12863_v19, %v9464_v18  ;;  %v12857_v3 = vld [vmem:[%s20686_s1 + $0x784] sm:$0xf0]  ;;  %v9560_v4 = vld [vmem:[%s20686_s1 + $0x870] sm:$0xf]  ;;  %v12935_v18 = vld [vmem:[%s20686_s1 + $0x9f4] sm:$0xf0] }
  0x67   :  { %6740 = vmatpush.bf16.msrb.mxu3 %v9497_v24  ;;  %v12813_v24 = vld [vmem:[%s20686_s1 + $0x624] sm:$0xf0]  ;;  %v9441_v19 = vor.u32 %v12857_v3, %v9440_v2  ;;  %v9753_v29 = vor.u32 %v12935_v18, %v9752_v17  ;;  %v9736_v51 = vld [vmem:[%s20686_s1 + $0x9d0] sm:$0xf]  ;;  %v9600_v3 = vld [vmem:[%s20686_s1 + $0x8c0] sm:$0xf] }
  0x68   :  { %6702 = vmatpush.bf16.msrb.mxu0 %v9297_v31  ;;  %v9456_v31 = vld [vmem:[%s20686_s1 + $0x7a0] sm:$0xf]  ;;  %v12881_v2 = vld [vmem:[%s20686_s1 + $0x844] sm:$0xf0]  ;;  %v9528_v17 = vld [vmem:[%s20686_s1 + $0x830] sm:$0xf] }
  0x69   :  { %6715 = vmatpush.bf16.msrb.mxu1 %v9361_v37  ;;  %v12861_v37 = vld [vmem:[%s20686_s1 + $0x7a4] sm:$0xf0]  ;;  %v12879_v18 = vld [vmem:[%s20686_s1 + $0x834] sm:$0xf0] }
  0x6a   :  { %6728 = vmatpush.bf16.msrb.mxu2 %v9425_v32  ;;  %v9265_v32 = vor.u32 %v12813_v24, %v9264_v23  ;;  %v9457_v48 = vor.u32 %v12861_v37, %v9456_v31  ;;  %v12885_v24 = vld [vmem:[%s20686_s1 + $0x864] sm:$0xf0]  ;;  %v9744_v37 = vld [vmem:[%s20686_s1 + $0x9e0] sm:$0xf] }
  0x6b   :  { %6741 = vmatpush.bf16.msrb.mxu3 %v9489_v35  ;;  %v12811_v35 = vld [vmem:[%s20686_s1 + $0x614] sm:$0xf0]  ;;  %v12917_v31 = vld [vmem:[%s20686_s1 + $0x964] sm:$0xf0] }
  0x6c   :  { %6703 = vmatpush.bf16.msrb.mxu0 %v9289_v52  ;;  %v9448_v52 = vld [vmem:[%s20686_s1 + $0x790] sm:$0xf]  ;;  %v9257_v54 = vor.u32 %v12811_v35, %v9256_v45  ;;  %v12883_v45 = vld [vmem:[%s20686_s1 + $0x854] sm:$0xf0]  ;;  %v9681_v50 = vor.u32 %v12917_v31, %v9680_v34 }
  0x6d   :  { %6716 = vmatpush.bf16.msrb.mxu1 %v9353_v57  ;;  %v12809_v57 = vld [vmem:[%s20686_s1 + $0x604] sm:$0xf0]  ;;  %v9449_v0 = vor.u32 %v12859_v53, %v9448_v52  ;;  %v9608_v35 = vld [vmem:[%s20686_s1 + $0x8d0] sm:$0xf]  ;;  %v12931_v52 = vld [vmem:[%s20686_s1 + $0x9d4] sm:$0xf0] }
  0x6e   :  { %6729 = vmatpush.bf16.msrb.mxu2 %v9417_v58  ;;  %v9321_v58 = vor.u32 %v12827_v49, %v9320_v46  ;;  %v9249_v9 = vor.u32 %v12809_v57, %v9248_v55  ;;  %v12899_v46 = vld [vmem:[%s20686_s1 + $0x8d4] sm:$0xf0]  ;;  %v14685_v53 = vld.sshfl [vmem:[#allocation1] sm:$0xff pattern:$0x75316420] }
  0x6f   :  { %6742 = vmatpush.bf16.msrb.mxu3 %v9481_v63  ;;  %v9376_v63 = vld [vmem:[%s20686_s1 + $0x700] sm:$0xf]  ;;  %v12915_v49 = vld [vmem:[%s20686_s1 + $0x954] sm:$0xf0] }
  0x70   :  { %6704 = vmatpush.bf16.msrb.mxu0 %v9281_v7  ;;  %v12887_v7 = vld [vmem:[%s20686_s1 + $0x874] sm:$0xf0]  ;;  %v9377_v16 = vor.u32 %v12841_v1, %v9376_v63  ;;  %v14691_v57 = vld.sshfl [vmem:[#allocation1 + $0x10] sm:$0xff pattern:$0x75316420]  ;;  %v9609_v63 = vor.u32 %v12899_v46, %v9608_v35 }
  0x71   :  { %6717 = vmatpush.bf16.msrb.mxu1 %v9345_v12  ;;  %v9688_v12 = vld [vmem:[%s20686_s1 + $0x970] sm:$0xf]  ;;  %v9536_v1 = vld [vmem:[%s20686_s1 + $0x840] sm:$0xf]  ;;  %v12909_v35 = vld [vmem:[%s20686_s1 + $0x924] sm:$0xf0] }
  0x72   :  { %6730 = vmatpush.bf16.msrb.mxu2 %v9409_v13  ;;  %v12919_v13 = vld [vmem:[%s20686_s1 + $0x974] sm:$0xf0]  ;;  %v9712_v46 = vld [vmem:[%s20686_s1 + $0x9a0] sm:$0xf] }
  0x73   :  { %6743 = vmatpush.bf16.msrb.mxu3 %v9473_v15  ;;  %v9313_v15 = vor.u32 %v12825_v62, %v9312_v61  ;;  %v9689_v23 = vor.u32 %v12919_v13, %v9688_v12  ;;  %v14700_v61 = vld.sshfl [vmem:[#allocation1 + $0x18] sm:$0xff pattern:$0x75316420]  ;;  %v12929_v12 = vld [vmem:[%s20686_s1 + $0x9c4] sm:$0xf0]  ;;  %v9537_v13 = vor.u32 %v12881_v2, %v9536_v1 }
  0x74   :  { %6705 = vmatpush.bf16.msrb.mxu0 %v9273_v20  ;;  %v9561_v20 = vor.u32 %v12887_v7, %v9560_v4  ;;  %v9737_v4 = vor.u32 %v12931_v52, %v9736_v51  ;;  %v12897_v7 = vld [vmem:[%s20686_s1 + $0x8c4] sm:$0xf0] }
  0x75   :  { %6718 = vmatpush.bf16.msrb.mxu1 %v9337_v21  ;;  %v9552_v21 = vld [vmem:[%s20686_s1 + $0x860] sm:$0xf] }
  0x76   :  { %6731 = vmatpush.bf16.msrb.mxu2 %v9401_v22  ;;  %v9625_v22 = vor.u32 %v12903_v11, %v9624_v8  ;;  %v9553_v10 = vor.u32 %v12885_v24, %v9552_v21  ;;  %v9664_v8 = vld [vmem:[%s20686_s1 + $0x940] sm:$0xf]  ;;  %v12895_v21 = vld [vmem:[%s20686_s1 + $0x8b4] sm:$0xf0]  ;;  %v9720_v24 = vld [vmem:[%s20686_s1 + $0x9b0] sm:$0xf] }
  0x77   :  { %6744 = vmatpush.bf16.msrb.mxu3 %v9465_v28  ;;  %v12901_v28 = vld [vmem:[%s20686_s1 + $0x8e4] sm:$0xf0]  ;;  %v9728_v11 = vld [vmem:[%s20686_s1 + $0x9c0] sm:$0xf] }
  0x78   :  { %6706 = vmatpush.bf16.msrb.mxu0 %v9265_v32  ;;  %v14648_v32 = vpack.c.bf16 %v14498_v6, %v14498_v6  ;;  %v14665_v6 = vpack.c.bf16 %v14511_v14, %v14511_v14  ;;  %v9617_v14 = vor.u32 %v12901_v28, %v9616_v26  ;;  %v12927_v26 = vld [vmem:[%s20686_s1 + $0x9b4] sm:$0xf0]  ;;  %v9529_v28 = vor.u32 %v12879_v18, %v9528_v17 }
  0x79   :  { %6719 = vmatpush.bf16.msrb.mxu1 %v9329_v41  ;;  %v12933_v41 = vld [vmem:[%s20686_s1 + $0x9e4] sm:$0xf0] }
  0x7a   :  { %6732 = vmatpush.bf16.msrb.mxu2 %v9393_v44  ;;  %v9544_v44 = vld [vmem:[%s20686_s1 + $0x850] sm:$0xf]  ;;  %v9745_v55 = vor.u32 %v12933_v41, %v9744_v37  ;;  %v12877_v37 = vld [vmem:[%s20686_s1 + $0x824] sm:$0xf0]  ;;  %v9584_v41 = vld [vmem:[%s20686_s1 + $0x8a0] sm:$0xf] }
  0x7b   :  { %6745 = vmatpush.bf16.msrb.mxu3 %v9457_v48  ;;  %v9672_v48 = vld [vmem:[%s20686_s1 + $0x950] sm:$0xf]  ;;  %v9545_v62 = vor.u32 %v12883_v45, %v9544_v44  ;;  %v12893_v44 = vld [vmem:[%s20686_s1 + $0x8a4] sm:$0xf0]  ;;  %v9721_v45 = vor.u32 %v12927_v26, %v9720_v24 }
  0x7c   :  { %6707 = vmatpush.bf16.msrb.mxu0 %v9257_v54  ;;  %v45_v54 = vld [vmem:[%s20685_s0 + $0x60] sm:$0xff] }
  0x7d   :  { %6720 = vmatpush.bf16.msrb.mxu1 %v9321_v58  ;;  %v14693_v58 = vld.sshfl [vmem:[#allocation1 + $0x8] sm:$0xff pattern:$0x75316420] }
  0x7e   :  { %6733 = vmatpush.bf16.msrb.mxu2 %v9385_v60  ;;  %138 = vst [vmem:[#allocation1] ss:$2 sm:$0xff] %v45_v54  ;;  %v46_v60 = vld [vmem:[%s20685_s0 + $0x68] sm:$0xff] }
  0x7f   :  { %6746 = vmatpush.bf16.msrb.mxu3 %v9449_v0  ;;  %139 = vst [vmem:[#allocation1 + $0x10] ss:$2 sm:$0xff] %v46_v60  ;;  %v9673_v0 = vor.u32 %v12915_v49, %v9672_v48  ;;  %v12925_v48 = vld [vmem:[%s20686_s1 + $0x9a4] sm:$0xf0] }
  0x80   :  { %6708 = vmatpush.bf16.msrb.mxu0 %v9249_v9  ;;  %v12913_v9 = vld [vmem:[%s20686_s1 + $0x944] sm:$0xf0] }
  0x81   :  { %6721 = vmatpush.bf16.msrb.mxu1 %v9313_v15  ;;  %v9601_v15 = vor.u32 %v12897_v7, %v9600_v3 }
  0x82   :  { %6734 = vmatpush.bf16.msrb.mxu2 %v9377_v16  ;;  %v9665_v16 = vor.u32 %v12913_v9, %v9664_v8 }
  0x83   :  { %6747 = vmatpush.bf16.msrb.mxu3 %v9441_v19  ;;  %6709 = vmatmul.bf16.vlgmr.msrb.gmra.mxu0 %v14635_v33  ;;  %v9592_v19 = vld [vmem:[%s20686_s1 + $0x8b0] sm:$0xf] }
  0x84   :  { %6753 = vmatpush.bf16.msra.mxu0 %v9561_v20  ;;  %6722 = vmatmul.bf16.vlgmr.msrb.gmra.mxu1 %v14652_v5  ;;  %v9729_v20 = vor.u32 %v12929_v12, %v9728_v11  ;;  %v9593_v34 = vor.u32 %v12895_v21, %v9592_v19 }
  0x85   :  { %6766 = vmatpush.bf16.msra.mxu1 %v9625_v22  ;;  %6735 = vmatmul.bf16.vlgmr.msrb.gmra.mxu2 %v14648_v32  ;;  %v9656_v22 = vld [vmem:[%s20686_s1 + $0x930] sm:$0xf] }
  0x86   :  { %6779 = vmatpush.bf16.msra.mxu2 %v9689_v23  ;;  %6748 = vmatmul.bf16.vlgmr.msrb.gmra.mxu3 %v14665_v6  ;;  %v12911_v23 = vld [vmem:[%s20686_s1 + $0x934] sm:$0xf0] }
  0x87   :  { %6792 = vmatpush.bf16.msra.mxu3 %v9753_v29  ;;  %v9520_v29 = vld [vmem:[%s20686_s1 + $0x820] sm:$0xf]  ;;  %v9657_v31 = vor.u32 %v12911_v23, %v9656_v22 }
  0x88   :  { %6754 = vmatpush.bf16.msra.mxu0 %v9553_v10  ;;  %v9648_v10 = vld [vmem:[%s20686_s1 + $0x920] sm:$0xf] }
  0x89   :  { %6767 = vmatpush.bf16.msra.mxu1 %v9617_v14 }
  0x8a   :  { %6780 = vmatpush.bf16.msra.mxu2 %v9681_v50 }
  0x8b   :  { %6793 = vmatpush.bf16.msra.mxu3 %v9745_v55 }
  0x8c   :  { %6755 = vmatpush.bf16.msra.mxu0 %v9545_v62 }
  0x8d   :  { %6768 = vmatpush.bf16.msra.mxu1 %v9609_v63 }
  0x8e   :  { %6781 = vmatpush.bf16.msra.mxu2 %v9673_v0 }
  0x8f   :  { %6794 = vmatpush.bf16.msra.mxu3 %v9737_v4 }
  0x90   :  { %6756 = vmatpush.bf16.msra.mxu0 %v9537_v13 }
  0x91   :  { %6769 = vmatpush.bf16.msra.mxu1 %v9601_v15 }
  0x92   :  { %6782 = vmatpush.bf16.msra.mxu2 %v9665_v16 }
  0x93   :  { %6795 = vmatpush.bf16.msra.mxu3 %v9729_v20 }
  0x94   :  { %15 = vsyncpa [#allocation3], 0  ;;  %6757 = vmatpush.bf16.msra.mxu0 %v9529_v28  ;;  %v9521_v49 = vor.u32 %v12877_v37, %v9520_v29  ;;  %v9585_v14 = vor.u32 %v12893_v44, %v9584_v41  ;;  %v9649_v50 = vor.u32 %v12909_v35, %v9648_v10  ;;  %v9512_v51 = vld [vmem:[%s20686_s1 + $0x810] sm:$0xf]  ;;  %v12875_v52 = vld [vmem:[%s20686_s1 + $0x814] sm:$0xf0]  ;;  %v9713_v55 = vor.u32 %v12925_v48, %v9712_v46 }
  0x95   :  { %6770 = vmatpush.bf16.msra.mxu1 %v9593_v34  ;;  %v9576_v54 = vld [vmem:[%s20686_s1 + $0x890] sm:$0xf]  ;;  %v12891_v60 = vld [vmem:[%s20686_s1 + $0x894] sm:$0xf0]  ;;  %v9513_v2 = vor.u32 %v12875_v52, %v9512_v51  ;;  %v9504_v3 = vld [vmem:[%s20686_s1 + $0x800] sm:$0xf]  ;;  %v14874_v52 = vpack.c.bf16 %v14691_v57, %v14691_v57  ;;  %v14891_v57 = vpack.c.bf16 %v14700_v61, %v14700_v61 }
  0x96   :  { %6783 = vmatpush.bf16.msra.mxu2 %v9657_v31  ;;  %v9640_v62 = vld [vmem:[%s20686_s1 + $0x910] sm:$0xf]  ;;  %v12907_v63 = vld [vmem:[%s20686_s1 + $0x914] sm:$0xf0]  ;;  %v12873_v4 = vld [vmem:[%s20686_s1 + $0x804] sm:$0xf0]  ;;  %v9577_v7 = vor.u32 %v12891_v60, %v9576_v54 }
  0x97   :  { %6796 = vmatpush.bf16.msra.mxu3 %v9721_v45  ;;  %v9704_v0 = vld [vmem:[%s20686_s1 + $0x990] sm:$0xf]  ;;  %v12923_v1 = vld [vmem:[%s20686_s1 + $0x994] sm:$0xf0]  ;;  %v9641_v8 = vor.u32 %v12907_v63, %v9640_v62  ;;  %v9568_v9 = vld [vmem:[%s20686_s1 + $0x880] sm:$0xf]  ;;  %v9505_v21 = vor.u32 %v12873_v4, %v9504_v3 }
  0x98   :  { %6758 = vmatpush.bf16.msra.mxu0 %v9521_v49  ;;  %v12889_v11 = vld [vmem:[%s20686_s1 + $0x884] sm:$0xf0]  ;;  %v9632_v12 = vld [vmem:[%s20686_s1 + $0x900] sm:$0xf]  ;;  %v9705_v13 = vor.u32 %v12923_v1, %v9704_v0  ;;  %v9816_v18 = vld [vmem:[%s20686_s1 + $0xa70] sm:$0xf]  ;;  %v14861_v49 = vpack.c.bf16 %v14685_v53, %v14685_v53  ;;  %v14878_v53 = vpack.c.bf16 %v14693_v58, %v14693_v58 }
  0x99   :  { %6771 = vmatpush.bf16.msra.mxu1 %v9585_v14  ;;  %v12905_v15 = vld [vmem:[%s20686_s1 + $0x904] sm:$0xf0]  ;;  %v9696_v16 = vld [vmem:[%s20686_s1 + $0x980] sm:$0xf]  ;;  %v12951_v19 = vld [vmem:[%s20686_s1 + $0xa74] sm:$0xf0]  ;;  %v9569_v26 = vor.u32 %v12889_v11, %v9568_v9 }
  0x9a   :  { %6784 = vmatpush.bf16.msra.mxu2 %v9649_v50  ;;  %v12921_v17 = vld [vmem:[%s20686_s1 + $0x984] sm:$0xf0]  ;;  %v9880_v20 = vld [vmem:[%s20686_s1 + $0xaf0] sm:$0xf]  ;;  %v12967_v22 = vld [vmem:[%s20686_s1 + $0xaf4] sm:$0xf0]  ;;  %v9633_v28 = vor.u32 %v12905_v15, %v9632_v12  ;;  %v9817_v37 = vor.u32 %v12951_v19, %v9816_v18 }
  0x9b   :  { %6797 = vmatpush.bf16.msra.mxu3 %v9713_v55  ;;  %v9944_v23 = vld [vmem:[%s20686_s1 + $0xb70] sm:$0xf]  ;;  %v12983_v24 = vld [vmem:[%s20686_s1 + $0xb74] sm:$0xf0]  ;;  %v9697_v31 = vor.u32 %v12921_v17, %v9696_v16  ;;  %v9808_v41 = vld [vmem:[%s20686_s1 + $0xa60] sm:$0xf]  ;;  %v9881_v44 = vor.u32 %v12967_v22, %v9880_v20 }
  0x9c   :  { %6759 = vmatpush.bf16.msra.mxu0 %v9513_v2  ;;  %v10008_v29 = vld [vmem:[%s20686_s1 + $0xbf0] sm:$0xf]  ;;  %v12999_v34 = vld [vmem:[%s20686_s1 + $0xbf4] sm:$0xf0]  ;;  %v9945_v45 = vor.u32 %v12983_v24, %v9944_v23  ;;  %v12949_v10 = vld [vmem:[%s20686_s1 + $0xa64] sm:$0xf0] }
  0x9d   :  { %6772 = vmatpush.bf16.msra.mxu1 %v9577_v7  ;;  %v9872_v35 = vld [vmem:[%s20686_s1 + $0xae0] sm:$0xf]  ;;  %v12965_v46 = vld [vmem:[%s20686_s1 + $0xae4] sm:$0xf0]  ;;  %v10009_v48 = vor.u32 %v12999_v34, %v10008_v29  ;;  %v9800_v55 = vld [vmem:[%s20686_s1 + $0xa50] sm:$0xf]  ;;  %v9809_v58 = vor.u32 %v12949_v10, %v9808_v41 }
  0x9e   :  { %6785 = vmatpush.bf16.msra.mxu2 %v9641_v8  ;;  %v9936_v14 = vld [vmem:[%s20686_s1 + $0xb60] sm:$0xf]  ;;  %v12981_v50 = vld [vmem:[%s20686_s1 + $0xb64] sm:$0xf0]  ;;  %v12947_v60 = vld [vmem:[%s20686_s1 + $0xa54] sm:$0xf0]  ;;  %v9873_v61 = vor.u32 %v12965_v46, %v9872_v35 }
  0x9f   :  { %6798 = vmatpush.bf16.msra.mxu3 %v9705_v13  ;;  %v10000_v51 = vld [vmem:[%s20686_s1 + $0xbe0] sm:$0xf]  ;;  %v12997_v54 = vld [vmem:[%s20686_s1 + $0xbe4] sm:$0xf0]  ;;  %v9864_v62 = vld [vmem:[%s20686_s1 + $0xad0] sm:$0xf]  ;;  %v9937_v3 = vor.u32 %v12981_v50, %v9936_v14  ;;  %v9801_v16 = vor.u32 %v12947_v60, %v9800_v55 }
  0xa0   :  { %6760 = vmatpush.bf16.msra.mxu0 %v9505_v21  ;;  %v12963_v63 = vld [vmem:[%s20686_s1 + $0xad4] sm:$0xf0]  ;;  %v9928_v0 = vld [vmem:[%s20686_s1 + $0xb50] sm:$0xf]  ;;  %v10001_v9 = vor.u32 %v12997_v54, %v10000_v51  ;;  %v9792_v19 = vld [vmem:[%s20686_s1 + $0xa40] sm:$0xf] }
  0xa1   :  { %6773 = vmatpush.bf16.msra.mxu1 %v9569_v26  ;;  %v12979_v1 = vld [vmem:[%s20686_s1 + $0xb54] sm:$0xf0]  ;;  %v14905_v2 = vld.sshfl [vmem:[#allocation1 + $0x20] sm:$0xff pattern:$0x75316420]  ;;  %v47_v7 = vld [vmem:[%s20685_s0 + $0x70] sm:$0xff]  ;;  %v9865_v17 = vor.u32 %v12963_v63, %v9864_v62 }
  0xa2   :  { %6786 = vmatpush.bf16.msra.mxu2 %v9633_v28  ;;  %v9992_v4 = vld [vmem:[%s20686_s1 + $0xbd0] sm:$0xf]  ;;  %v14913_v8 = vld.sshfl [vmem:[#allocation1 + $0x28] sm:$0xff pattern:$0x75316420]  ;;  %v48_v12 = vld [vmem:[%s20685_s0 + $0x78] sm:$0xff]  ;;  %v9929_v18 = vor.u32 %v12979_v1, %v9928_v0 }
  0xa3   :  { %6799 = vmatpush.bf16.msra.mxu3 %v9697_v31  ;;  %6761 = vmatmul.bf16.vlgmr.msra.gmra.mxu0 %v14861_v49  ;;  %v12995_v11 = vld [vmem:[%s20686_s1 + $0xbd4] sm:$0xf0]  ;;  %140 = vst [vmem:[#allocation1 + $0x20] ss:$2 sm:$0xff] %v47_v7  ;;  %v12945_v20 = vld [vmem:[%s20686_s1 + $0xa44] sm:$0xf0] }
  0xa4   :  { %6805 = vmatpush.bf16.msrb.mxu0 %v9817_v37  ;;  %6774 = vmatmul.bf16.vlgmr.msra.gmra.mxu1 %v14878_v53  ;;  %v14924_v13 = vld.sshfl [vmem:[#allocation1 + $0x30] sm:$0xff pattern:$0x75316420]  ;;  %v14926_v15 = vld.sshfl [vmem:[#allocation1 + $0x38] sm:$0xff pattern:$0x75316420]  ;;  %v9993_v22 = vor.u32 %v12995_v11, %v9992_v4  ;;  %v9793_v34 = vor.u32 %v12945_v20, %v9792_v19 }
  0xa5   :  { %6818 = vmatpush.bf16.msrb.mxu1 %v9881_v44  ;;  %6787 = vmatmul.bf16.vlgmr.msra.gmra.mxu2 %v14874_v52  ;;  %141 = vst [vmem:[#allocation1 + $0x30] ss:$2 sm:$0xff] %v48_v12  ;;  %v9856_v21 = vld [vmem:[%s20686_s1 + $0xac0] sm:$0xf]  ;;  %v12961_v23 = vld [vmem:[%s20686_s1 + $0xac4] sm:$0xf0] }
  0xa6   :  { %6831 = vmatpush.bf16.msrb.mxu2 %v9945_v45  ;;  %6800 = vmatmul.bf16.vlgmr.msra.gmra.mxu3 %v14891_v57  ;;  %v9920_v24 = vld [vmem:[%s20686_s1 + $0xb40] sm:$0xf]  ;;  %v12977_v26 = vld [vmem:[%s20686_s1 + $0xb44] sm:$0xf0]  ;;  %v9857_v31 = vor.u32 %v12961_v23, %v9856_v21  ;;  %v9784_v41 = vld [vmem:[%s20686_s1 + $0xa30] sm:$0xf] }
  0xa7   :  { %6844 = vmatpush.bf16.msrb.mxu3 %v10009_v48  ;;  %v9984_v28 = vld [vmem:[%s20686_s1 + $0xbc0] sm:$0xf]  ;;  %v12993_v29 = vld [vmem:[%s20686_s1 + $0xbc4] sm:$0xf0]  ;;  %v9921_v37 = vor.u32 %v12977_v26, %v9920_v24  ;;  %v12943_v44 = vld [vmem:[%s20686_s1 + $0xa34] sm:$0xf0] }
  0xa8   :  { %6806 = vmatpush.bf16.msrb.mxu0 %v9809_v58  ;;  %v9848_v45 = vld [vmem:[%s20686_s1 + $0xab0] sm:$0xf]  ;;  %v9985_v10 = vor.u32 %v12993_v29, %v9984_v28  ;;  %v12959_v35 = vld [vmem:[%s20686_s1 + $0xab4] sm:$0xf0]  ;;  %v9785_v51 = vor.u32 %v12943_v44, %v9784_v41  ;;  %v9776_v60 = vld [vmem:[%s20686_s1 + $0xa20] sm:$0xf] }
  0xa9   :  { %6819 = vmatpush.bf16.msrb.mxu1 %v9873_v61  ;;  %v9912_v46 = vld [vmem:[%s20686_s1 + $0xb30] sm:$0xf]  ;;  %v12975_v48 = vld [vmem:[%s20686_s1 + $0xb34] sm:$0xf0]  ;;  %v9849_v54 = vor.u32 %v12959_v35, %v9848_v45  ;;  %v12941_v58 = vld [vmem:[%s20686_s1 + $0xa24] sm:$0xf0] }
  0xaa   :  { %6832 = vmatpush.bf16.msrb.mxu2 %v9937_v3  ;;  %v9976_v14 = vld [vmem:[%s20686_s1 + $0xbb0] sm:$0xf]  ;;  %v12991_v50 = vld [vmem:[%s20686_s1 + $0xbb4] sm:$0xf0]  ;;  %v9913_v55 = vor.u32 %v12975_v48, %v9912_v46  ;;  %v9840_v62 = vld [vmem:[%s20686_s1 + $0xaa0] sm:$0xf]  ;;  %v9777_v7 = vor.u32 %v12941_v58, %v9776_v60 }
  0xab   :  { %6845 = vmatpush.bf16.msrb.mxu3 %v10001_v9  ;;  %v9977_v63 = vor.u32 %v12991_v50, %v9976_v14  ;;  %v12957_v0 = vld [vmem:[%s20686_s1 + $0xaa4] sm:$0xf0]  ;;  %v9904_v1 = vld [vmem:[%s20686_s1 + $0xb20] sm:$0xf]  ;;  %v9768_v9 = vld [vmem:[%s20686_s1 + $0xa10] sm:$0xf] }
  0xac   :  { %6807 = vmatpush.bf16.msrb.mxu0 %v9801_v16  ;;  %v12973_v61 = vld [vmem:[%s20686_s1 + $0xb24] sm:$0xf0]  ;;  %v9968_v3 = vld [vmem:[%s20686_s1 + $0xba0] sm:$0xf]  ;;  %v9841_v11 = vor.u32 %v12957_v0, %v9840_v62  ;;  %v12939_v16 = vld [vmem:[%s20686_s1 + $0xa14] sm:$0xf0]  ;;  %v6567_v0 = vpop.f32.mrf.mxu1 }
  0xad   :  { %6820 = vmatpush.bf16.msrb.mxu1 %v9865_v17  ;;  %v12989_v4 = vld [vmem:[%s20686_s1 + $0xba4] sm:$0xf0]  ;;  %v9905_v12 = vor.u32 %v12973_v61, %v9904_v1  ;;  %v9832_v17 = vld [vmem:[%s20686_s1 + $0xa90] sm:$0xf]  ;;  %v12955_v20 = vld [vmem:[%s20686_s1 + $0xa94] sm:$0xf0]  ;;  %v9769_v26 = vor.u32 %v12939_v16, %v9768_v9 }
  0xae   :  { %6833 = vmatpush.bf16.msrb.mxu2 %v9929_v18  ;;  %v1363_v18 = vld [vmem:[%s20687_s2] sm:$0x3]  ;;  %v9969_v19 = vor.u32 %v12989_v4, %v9968_v3  ;;  %v9896_v21 = vld [vmem:[%s20686_s1 + $0xb10] sm:$0xf]  ;;  %v12987_v24 = vld [vmem:[%s20686_s1 + $0xb94] sm:$0xf0]  ;;  %v6580_v16 = vpop.f32.mrf.mxu2 }
  0xaf   :  { %6846 = vmatpush.bf16.msrb.mxu3 %v9993_v22  ;;  %v12971_v22 = vld [vmem:[%s20686_s1 + $0xb14] sm:$0xf0]  ;;  %v9960_v23 = vld [vmem:[%s20686_s1 + $0xb90] sm:$0xf]  ;;  %v9760_v28 = vld [vmem:[%s20686_s1 + $0xa00] sm:$0xf] }
  0xb0   :  { %6808 = vmatpush.bf16.msrb.mxu0 %v9793_v34  ;;  %v12937_v29 = vld [vmem:[%s20686_s1 + $0xa04] sm:$0xf0]  ;;  %v1365_v34 = vperm.slane %v1363_v18, 0  ;;  %v9824_v41 = vld [vmem:[%s20686_s1 + $0xa80] sm:$0xf]  ;;  %vm6538_vm0 = vcmask 1043456  }
  0xb1   :  { %6821 = vmatpush.bf16.msrb.mxu1 %v9857_v31  ;;  %v9833_v31 = vor.u32 %v12955_v20, %v9832_v17  ;;  %v12953_v44 = vld [vmem:[%s20686_s1 + $0xa84] sm:$0xf0]  ;;  %v9888_v45 = vld [vmem:[%s20686_s1 + $0xb00] sm:$0xf]  ;;  %v10072_v14 = vld [vmem:[%s20686_s1 + $0xc70] sm:$0xf]  ;;  %v6593_v17 = vpop.f32.mrf.mxu3 }
  0xb2   :  { %6834 = vmatpush.bf16.msrb.mxu2 %v9921_v37  ;;  %v9897_v37 = vor.u32 %v12971_v22, %v9896_v21  ;;  %v12969_v35 = vld [vmem:[%s20686_s1 + $0xb04] sm:$0xf0]  ;;  %v9952_v46 = vld [vmem:[%s20686_s1 + $0xb80] sm:$0xf]  ;;  %v13015_v50 = vld [vmem:[%s20686_s1 + $0xc74] sm:$0xf0]  ;;  %v9825_v1 = vor.u32 %v12953_v44, %v9824_v41 }
  0xb3   :  { %6847 = vmatpush.bf16.msrb.mxu3 %v9985_v10  ;;  %v9961_v10 = vor.u32 %v12987_v24, %v9960_v23  ;;  %v12985_v48 = vld [vmem:[%s20686_s1 + $0xb84] sm:$0xf0]  ;;  %v13031_v60 = vld [vmem:[%s20686_s1 + $0xcf4] sm:$0xf0]  ;;  %v10200_v58 = vld [vmem:[%s20686_s1 + $0xd70] sm:$0xf]  ;;  %v9889_v61 = vor.u32 %v12969_v35, %v9888_v45  ;;  %v10073_v9 = vor.u32 %v13015_v50, %v10072_v14  ;;  %v15090_v24 = vpack.c.bf16 %v14905_v2, %v14905_v2 }
  0xb4   :  { %6809 = vmatpush.bf16.msrb.mxu0 %v9785_v51  ;;  %v10136_v51 = vld [vmem:[%s20686_s1 + $0xcf0] sm:$0xf]  ;;  %v13047_v62 = vld [vmem:[%s20686_s1 + $0xd74] sm:$0xf0]  ;;  %v13013_v20 = vld [vmem:[%s20686_s1 + $0xc64] sm:$0xf0]  ;;  %v15107_v2 = vpack.c.bf16 %v14913_v8, %v14913_v8 }
  0xb5   :  { %6822 = vmatpush.bf16.msrb.mxu1 %v9849_v54  ;;  %v6554_v54 = vpop.f32.mrf.mxu0  ;;  %v10264_v3 = vld [vmem:[%s20686_s1 + $0xdf0] sm:$0xf]  ;;  %v13063_v4 = vld [vmem:[%s20686_s1 + $0xdf4] sm:$0xf0]  ;;  %v10137_v18 = vor.u32 %v13031_v60, %v10136_v51  ;;  %v10128_v21 = vld [vmem:[%s20686_s1 + $0xce0] sm:$0xf] }
  0xb6   :  { %6835 = vmatpush.bf16.msrb.mxu2 %v9913_v55  ;;  %v9761_v55 = vor.u32 %v12937_v29, %v9760_v28  ;;  %v13029_v22 = vld [vmem:[%s20686_s1 + $0xce4] sm:$0xf0]  ;;  %v10265_v23 = vor.u32 %v13063_v4, %v10264_v3  ;;  %v10256_v29 = vld [vmem:[%s20686_s1 + $0xde0] sm:$0xf]  ;;  %v10056_v41 = vld [vmem:[%s20686_s1 + $0xc50] sm:$0xf]  ;;  %v6582_v4 = vpop.f32.mrf.mxu2 }
  0xb7   :  { %6848 = vmatpush.bf16.msrb.mxu3 %v9977_v63  ;;  %v6555_v63 = vadd.f32 %v6554_v54, %v1365_v34  ;;  %v13045_v28 = vld [vmem:[%s20686_s1 + $0xd64] sm:$0xf0]  ;;  %v13011_v44 = vld [vmem:[%s20686_s1 + $0xc54] sm:$0xf0]  ;;  %v10120_v45 = vld [vmem:[%s20686_s1 + $0xcd0] sm:$0xf]  ;;  %v10129_v50 = vor.u32 %v13029_v22, %v10128_v21 }
  0xb8   :  { %6810 = vmatpush.bf16.msrb.mxu0 %v9777_v7  ;;  %v9953_v7 = vor.u32 %v12985_v48, %v9952_v46  ;;  %v10184_v35 = vld [vmem:[%s20686_s1 + $0xd50] sm:$0xf]  ;;  %v13043_v46 = vld [vmem:[%s20686_s1 + $0xd54] sm:$0xf0]  ;;  %v10057_v3 = vor.u32 %v13011_v44, %v10056_v41  ;;  %v13041_v21 = vld [vmem:[%s20686_s1 + $0xd44] sm:$0xf0] }
  0xb9   :  { %6823 = vmatpush.bf16.msrb.mxu1 %v9841_v11  ;;  %v10064_v11 = vld [vmem:[%s20686_s1 + $0xc60] sm:$0xf]  ;;  %v15136_v14 = vld.sshfl [vmem:[#allocation1 + $0x10] sm:$0xff pattern:$0x75316420]  ;;  %vm6534_vm1 = vcmask 588800  }
  0xba   :  { %6836 = vmatpush.bf16.msrb.mxu2 %v9905_v12  ;;  %v6568_v12 = vadd.f32 %v6567_v0, %v6555_v63  ;;  %v10065_v8 = vor.u32 %v13013_v20, %v10064_v11  ;;  %v15141_v60 = vld.sshfl [vmem:[#allocation1 + $0x8] sm:$0xff pattern:$0x75316420]  ;;  %v6569_v63 = vpop.f32.mrf.mxu1  ;;  %v15147_v0 = vld.sshfl [vmem:[#allocation1 + $0x18] sm:$0xff pattern:$0x75316420]  ;;  %v10185_v11 = vor.u32 %v13043_v46, %v10184_v35 }
  0xbb   :  { %6849 = vmatpush.bf16.msrb.mxu3 %v9969_v19  ;;  %v10201_v19 = vor.u32 %v13047_v62, %v10200_v58  ;;  %v50_v58 = vld [vmem:[%s20685_s0 + $0x88] sm:$0xff]  ;;  %v10176_v20 = vld [vmem:[%s20686_s1 + $0xd40] sm:$0xf]  ;;  %v10104_v41 = vld [vmem:[%s20686_s1 + $0xcb0] sm:$0xf]  ;;  %vm8244_vm2 = vcmask 31744  }
  0xbc   :  { %6811 = vmatpush.bf16.msrb.mxu0 %v9769_v26  ;;  %v10192_v26 = vld [vmem:[%s20686_s1 + $0xd60] sm:$0xf]  ;;  %v6581_v34 = vadd.f32 %v6580_v16, %v6568_v12  ;;  %151 = vst [vmem:[#allocation1 + $0x10] ss:$2 sm:$0xff] %v50_v58  ;;  %v13009_v16 = vld [vmem:[%s20686_s1 + $0xc44] sm:$0xf0] }
  0xbd   :  { %6824 = vmatpush.bf16.msrb.mxu1 %v9833_v31  ;;  %v15103_v31 = vpack.c.bf16 %v14924_v13, %v14924_v13  ;;  %v15120_v13 = vpack.c.bf16 %v14926_v15, %v14926_v15  ;;  %v15134_v15 = vld.sshfl [vmem:[#allocation1] sm:$0xff pattern:$0x75316420]  ;;  %v10193_v51 = vor.u32 %v13045_v28, %v10192_v26  ;;  %v6556_v54 = vpop.f32.mrf.mxu0  ;;  %v10232_v35 = vld [vmem:[%s20686_s1 + $0xdb0] sm:$0xf]  ;;  %s8467_s22 = sshll.u32 %s20694_s9, 4  ;;  %s8468_s22 = int_to_ptr.hbm [resolvable:$true] %s8467_s22 }
  0xbe   :  { %6837 = vmatpush.bf16.msrb.mxu2 %v9897_v37  ;;  %v13061_v37 = vld [vmem:[%s20686_s1 + $0xde4] sm:$0xf0]  ;;  %v6594_v48 = vadd.f32 %v6593_v17, %v6581_v34  ;;  %v10048_v12 = vld [vmem:[%s20686_s1 + $0xc40] sm:$0xf]  ;;  %v10040_v34 = vld [vmem:[%s20686_s1 + $0xc30] sm:$0xf] }
  0xbf   :  { %6850 = vmatpush.bf16.msrb.mxu3 %v9961_v10  ;;  %v13027_v10 = vld [vmem:[%s20686_s1 + $0xcd4] sm:$0xf0]  ;;  %v10257_v62 = vor.u32 %v13061_v37, %v10256_v29  ;;  %v10112_v17 = vld [vmem:[%s20686_s1 + $0xcc0] sm:$0xf]  ;;  %v10049_v26 = vor.u32 %v13009_v16, %v10048_v12  ;;  %v10177_v29 = vor.u32 %v13041_v21, %v10176_v20  ;;  %v13021_v4 = vld [vmem:[%s20686_s1 + $0xca4] sm:$0xf0] }
  0xc0   :  { %6812 = vmatpush.bf16.msrb.mxu0 %v9761_v55  ;;  %v49_v55 = vld [vmem:[%s20685_s0 + $0x80] sm:$0xff]  ;;  %v13007_v37 = vld [vmem:[%s20686_s1 + $0xc34] sm:$0xf0]  ;;  %vm8456_vm9 = vcmask 363520  }
  0xc1   :  { %6825 = vmatpush.bf16.msrb.mxu1 %v9825_v1  ;;  %150 = vst [vmem:[#allocation1] ss:$2 sm:$0xff] %v49_v55  ;;  %v10248_v1 = vld [vmem:[%s20686_s1 + $0xdd0] sm:$0xf]  ;;  %v10240_v22 = vld [vmem:[%s20686_s1 + $0xdc0] sm:$0xf] }
  0xc2   :  { %6838 = vmatpush.bf16.msrb.mxu2 %v9889_v61  ;;  %v13059_v61 = vld [vmem:[%s20686_s1 + $0xdd4] sm:$0xf0]  ;;  %v6619_v55 = vpop.f32.mrf.mxu1  ;;  %v10032_v63 = vld [vmem:[%s20686_s1 + $0xc20] sm:$0xf] }
  0xc3   :  { %6851 = vmatpush.bf16.msrb.mxu3 %v9953_v7  ;;  %6813 = vmatmul.bf16.vlgmr.msrb.gmra.mxu0 %v15090_v24  ;;  %v6595_v7 = vpop.f32.mrf.mxu3  ;;  %v13055_v46 = vld [vmem:[%s20686_s1 + $0xdb4] sm:$0xf0]  ;;  %v10224_v16 = vld [vmem:[%s20686_s1 + $0xda0] sm:$0xf] }
  0xc4   :  { %6857 = vmatpush.bf16.msra.mxu0 %v10073_v9  ;;  %6826 = vmatmul.bf16.vlgmr.msrb.gmra.mxu1 %v15107_v2  ;;  %v10121_v9 = vor.u32 %v13027_v10, %v10120_v45  ;;  %v10168_v45 = vld [vmem:[%s20686_s1 + $0xd30] sm:$0xf]  ;;  %v13039_v10 = vld [vmem:[%s20686_s1 + $0xd34] sm:$0xf0]  ;;  %v10160_v7 = vld [vmem:[%s20686_s1 + $0xd20] sm:$0xf] }
  0xc5   :  { %6870 = vmatpush.bf16.msra.mxu1 %v10137_v18  ;;  %6839 = vmatmul.bf16.vlgmr.msrb.gmra.mxu2 %v15103_v31  ;;  %v10249_v18 = vor.u32 %v13059_v61, %v10248_v1  ;;  %v13005_v1 = vld [vmem:[%s20686_s1 + $0xc24] sm:$0xf0]  ;;  %v10096_v61 = vld [vmem:[%s20686_s1 + $0xca0] sm:$0xf] }
  0xc6   :  { %6883 = vmatpush.bf16.msra.mxu2 %v10201_v19  ;;  %6852 = vmatmul.bf16.vlgmr.msrb.gmra.mxu3 %v15120_v13  ;;  %v13025_v19 = vld [vmem:[%s20686_s1 + $0xcc4] sm:$0xf0]  ;;  %v10097_v20 = vor.u32 %v13021_v4, %v10096_v61 }
  0xc7   :  { %6896 = vmatpush.bf16.msra.mxu3 %v10265_v23  ;;  %v13057_v23 = vld [vmem:[%s20686_s1 + $0xdc4] sm:$0xf0]  ;;  %v10113_v28 = vor.u32 %v13025_v19, %v10112_v17 }
  0xc8   :  { %6858 = vmatpush.bf16.msra.mxu0 %v10065_v8  ;;  %v10241_v44 = vor.u32 %v13057_v23, %v10240_v22  ;;  %v13023_v8 = vld [vmem:[%s20686_s1 + $0xcb4] sm:$0xf0]  ;;  %v13053_v17 = vld [vmem:[%s20686_s1 + $0xda4] sm:$0xf0]  ;;  %v10024_v22 = vld [vmem:[%s20686_s1 + $0xc10] sm:$0xf] }
  0xc9   :  { %6871 = vmatpush.bf16.msra.mxu1 %v10129_v50  ;;  %v6606_v50 = vpop.f32.mrf.mxu0  ;;  %v10105_v58 = vor.u32 %v13023_v8, %v10104_v41  ;;  %v13003_v23 = vld [vmem:[%s20686_s1 + $0xc14] sm:$0xf0]  ;;  %v13033_v61 = vld [vmem:[%s20686_s1 + $0xd04] sm:$0xf0] }
  0xca   :  { %6884 = vmatpush.bf16.msra.mxu2 %v10193_v51  ;;  %v10041_v51 = vor.u32 %v13007_v37, %v10040_v34  ;;  %v6607_v54 = vadd.f32 %v6606_v50, %v6594_v48  ;;  %v10233_v48 = vor.u32 %v13055_v46, %v10232_v35  ;;  %v10152_v34 = vld [vmem:[%s20686_s1 + $0xd10] sm:$0xf]  ;;  %v13035_v37 = vld [vmem:[%s20686_s1 + $0xd14] sm:$0xf0]  ;;  %v10016_v35 = vld [vmem:[%s20686_s1 + $0xc00] sm:$0xf]  ;;  %v6621_v50 = vpop.f32.mrf.mxu1 }
  0xcb   :  { %6897 = vmatpush.bf16.msra.mxu3 %v10257_v62  ;;  %v10169_v62 = vor.u32 %v13039_v10, %v10168_v45  ;;  %v6645_v12 = vpop.f32.mrf.mxu3  ;;  %v13051_v8 = vld [vmem:[%s20686_s1 + $0xd94] sm:$0xf0]  ;;  %v10025_v10 = vor.u32 %v13003_v23, %v10024_v22  ;;  %v13001_v46 = vld [vmem:[%s20686_s1 + $0xc04] sm:$0xf0]  ;;  %v10512_v50 = vld [vmem:[%s20686_s1 + $0xfe0] sm:$0xf] }
  0xcc   :  { %6859 = vmatpush.bf16.msra.mxu0 %v10057_v3  ;;  %v6632_v3 = vpop.f32.mrf.mxu2  ;;  %v13127_v22 = vld [vmem:[%s20686_s1 + $0xff4] sm:$0xf0] }
  0xcd   :  { %6872 = vmatpush.bf16.msra.mxu1 %v10121_v9  ;;  %v13037_v9 = vld [vmem:[%s20686_s1 + $0xd24] sm:$0xf0] }
  0xce   :  { %6885 = vmatpush.bf16.msra.mxu2 %v10185_v11  ;;  %v6620_v11 = vadd.f32 %v6619_v55, %v6607_v54  ;;  %v10161_v21 = vor.u32 %v13037_v9, %v10160_v7  ;;  %v10153_v54 = vor.u32 %v13035_v37, %v10152_v34  ;;  %v10080_v55 = vld [vmem:[%s20686_s1 + $0xc80] sm:$0xf]  ;;  %v10328_v7 = vld [vmem:[%s20686_s1 + $0xe70] sm:$0xf]  ;;  %v13079_v9 = vld [vmem:[%s20686_s1 + $0xe74] sm:$0xf0] }
  0xcf   :  { %6898 = vmatpush.bf16.msra.mxu3 %v10249_v18  ;;  %v10033_v18 = vor.u32 %v13005_v1, %v10032_v63  ;;  %v13077_v37 = vld [vmem:[%s20686_s1 + $0xe64] sm:$0xf0] }
  0xd0   :  { %6860 = vmatpush.bf16.msra.mxu0 %v10049_v26  ;;  %v6633_v19 = vadd.f32 %v6632_v3, %v6620_v11  ;;  %v10088_v26 = vld [vmem:[%s20686_s1 + $0xc90] sm:$0xf]  ;;  %v10208_v3 = vld [vmem:[%s20686_s1 + $0xd80] sm:$0xf] }
  0xd1   :  { %6873 = vmatpush.bf16.msra.mxu1 %v10113_v28  ;;  %v10225_v28 = vor.u32 %v13053_v17, %v10224_v16  ;;  %v6608_v45 = vpop.f32.mrf.mxu0  ;;  %v10392_v11 = vld [vmem:[%s20686_s1 + $0xef0] sm:$0xf]  ;;  %v13095_v16 = vld [vmem:[%s20686_s1 + $0xef4] sm:$0xf0] }
  0xd2   :  { %6886 = vmatpush.bf16.msra.mxu2 %v10177_v29  ;;  %v13019_v29 = vld [vmem:[%s20686_s1 + $0xc94] sm:$0xf0]  ;;  %v15248_v41 = vadd.f32 %v6645_v12, %v6633_v19  ;;  %v10017_v12 = vor.u32 %v13001_v46, %v10016_v35  ;;  %v10456_v17 = vld [vmem:[%s20686_s1 + $0xf70] sm:$0xf]  ;;  %v10448_v35 = vld [vmem:[%s20686_s1 + $0xf60] sm:$0xf] }
  0xd3   :  { %6899 = vmatpush.bf16.msra.mxu3 %v10241_v44  ;;  %v10216_v44 = vld [vmem:[%s20686_s1 + $0xd90] sm:$0xf]  ;;  %v6647_v4 = vpop.f32.mrf.mxu3  ;;  %v13109_v46 = vld [vmem:[%s20686_s1 + $0xf64] sm:$0xf0] }
  0xd4   :  { %6861 = vmatpush.bf16.msra.mxu0 %v10041_v51  ;;  %v10089_v51 = vor.u32 %v13019_v29, %v10088_v26  ;;  %v6634_v63 = vpop.f32.mrf.mxu2  ;;  %v10217_v1 = vor.u32 %v13051_v8, %v10216_v44  ;;  %v10329_v26 = vor.u32 %v13079_v9, %v10328_v7  ;;  %v10393_v29 = vor.u32 %v13095_v16, %v10392_v11  ;;  %v10384_v44 = vld [vmem:[%s20686_s1 + $0xee0] sm:$0xf]  ;;  %v13093_v8 = vld [vmem:[%s20686_s1 + $0xee4] sm:$0xf0]  ;;  %v51_v7 = vld [vmem:[%s20685_s0 + $0x90] sm:$0xff] }
  0xd5   :  { %6874 = vmatpush.bf16.msra.mxu1 %v10105_v58  ;;  %v13017_v58 = vld [vmem:[%s20686_s1 + $0xc84] sm:$0xf0]  ;;  %v13091_v63 = vld [vmem:[%s20686_s1 + $0xed4] sm:$0xf0]  ;;  %v10449_v4 = vor.u32 %v13109_v46, %v10448_v35 }
  0xd6   :  { %6887 = vmatpush.bf16.msra.mxu2 %v10169_v62  ;;  %v10144_v62 = vld [vmem:[%s20686_s1 + $0xd00] sm:$0xf]  ;;  %v10081_v19 = vor.u32 %v13017_v58, %v10080_v55  ;;  %v10312_v55 = vld [vmem:[%s20686_s1 + $0xe50] sm:$0xf]  ;;  %v13075_v58 = vld [vmem:[%s20686_s1 + $0xe54] sm:$0xf0] }
  0xd7   :  { %6900 = vmatpush.bf16.msra.mxu3 %v10233_v48  ;;  %v13049_v48 = vld [vmem:[%s20686_s1 + $0xd84] sm:$0xf0]  ;;  %v52_v11 = vld [vmem:[%s20685_s0 + $0x98] sm:$0xff] }
  0xd8   :  { %6862 = vmatpush.bf16.msra.mxu0 %v10033_v18  ;;  %v13111_v18 = vld [vmem:[%s20686_s1 + $0xf74] sm:$0xf0]  ;;  %v10209_v23 = vor.u32 %v13049_v48, %v10208_v3  ;;  %v15362_v3 = vld.sshfl [vmem:[#allocation1 + $0x20] sm:$0xff pattern:$0x75316420]  ;;  %v10385_v48 = vor.u32 %v13093_v8, %v10384_v44 }
  0xd9   :  { %6875 = vmatpush.bf16.msra.mxu1 %v10097_v20  ;;  %v10145_v20 = vor.u32 %v13033_v61, %v10144_v62  ;;  %v10457_v34 = vor.u32 %v13111_v18, %v10456_v17  ;;  %v10376_v62 = vld [vmem:[%s20686_s1 + $0xed0] sm:$0xf]  ;;  %v13107_v61 = vld [vmem:[%s20686_s1 + $0xf54] sm:$0xf0]  ;;  %v10496_v8 = vld [vmem:[%s20686_s1 + $0xfc0] sm:$0xf] }
  0xda   :  { %6888 = vmatpush.bf16.msra.mxu2 %v10161_v21  ;;  %v10520_v21 = vld [vmem:[%s20686_s1 + $0xff0] sm:$0xf]  ;;  %v15369_v9 = vld.sshfl [vmem:[#allocation1 + $0x28] sm:$0xff pattern:$0x75316420] }
  0xdb   :  { %6901 = vmatpush.bf16.msra.mxu3 %v10225_v28  ;;  %v10320_v28 = vld [vmem:[%s20686_s1 + $0xe60] sm:$0xf]  ;;  %v10521_v45 = vor.u32 %v13127_v22, %v10520_v21  ;;  %152 = vst [vmem:[#allocation1 + $0x20] ss:$2 sm:$0xff] %v51_v7  ;;  %v10504_v17 = vld [vmem:[%s20686_s1 + $0xfd0] sm:$0xf] }
  0xdc   :  { %6863 = vmatpush.bf16.msra.mxu0 %v10025_v10  ;;  %v15318_v10 = vpack.c.bf16 %v15134_v15, %v15134_v15  ;;  %v15335_v15 = vpack.c.bf16 %v15141_v60, %v15141_v60  ;;  %v10321_v60 = vor.u32 %v13077_v37, %v10320_v28  ;;  %v15375_v16 = vld.sshfl [vmem:[#allocation1 + $0x38] sm:$0xff pattern:$0x75316420]  ;;  %v10304_v22 = vld [vmem:[%s20686_s1 + $0xe40] sm:$0xf] }
  0xdd   :  { %6876 = vmatpush.bf16.msra.mxu1 %v10089_v51  ;;  %v15331_v51 = vpack.c.bf16 %v15136_v14, %v15136_v14  ;;  %v15348_v14 = vpack.c.bf16 %v15147_v0, %v15147_v0  ;;  %v15364_v0 = vld.sshfl [vmem:[#allocation1 + $0x30] sm:$0xff pattern:$0x75316420]  ;;  %v13123_v18 = vld [vmem:[%s20686_s1 + $0xfd4] sm:$0xf0] }
  0xde   :  { %6889 = vmatpush.bf16.msra.mxu2 %v10153_v54  ;;  %v13125_v54 = vld [vmem:[%s20686_s1 + $0xfe4] sm:$0xf0]  ;;  %153 = vst [vmem:[#allocation1 + $0x30] ss:$2 sm:$0xff] %v52_v11  ;;  %v10505_v28 = vor.u32 %v13123_v18, %v10504_v17  ;;  %v13119_v7 = vld [vmem:[%s20686_s1 + $0xfb4] sm:$0xf0] }
  0xdf   :  { %6902 = vmatpush.bf16.msra.mxu3 %v10217_v1  ;;  %v10440_v1 = vld [vmem:[%s20686_s1 + $0xf50] sm:$0xf]  ;;  %v13105_v37 = vld [vmem:[%s20686_s1 + $0xf44] sm:$0xf0]  ;;  %v10288_v18 = vld [vmem:[%s20686_s1 + $0xe20] sm:$0xf] }
  0xe0   :  { %6864 = vmatpush.bf16.msra.mxu0 %v10017_v12  ;;  %v10513_v12 = vor.u32 %v13125_v54, %v10512_v50  ;;  %v10441_v21 = vor.u32 %v13107_v61, %v10440_v1  ;;  %v6658_v44 = vpop.f32.mrf.mxu0  ;;  %v13087_v1 = vld [vmem:[%s20686_s1 + $0xeb4] sm:$0xf0]  ;;  %v10424_v61 = vld [vmem:[%s20686_s1 + $0xf30] sm:$0xf] }
  0xe1   :  { %6877 = vmatpush.bf16.msra.mxu1 %v10081_v19  ;;  %v10313_v19 = vor.u32 %v13075_v58, %v10312_v55  ;;  %v6659_v35 = vadd.f32 %v6658_v44, %v15248_v41  ;;  %v6671_v50 = vpop.f32.mrf.mxu1  ;;  %v10296_v58 = vld [vmem:[%s20686_s1 + $0xe30] sm:$0xf]  ;;  %v13117_v44 = vld [vmem:[%s20686_s1 + $0xfa4] sm:$0xf0] }
  0xe2   :  { %6890 = vmatpush.bf16.msra.mxu2 %v10145_v20  ;;  %v10377_v20 = vor.u32 %v13091_v63, %v10376_v62  ;;  %v10360_v62 = vld [vmem:[%s20686_s1 + $0xeb0] sm:$0xf] }
  0xe3   :  { %6903 = vmatpush.bf16.msra.mxu3 %v10209_v23  ;;  %6865 = vmatmul.bf16.vlgmr.msra.gmra.mxu0 %v15318_v10  ;;  %v13073_v23 = vld [vmem:[%s20686_s1 + $0xe44] sm:$0xf0]  ;;  %v6672_v63 = vadd.f32 %v6671_v50, %v6659_v35 }
  0xe4   :  { %6909 = vmatpush.bf16.msrb.mxu0 %v10329_v26  ;;  %6878 = vmatmul.bf16.vlgmr.msra.gmra.mxu1 %v15335_v15  ;;  %v10368_v26 = vld [vmem:[%s20686_s1 + $0xec0] sm:$0xf]  ;;  %v10305_v46 = vor.u32 %v13073_v23, %v10304_v22  ;;  %v13085_v23 = vld [vmem:[%s20686_s1 + $0xea4] sm:$0xf0] }
  0xe5   :  { %6922 = vmatpush.bf16.msrb.mxu1 %v10393_v29  ;;  %6891 = vmatmul.bf16.vlgmr.msra.gmra.mxu2 %v15331_v51  ;;  %v13089_v29 = vld [vmem:[%s20686_s1 + $0xec4] sm:$0xf0] }
  0xe6   :  { %6935 = vmatpush.bf16.msrb.mxu2 %v10457_v34  ;;  %6904 = vmatmul.bf16.vlgmr.msra.gmra.mxu3 %v15348_v14  ;;  %v10432_v34 = vld [vmem:[%s20686_s1 + $0xf40] sm:$0xf]  ;;  %v10369_v54 = vor.u32 %v13089_v29, %v10368_v26 }
  0xe7   :  { %6948 = vmatpush.bf16.msrb.mxu3 %v10521_v45  ;;  %v13121_v45 = vld [vmem:[%s20686_s1 + $0xfc4] sm:$0xf0]  ;;  %v10433_v55 = vor.u32 %v13105_v37, %v10432_v34  ;;  %v10416_v26 = vld [vmem:[%s20686_s1 + $0xf20] sm:$0xf] }
  0xe8   :  { %6910 = vmatpush.bf16.msrb.mxu0 %v10321_v60  ;;  %v13071_v60 = vld [vmem:[%s20686_s1 + $0xe34] sm:$0xf0]  ;;  %v10497_v41 = vor.u32 %v13121_v45, %v10496_v8  ;;  %v6684_v22 = vpop.f32.mrf.mxu2  ;;  %v10480_v37 = vld [vmem:[%s20686_s1 + $0xfa0] sm:$0xf]  ;;  %v6660_v8 = vpop.f32.mrf.mxu0 }
  0xe9   :  { %6923 = vmatpush.bf16.msrb.mxu1 %v10385_v48  ;;  %v13103_v48 = vld [vmem:[%s20686_s1 + $0xf34] sm:$0xf0]  ;;  %v10297_v11 = vor.u32 %v13071_v60, %v10296_v58  ;;  %v6685_v29 = vadd.f32 %v6684_v22, %v6672_v63  ;;  %v6697_v34 = vpop.f32.mrf.mxu3  ;;  %v6673_v35 = vpop.f32.mrf.mxu1  ;;  %v10344_v60 = vld [vmem:[%s20686_s1 + $0xe90] sm:$0xf]  ;;  %v13097_v22 = vld [vmem:[%s20686_s1 + $0xf04] sm:$0xf0] }
  0xea   :  { %6936 = vmatpush.bf16.msrb.mxu2 %v10449_v4  ;;  %v10488_v4 = vld [vmem:[%s20686_s1 + $0xfb0] sm:$0xf]  ;;  %v10425_v17 = vor.u32 %v13103_v48, %v10424_v61  ;;  %v13067_v58 = vld [vmem:[%s20686_s1 + $0xe14] sm:$0xf0] }
  0xeb   :  { %6949 = vmatpush.bf16.msrb.mxu3 %v10513_v12  ;;  %v10361_v12 = vor.u32 %v13087_v1, %v10360_v62  ;;  %v10481_v62 = vor.u32 %v13117_v44, %v10480_v37  ;;  %v10408_v63 = vld [vmem:[%s20686_s1 + $0xf10] sm:$0xf]  ;;  %v13099_v1 = vld [vmem:[%s20686_s1 + $0xf14] sm:$0xf0] }
  0xec   :  { %6911 = vmatpush.bf16.msrb.mxu0 %v10313_v19  ;;  %v13069_v19 = vld [vmem:[%s20686_s1 + $0xe24] sm:$0xf0]  ;;  %v10472_v61 = vld [vmem:[%s20686_s1 + $0xf90] sm:$0xf]  ;;  %v13115_v48 = vld [vmem:[%s20686_s1 + $0xf94] sm:$0xf0] }
  0xed   :  { %6924 = vmatpush.bf16.msrb.mxu1 %v10377_v20  ;;  %v10352_v20 = vld [vmem:[%s20686_s1 + $0xea0] sm:$0xf]  ;;  %v10289_v45 = vor.u32 %v13069_v19, %v10288_v18  ;;  %v13081_v19 = vld [vmem:[%s20686_s1 + $0xe84] sm:$0xf0]  ;;  %v10648_v37 = vld [vmem:[%s20686_s1 + $0x10f0] sm:$0xf] }
  0xee   :  { %6937 = vmatpush.bf16.msrb.mxu2 %v10441_v21  ;;  %v10489_v21 = vor.u32 %v13119_v7, %v10488_v4  ;;  %v10353_v50 = vor.u32 %v13085_v23, %v10352_v20  ;;  %v10272_v7 = vld [vmem:[%s20686_s1 + $0xe00] sm:$0xf]  ;;  %v10712_v35 = vld [vmem:[%s20686_s1 + $0x1170] sm:$0xf] }
  0xef   :  { %6950 = vmatpush.bf16.msrb.mxu3 %v10505_v28  ;;  %v13101_v28 = vld [vmem:[%s20686_s1 + $0xf24] sm:$0xf0]  ;;  %v10336_v18 = vld [vmem:[%s20686_s1 + $0xe80] sm:$0xf] }
  0xf0   :  { %6912 = vmatpush.bf16.msrb.mxu0 %v10305_v46  ;;  %v15459_v46 = vadd.f32 %v6697_v34, %v6685_v29  ;;  %v10400_v20 = vld [vmem:[%s20686_s1 + $0xf00] sm:$0xf]  ;;  %v10584_v29 = vld [vmem:[%s20686_s1 + $0x1070] sm:$0xf]  ;;  %v13143_v34 = vld [vmem:[%s20686_s1 + $0x1074] sm:$0xf0] }
  0xf1   :  { %6925 = vmatpush.bf16.msrb.mxu1 %v10369_v54  ;;  %v10417_v54 = vor.u32 %v13101_v28, %v10416_v26  ;;  %v10464_v23 = vld [vmem:[%s20686_s1 + $0xf80] sm:$0xf]  ;;  %v13113_v26 = vld [vmem:[%s20686_s1 + $0xf84] sm:$0xf0]  ;;  %v6686_v28 = vpop.f32.mrf.mxu2  ;;  %v6699_v44 = vpop.f32.mrf.mxu3 }
  0xf2   :  { %6938 = vmatpush.bf16.msrb.mxu2 %v10433_v55  ;;  %v10280_v55 = vld [vmem:[%s20686_s1 + $0xe10] sm:$0xf]  ;;  %v13139_v28 = vld [vmem:[%s20686_s1 + $0x1054] sm:$0xf0] }
  0xf3   :  { %6951 = vmatpush.bf16.msrb.mxu3 %v10497_v41  ;;  %v13083_v41 = vld [vmem:[%s20686_s1 + $0xe94] sm:$0xf0]  ;;  %v10281_v4 = vor.u32 %v13067_v58, %v10280_v55  ;;  %v10401_v55 = vor.u32 %v13097_v22, %v10400_v20  ;;  %v10776_v58 = vld [vmem:[%s20686_s1 + $0x11f0] sm:$0xf]  ;;  %v10768_v20 = vld [vmem:[%s20686_s1 + $0x11e0] sm:$0xf]  ;;  %v15571_v22 = vpack.c.bf16 %v15375_v16, %v15375_v16 }
  0xf4   :  { %6913 = vmatpush.bf16.msrb.mxu0 %v10297_v11  ;;  %v13065_v11 = vld [vmem:[%s20686_s1 + $0xe04] sm:$0xf0]  ;;  %v13171_v44 = vld [vmem:[%s20686_s1 + $0x1154] sm:$0xf0] }
  0xf5   :  { %6926 = vmatpush.bf16.msrb.mxu1 %v10361_v12  ;;  %v10345_v12 = vor.u32 %v13083_v41, %v10344_v60  ;;  %v10273_v8 = vor.u32 %v13065_v11, %v10272_v7  ;;  %v13191_v60 = vld [vmem:[%s20686_s1 + $0x11f4] sm:$0xf0]  ;;  %v10585_v41 = vor.u32 %v13143_v34, %v10584_v29  ;;  %v15544_v11 = vpack.c.bf16 %v15362_v3, %v15362_v3  ;;  %v10632_v29 = vld [vmem:[%s20686_s1 + $0x10d0] sm:$0xf] }
  0xf6   :  { %6939 = vmatpush.bf16.msrb.mxu2 %v10425_v17  ;;  %v10409_v17 = vor.u32 %v13099_v1, %v10408_v63  ;;  %v10777_v7 = vor.u32 %v13191_v60, %v10776_v58  ;;  %v15561_v3 = vpack.c.bf16 %v15369_v9, %v15369_v9  ;;  %20721 = vst [vmem:[#allocation6_spill] sm:$0xff] %v15571_v22  ;;  %v13155_v34 = vld [vmem:[%s20686_s1 + $0x10d4] sm:$0xf0]  ;;  %v13137_v58 = vld [vmem:[%s20686_s1 + $0x1044] sm:$0xf0] }
  0xf7   :  { %6952 = vmatpush.bf16.msrb.mxu3 %v10489_v21  ;;  %v10473_v21 = vor.u32 %v13115_v48, %v10472_v61  ;;  %v10576_v61 = vld [vmem:[%s20686_s1 + $0x1060] sm:$0xf]  ;;  %v13141_v48 = vld [vmem:[%s20686_s1 + $0x1064] sm:$0xf0] }
  0xf8   :  { %6914 = vmatpush.bf16.msrb.mxu0 %v10289_v45  ;;  %v13159_v45 = vld [vmem:[%s20686_s1 + $0x10f4] sm:$0xf0]  ;;  %20720 = vst [vmem:[#allocation5_spill] sm:$0xff] %v15561_v3  ;;  %v10624_v60 = vld [vmem:[%s20686_s1 + $0x10c0] sm:$0xf] }
  0xf9   :  { %6927 = vmatpush.bf16.msrb.mxu1 %v10353_v50  ;;  %v13175_v50 = vld [vmem:[%s20686_s1 + $0x1174] sm:$0xf0]  ;;  %v10649_v63 = vor.u32 %v13159_v45, %v10648_v37  ;;  %v10696_v37 = vld [vmem:[%s20686_s1 + $0x1150] sm:$0xf] }
  0xfa   :  { %6940 = vmatpush.bf16.msrb.mxu2 %v10417_v54  ;;  %v10337_v54 = vor.u32 %v13081_v19, %v10336_v18  ;;  %v10713_v1 = vor.u32 %v13175_v50, %v10712_v35  ;;  %v13173_v18 = vld [vmem:[%s20686_s1 + $0x1164] sm:$0xf0]  ;;  %v15557_v19 = vpack.c.bf16 %v15364_v0, %v15364_v0  ;;  %v10577_v0 = vor.u32 %v13141_v48, %v10576_v61  ;;  %v13187_v45 = vld [vmem:[%s20686_s1 + $0x11d4] sm:$0xf0]  ;;  %v10752_v48 = vld [vmem:[%s20686_s1 + $0x11c0] sm:$0xf] }
  0xfb   :  { %6953 = vmatpush.bf16.msrb.mxu3 %v10481_v62  ;;  %v10465_v62 = vor.u32 %v13113_v26, %v10464_v23  ;;  %v10568_v26 = vld [vmem:[%s20686_s1 + $0x1050] sm:$0xf]  ;;  %v10633_v50 = vor.u32 %v13155_v34, %v10632_v29  ;;  %v13167_v29 = vld [vmem:[%s20686_s1 + $0x1134] sm:$0xf0] }
  0xfc   :  { %6915 = vmatpush.bf16.msrb.mxu0 %v10281_v4  ;;  %v10640_v4 = vld [vmem:[%s20686_s1 + $0x10e0] sm:$0xf]  ;;  %v10569_v35 = vor.u32 %v13139_v28, %v10568_v26  ;;  %v13151_v26 = vld [vmem:[%s20686_s1 + $0x10b4] sm:$0xf0]  ;;  %v10680_v28 = vld [vmem:[%s20686_s1 + $0x1130] sm:$0xf] }
  0xfd   :  { %6928 = vmatpush.bf16.msrb.mxu1 %v10345_v12  ;;  %v13157_v12 = vld [vmem:[%s20686_s1 + $0x10e4] sm:$0xf0]  ;;  %v13183_v34 = vld [vmem:[%s20686_s1 + $0x11b4] sm:$0xf0] }
  0xfe   :  { %6941 = vmatpush.bf16.msrb.mxu2 %v10409_v17  ;;  %v10704_v17 = vld [vmem:[%s20686_s1 + $0x1160] sm:$0xf]  ;;  %v10641_v23 = vor.u32 %v13157_v12, %v10640_v4  ;;  %v13185_v4 = vld [vmem:[%s20686_s1 + $0x11c4] sm:$0xf0] }
  0xff   :  { %6954 = vmatpush.bf16.msrb.mxu3 %v10473_v21  ;;  %v13189_v21 = vld [vmem:[%s20686_s1 + $0x11e4] sm:$0xf0]  ;;  %v10705_v9 = vor.u32 %v13173_v18, %v10704_v17 }
 0x100   :  { %6916 = vmatpush.bf16.msrb.mxu0 %v10273_v8  ;;  %v10769_v16 = vor.u32 %v13189_v21, %v10768_v20  ;;  %v10760_v8 = vld [vmem:[%s20686_s1 + $0x11d0] sm:$0xf]  ;;  %v6710_v61 = vpop.f32.mrf.mxu0 }
 0x101   :  { %6929 = vmatpush.bf16.msrb.mxu1 %v10337_v54  ;;  %v10697_v54 = vor.u32 %v13171_v44, %v10696_v37  ;;  %v6723_v17 = vpop.f32.mrf.mxu1  ;;  %v10552_v21 = vld [vmem:[%s20686_s1 + $0x1030] sm:$0xf] }
 0x102   :  { %6942 = vmatpush.bf16.msrb.mxu2 %v10401_v55  ;;  %v10560_v55 = vld [vmem:[%s20686_s1 + $0x1040] sm:$0xf] }
 0x103   :  { %6955 = vmatpush.bf16.msrb.mxu3 %v10465_v62  ;;  %6917 = vmatmul.bf16.vlgmr.msrb.gmra.mxu0 %v15544_v11  ;;  %v10761_v62 = vor.u32 %v13187_v45, %v10760_v8  ;;  %v10561_v12 = vor.u32 %v13137_v58, %v10560_v55  ;;  %v10681_v8 = vor.u32 %v13167_v29, %v10680_v28  ;;  %v10544_v45 = vld [vmem:[%s20686_s1 + $0x1020] sm:$0xf]  ;;  %v13149_v58 = vld [vmem:[%s20686_s1 + $0x10a4] sm:$0xf0]  ;;  %v10728_v28 = vld [vmem:[%s20686_s1 + $0x1190] sm:$0xf] }
 0x104   :  { %6961 = vmatpush.bf16.msra.mxu0 %v10585_v41  ;;  %6930 = vmatmul.bf16.vlgmr.msrb.gmra.mxu1 %v15561_v3  ;;  %v13153_v41 = vld [vmem:[%s20686_s1 + $0x10c4] sm:$0xf0]  ;;  %v13179_v29 = vld [vmem:[%s20686_s1 + $0x1194] sm:$0xf0] }
 0x105   :  { %6974 = vmatpush.bf16.msra.mxu1 %v10649_v63  ;;  %6943 = vmatmul.bf16.vlgmr.msrb.gmra.mxu2 %v15557_v19  ;;  %v10688_v63 = vld [vmem:[%s20686_s1 + $0x1140] sm:$0xf]  ;;  %v10625_v18 = vor.u32 %v13153_v41, %v10624_v60 }
 0x106   :  { %6987 = vmatpush.bf16.msra.mxu2 %v10713_v1  ;;  %6956 = vmatmul.bf16.vlgmr.msrb.gmra.mxu3 %v15571_v22  ;;  %v13169_v1 = vld [vmem:[%s20686_s1 + $0x1144] sm:$0xf0]  ;;  %v10672_v60 = vld [vmem:[%s20686_s1 + $0x1120] sm:$0xf] }
 0x107   :  { %7000 = vmatpush.bf16.msra.mxu3 %v10777_v7  ;;  %v6711_v7 = vadd.f32 %v6710_v61, %v15459_v46  ;;  %v10689_v20 = vor.u32 %v13169_v1, %v10688_v63  ;;  %v10753_v46 = vor.u32 %v13185_v4, %v10752_v48  ;;  %v10736_v1 = vld [vmem:[%s20686_s1 + $0x11a0] sm:$0xf]  ;;  %v13181_v61 = vld [vmem:[%s20686_s1 + $0x11a4] sm:$0xf0] }
 0x108   :  { %6962 = vmatpush.bf16.msra.mxu0 %v10577_v0  ;;  %v13135_v0 = vld [vmem:[%s20686_s1 + $0x1034] sm:$0xf0]  ;;  %v6736_v55 = vpop.f32.mrf.mxu2  ;;  %v6712_v48 = vpop.f32.mrf.mxu0 }
 0x109   :  { %6975 = vmatpush.bf16.msra.mxu1 %v10641_v23  ;;  %v10616_v23 = vld [vmem:[%s20686_s1 + $0x10b0] sm:$0xf]  ;;  %v10553_v37 = vor.u32 %v13135_v0, %v10552_v21  ;;  %v6749_v63 = vpop.f32.mrf.mxu3  ;;  %v13131_v21 = vld [vmem:[%s20686_s1 + $0x1014] sm:$0xf0] }
 0x10a   :  { %6988 = vmatpush.bf16.msra.mxu2 %v10705_v9  ;;  %v6724_v9 = vadd.f32 %v6723_v17, %v6711_v7  ;;  %v10617_v44 = vor.u32 %v13151_v26, %v10616_v23  ;;  %v6725_v7 = vpop.f32.mrf.mxu1  ;;  %v10600_v0 = vld [vmem:[%s20686_s1 + $0x1090] sm:$0xf]  ;;  %v10737_v23 = vor.u32 %v13181_v61, %v10736_v1  ;;  %v13163_v26 = vld [vmem:[%s20686_s1 + $0x1114] sm:$0xf0] }
 0x10b   :  { %7001 = vmatpush.bf16.msra.mxu3 %v10769_v16  ;;  %v10744_v16 = vld [vmem:[%s20686_s1 + $0x11b0] sm:$0xf]  ;;  %v13223_v61 = vld [vmem:[%s20686_s1 + $0x12f4] sm:$0xf0] }
 0x10c   :  { %6963 = vmatpush.bf16.msra.mxu0 %v10569_v35  ;;  %v13133_v35 = vld [vmem:[%s20686_s1 + $0x1024] sm:$0xf0]  ;;  %v6737_v41 = vadd.f32 %v6736_v55, %v6724_v9  ;;  %v10664_v9 = vld [vmem:[%s20686_s1 + $0x1110] sm:$0xf]  ;;  %v10720_v55 = vld [vmem:[%s20686_s1 + $0x1180] sm:$0xf] }
 0x10d   :  { %6976 = vmatpush.bf16.msra.mxu1 %v10633_v50  ;;  %v10608_v50 = vld [vmem:[%s20686_s1 + $0x10a0] sm:$0xf]  ;;  %v10545_v4 = vor.u32 %v13133_v35, %v10544_v45  ;;  %v10665_v35 = vor.u32 %v13163_v26, %v10664_v9  ;;  %v10904_v1 = vld [vmem:[%s20686_s1 + $0x12f0] sm:$0xf] }
 0x10e   :  { %6989 = vmatpush.bf16.msra.mxu2 %v10697_v54  ;;  %v10745_v54 = vor.u32 %v13183_v34, %v10744_v16  ;;  %v10609_v17 = vor.u32 %v13149_v58, %v10608_v50  ;;  %v10528_v16 = vld [vmem:[%s20686_s1 + $0x1000] sm:$0xf]  ;;  %v10729_v58 = vor.u32 %v13179_v29, %v10728_v28  ;;  %v10968_v48 = vld [vmem:[%s20686_s1 + $0x1370] sm:$0xf] }
 0x10f   :  { %7002 = vmatpush.bf16.msra.mxu3 %v10761_v62  ;;  %v13165_v62 = vld [vmem:[%s20686_s1 + $0x1124] sm:$0xf0]  ;;  %v10656_v50 = vld [vmem:[%s20686_s1 + $0x1100] sm:$0xf] }
 0x110   :  { %6964 = vmatpush.bf16.msra.mxu0 %v10561_v12  ;;  %v15674_v12 = vadd.f32 %v6749_v63, %v6737_v41  ;;  %v13207_v41 = vld [vmem:[%s20686_s1 + $0x1274] sm:$0xf0]  ;;  %v6738_v63 = vpop.f32.mrf.mxu2  ;;  %v155_v28 = vld.sshfl [vmem:[#allocation1 + $0x8] sm:$0xff pattern:$0x75316420] }
 0x111   :  { %6977 = vmatpush.bf16.msra.mxu1 %v10625_v18  ;;  %v10673_v18 = vor.u32 %v13165_v62, %v10672_v60  ;;  %v13177_v60 = vld [vmem:[%s20686_s1 + $0x1184] sm:$0xf0]  ;;  %v10840_v62 = vld [vmem:[%s20686_s1 + $0x1270] sm:$0xf] }
 0x112   :  { %6990 = vmatpush.bf16.msra.mxu2 %v10689_v20  ;;  %v10536_v20 = vld [vmem:[%s20686_s1 + $0x1010] sm:$0xf]  ;;  %v10721_v9 = vor.u32 %v13177_v60, %v10720_v55  ;;  %v10841_v26 = vor.u32 %v13207_v41, %v10840_v62  ;;  %v157_v29 = vld.sshfl [vmem:[#allocation1 + $0x18] sm:$0xff pattern:$0x75316420]  ;;  %v15770_v60 = vpack.c.bf16 %v155_v28, %v155_v28 }
 0x113   :  { %7003 = vmatpush.bf16.msra.mxu3 %v10753_v46  ;;  %v13147_v46 = vld [vmem:[%s20686_s1 + $0x1094] sm:$0xf0]  ;;  %v10537_v34 = vor.u32 %v13131_v21, %v10536_v20  ;;  %v13237_v55 = vld [vmem:[%s20686_s1 + $0x1364] sm:$0xf0]  ;;  %v11024_v62 = vld [vmem:[%s20686_s1 + $0x13e0] sm:$0xf]  ;;  %v15778_v63 = vpack.c.bf16 %v157_v29, %v157_v29 }
 0x114   :  { %6965 = vmatpush.bf16.msra.mxu0 %v10553_v37  ;;  %v13129_v37 = vld [vmem:[%s20686_s1 + $0x1004] sm:$0xf0]  ;;  %v10601_v45 = vor.u32 %v13147_v46, %v10600_v0  ;;  %v13255_v20 = vld [vmem:[%s20686_s1 + $0x13f4] sm:$0xf0]  ;;  %20724 = vst [vmem:[#allocation9_spill] sm:$0xff] %v15770_v60 }
 0x115   :  { %6978 = vmatpush.bf16.msra.mxu1 %v10617_v44  ;;  %v10592_v44 = vld [vmem:[%s20686_s1 + $0x1080] sm:$0xf]  ;;  %v10529_v7 = vor.u32 %v13129_v37, %v10528_v16  ;;  %v156_v46 = vld.sshfl [vmem:[#allocation1 + $0x10] sm:$0xff pattern:$0x75316420]  ;;  %v10905_v16 = vor.u32 %v13223_v61, %v10904_v1  ;;  %20725 = vst [vmem:[#allocation10_spill] sm:$0xff] %v15778_v63 }
 0x116   :  { %6991 = vmatpush.bf16.msra.mxu2 %v10681_v8  ;;  %v13145_v8 = vld [vmem:[%s20686_s1 + $0x1084] sm:$0xf0]  ;;  %v10832_v37 = vld [vmem:[%s20686_s1 + $0x1260] sm:$0xf] }
 0x117   :  { %7004 = vmatpush.bf16.msra.mxu3 %v10745_v54  ;;  %v13161_v54 = vld [vmem:[%s20686_s1 + $0x1104] sm:$0xf0]  ;;  %v10593_v21 = vor.u32 %v13145_v8, %v10592_v44  ;;  %v10896_v44 = vld [vmem:[%s20686_s1 + $0x12e0] sm:$0xf] }
 0x118   :  { %6966 = vmatpush.bf16.msra.mxu0 %v10545_v4  ;;  %v6751_v4 = vpop.f32.mrf.mxu3  ;;  %v10657_v0 = vor.u32 %v13161_v54, %v10656_v50  ;;  %v13221_v50 = vld [vmem:[%s20686_s1 + $0x12e4] sm:$0xf0]  ;;  %v10960_v54 = vld [vmem:[%s20686_s1 + $0x1360] sm:$0xf] }
 0x119   :  { %6979 = vmatpush.bf16.msra.mxu1 %v10609_v17  ;;  %v13239_v17 = vld [vmem:[%s20686_s1 + $0x1374] sm:$0xf0]  ;;  %v13253_v41 = vld [vmem:[%s20686_s1 + $0x13e4] sm:$0xf0]  ;;  %v10897_v61 = vor.u32 %v13221_v50, %v10896_v44  ;;  %v10824_v4 = vld [vmem:[%s20686_s1 + $0x1250] sm:$0xf] }
 0x11a   :  { %6992 = vmatpush.bf16.msra.mxu2 %v10673_v18  ;;  %v11032_v18 = vld [vmem:[%s20686_s1 + $0x13f0] sm:$0xf]  ;;  %v10816_v29 = vld [vmem:[%s20686_s1 + $0x1240] sm:$0xf] }
 0x11b   :  { %7005 = vmatpush.bf16.msra.mxu3 %v10737_v23  ;;  %v154_v23 = vld.sshfl [vmem:[#allocation1] sm:$0xff pattern:$0x75316420]  ;;  %v11033_v8 = vor.u32 %v13255_v20, %v11032_v18  ;;  %v11025_v18 = vor.u32 %v13253_v41, %v11024_v62  ;;  %v13219_v20 = vld [vmem:[%s20686_s1 + $0x12d4] sm:$0xf0] }
 0x11c   :  { %6967 = vmatpush.bf16.msra.mxu0 %v10537_v34  ;;  %v10969_v34 = vor.u32 %v13239_v17, %v10968_v48  ;;  %v10961_v48 = vor.u32 %v13237_v55, %v10960_v54  ;;  %v10888_v17 = vld [vmem:[%s20686_s1 + $0x12d0] sm:$0xf]  ;;  %v10944_v44 = vld [vmem:[%s20686_s1 + $0x1340] sm:$0xf]  ;;  %v13249_v55 = vld [vmem:[%s20686_s1 + $0x13c4] sm:$0xf0] }
 0x11d   :  { %6980 = vmatpush.bf16.msra.mxu1 %v10601_v45  ;;  %v13205_v45 = vld [vmem:[%s20686_s1 + $0x1264] sm:$0xf0]  ;;  %v11008_v54 = vld [vmem:[%s20686_s1 + $0x13c0] sm:$0xf] }
 0x11e   :  { %6993 = vmatpush.bf16.msra.mxu2 %v10665_v35  ;;  %v15757_v35 = vpack.c.bf16 %v154_v23, %v154_v23  ;;  %v10833_v1 = vor.u32 %v13205_v45, %v10832_v37  ;;  %v11016_v23 = vld [vmem:[%s20686_s1 + $0x13d0] sm:$0xf]  ;;  %v13217_v45 = vld [vmem:[%s20686_s1 + $0x12c4] sm:$0xf0] }
 0x11f   :  { %7006 = vmatpush.bf16.msra.mxu3 %v10729_v58  ;;  %v15768_v58 = vpack.c.bf16 %v156_v46, %v156_v46  ;;  %v13251_v46 = vld [vmem:[%s20686_s1 + $0x13d4] sm:$0xf0] }
 0x120   :  { %6968 = vmatpush.bf16.msra.mxu0 %v10529_v7  ;;  %20722 = vst [vmem:[#allocation7_spill] sm:$0xff] %v15757_v35  ;;  %v13203_v7 = vld [vmem:[%s20686_s1 + $0x1254] sm:$0xf0]  ;;  %v11017_v37 = vor.u32 %v13251_v46, %v11016_v23  ;;  %v6762_v50 = vpop.f32.mrf.mxu0  ;;  %v11000_v23 = vld [vmem:[%s20686_s1 + $0x13b0] sm:$0xf] }
 0x121   :  { %6981 = vmatpush.bf16.msra.mxu1 %v10593_v21  ;;  %20723 = vst [vmem:[#allocation8_spill] sm:$0xff] %v15768_v58  ;;  %v10952_v21 = vld [vmem:[%s20686_s1 + $0x1350] sm:$0xf]  ;;  %v6763_v62 = vadd.f32 %v6762_v50, %v15674_v12  ;;  %v11009_v12 = vor.u32 %v13249_v55, %v11008_v54  ;;  %v13247_v46 = vld [vmem:[%s20686_s1 + $0x13b4] sm:$0xf0] }
 0x122   :  { %6994 = vmatpush.bf16.msra.mxu2 %v10657_v0  ;;  %v13235_v0 = vld [vmem:[%s20686_s1 + $0x1354] sm:$0xf0]  ;;  %v13229_v50 = vld [vmem:[%s20686_s1 + $0x1324] sm:$0xf0] }
 0x123   :  { %7007 = vmatpush.bf16.msra.mxu3 %v10721_v9  ;;  %6969 = vmatmul.bf16.vlgmr.msra.gmra.mxu0 %v15757_v35  ;;  %v10825_v9 = vor.u32 %v13203_v7, %v10824_v4  ;;  %v10953_v28 = vor.u32 %v13235_v0, %v10952_v21  ;;  %v10808_v4 = vld [vmem:[%s20686_s1 + $0x1230] sm:$0xf]  ;;  %v13199_v7 = vld [vmem:[%s20686_s1 + $0x1234] sm:$0xf0] }
 0x124   :  { %7013 = vmatpush.bf16.msrb.mxu0 %v10841_v26  ;;  %6982 = vmatmul.bf16.vlgmr.msra.gmra.mxu1 %v15770_v60  ;;  %v10889_v26 = vor.u32 %v13219_v20, %v10888_v17  ;;  %v10872_v17 = vld [vmem:[%s20686_s1 + $0x12b0] sm:$0xf]  ;;  %v13215_v20 = vld [vmem:[%s20686_s1 + $0x12b4] sm:$0xf0] }
 0x125   :  { %7026 = vmatpush.bf16.msrb.mxu1 %v10905_v16  ;;  %6995 = vmatmul.bf16.vlgmr.msra.gmra.mxu2 %v15768_v58  ;;  %v13201_v16 = vld [vmem:[%s20686_s1 + $0x1244] sm:$0xf0]  ;;  %v10936_v21 = vld [vmem:[%s20686_s1 + $0x1330] sm:$0xf]  ;;  %v13231_v0 = vld [vmem:[%s20686_s1 + $0x1334] sm:$0xf0] }
 0x126   :  { %7039 = vmatpush.bf16.msrb.mxu2 %v10969_v34  ;;  %7008 = vmatmul.bf16.vlgmr.msra.gmra.mxu3 %v15778_v63  ;;  %v10880_v34 = vld [vmem:[%s20686_s1 + $0x12c0] sm:$0xf]  ;;  %v10817_v41 = vor.u32 %v13201_v16, %v10816_v29  ;;  %v13197_v16 = vld [vmem:[%s20686_s1 + $0x1224] sm:$0xf0] }
 0x127   :  { %7052 = vmatpush.bf16.msrb.mxu3 %v11033_v8  ;;  %v13233_v8 = vld [vmem:[%s20686_s1 + $0x1344] sm:$0xf0]  ;;  %v10800_v29 = vld [vmem:[%s20686_s1 + $0x1220] sm:$0xf] }
 0x128   :  { %7014 = vmatpush.bf16.msrb.mxu0 %v10833_v1  ;;  %v6775_v1 = vpop.f32.mrf.mxu1  ;;  %v159_v60 = vld.sshfl [vmem:[#allocation1 + $0x28] sm:$0xff pattern:$0x75316420]  ;;  %v161_v35 = vld.sshfl [vmem:[#allocation1 + $0x38] sm:$0xff pattern:$0x75316420] }
 0x129   :  { %7027 = vmatpush.bf16.msrb.mxu1 %v10897_v61  ;;  %v10881_v61 = vor.u32 %v13217_v45, %v10880_v34  ;;  %v10864_v34 = vld [vmem:[%s20686_s1 + $0x12a0] sm:$0xf]  ;;  %v6788_v45 = vpop.f32.mrf.mxu2  ;;  %v6801_v55 = vpop.f32.mrf.mxu3 }
 0x12a   :  { %7040 = vmatpush.bf16.msrb.mxu2 %v10961_v48  ;;  %v10945_v48 = vor.u32 %v13233_v8, %v10944_v44  ;;  %v13213_v44 = vld [vmem:[%s20686_s1 + $0x12a4] sm:$0xf0]  ;;  %v10928_v8 = vld [vmem:[%s20686_s1 + $0x1320] sm:$0xf] }
 0x12b   :  { %7053 = vmatpush.bf16.msrb.mxu3 %v11025_v18  ;;  %v6776_v18 = vadd.f32 %v6775_v1, %v6763_v62  ;;  %v10992_v62 = vld [vmem:[%s20686_s1 + $0x13a0] sm:$0xf]  ;;  %v6764_v1 = vpop.f32.mrf.mxu0 }
 0x12c   :  { %7015 = vmatpush.bf16.msrb.mxu0 %v10825_v9  ;;  %v10809_v9 = vor.u32 %v13199_v7, %v10808_v4 }
 0x12d   :  { %7028 = vmatpush.bf16.msrb.mxu1 %v10889_v26  ;;  %v10873_v26 = vor.u32 %v13215_v20, %v10872_v17  ;;  %v6789_v54 = vadd.f32 %v6788_v45, %v6776_v18  ;;  %v10865_v17 = vor.u32 %v13213_v44, %v10864_v34  ;;  %v13195_v18 = vld [vmem:[%s20686_s1 + $0x1214] sm:$0xf0]  ;;  %v10856_v20 = vld [vmem:[%s20686_s1 + $0x1290] sm:$0xf]  ;;  %v10848_v34 = vld [vmem:[%s20686_s1 + $0x1280] sm:$0xf] }
 0x12e   :  { %7041 = vmatpush.bf16.msrb.mxu2 %v10953_v28  ;;  %v10937_v28 = vor.u32 %v13231_v0, %v10936_v21  ;;  %v13211_v21 = vld [vmem:[%s20686_s1 + $0x1294] sm:$0xf0]  ;;  %v10912_v45 = vld [vmem:[%s20686_s1 + $0x1300] sm:$0xf]  ;;  %v13225_v44 = vld [vmem:[%s20686_s1 + $0x1304] sm:$0xf0] }
 0x12f   :  { %7054 = vmatpush.bf16.msrb.mxu3 %v11017_v37  ;;  %v11001_v37 = vor.u32 %v13247_v46, %v11000_v23  ;;  %v15884_v7 = vadd.f32 %v6801_v55, %v6789_v54  ;;  %v10920_v23 = vld [vmem:[%s20686_s1 + $0x1310] sm:$0xf]  ;;  %v13227_v46 = vld [vmem:[%s20686_s1 + $0x1314] sm:$0xf0]  ;;  %v10976_v54 = vld [vmem:[%s20686_s1 + $0x1380] sm:$0xf] }
 0x130   :  { %7016 = vmatpush.bf16.msrb.mxu0 %v10817_v41  ;;  %v13245_v41 = vld [vmem:[%s20686_s1 + $0x13a4] sm:$0xf0]  ;;  %v6777_v4 = vpop.f32.mrf.mxu1 }
 0x131   :  { %7029 = vmatpush.bf16.msrb.mxu1 %v10881_v61  ;;  %v10801_v61 = vor.u32 %v13197_v16, %v10800_v29  ;;  %v10993_v0 = vor.u32 %v13245_v41, %v10992_v62  ;;  %v13193_v29 = vld [vmem:[%s20686_s1 + $0x1204] sm:$0xf0]  ;;  %v11096_v62 = vld [vmem:[%s20686_s1 + $0x1470] sm:$0xf]  ;;  %v13271_v41 = vld [vmem:[%s20686_s1 + $0x1474] sm:$0xf0] }
 0x132   :  { %7042 = vmatpush.bf16.msrb.mxu2 %v10945_v48  ;;  %v10792_v48 = vld [vmem:[%s20686_s1 + $0x1210] sm:$0xf]  ;;  %v13241_v55 = vld [vmem:[%s20686_s1 + $0x1384] sm:$0xf0]  ;;  %v11097_v58 = vor.u32 %v13271_v41, %v11096_v62  ;;  %v15991_v41 = vpack.c.bf16 %v161_v35, %v161_v35 }
 0x133   :  { %7055 = vmatpush.bf16.msrb.mxu3 %v11009_v12  ;;  %v10929_v12 = vor.u32 %v13229_v50, %v10928_v8  ;;  %v10793_v16 = vor.u32 %v13195_v18, %v10792_v48  ;;  %v10857_v8 = vor.u32 %v13211_v21, %v10856_v20  ;;  %v10921_v50 = vor.u32 %v13227_v46, %v10920_v23  ;;  %v13287_v48 = vld [vmem:[%s20686_s1 + $0x14f4] sm:$0xf0]  ;;  %v11224_v4 = vld [vmem:[%s20686_s1 + $0x1570] sm:$0xf]  ;;  %v6803_v21 = vpop.f32.mrf.mxu3  ;;  %v13317_v62 = vld [vmem:[%s20686_s1 + $0x15e4] sm:$0xf0] }
 0x134   :  { %7017 = vmatpush.bf16.msrb.mxu0 %v10809_v9  ;;  %v10984_v9 = vld [vmem:[%s20686_s1 + $0x1390] sm:$0xf]  ;;  %v13319_v20 = vld [vmem:[%s20686_s1 + $0x15f4] sm:$0xf0]  ;;  %v10977_v63 = vor.u32 %v13241_v55, %v10976_v54  ;;  %v54_v21 = vld [vmem:[%s20685_s0 + $0xa8] sm:$0xff]  ;;  %v15983_v54 = vpack.c.bf16 %v159_v60, %v159_v60 }
 0x135   :  { %7030 = vmatpush.bf16.msrb.mxu1 %v10873_v26  ;;  %v13243_v26 = vld [vmem:[%s20686_s1 + $0x1394] sm:$0xf0]  ;;  %v11288_v18 = vld [vmem:[%s20686_s1 + $0x15f0] sm:$0xf]  ;;  %v11280_v55 = vld [vmem:[%s20686_s1 + $0x15e0] sm:$0xf] }
 0x136   :  { %7043 = vmatpush.bf16.msrb.mxu2 %v10937_v28  ;;  %v10784_v28 = vld [vmem:[%s20686_s1 + $0x1200] sm:$0xf]  ;;  %v10985_v1 = vor.u32 %v13243_v26, %v10984_v9  ;;  %v10913_v26 = vor.u32 %v13225_v44, %v10912_v45  ;;  %v13285_v45 = vld [vmem:[%s20686_s1 + $0x14e4] sm:$0xf0]  ;;  %20726 = vst [vmem:[#allocation11_spill] sm:$0xff] %v15983_v54  ;;  %v11281_v35 = vor.u32 %v13317_v62, %v11280_v55 }
 0x137   :  { %7056 = vmatpush.bf16.msrb.mxu3 %v11001_v37  ;;  %v13209_v37 = vld [vmem:[%s20686_s1 + $0x1284] sm:$0xf0]  ;;  %v10785_v23 = vor.u32 %v13193_v29, %v10784_v28  ;;  %v158_v46 = vld.sshfl [vmem:[#allocation1 + $0x20] sm:$0xff pattern:$0x75316420] }
 0x138   :  { %7018 = vmatpush.bf16.msrb.mxu0 %v10801_v61  ;;  %v11160_v61 = vld [vmem:[%s20686_s1 + $0x14f0] sm:$0xf]  ;;  %v10849_v9 = vor.u32 %v13209_v37, %v10848_v34  ;;  %v11088_v28 = vld [vmem:[%s20686_s1 + $0x1460] sm:$0xf]  ;;  %v13269_v29 = vld [vmem:[%s20686_s1 + $0x1464] sm:$0xf0]  ;;  %v11289_v34 = vor.u32 %v13319_v20, %v11288_v18  ;;  %v15970_v37 = vpack.c.bf16 %v158_v46, %v158_v46 }
 0x139   :  { %7031 = vmatpush.bf16.msrb.mxu1 %v10865_v17  ;;  %v13303_v17 = vld [vmem:[%s20686_s1 + $0x1574] sm:$0xf0]  ;;  %v11161_v3 = vor.u32 %v13287_v48, %v11160_v61  ;;  %v11216_v44 = vld [vmem:[%s20686_s1 + $0x1560] sm:$0xf]  ;;  %163 = vst [vmem:[#allocation1 + $0x10] ss:$2 sm:$0xff] %v54_v21 }
 0x13a   :  { %7044 = vmatpush.bf16.msrb.mxu2 %v10929_v12  ;;  %v6790_v12 = vpop.f32.mrf.mxu2  ;;  %v11225_v22 = vor.u32 %v13303_v17, %v11224_v4  ;;  %v11080_v60 = vld [vmem:[%s20686_s1 + $0x1450] sm:$0xf]  ;;  %v13267_v4 = vld [vmem:[%s20686_s1 + $0x1454] sm:$0xf0]  ;;  %v11072_v46 = vld [vmem:[%s20686_s1 + $0x1440] sm:$0xf] }
 0x13b   :  { %7057 = vmatpush.bf16.msrb.mxu3 %v10993_v0  ;;  %v53_v0 = vld [vmem:[%s20685_s0 + $0xa0] sm:$0xff]  ;;  %v160_v12 = vld.sshfl [vmem:[#allocation1 + $0x30] sm:$0xff pattern:$0x75316420]  ;;  %v13315_v18 = vld [vmem:[%s20686_s1 + $0x15d4] sm:$0xf0]  ;;  %v11081_v20 = vor.u32 %v13267_v4, %v11080_v60 }
 0x13c   :  { %7019 = vmatpush.bf16.msrb.mxu0 %v10793_v16  ;;  %162 = vst [vmem:[#allocation1] ss:$2 sm:$0xff] %v53_v0  ;;  %v11152_v16 = vld [vmem:[%s20686_s1 + $0x14e0] sm:$0xf]  ;;  %v11272_v17 = vld [vmem:[%s20686_s1 + $0x15d0] sm:$0xf] }
 0x13d   :  { %7032 = vmatpush.bf16.msrb.mxu1 %v10857_v8  ;;  %v13301_v8 = vld [vmem:[%s20686_s1 + $0x1564] sm:$0xf0]  ;;  %v11153_v61 = vor.u32 %v13285_v45, %v11152_v16  ;;  %v11128_v60 = vld [vmem:[%s20686_s1 + $0x14b0] sm:$0xf] }
 0x13e   :  { %7045 = vmatpush.bf16.msrb.mxu2 %v10921_v50  ;;  %v15981_v50 = vpack.c.bf16 %v160_v12, %v160_v12  ;;  %v11217_v48 = vor.u32 %v13301_v8, %v11216_v44  ;;  %v11273_v12 = vor.u32 %v13315_v18, %v11272_v17  ;;  %v13281_v21 = vld [vmem:[%s20686_s1 + $0x14c4] sm:$0xf0] }
 0x13f   :  { %7058 = vmatpush.bf16.msrb.mxu3 %v10985_v1  ;;  %v11089_v1 = vor.u32 %v13269_v29, %v11088_v28  ;;  %v11200_v28 = vld [vmem:[%s20686_s1 + $0x1540] sm:$0xf]  ;;  %v13297_v29 = vld [vmem:[%s20686_s1 + $0x1544] sm:$0xf0] }
 0x140   :  { %7020 = vmatpush.bf16.msrb.mxu0 %v10785_v23  ;;  %v6814_v16 = vpop.f32.mrf.mxu0  ;;  %v13313_v45 = vld [vmem:[%s20686_s1 + $0x15c4] sm:$0xf0] }
 0x141   :  { %7033 = vmatpush.bf16.msrb.mxu1 %v10849_v9  ;;  %v13265_v9 = vld [vmem:[%s20686_s1 + $0x1444] sm:$0xf0]  ;;  %v6815_v44 = vadd.f32 %v6814_v16, %v15884_v7  ;;  %v6827_v55 = vpop.f32.mrf.mxu1 }
 0x142   :  { %7046 = vmatpush.bf16.msrb.mxu2 %v10913_v26  ;;  %v11136_v26 = vld [vmem:[%s20686_s1 + $0x14c0] sm:$0xf]  ;;  %v11073_v8 = vor.u32 %v13265_v9, %v11072_v46 }
 0x143   :  { %7059 = vmatpush.bf16.msrb.mxu3 %v10977_v63  ;;  %v11144_v63 = vld [vmem:[%s20686_s1 + $0x14d0] sm:$0xf]  ;;  %7021 = vmatmul.bf16.vlgmr.msrb.gmra.mxu0 %v15970_v37  ;;  %v11137_v62 = vor.u32 %v13281_v21, %v11136_v26  ;;  %v6828_v4 = vadd.f32 %v6827_v55, %v6815_v44  ;;  %v11120_v46 = vld [vmem:[%s20686_s1 + $0x14a0] sm:$0xf] }
 0x144   :  { %7065 = vmatpush.bf16.msra.mxu0 %v11097_v58  ;;  %v13299_v58 = vld [vmem:[%s20686_s1 + $0x1554] sm:$0xf0]  ;;  %7034 = vmatmul.bf16.vlgmr.msrb.gmra.mxu1 %v15983_v54  ;;  %v11184_v21 = vld [vmem:[%s20686_s1 + $0x1520] sm:$0xf]  ;;  %v11048_v55 = vld [vmem:[%s20686_s1 + $0x1410] sm:$0xf] }
 0x145   :  { %7078 = vmatpush.bf16.msra.mxu1 %v11161_v3  ;;  %v13283_v3 = vld [vmem:[%s20686_s1 + $0x14d4] sm:$0xf0]  ;;  %7047 = vmatmul.bf16.vlgmr.msrb.gmra.mxu2 %v15981_v50  ;;  %v168_v54 = vld.sshfl [vmem:[#allocation1 + $0x10] sm:$0xff pattern:$0x75316420] }
 0x146   :  { %7091 = vmatpush.bf16.msra.mxu2 %v11225_v22  ;;  %v11208_v22 = vld [vmem:[%s20686_s1 + $0x1550] sm:$0xf]  ;;  %7060 = vmatmul.bf16.vlgmr.msrb.gmra.mxu3 %v15991_v41  ;;  %v11145_v0 = vor.u32 %v13283_v3, %v11144_v63  ;;  %v13279_v63 = vld [vmem:[%s20686_s1 + $0x14b4] sm:$0xf0] }
 0x147   :  { %7104 = vmatpush.bf16.msra.mxu3 %v11289_v34  ;;  %v11209_v23 = vor.u32 %v13299_v58, %v11208_v22  ;;  %v11264_v34 = vld [vmem:[%s20686_s1 + $0x15c0] sm:$0xf]  ;;  %v13295_v3 = vld [vmem:[%s20686_s1 + $0x1534] sm:$0xf0]  ;;  %v11256_v22 = vld [vmem:[%s20686_s1 + $0x15b0] sm:$0xf]  ;;  %v11129_v18 = vor.u32 %v13279_v63, %v11128_v60 }
 0x148   :  { %7066 = vmatpush.bf16.msra.mxu0 %v11089_v1  ;;  %v11201_v1 = vor.u32 %v13297_v29, %v11200_v28  ;;  %v11265_v7 = vor.u32 %v13313_v45, %v11264_v34  ;;  %v13311_v58 = vld [vmem:[%s20686_s1 + $0x15b4] sm:$0xf0]  ;;  %v6840_v26 = vpop.f32.mrf.mxu2  ;;  %v13293_v28 = vld [vmem:[%s20686_s1 + $0x1524] sm:$0xf0]  ;;  %v11248_v34 = vld [vmem:[%s20686_s1 + $0x15a0] sm:$0xf]  ;;  %v6816_v44 = vpop.f32.mrf.mxu0 }
 0x149   :  { %7079 = vmatpush.bf16.msra.mxu1 %v11153_v61  ;;  %v11064_v61 = vld [vmem:[%s20686_s1 + $0x1430] sm:$0xf]  ;;  %v11257_v9 = vor.u32 %v13311_v58, %v11256_v22  ;;  %v6841_v29 = vadd.f32 %v6840_v26, %v6828_v4  ;;  %v6853_v16 = vpop.f32.mrf.mxu3  ;;  %v13309_v45 = vld [vmem:[%s20686_s1 + $0x15a4] sm:$0xf0]  ;;  %v13259_v60 = vld [vmem:[%s20686_s1 + $0x1414] sm:$0xf0] }
 0x14a   :  { %7092 = vmatpush.bf16.msra.mxu2 %v11217_v48  ;;  %v13263_v48 = vld [vmem:[%s20686_s1 + $0x1434] sm:$0xf0]  ;;  %v11249_v63 = vor.u32 %v13309_v45, %v11248_v34  ;;  %v11240_v22 = vld [vmem:[%s20686_s1 + $0x1590] sm:$0xf] }
 0x14b   :  { %7105 = vmatpush.bf16.msra.mxu3 %v11281_v35  ;;  %v11192_v35 = vld [vmem:[%s20686_s1 + $0x1530] sm:$0xf]  ;;  %v11065_v17 = vor.u32 %v13263_v48, %v11064_v61  ;;  %v11185_v48 = vor.u32 %v13293_v28, %v11184_v21  ;;  %v13275_v4 = vld [vmem:[%s20686_s1 + $0x1494] sm:$0xf0]  ;;  %v11232_v21 = vld [vmem:[%s20686_s1 + $0x1580] sm:$0xf] }
 0x14c   :  { %7067 = vmatpush.bf16.msra.mxu0 %v11081_v20  ;;  %v11193_v20 = vor.u32 %v13295_v3, %v11192_v35  ;;  %v11176_v35 = vld [vmem:[%s20686_s1 + $0x1510] sm:$0xf]  ;;  %v13291_v3 = vld [vmem:[%s20686_s1 + $0x1514] sm:$0xf0]  ;;  %v13305_v28 = vld [vmem:[%s20686_s1 + $0x1584] sm:$0xf0] }
 0x14d   :  { %7080 = vmatpush.bf16.msra.mxu1 %v11145_v0  ;;  %v11056_v0 = vld [vmem:[%s20686_s1 + $0x1420] sm:$0xf]  ;;  %v13307_v58 = vld [vmem:[%s20686_s1 + $0x1594] sm:$0xf0]  ;;  %v11416_v45 = vld [vmem:[%s20686_s1 + $0x16f0] sm:$0xf] }
 0x14e   :  { %7093 = vmatpush.bf16.msra.mxu2 %v11209_v23  ;;  %v13261_v23 = vld [vmem:[%s20686_s1 + $0x1424] sm:$0xf0]  ;;  %v11241_v34 = vor.u32 %v13307_v58, %v11240_v22  ;;  %v13351_v44 = vld [vmem:[%s20686_s1 + $0x16f4] sm:$0xf0]  ;;  %v11344_v58 = vld [vmem:[%s20686_s1 + $0x1660] sm:$0xf] }
 0x14f   :  { %7106 = vmatpush.bf16.msra.mxu3 %v11273_v12  ;;  %v13277_v12 = vld [vmem:[%s20686_s1 + $0x14a4] sm:$0xf0] }
 0x150   :  { %7068 = vmatpush.bf16.msra.mxu0 %v11073_v8  ;;  %v11057_v8 = vor.u32 %v13261_v23, %v11056_v0  ;;  %v11121_v61 = vor.u32 %v13277_v12, %v11120_v46  ;;  %v11104_v0 = vld [vmem:[%s20686_s1 + $0x1480] sm:$0xf]  ;;  %v13273_v23 = vld [vmem:[%s20686_s1 + $0x1484] sm:$0xf0]  ;;  %v11177_v12 = vor.u32 %v13291_v3, %v11176_v35 }
 0x151   :  { %7081 = vmatpush.bf16.msra.mxu1 %v11137_v62  ;;  %v6829_v62 = vpop.f32.mrf.mxu1  ;;  %v11168_v46 = vld [vmem:[%s20686_s1 + $0x1500] sm:$0xf]  ;;  %v11105_v35 = vor.u32 %v13273_v23, %v11104_v0  ;;  %v167_v22 = vld.sshfl [vmem:[#allocation1 + $0x8] sm:$0xff pattern:$0x75316420] }
 0x152   :  { %7094 = vmatpush.bf16.msra.mxu2 %v11201_v1  ;;  %v16097_v1 = vadd.f32 %v6853_v16, %v6841_v29  ;;  %v11352_v29 = vld [vmem:[%s20686_s1 + $0x1670] sm:$0xf]  ;;  %v13335_v16 = vld [vmem:[%s20686_s1 + $0x1674] sm:$0xf0]  ;;  %v6842_v62 = vpop.f32.mrf.mxu2 }
 0x153   :  { %7107 = vmatpush.bf16.msra.mxu3 %v11265_v7  ;;  %v11112_v7 = vld [vmem:[%s20686_s1 + $0x1490] sm:$0xf]  ;;  %v11233_v62 = vor.u32 %v13305_v28, %v11232_v21  ;;  %v169_v23 = vld.sshfl [vmem:[#allocation1 + $0x18] sm:$0xff pattern:$0x75316420] }
 0x154   :  { %7069 = vmatpush.bf16.msra.mxu0 %v11065_v17  ;;  %v11040_v17 = vld [vmem:[%s20686_s1 + $0x1400] sm:$0xf]  ;;  %v11113_v26 = vor.u32 %v13275_v4, %v11112_v7  ;;  %v55_v7 = vld [vmem:[%s20685_s0 + $0xb0] sm:$0xff]  ;;  %v13365_v28 = vld [vmem:[%s20686_s1 + $0x1764] sm:$0xf0] }
 0x155   :  { %7082 = vmatpush.bf16.msra.mxu1 %v11129_v18  ;;  %v13257_v18 = vld [vmem:[%s20686_s1 + $0x1404] sm:$0xf0]  ;;  %164 = vst [vmem:[#allocation1 + $0x20] ss:$2 sm:$0xff] %v55_v7  ;;  %v11472_v21 = vld [vmem:[%s20686_s1 + $0x1760] sm:$0xf] }
 0x156   :  { %7095 = vmatpush.bf16.msra.mxu2 %v11193_v20  ;;  %v11049_v20 = vor.u32 %v13259_v60, %v11048_v55  ;;  %v13367_v55 = vld [vmem:[%s20686_s1 + $0x1774] sm:$0xf0]  ;;  %v6855_v60 = vpop.f32.mrf.mxu3  ;;  %v11041_v4 = vor.u32 %v13257_v18, %v11040_v17  ;;  %v11417_v18 = vor.u32 %v13351_v44, %v11416_v45  ;;  %v13381_v45 = vld [vmem:[%s20686_s1 + $0x17e4] sm:$0xf0]  ;;  %v16204_v44 = vpack.c.bf16 %v169_v23, %v169_v23  ;;  %v11400_v7 = vld [vmem:[%s20686_s1 + $0x16d0] sm:$0xf] }
 0x157   :  { %7108 = vmatpush.bf16.msra.mxu3 %v11257_v9  ;;  %v13289_v9 = vld [vmem:[%s20686_s1 + $0x1504] sm:$0xf0]  ;;  %v11353_v60 = vor.u32 %v13335_v16, %v11352_v29  ;;  %v56_v17 = vld [vmem:[%s20685_s0 + $0xb8] sm:$0xff]  ;;  %v16194_v29 = vpack.c.bf16 %v168_v54, %v168_v54  ;;  %v16196_v16 = vpack.c.bf16 %v167_v22, %v167_v22  ;;  %v11528_v22 = vld [vmem:[%s20686_s1 + $0x17d0] sm:$0xf] }
 0x158   :  { %7070 = vmatpush.bf16.msra.mxu0 %v11057_v8  ;;  %v11480_v8 = vld [vmem:[%s20686_s1 + $0x1770] sm:$0xf]  ;;  %v11169_v3 = vor.u32 %v13289_v9, %v11168_v46  ;;  %v11408_v46 = vld [vmem:[%s20686_s1 + $0x16e0] sm:$0xf]  ;;  %165 = vst [vmem:[#allocation1 + $0x30] ss:$2 sm:$0xff] %v56_v17 }
 0x159   :  { %7083 = vmatpush.bf16.msra.mxu1 %v11121_v61  ;;  %v11544_v61 = vld [vmem:[%s20686_s1 + $0x17f0] sm:$0xf]  ;;  %v11481_v0 = vor.u32 %v13367_v55, %v11480_v8  ;;  %20728 = vst [vmem:[#allocation13_spill] sm:$0xff] %v16194_v29  ;;  %v11473_v55 = vor.u32 %v13365_v28, %v11472_v21  ;;  %v11328_v17 = vld [vmem:[%s20686_s1 + $0x1640] sm:$0xf] }
 0x15a   :  { %7096 = vmatpush.bf16.msra.mxu2 %v11185_v48  ;;  %v13383_v48 = vld [vmem:[%s20686_s1 + $0x17f4] sm:$0xf0]  ;;  %20729 = vst [vmem:[#allocation14_spill] sm:$0xff] %v16196_v16  ;;  %v11520_v28 = vld [vmem:[%s20686_s1 + $0x17c0] sm:$0xf] }
 0x15b   :  { %7109 = vmatpush.bf16.msra.mxu3 %v11249_v63  ;;  %v166_v63 = vld.sshfl [vmem:[#allocation1] sm:$0xff pattern:$0x75316420]  ;;  %v11545_v9 = vor.u32 %v13383_v48, %v11544_v61  ;;  %20730 = vst [vmem:[#allocation15_spill] sm:$0xff] %v16204_v44  ;;  %v11336_v61 = vld [vmem:[%s20686_s1 + $0x1650] sm:$0xf] }
 0x15c   :  { %7071 = vmatpush.bf16.msra.mxu0 %v11049_v20  ;;  %v13333_v20 = vld [vmem:[%s20686_s1 + $0x1664] sm:$0xf0]  ;;  %v13331_v48 = vld [vmem:[%s20686_s1 + $0x1654] sm:$0xf0] }
 0x15d   :  { %7084 = vmatpush.bf16.msra.mxu1 %v11113_v26  ;;  %v16183_v26 = vpack.c.bf16 %v166_v63, %v166_v63  ;;  %v11345_v8 = vor.u32 %v13333_v20, %v11344_v58  ;;  %v13347_v63 = vld [vmem:[%s20686_s1 + $0x16d4] sm:$0xf0] }
 0x15e   :  { %7097 = vmatpush.bf16.msra.mxu2 %v11177_v12  ;;  %v13349_v12 = vld [vmem:[%s20686_s1 + $0x16e4] sm:$0xf0]  ;;  %v13379_v58 = vld [vmem:[%s20686_s1 + $0x17d4] sm:$0xf0] }
 0x15f   :  { %7110 = vmatpush.bf16.msra.mxu3 %v11241_v34  ;;  %20727 = vst [vmem:[#allocation12_spill] sm:$0xff] %v16183_v26  ;;  %v11536_v34 = vld [vmem:[%s20686_s1 + $0x17e0] sm:$0xf]  ;;  %v11409_v54 = vor.u32 %v13349_v12, %v11408_v46  ;;  %v11529_v23 = vor.u32 %v13379_v58, %v11528_v22  ;;  %v13345_v46 = vld [vmem:[%s20686_s1 + $0x16c4] sm:$0xf0] }
 0x160   :  { %7072 = vmatpush.bf16.msra.mxu0 %v11041_v4  ;;  %v11537_v4 = vor.u32 %v13381_v45, %v11536_v34  ;;  %v13361_v12 = vld [vmem:[%s20686_s1 + $0x1744] sm:$0xf0]  ;;  %v6866_v21 = vpop.f32.mrf.mxu0  ;;  %v13359_v22 = vld [vmem:[%s20686_s1 + $0x1734] sm:$0xf0]  ;;  %v11512_v58 = vld [vmem:[%s20686_s1 + $0x17b0] sm:$0xf] }
 0x161   :  { %7085 = vmatpush.bf16.msra.mxu1 %v11105_v35  ;;  %v11464_v35 = vld [vmem:[%s20686_s1 + $0x1750] sm:$0xf]  ;;  %v13377_v34 = vld [vmem:[%s20686_s1 + $0x17c4] sm:$0xf0]  ;;  %v6867_v45 = vadd.f32 %v6866_v21, %v16097_v1  ;;  %v11440_v21 = vld [vmem:[%s20686_s1 + $0x1720] sm:$0xf] }
 0x162   :  { %7098 = vmatpush.bf16.msra.mxu2 %v11169_v3  ;;  %v13363_v3 = vld [vmem:[%s20686_s1 + $0x1754] sm:$0xf0]  ;;  %v11521_v1 = vor.u32 %v13377_v34, %v11520_v28  ;;  %v13357_v28 = vld [vmem:[%s20686_s1 + $0x1724] sm:$0xf0] }
 0x163   :  { %7111 = vmatpush.bf16.msra.mxu3 %v11233_v62  ;;  %7073 = vmatmul.bf16.vlgmr.msra.gmra.mxu0 %v16183_v26  ;;  %v11337_v62 = vor.u32 %v13331_v48, %v11336_v61  ;;  %v11465_v20 = vor.u32 %v13363_v3, %v11464_v35  ;;  %v11320_v48 = vld [vmem:[%s20686_s1 + $0x1630] sm:$0xf]  ;;  %v13343_v35 = vld [vmem:[%s20686_s1 + $0x16b4] sm:$0xf0] }
 0x164   :  { %7117 = vmatpush.bf16.msrb.mxu0 %v11353_v60  ;;  %7086 = vmatmul.bf16.vlgmr.msra.gmra.mxu1 %v16196_v16  ;;  %v11401_v60 = vor.u32 %v13347_v63, %v11400_v7  ;;  %v13327_v7 = vld [vmem:[%s20686_s1 + $0x1634] sm:$0xf0]  ;;  %v11448_v3 = vld [vmem:[%s20686_s1 + $0x1730] sm:$0xf] }
 0x165   :  { %7130 = vmatpush.bf16.msrb.mxu1 %v11417_v18  ;;  %7099 = vmatmul.bf16.vlgmr.msra.gmra.mxu2 %v16194_v29  ;;  %v13329_v18 = vld [vmem:[%s20686_s1 + $0x1644] sm:$0xf0]  ;;  %v172_v26 = vld.sshfl [vmem:[#allocation1 + $0x30] sm:$0xff pattern:$0x75316420] }
 0x166   :  { %7143 = vmatpush.bf16.msrb.mxu2 %v11481_v0  ;;  %7112 = vmatmul.bf16.vlgmr.msra.gmra.mxu3 %v16204_v44  ;;  %v11392_v0 = vld [vmem:[%s20686_s1 + $0x16c0] sm:$0xf]  ;;  %v171_v16 = vld.sshfl [vmem:[#allocation1 + $0x28] sm:$0xff pattern:$0x75316420] }
 0x167   :  { %7156 = vmatpush.bf16.msrb.mxu3 %v11545_v9  ;;  %v11456_v9 = vld [vmem:[%s20686_s1 + $0x1740] sm:$0xf] }
 0x168   :  { %7118 = vmatpush.bf16.msrb.mxu0 %v11345_v8  ;;  %v11329_v8 = vor.u32 %v13329_v18, %v11328_v17  ;;  %v11457_v61 = vor.u32 %v13361_v12, %v11456_v9  ;;  %v11449_v17 = vor.u32 %v13359_v22, %v11448_v3  ;;  %v11312_v18 = vld [vmem:[%s20686_s1 + $0x1620] sm:$0xf]  ;;  %v6892_v9 = vpop.f32.mrf.mxu2  ;;  %v13341_v12 = vld [vmem:[%s20686_s1 + $0x16a4] sm:$0xf0]  ;;  %v11368_v3 = vld [vmem:[%s20686_s1 + $0x1690] sm:$0xf] }
 0x169   :  { %7131 = vmatpush.bf16.msrb.mxu1 %v11409_v54  ;;  %v6879_v54 = vpop.f32.mrf.mxu1  ;;  %v13339_v22 = vld [vmem:[%s20686_s1 + $0x1694] sm:$0xf0]  ;;  %v11600_v44 = vld [vmem:[%s20686_s1 + $0x1860] sm:$0xf] }
 0x16a   :  { %7144 = vmatpush.bf16.msrb.mxu2 %v11473_v55  ;;  %v11393_v55 = vor.u32 %v13345_v46, %v11392_v0  ;;  %v6880_v63 = vadd.f32 %v6879_v54, %v6867_v45  ;;  %v13325_v0 = vld [vmem:[%s20686_s1 + $0x1624] sm:$0xf0]  ;;  %v6905_v45 = vpop.f32.mrf.mxu3 }
 0x16b   :  { %7157 = vmatpush.bf16.msrb.mxu3 %v11537_v4  ;;  %v11384_v4 = vld [vmem:[%s20686_s1 + $0x16b0] sm:$0xf]  ;;  %v13373_v54 = vld [vmem:[%s20686_s1 + $0x17a4] sm:$0xf0] }
 0x16c   :  { %7119 = vmatpush.bf16.msrb.mxu0 %v11337_v62  ;;  %v13375_v62 = vld [vmem:[%s20686_s1 + $0x17b4] sm:$0xf0]  ;;  %v6893_v34 = vadd.f32 %v6892_v9, %v6880_v63  ;;  %v11441_v63 = vor.u32 %v13357_v28, %v11440_v21  ;;  %v13337_v9 = vld [vmem:[%s20686_s1 + $0x1684] sm:$0xf0]  ;;  %v11369_v28 = vor.u32 %v13339_v22, %v11368_v3  ;;  %v11800_v3 = vld [vmem:[%s20686_s1 + $0x19f0] sm:$0xf] }
 0x16d   :  { %7132 = vmatpush.bf16.msrb.mxu1 %v11401_v60  ;;  %v11321_v60 = vor.u32 %v13327_v7, %v11320_v48  ;;  %v11513_v46 = vor.u32 %v13375_v62, %v11512_v58  ;;  %v11304_v48 = vld [vmem:[%s20686_s1 + $0x1610] sm:$0xf]  ;;  %v13353_v21 = vld [vmem:[%s20686_s1 + $0x1704] sm:$0xf0]  ;;  %v13447_v22 = vld [vmem:[%s20686_s1 + $0x19f4] sm:$0xf0] }
 0x16e   :  { %7145 = vmatpush.bf16.msrb.mxu2 %v11465_v20  ;;  %v11385_v20 = vor.u32 %v13343_v35, %v11384_v4  ;;  %v16310_v4 = vadd.f32 %v6905_v45, %v6893_v34  ;;  %v13323_v35 = vld [vmem:[%s20686_s1 + $0x1614] sm:$0xf0]  ;;  %v11432_v62 = vld [vmem:[%s20686_s1 + $0x1710] sm:$0xf]  ;;  %v11488_v45 = vld [vmem:[%s20686_s1 + $0x1780] sm:$0xf] }
 0x16f   :  { %7158 = vmatpush.bf16.msrb.mxu3 %v11529_v23  ;;  %v11376_v23 = vld [vmem:[%s20686_s1 + $0x16a0] sm:$0xf] }
 0x170   :  { %7120 = vmatpush.bf16.msrb.mxu0 %v11329_v8  ;;  %v11504_v8 = vld [vmem:[%s20686_s1 + $0x17a0] sm:$0xf] }
 0x171   :  { %7133 = vmatpush.bf16.msrb.mxu1 %v11393_v55  ;;  %v6868_v55 = vpop.f32.mrf.mxu0  ;;  %v6881_v7 = vpop.f32.mrf.mxu1  ;;  %v11505_v58 = vor.u32 %v13373_v54, %v11504_v8  ;;  %v13369_v8 = vld [vmem:[%s20686_s1 + $0x1784] sm:$0xf0]  ;;  %v11608_v54 = vld [vmem:[%s20686_s1 + $0x1870] sm:$0xf] }
 0x172   :  { %7146 = vmatpush.bf16.msrb.mxu2 %v11457_v61  ;;  %v11313_v61 = vor.u32 %v13325_v0, %v11312_v18  ;;  %v11296_v18 = vld [vmem:[%s20686_s1 + $0x1600] sm:$0xf]  ;;  %v13321_v0 = vld [vmem:[%s20686_s1 + $0x1604] sm:$0xf0]  ;;  %v13399_v55 = vld [vmem:[%s20686_s1 + $0x1874] sm:$0xf0]  ;;  %v11489_v29 = vor.u32 %v13369_v8, %v11488_v45 }
 0x173   :  { %7159 = vmatpush.bf16.msrb.mxu3 %v11521_v1  ;;  %v11377_v1 = vor.u32 %v13341_v12, %v11376_v23  ;;  %v11305_v23 = vor.u32 %v13323_v35, %v11304_v48  ;;  %v11424_v12 = vld [vmem:[%s20686_s1 + $0x1700] sm:$0xf]  ;;  %v11672_v48 = vld [vmem:[%s20686_s1 + $0x18f0] sm:$0xf]  ;;  %v13415_v7 = vld [vmem:[%s20686_s1 + $0x18f4] sm:$0xf0]  ;;  %v6894_v35 = vpop.f32.mrf.mxu2 }
 0x174   :  { %7121 = vmatpush.bf16.msrb.mxu0 %v11321_v60  ;;  %v13355_v60 = vld [vmem:[%s20686_s1 + $0x1714] sm:$0xf0]  ;;  %v11425_v35 = vor.u32 %v13353_v21, %v11424_v12  ;;  %v11664_v12 = vld [vmem:[%s20686_s1 + $0x18e0] sm:$0xf]  ;;  %v11801_v21 = vor.u32 %v13447_v22, %v11800_v3  ;;  %v13429_v8 = vld [vmem:[%s20686_s1 + $0x1964] sm:$0xf0] }
 0x175   :  { %7134 = vmatpush.bf16.msrb.mxu1 %v11385_v20  ;;  %v11496_v20 = vld [vmem:[%s20686_s1 + $0x1790] sm:$0xf]  ;;  %v11433_v34 = vor.u32 %v13355_v60, %v11432_v62  ;;  %v57_v62 = vld [vmem:[%s20685_s0 + $0xc0] sm:$0xff]  ;;  %v11297_v60 = vor.u32 %v13321_v0, %v11296_v18  ;;  %v58_v18 = vld [vmem:[%s20685_s0 + $0xc8] sm:$0xff]  ;;  %v11673_v0 = vor.u32 %v13415_v7, %v11672_v48 }
 0x176   :  { %7147 = vmatpush.bf16.msrb.mxu2 %v11449_v17  ;;  %v13371_v17 = vld [vmem:[%s20686_s1 + $0x1794] sm:$0xf0]  ;;  %174 = vst [vmem:[#allocation1] ss:$2 sm:$0xff] %v57_v62  ;;  %v11728_v45 = vld [vmem:[%s20686_s1 + $0x1960] sm:$0xf] }
 0x177   :  { %7160 = vmatpush.bf16.msrb.mxu3 %v11513_v46  ;;  %v11360_v46 = vld [vmem:[%s20686_s1 + $0x1680] sm:$0xf]  ;;  %v13445_v48 = vld [vmem:[%s20686_s1 + $0x19e4] sm:$0xf0]  ;;  %175 = vst [vmem:[#allocation1 + $0x10] ss:$2 sm:$0xff] %v58_v18 }
 0x178   :  { %7122 = vmatpush.bf16.msrb.mxu0 %v11313_v61  ;;  %v11497_v61 = vor.u32 %v13371_v17, %v11496_v20  ;;  %v170_v20 = vld.sshfl [vmem:[#allocation1 + $0x20] sm:$0xff pattern:$0x75316420]  ;;  %v11361_v17 = vor.u32 %v13337_v9, %v11360_v46  ;;  %v173_v9 = vld.sshfl [vmem:[#allocation1 + $0x38] sm:$0xff pattern:$0x75316420] }
 0x179   :  { %7135 = vmatpush.bf16.msrb.mxu1 %v11377_v1  ;;  %v11736_v1 = vld [vmem:[%s20686_s1 + $0x1970] sm:$0xf]  ;;  %v16417_v7 = vpack.c.bf16 %v173_v9, %v173_v9  ;;  %v13395_v3 = vld [vmem:[%s20686_s1 + $0x1854] sm:$0xf0]  ;;  %v11584_v18 = vld [vmem:[%s20686_s1 + $0x1840] sm:$0xf] }
 0x17a   :  { %7148 = vmatpush.bf16.msrb.mxu2 %v11441_v63  ;;  %v13431_v63 = vld [vmem:[%s20686_s1 + $0x1974] sm:$0xf0]  ;;  %v11720_v62 = vld [vmem:[%s20686_s1 + $0x1950] sm:$0xf] }
 0x17b   :  { %7161 = vmatpush.bf16.msrb.mxu3 %v11505_v58  ;;  %v6907_v58 = vpop.f32.mrf.mxu3  ;;  %v11737_v46 = vor.u32 %v13431_v63, %v11736_v1  ;;  %20734 = vst [vmem:[#allocation19_spill] sm:$0xff] %v16417_v7  ;;  %v11729_v63 = vor.u32 %v13429_v8, %v11728_v45  ;;  %v13411_v22 = vld [vmem:[%s20686_s1 + $0x18d4] sm:$0xf0]  ;;  %v11776_v8 = vld [vmem:[%s20686_s1 + $0x19c0] sm:$0xf] }
 0x17c   :  { %7123 = vmatpush.bf16.msrb.mxu0 %v11305_v23  ;;  %v11609_v58 = vor.u32 %v13399_v55, %v11608_v54  ;;  %v13397_v23 = vld [vmem:[%s20686_s1 + $0x1864] sm:$0xf0]  ;;  %v16407_v54 = vpack.c.bf16 %v172_v26, %v172_v26  ;;  %v16409_v55 = vpack.c.bf16 %v171_v16, %v171_v16  ;;  %v11592_v16 = vld [vmem:[%s20686_s1 + $0x1850] sm:$0xf] }
 0x17d   :  { %7136 = vmatpush.bf16.msrb.mxu1 %v11369_v28  ;;  %v16396_v28 = vpack.c.bf16 %v170_v20, %v170_v20  ;;  %v11601_v1 = vor.u32 %v13397_v23, %v11600_v44  ;;  %v11784_v20 = vld [vmem:[%s20686_s1 + $0x19d0] sm:$0xf] }
 0x17e   :  { %7149 = vmatpush.bf16.msrb.mxu2 %v11433_v34  ;;  %v13413_v34 = vld [vmem:[%s20686_s1 + $0x18e4] sm:$0xf0]  ;;  %20732 = vst [vmem:[#allocation17_spill] sm:$0xff] %v16407_v54 }
 0x17f   :  { %7162 = vmatpush.bf16.msrb.mxu3 %v11497_v61  ;;  %20731 = vst [vmem:[#allocation16_spill] sm:$0xff] %v16396_v28  ;;  %v11792_v61 = vld [vmem:[%s20686_s1 + $0x19e0] sm:$0xf]  ;;  %v11665_v26 = vor.u32 %v13413_v34, %v11664_v12  ;;  %v13409_v12 = vld [vmem:[%s20686_s1 + $0x18c4] sm:$0xf0] }
 0x180   :  { %7124 = vmatpush.bf16.msrb.mxu0 %v11297_v60  ;;  %20733 = vst [vmem:[#allocation18_spill] sm:$0xff] %v16409_v55  ;;  %v11793_v44 = vor.u32 %v13445_v48, %v11792_v61  ;;  %v13427_v60 = vld [vmem:[%s20686_s1 + $0x1954] sm:$0xf0]  ;;  %v13425_v34 = vld [vmem:[%s20686_s1 + $0x1944] sm:$0xf0]  ;;  %v6918_v45 = vpop.f32.mrf.mxu0 }
 0x181   :  { %7137 = vmatpush.bf16.msrb.mxu1 %v11361_v17  ;;  %v13443_v17 = vld [vmem:[%s20686_s1 + $0x19d4] sm:$0xf0]  ;;  %v11721_v23 = vor.u32 %v13427_v60, %v11720_v62  ;;  %v13441_v61 = vld [vmem:[%s20686_s1 + $0x19c4] sm:$0xf0]  ;;  %v6919_v48 = vadd.f32 %v6918_v45, %v16310_v4  ;;  %v11704_v60 = vld [vmem:[%s20686_s1 + $0x1930] sm:$0xf] }
 0x182   :  { %7150 = vmatpush.bf16.msrb.mxu2 %v11425_v35  ;;  %v11593_v35 = vor.u32 %v13395_v3, %v11592_v16  ;;  %v11785_v9 = vor.u32 %v13443_v17, %v11784_v20  ;;  %v11576_v3 = vld [vmem:[%s20686_s1 + $0x1830] sm:$0xf]  ;;  %v11777_v4 = vor.u32 %v13441_v61, %v11776_v8  ;;  %v13407_v62 = vld [vmem:[%s20686_s1 + $0x18b4] sm:$0xf0]  ;;  %v11696_v45 = vld [vmem:[%s20686_s1 + $0x1920] sm:$0xf] }
 0x183   :  { %7163 = vmatpush.bf16.msrb.mxu3 %v11489_v29  ;;  %v11656_v29 = vld [vmem:[%s20686_s1 + $0x18d0] sm:$0xf]  ;;  %7125 = vmatmul.bf16.vlgmr.msrb.gmra.mxu0 %v16396_v28  ;;  %v13423_v20 = vld [vmem:[%s20686_s1 + $0x1934] sm:$0xf0]  ;;  %v13421_v8 = vld [vmem:[%s20686_s1 + $0x1924] sm:$0xf0] }
 0x184   :  { %7169 = vmatpush.bf16.msra.mxu0 %v11609_v58  ;;  %7138 = vmatmul.bf16.vlgmr.msrb.gmra.mxu1 %v16409_v55  ;;  %v11657_v58 = vor.u32 %v13411_v22, %v11656_v29  ;;  %v13391_v29 = vld [vmem:[%s20686_s1 + $0x1834] sm:$0xf0]  ;;  %v11768_v17 = vld [vmem:[%s20686_s1 + $0x19b0] sm:$0xf] }
 0x185   :  { %7182 = vmatpush.bf16.msra.mxu1 %v11673_v0  ;;  %7151 = vmatmul.bf16.vlgmr.msrb.gmra.mxu2 %v16407_v54  ;;  %v13393_v0 = vld [vmem:[%s20686_s1 + $0x1844] sm:$0xf0]  ;;  %v180_v28 = vld.sshfl [vmem:[#allocation1 + $0x10] sm:$0xff pattern:$0x75316420] }
 0x186   :  { %7195 = vmatpush.bf16.msra.mxu2 %v11737_v46  ;;  %7164 = vmatmul.bf16.vlgmr.msrb.gmra.mxu3 %v16417_v7  ;;  %v11648_v46 = vld [vmem:[%s20686_s1 + $0x18c0] sm:$0xf]  ;;  %v179_v55 = vld.sshfl [vmem:[#allocation1 + $0x8] sm:$0xff pattern:$0x75316420] }
 0x187   :  { %7208 = vmatpush.bf16.msra.mxu3 %v11801_v21  ;;  %v11712_v21 = vld [vmem:[%s20686_s1 + $0x1940] sm:$0xf] }
 0x188   :  { %7170 = vmatpush.bf16.msra.mxu0 %v11601_v1  ;;  %v11585_v1 = vor.u32 %v13393_v0, %v11584_v18  ;;  %v11713_v16 = vor.u32 %v13425_v34, %v11712_v21  ;;  %v11705_v18 = vor.u32 %v13423_v20, %v11704_v60  ;;  %v11568_v0 = vld [vmem:[%s20686_s1 + $0x1820] sm:$0xf]  ;;  %v6944_v21 = vpop.f32.mrf.mxu2  ;;  %v13405_v34 = vld [vmem:[%s20686_s1 + $0x18a4] sm:$0xf0]  ;;  %v11624_v60 = vld [vmem:[%s20686_s1 + $0x1890] sm:$0xf] }
 0x189   :  { %7183 = vmatpush.bf16.msra.mxu1 %v11665_v26  ;;  %v6931_v26 = vpop.f32.mrf.mxu1  ;;  %v13403_v20 = vld [vmem:[%s20686_s1 + $0x1894] sm:$0xf0]  ;;  %v11856_v7 = vld [vmem:[%s20686_s1 + $0x1a60] sm:$0xf] }
 0x18a   :  { %7196 = vmatpush.bf16.msra.mxu2 %v11729_v63  ;;  %v11649_v63 = vor.u32 %v13409_v12, %v11648_v46  ;;  %v6932_v22 = vadd.f32 %v6931_v26, %v6919_v48  ;;  %v13389_v46 = vld [vmem:[%s20686_s1 + $0x1824] sm:$0xf0]  ;;  %v6957_v48 = vpop.f32.mrf.mxu3 }
 0x18b   :  { %7209 = vmatpush.bf16.msra.mxu3 %v11793_v44  ;;  %v11640_v44 = vld [vmem:[%s20686_s1 + $0x18b0] sm:$0xf]  ;;  %v13437_v26 = vld [vmem:[%s20686_s1 + $0x19a4] sm:$0xf0] }
 0x18c   :  { %7171 = vmatpush.bf16.msra.mxu0 %v11593_v35  ;;  %v13439_v35 = vld [vmem:[%s20686_s1 + $0x19b4] sm:$0xf0]  ;;  %v6945_v61 = vadd.f32 %v6944_v21, %v6932_v22  ;;  %v11697_v22 = vor.u32 %v13421_v8, %v11696_v45  ;;  %v13401_v21 = vld [vmem:[%s20686_s1 + $0x1884] sm:$0xf0]  ;;  %v11625_v8 = vor.u32 %v13403_v20, %v11624_v60  ;;  %v12056_v60 = vld [vmem:[%s20686_s1 + $0x1bf0] sm:$0xf] }
 0x18d   :  { %7184 = vmatpush.bf16.msra.mxu1 %v11657_v58  ;;  %v11577_v58 = vor.u32 %v13391_v29, %v11576_v3  ;;  %v11769_v12 = vor.u32 %v13439_v35, %v11768_v17  ;;  %v11560_v3 = vld [vmem:[%s20686_s1 + $0x1810] sm:$0xf]  ;;  %v13417_v45 = vld [vmem:[%s20686_s1 + $0x1904] sm:$0xf0]  ;;  %v13511_v20 = vld [vmem:[%s20686_s1 + $0x1bf4] sm:$0xf0] }
 0x18e   :  { %7197 = vmatpush.bf16.msra.mxu2 %v11721_v23  ;;  %v11641_v23 = vor.u32 %v13407_v62, %v11640_v44  ;;  %v16523_v44 = vadd.f32 %v6957_v48, %v6945_v61  ;;  %v13387_v62 = vld [vmem:[%s20686_s1 + $0x1814] sm:$0xf0]  ;;  %v11688_v35 = vld [vmem:[%s20686_s1 + $0x1910] sm:$0xf]  ;;  %v11744_v48 = vld [vmem:[%s20686_s1 + $0x1980] sm:$0xf] }
 0x18f   :  { %7210 = vmatpush.bf16.msra.mxu3 %v11785_v9  ;;  %v11632_v9 = vld [vmem:[%s20686_s1 + $0x18a0] sm:$0xf] }
 0x190   :  { %7172 = vmatpush.bf16.msra.mxu0 %v11585_v1  ;;  %v11760_v1 = vld [vmem:[%s20686_s1 + $0x19a0] sm:$0xf] }
 0x191   :  { %7185 = vmatpush.bf16.msra.mxu1 %v11649_v63  ;;  %v6920_v63 = vpop.f32.mrf.mxu0  ;;  %v6933_v29 = vpop.f32.mrf.mxu1  ;;  %v11761_v17 = vor.u32 %v13437_v26, %v11760_v1  ;;  %v13433_v1 = vld [vmem:[%s20686_s1 + $0x1984] sm:$0xf0]  ;;  %v11864_v26 = vld [vmem:[%s20686_s1 + $0x1a70] sm:$0xf] }
 0x192   :  { %7198 = vmatpush.bf16.msra.mxu2 %v11713_v16  ;;  %v11569_v16 = vor.u32 %v13389_v46, %v11568_v0  ;;  %v11552_v0 = vld [vmem:[%s20686_s1 + $0x1800] sm:$0xf]  ;;  %v13385_v46 = vld [vmem:[%s20686_s1 + $0x1804] sm:$0xf0]  ;;  %v13463_v63 = vld [vmem:[%s20686_s1 + $0x1a74] sm:$0xf0]  ;;  %v11745_v54 = vor.u32 %v13433_v1, %v11744_v48 }
 0x193   :  { %7211 = vmatpush.bf16.msra.mxu3 %v11777_v4  ;;  %v11633_v4 = vor.u32 %v13405_v34, %v11632_v9  ;;  %v11561_v9 = vor.u32 %v13387_v62, %v11560_v3  ;;  %v11680_v34 = vld [vmem:[%s20686_s1 + $0x1900] sm:$0xf]  ;;  %v11928_v3 = vld [vmem:[%s20686_s1 + $0x1af0] sm:$0xf]  ;;  %v13479_v29 = vld [vmem:[%s20686_s1 + $0x1af4] sm:$0xf0]  ;;  %v6946_v62 = vpop.f32.mrf.mxu2 }
 0x194   :  { %7173 = vmatpush.bf16.msra.mxu0 %v11577_v58  ;;  %v13419_v58 = vld [vmem:[%s20686_s1 + $0x1914] sm:$0xf0]  ;;  %v11681_v62 = vor.u32 %v13417_v45, %v11680_v34  ;;  %v11920_v34 = vld [vmem:[%s20686_s1 + $0x1ae0] sm:$0xf]  ;;  %v12057_v45 = vor.u32 %v13511_v20, %v12056_v60  ;;  %v13493_v1 = vld [vmem:[%s20686_s1 + $0x1b64] sm:$0xf0] }
 0x195   :  { %7186 = vmatpush.bf16.msra.mxu1 %v11641_v23  ;;  %v11752_v23 = vld [vmem:[%s20686_s1 + $0x1990] sm:$0xf]  ;;  %v11689_v61 = vor.u32 %v13419_v58, %v11688_v35  ;;  %v11553_v58 = vor.u32 %v13385_v46, %v11552_v0  ;;  %v60_v0 = vld [vmem:[%s20685_s0 + $0xd8] sm:$0xff]  ;;  %v11929_v46 = vor.u32 %v13479_v29, %v11928_v3  ;;  %v11984_v48 = vld [vmem:[%s20686_s1 + $0x1b60] sm:$0xf] }
 0x196   :  { %7199 = vmatpush.bf16.msra.mxu2 %v11705_v18  ;;  %v13435_v18 = vld [vmem:[%s20686_s1 + $0x1994] sm:$0xf0]  ;;  %v59_v35 = vld [vmem:[%s20685_s0 + $0xd0] sm:$0xff]  ;;  %v13509_v3 = vld [vmem:[%s20686_s1 + $0x1be4] sm:$0xf0] }
 0x197   :  { %7212 = vmatpush.bf16.msra.mxu3 %v11769_v12  ;;  %v11616_v12 = vld [vmem:[%s20686_s1 + $0x1880] sm:$0xf]  ;;  %176 = vst [vmem:[#allocation1 + $0x20] ss:$2 sm:$0xff] %v59_v35  ;;  %v13459_v60 = vld [vmem:[%s20686_s1 + $0x1a54] sm:$0xf0] }
 0x198   :  { %7174 = vmatpush.bf16.msra.mxu0 %v11569_v16  ;;  %v11753_v16 = vor.u32 %v13435_v18, %v11752_v23  ;;  %v178_v23 = vld.sshfl [vmem:[#allocation1] sm:$0xff pattern:$0x75316420]  ;;  %v11617_v18 = vor.u32 %v13401_v21, %v11616_v12  ;;  %v181_v21 = vld.sshfl [vmem:[#allocation1 + $0x18] sm:$0xff pattern:$0x75316420] }
 0x199   :  { %7187 = vmatpush.bf16.msra.mxu1 %v11633_v4  ;;  %v11992_v4 = vld [vmem:[%s20686_s1 + $0x1b70] sm:$0xf]  ;;  %177 = vst [vmem:[#allocation1 + $0x30] ss:$2 sm:$0xff] %v60_v0  ;;  %v16630_v29 = vpack.c.bf16 %v181_v21, %v181_v21  ;;  %v13475_v20 = vld [vmem:[%s20686_s1 + $0x1ad4] sm:$0xf0] }
 0x19a   :  { %7200 = vmatpush.bf16.msra.mxu2 %v11697_v22  ;;  %v13495_v22 = vld [vmem:[%s20686_s1 + $0x1b74] sm:$0xf0]  ;;  %v11976_v35 = vld [vmem:[%s20686_s1 + $0x1b50] sm:$0xf]  ;;  %v11840_v0 = vld [vmem:[%s20686_s1 + $0x1a40] sm:$0xf] }
 0x19b   :  { %7213 = vmatpush.bf16.msra.mxu3 %v11761_v17  ;;  %v6959_v17 = vpop.f32.mrf.mxu3  ;;  %v11993_v12 = vor.u32 %v13495_v22, %v11992_v4  ;;  %20738 = vst [vmem:[#allocation23_spill] sm:$0xff] %v16630_v29  ;;  %v11985_v22 = vor.u32 %v13493_v1, %v11984_v48  ;;  %v12032_v1 = vld [vmem:[%s20686_s1 + $0x1bc0] sm:$0xf] }
 0x19c   :  { %7175 = vmatpush.bf16.msra.mxu0 %v11561_v9  ;;  %v11865_v17 = vor.u32 %v13463_v63, %v11864_v26  ;;  %v13461_v9 = vld [vmem:[%s20686_s1 + $0x1a64] sm:$0xf0]  ;;  %v16620_v26 = vpack.c.bf16 %v180_v28, %v180_v28  ;;  %v16622_v63 = vpack.c.bf16 %v179_v55, %v179_v55  ;;  %v11848_v55 = vld [vmem:[%s20686_s1 + $0x1a50] sm:$0xf] }
 0x19d   :  { %7188 = vmatpush.bf16.msra.mxu1 %v11625_v8  ;;  %v16609_v8 = vpack.c.bf16 %v178_v23, %v178_v23  ;;  %v11857_v4 = vor.u32 %v13461_v9, %v11856_v7  ;;  %v12040_v23 = vld [vmem:[%s20686_s1 + $0x1bd0] sm:$0xf] }
 0x19e   :  { %7201 = vmatpush.bf16.msra.mxu2 %v11689_v61  ;;  %v13477_v61 = vld [vmem:[%s20686_s1 + $0x1ae4] sm:$0xf0]  ;;  %20736 = vst [vmem:[#allocation21_spill] sm:$0xff] %v16620_v26 }
 0x19f   :  { %7214 = vmatpush.bf16.msra.mxu3 %v11753_v16  ;;  %20735 = vst [vmem:[#allocation20_spill] sm:$0xff] %v16609_v8  ;;  %v12048_v16 = vld [vmem:[%s20686_s1 + $0x1be0] sm:$0xf]  ;;  %v11921_v28 = vor.u32 %v13477_v61, %v11920_v34  ;;  %v13473_v34 = vld [vmem:[%s20686_s1 + $0x1ac4] sm:$0xf0] }
 0x1a0   :  { %7176 = vmatpush.bf16.msra.mxu0 %v11553_v58  ;;  %20737 = vst [vmem:[#allocation22_spill] sm:$0xff] %v16622_v63  ;;  %v12049_v7 = vor.u32 %v13509_v3, %v12048_v16  ;;  %v13491_v58 = vld [vmem:[%s20686_s1 + $0x1b54] sm:$0xf0]  ;;  %v13489_v61 = vld [vmem:[%s20686_s1 + $0x1b44] sm:$0xf0]  ;;  %v6970_v48 = vpop.f32.mrf.mxu0 }
 0x1a1   :  { %7189 = vmatpush.bf16.msra.mxu1 %v11617_v18  ;;  %v13507_v18 = vld [vmem:[%s20686_s1 + $0x1bd4] sm:$0xf0]  ;;  %v11977_v9 = vor.u32 %v13491_v58, %v11976_v35  ;;  %v13505_v16 = vld [vmem:[%s20686_s1 + $0x1bc4] sm:$0xf0]  ;;  %v6971_v3 = vadd.f32 %v6970_v48, %v16523_v44  ;;  %v11960_v58 = vld [vmem:[%s20686_s1 + $0x1b30] sm:$0xf] }
 0x1a2   :  { %7202 = vmatpush.bf16.msra.mxu2 %v11681_v62  ;;  %v11849_v62 = vor.u32 %v13459_v60, %v11848_v55  ;;  %v12041_v21 = vor.u32 %v13507_v18, %v12040_v23  ;;  %v11832_v60 = vld [vmem:[%s20686_s1 + $0x1a30] sm:$0xf]  ;;  %v12033_v44 = vor.u32 %v13505_v16, %v12032_v1  ;;  %v13471_v35 = vld [vmem:[%s20686_s1 + $0x1ab4] sm:$0xf0]  ;;  %v11952_v48 = vld [vmem:[%s20686_s1 + $0x1b20] sm:$0xf] }
 0x1a3   :  { %7215 = vmatpush.bf16.msra.mxu3 %v11745_v54  ;;  %v11912_v54 = vld [vmem:[%s20686_s1 + $0x1ad0] sm:$0xf]  ;;  %7177 = vmatmul.bf16.vlgmr.msra.gmra.mxu0 %v16609_v8  ;;  %v13487_v23 = vld [vmem:[%s20686_s1 + $0x1b34] sm:$0xf0]  ;;  %v13485_v1 = vld [vmem:[%s20686_s1 + $0x1b24] sm:$0xf0] }
 0x1a4   :  { %7221 = vmatpush.bf16.msrb.mxu0 %v11865_v17  ;;  %7190 = vmatmul.bf16.vlgmr.msra.gmra.mxu1 %v16622_v63  ;;  %v11913_v17 = vor.u32 %v13475_v20, %v11912_v54  ;;  %v13455_v54 = vld [vmem:[%s20686_s1 + $0x1a34] sm:$0xf0]  ;;  %v12024_v18 = vld [vmem:[%s20686_s1 + $0x1bb0] sm:$0xf] }
 0x1a5   :  { %7234 = vmatpush.bf16.msrb.mxu1 %v11929_v46  ;;  %7203 = vmatmul.bf16.vlgmr.msra.gmra.mxu2 %v16620_v26  ;;  %v13457_v46 = vld [vmem:[%s20686_s1 + $0x1a44] sm:$0xf0]  ;;  %v184_v8 = vld.sshfl [vmem:[#allocation1 + $0x30] sm:$0xff pattern:$0x75316420] }
 0x1a6   :  { %7247 = vmatpush.bf16.msrb.mxu2 %v11993_v12  ;;  %7216 = vmatmul.bf16.vlgmr.msra.gmra.mxu3 %v16630_v29  ;;  %v11904_v12 = vld [vmem:[%s20686_s1 + $0x1ac0] sm:$0xf]  ;;  %v183_v63 = vld.sshfl [vmem:[#allocation1 + $0x28] sm:$0xff pattern:$0x75316420] }
 0x1a7   :  { %7260 = vmatpush.bf16.msrb.mxu3 %v12057_v45  ;;  %v11968_v45 = vld [vmem:[%s20686_s1 + $0x1b40] sm:$0xf] }
 0x1a8   :  { %7222 = vmatpush.bf16.msrb.mxu0 %v11857_v4  ;;  %v11841_v4 = vor.u32 %v13457_v46, %v11840_v0  ;;  %v11969_v55 = vor.u32 %v13489_v61, %v11968_v45  ;;  %v11961_v0 = vor.u32 %v13487_v23, %v11960_v58  ;;  %v11824_v46 = vld [vmem:[%s20686_s1 + $0x1a20] sm:$0xf]  ;;  %v6996_v45 = vpop.f32.mrf.mxu2  ;;  %v13469_v61 = vld [vmem:[%s20686_s1 + $0x1aa4] sm:$0xf0]  ;;  %v11880_v58 = vld [vmem:[%s20686_s1 + $0x1a90] sm:$0xf] }
 0x1a9   :  { %7235 = vmatpush.bf16.msrb.mxu1 %v11921_v28  ;;  %v6983_v28 = vpop.f32.mrf.mxu1  ;;  %v13467_v23 = vld [vmem:[%s20686_s1 + $0x1a94] sm:$0xf0]  ;;  %v12112_v29 = vld [vmem:[%s20686_s1 + $0x1c60] sm:$0xf] }
 0x1aa   :  { %7248 = vmatpush.bf16.msrb.mxu2 %v11985_v22  ;;  %v11905_v22 = vor.u32 %v13473_v34, %v11904_v12  ;;  %v6984_v20 = vadd.f32 %v6983_v28, %v6971_v3  ;;  %v13453_v12 = vld [vmem:[%s20686_s1 + $0x1a24] sm:$0xf0]  ;;  %v7009_v3 = vpop.f32.mrf.mxu3 }
 0x1ab   :  { %7261 = vmatpush.bf16.msrb.mxu3 %v12049_v7  ;;  %v11896_v7 = vld [vmem:[%s20686_s1 + $0x1ab0] sm:$0xf]  ;;  %v13501_v28 = vld [vmem:[%s20686_s1 + $0x1ba4] sm:$0xf0] }
 0x1ac   :  { %7223 = vmatpush.bf16.msrb.mxu0 %v11849_v62  ;;  %v13503_v62 = vld [vmem:[%s20686_s1 + $0x1bb4] sm:$0xf0]  ;;  %v6997_v16 = vadd.f32 %v6996_v45, %v6984_v20  ;;  %v11953_v20 = vor.u32 %v13485_v1, %v11952_v48  ;;  %v13465_v45 = vld [vmem:[%s20686_s1 + $0x1a84] sm:$0xf0]  ;;  %v11881_v1 = vor.u32 %v13467_v23, %v11880_v58  ;;  %v12312_v58 = vld [vmem:[%s20686_s1 + $0x1df0] sm:$0xf] }
 0x1ad   :  { %7236 = vmatpush.bf16.msrb.mxu1 %v11913_v17  ;;  %v11833_v17 = vor.u32 %v13455_v54, %v11832_v60  ;;  %v12025_v34 = vor.u32 %v13503_v62, %v12024_v18  ;;  %v11816_v60 = vld [vmem:[%s20686_s1 + $0x1a10] sm:$0xf]  ;;  %v13481_v48 = vld [vmem:[%s20686_s1 + $0x1b04] sm:$0xf0]  ;;  %v13575_v23 = vld [vmem:[%s20686_s1 + $0x1df4] sm:$0xf0] }
 0x1ae   :  { %7249 = vmatpush.bf16.msrb.mxu2 %v11977_v9  ;;  %v11897_v9 = vor.u32 %v13471_v35, %v11896_v7  ;;  %v16736_v7 = vadd.f32 %v7009_v3, %v6997_v16  ;;  %v13451_v35 = vld [vmem:[%s20686_s1 + $0x1a14] sm:$0xf0]  ;;  %v11944_v62 = vld [vmem:[%s20686_s1 + $0x1b10] sm:$0xf]  ;;  %v12000_v3 = vld [vmem:[%s20686_s1 + $0x1b80] sm:$0xf] }
 0x1af   :  { %7262 = vmatpush.bf16.msrb.mxu3 %v12041_v21  ;;  %v11888_v21 = vld [vmem:[%s20686_s1 + $0x1aa0] sm:$0xf] }
 0x1b0   :  { %7224 = vmatpush.bf16.msrb.mxu0 %v11841_v4  ;;  %v12016_v4 = vld [vmem:[%s20686_s1 + $0x1ba0] sm:$0xf] }
 0x1b1   :  { %7237 = vmatpush.bf16.msrb.mxu1 %v11905_v22  ;;  %v6972_v22 = vpop.f32.mrf.mxu0  ;;  %v6985_v54 = vpop.f32.mrf.mxu1  ;;  %v12017_v18 = vor.u32 %v13501_v28, %v12016_v4  ;;  %v13497_v4 = vld [vmem:[%s20686_s1 + $0x1b84] sm:$0xf0]  ;;  %v12120_v28 = vld [vmem:[%s20686_s1 + $0x1c70] sm:$0xf] }
 0x1b2   :  { %7250 = vmatpush.bf16.msrb.mxu2 %v11969_v55  ;;  %v11825_v55 = vor.u32 %v13453_v12, %v11824_v46  ;;  %v11808_v46 = vld [vmem:[%s20686_s1 + $0x1a00] sm:$0xf]  ;;  %v13449_v12 = vld [vmem:[%s20686_s1 + $0x1a04] sm:$0xf0]  ;;  %v13527_v22 = vld [vmem:[%s20686_s1 + $0x1c74] sm:$0xf0]  ;;  %v12001_v26 = vor.u32 %v13497_v4, %v12000_v3 }
 0x1b3   :  { %7263 = vmatpush.bf16.msrb.mxu3 %v12033_v44  ;;  %v11889_v44 = vor.u32 %v13469_v61, %v11888_v21  ;;  %v11817_v21 = vor.u32 %v13451_v35, %v11816_v60  ;;  %v11936_v61 = vld [vmem:[%s20686_s1 + $0x1b00] sm:$0xf]  ;;  %v12184_v60 = vld [vmem:[%s20686_s1 + $0x1cf0] sm:$0xf]  ;;  %v13543_v54 = vld [vmem:[%s20686_s1 + $0x1cf4] sm:$0xf0]  ;;  %v6998_v35 = vpop.f32.mrf.mxu2 }
 0x1b4   :  { %7225 = vmatpush.bf16.msrb.mxu0 %v11833_v17  ;;  %v13483_v17 = vld [vmem:[%s20686_s1 + $0x1b14] sm:$0xf0]  ;;  %v11937_v35 = vor.u32 %v13481_v48, %v11936_v61  ;;  %v12176_v61 = vld [vmem:[%s20686_s1 + $0x1ce0] sm:$0xf]  ;;  %v12313_v48 = vor.u32 %v13575_v23, %v12312_v58  ;;  %v13557_v4 = vld [vmem:[%s20686_s1 + $0x1d64] sm:$0xf0] }
 0x1b5   :  { %7238 = vmatpush.bf16.msrb.mxu1 %v11897_v9  ;;  %v12008_v9 = vld [vmem:[%s20686_s1 + $0x1b90] sm:$0xf]  ;;  %v11945_v16 = vor.u32 %v13483_v17, %v11944_v62  ;;  %v61_v62 = vld [vmem:[%s20685_s0 + $0xe0] sm:$0xff]  ;;  %v11809_v17 = vor.u32 %v13449_v12, %v11808_v46  ;;  %v62_v46 = vld [vmem:[%s20685_s0 + $0xe8] sm:$0xff]  ;;  %v12185_v12 = vor.u32 %v13543_v54, %v12184_v60 }
 0x1b6   :  { %7251 = vmatpush.bf16.msrb.mxu2 %v11961_v0  ;;  %v13499_v0 = vld [vmem:[%s20686_s1 + $0x1b94] sm:$0xf0]  ;;  %186 = vst [vmem:[#allocation1] ss:$2 sm:$0xff] %v61_v62  ;;  %v12240_v3 = vld [vmem:[%s20686_s1 + $0x1d60] sm:$0xf] }
 0x1b7   :  { %7264 = vmatpush.bf16.msrb.mxu3 %v12025_v34  ;;  %v11872_v34 = vld [vmem:[%s20686_s1 + $0x1a80] sm:$0xf]  ;;  %v13573_v60 = vld [vmem:[%s20686_s1 + $0x1de4] sm:$0xf0]  ;;  %187 = vst [vmem:[#allocation1 + $0x10] ss:$2 sm:$0xff] %v62_v46 }
 0x1b8   :  { %7226 = vmatpush.bf16.msrb.mxu0 %v11825_v55  ;;  %v12009_v55 = vor.u32 %v13499_v0, %v12008_v9  ;;  %v182_v9 = vld.sshfl [vmem:[#allocation1 + $0x20] sm:$0xff pattern:$0x75316420]  ;;  %v11873_v0 = vor.u32 %v13465_v45, %v11872_v34  ;;  %v185_v45 = vld.sshfl [vmem:[#allocation1 + $0x38] sm:$0xff pattern:$0x75316420] }
 0x1b9   :  { %7239 = vmatpush.bf16.msrb.mxu1 %v11889_v44  ;;  %v12248_v44 = vld [vmem:[%s20686_s1 + $0x1d70] sm:$0xf]  ;;  %v16843_v54 = vpack.c.bf16 %v185_v45, %v185_v45  ;;  %v13523_v58 = vld [vmem:[%s20686_s1 + $0x1c54] sm:$0xf0]  ;;  %v12096_v46 = vld [vmem:[%s20686_s1 + $0x1c40] sm:$0xf] }
 0x1ba   :  { %7252 = vmatpush.bf16.msrb.mxu2 %v11953_v20  ;;  %v13559_v20 = vld [vmem:[%s20686_s1 + $0x1d74] sm:$0xf0]  ;;  %v12232_v62 = vld [vmem:[%s20686_s1 + $0x1d50] sm:$0xf] }
 0x1bb   :  { %7265 = vmatpush.bf16.msrb.mxu3 %v12017_v18  ;;  %v7011_v18 = vpop.f32.mrf.mxu3  ;;  %v12249_v34 = vor.u32 %v13559_v20, %v12248_v44  ;;  %20742 = vst [vmem:[#allocation27_spill] sm:$0xff] %v16843_v54  ;;  %v12241_v20 = vor.u32 %v13557_v4, %v12240_v3  ;;  %v13539_v23 = vld [vmem:[%s20686_s1 + $0x1cd4] sm:$0xf0]  ;;  %v12288_v4 = vld [vmem:[%s20686_s1 + $0x1dc0] sm:$0xf] }
 0x1bc   :  { %7227 = vmatpush.bf16.msrb.mxu0 %v11817_v21  ;;  %v12121_v18 = vor.u32 %v13527_v22, %v12120_v28  ;;  %v13525_v21 = vld [vmem:[%s20686_s1 + $0x1c64] sm:$0xf0]  ;;  %v16833_v28 = vpack.c.bf16 %v184_v8, %v184_v8  ;;  %v16835_v22 = vpack.c.bf16 %v183_v63, %v183_v63  ;;  %v12104_v63 = vld [vmem:[%s20686_s1 + $0x1c50] sm:$0xf] }
 0x1bd   :  { %7240 = vmatpush.bf16.msrb.mxu1 %v11881_v1  ;;  %v16822_v1 = vpack.c.bf16 %v182_v9, %v182_v9  ;;  %v12113_v44 = vor.u32 %v13525_v21, %v12112_v29  ;;  %v12296_v9 = vld [vmem:[%s20686_s1 + $0x1dd0] sm:$0xf] }
 0x1be   :  { %7253 = vmatpush.bf16.msrb.mxu2 %v11945_v16  ;;  %v13541_v16 = vld [vmem:[%s20686_s1 + $0x1ce4] sm:$0xf0]  ;;  %20740 = vst [vmem:[#allocation25_spill] sm:$0xff] %v16833_v28 }
 0x1bf   :  { %7266 = vmatpush.bf16.msrb.mxu3 %v12009_v55  ;;  %20739 = vst [vmem:[#allocation24_spill] sm:$0xff] %v16822_v1  ;;  %v12304_v55 = vld [vmem:[%s20686_s1 + $0x1de0] sm:$0xf]  ;;  %v12177_v8 = vor.u32 %v13541_v16, %v12176_v61  ;;  %v13537_v61 = vld [vmem:[%s20686_s1 + $0x1cc4] sm:$0xf0] }
 0x1c0   :  { %7228 = vmatpush.bf16.msrb.mxu0 %v11809_v17  ;;  %20741 = vst [vmem:[#allocation26_spill] sm:$0xff] %v16835_v22  ;;  %v12305_v29 = vor.u32 %v13573_v60, %v12304_v55  ;;  %v13555_v17 = vld [vmem:[%s20686_s1 + $0x1d54] sm:$0xf0]  ;;  %v13553_v16 = vld [vmem:[%s20686_s1 + $0x1d44] sm:$0xf0]  ;;  %v7022_v3 = vpop.f32.mrf.mxu0 }
 0x1c1   :  { %7241 = vmatpush.bf16.msrb.mxu1 %v11873_v0  ;;  %v13571_v0 = vld [vmem:[%s20686_s1 + $0x1dd4] sm:$0xf0]  ;;  %v12233_v21 = vor.u32 %v13555_v17, %v12232_v62  ;;  %v13569_v55 = vld [vmem:[%s20686_s1 + $0x1dc4] sm:$0xf0]  ;;  %v7023_v60 = vadd.f32 %v7022_v3, %v16736_v7  ;;  %v12216_v17 = vld [vmem:[%s20686_s1 + $0x1d30] sm:$0xf] }
 0x1c2   :  { %7254 = vmatpush.bf16.msrb.mxu2 %v11937_v35  ;;  %v12105_v35 = vor.u32 %v13523_v58, %v12104_v63  ;;  %v12297_v45 = vor.u32 %v13571_v0, %v12296_v9  ;;  %v12088_v58 = vld [vmem:[%s20686_s1 + $0x1c30] sm:$0xf]  ;;  %v12289_v7 = vor.u32 %v13569_v55, %v12288_v4  ;;  %v13535_v62 = vld [vmem:[%s20686_s1 + $0x1cb4] sm:$0xf0]  ;;  %v12208_v3 = vld [vmem:[%s20686_s1 + $0x1d20] sm:$0xf] }
 0x1c3   :  { %7267 = vmatpush.bf16.msrb.mxu3 %v12001_v26  ;;  %v12168_v26 = vld [vmem:[%s20686_s1 + $0x1cd0] sm:$0xf]  ;;  %7229 = vmatmul.bf16.vlgmr.msrb.gmra.mxu0 %v16822_v1  ;;  %v13551_v9 = vld [vmem:[%s20686_s1 + $0x1d34] sm:$0xf0]  ;;  %v13549_v4 = vld [vmem:[%s20686_s1 + $0x1d24] sm:$0xf0] }
 0x1c4   :  { %7273 = vmatpush.bf16.msra.mxu0 %v12121_v18  ;;  %7242 = vmatmul.bf16.vlgmr.msrb.gmra.mxu1 %v16835_v22  ;;  %v12169_v18 = vor.u32 %v13539_v23, %v12168_v26  ;;  %v13519_v26 = vld [vmem:[%s20686_s1 + $0x1c34] sm:$0xf0]  ;;  %v12280_v0 = vld [vmem:[%s20686_s1 + $0x1db0] sm:$0xf] }
 0x1c5   :  { %7286 = vmatpush.bf16.msra.mxu1 %v12185_v12  ;;  %7255 = vmatmul.bf16.vlgmr.msrb.gmra.mxu2 %v16833_v28  ;;  %v13521_v12 = vld [vmem:[%s20686_s1 + $0x1c44] sm:$0xf0]  ;;  %v12368_v28 = vld [vmem:[%s20686_s1 + $0x1e60] sm:$0xf] }
 0x1c6   :  { %7299 = vmatpush.bf16.msra.mxu2 %v12249_v34  ;;  %7268 = vmatmul.bf16.vlgmr.msrb.gmra.mxu3 %v16843_v54  ;;  %v12160_v34 = vld [vmem:[%s20686_s1 + $0x1cc0] sm:$0xf]  ;;  %v191_v54 = vld.sshfl [vmem:[#allocation1 + $0x8] sm:$0xff pattern:$0x75316420] }
 0x1c7   :  { %7312 = vmatpush.bf16.msra.mxu3 %v12313_v48  ;;  %v12224_v48 = vld [vmem:[%s20686_s1 + $0x1d40] sm:$0xf]  ;;  %v192_v1 = vld.sshfl [vmem:[#allocation1 + $0x10] sm:$0xff pattern:$0x75316420] }
 0x1c8   :  { %7274 = vmatpush.bf16.msra.mxu0 %v12113_v44  ;;  %v12097_v44 = vor.u32 %v13521_v12, %v12096_v46  ;;  %v12225_v63 = vor.u32 %v13553_v16, %v12224_v48  ;;  %v12217_v46 = vor.u32 %v13551_v9, %v12216_v17  ;;  %v12080_v12 = vld [vmem:[%s20686_s1 + $0x1c20] sm:$0xf]  ;;  %v7048_v48 = vpop.f32.mrf.mxu2  ;;  %v13533_v16 = vld [vmem:[%s20686_s1 + $0x1ca4] sm:$0xf0]  ;;  %v12136_v17 = vld [vmem:[%s20686_s1 + $0x1c90] sm:$0xf] }
 0x1c9   :  { %7287 = vmatpush.bf16.msra.mxu1 %v12177_v8  ;;  %v7035_v8 = vpop.f32.mrf.mxu1  ;;  %v13531_v9 = vld [vmem:[%s20686_s1 + $0x1c94] sm:$0xf0] }
 0x1ca   :  { %7300 = vmatpush.bf16.msra.mxu2 %v12241_v20  ;;  %v12161_v20 = vor.u32 %v13537_v61, %v12160_v34  ;;  %v7036_v23 = vadd.f32 %v7035_v8, %v7023_v60  ;;  %v13517_v34 = vld [vmem:[%s20686_s1 + $0x1c24] sm:$0xf0]  ;;  %v7061_v60 = vpop.f32.mrf.mxu3 }
 0x1cb   :  { %7313 = vmatpush.bf16.msra.mxu3 %v12305_v29  ;;  %v12152_v29 = vld [vmem:[%s20686_s1 + $0x1cb0] sm:$0xf]  ;;  %v13565_v8 = vld [vmem:[%s20686_s1 + $0x1da4] sm:$0xf0] }
 0x1cc   :  { %7275 = vmatpush.bf16.msra.mxu0 %v12105_v35  ;;  %v13567_v35 = vld [vmem:[%s20686_s1 + $0x1db4] sm:$0xf0]  ;;  %v7049_v55 = vadd.f32 %v7048_v48, %v7036_v23  ;;  %v12209_v23 = vor.u32 %v13549_v4, %v12208_v3  ;;  %v13529_v48 = vld [vmem:[%s20686_s1 + $0x1c84] sm:$0xf0]  ;;  %v63_v4 = vld [vmem:[%s20685_s0 + $0xf0] sm:$0xff] }
 0x1cd   :  { %7288 = vmatpush.bf16.msra.mxu1 %v12169_v18  ;;  %v12089_v18 = vor.u32 %v13519_v26, %v12088_v58  ;;  %v12281_v61 = vor.u32 %v13567_v35, %v12280_v0  ;;  %v12072_v58 = vld [vmem:[%s20686_s1 + $0x1c10] sm:$0xf]  ;;  %v13545_v3 = vld [vmem:[%s20686_s1 + $0x1d04] sm:$0xf0]  ;;  %188 = vst [vmem:[#allocation1 + $0x20] ss:$2 sm:$0xff] %v63_v4 }
 0x1ce   :  { %7301 = vmatpush.bf16.msra.mxu2 %v12233_v21  ;;  %v12153_v21 = vor.u32 %v13535_v62, %v12152_v29  ;;  %v16949_v29 = vadd.f32 %v7061_v60, %v7049_v55  ;;  %v13515_v62 = vld [vmem:[%s20686_s1 + $0x1c14] sm:$0xf0]  ;;  %v12200_v35 = vld [vmem:[%s20686_s1 + $0x1d10] sm:$0xf]  ;;  %v12137_v55 = vor.u32 %v13531_v9, %v12136_v17 }
 0x1cf   :  { %7314 = vmatpush.bf16.msra.mxu3 %v12297_v45  ;;  %v12144_v45 = vld [vmem:[%s20686_s1 + $0x1ca0] sm:$0xf]  ;;  %v12568_v9 = vld [vmem:[%s20686_s1 + $0x1ff0] sm:$0xf] }
 0x1d0   :  { %7276 = vmatpush.bf16.msra.mxu0 %v12097_v44  ;;  %v12272_v44 = vld [vmem:[%s20686_s1 + $0x1da0] sm:$0xf]  ;;  %v7050_v17 = vpop.f32.mrf.mxu2 }
 0x1d1   :  { %7289 = vmatpush.bf16.msra.mxu1 %v12161_v20  ;;  %v7024_v20 = vpop.f32.mrf.mxu0  ;;  %v7037_v26 = vpop.f32.mrf.mxu1  ;;  %v12273_v0 = vor.u32 %v13565_v8, %v12272_v44  ;;  %v12256_v44 = vld [vmem:[%s20686_s1 + $0x1d80] sm:$0xf]  ;;  %v13561_v8 = vld [vmem:[%s20686_s1 + $0x1d84] sm:$0xf0] }
 0x1d2   :  { %7302 = vmatpush.bf16.msra.mxu2 %v12225_v63  ;;  %v12081_v63 = vor.u32 %v13517_v34, %v12080_v12  ;;  %v12064_v12 = vld [vmem:[%s20686_s1 + $0x1c00] sm:$0xf]  ;;  %v13513_v34 = vld [vmem:[%s20686_s1 + $0x1c04] sm:$0xf0]  ;;  %v12376_v20 = vld [vmem:[%s20686_s1 + $0x1e70] sm:$0xf] }
 0x1d3   :  { %7315 = vmatpush.bf16.msra.mxu3 %v12289_v7  ;;  %v12145_v7 = vor.u32 %v13533_v16, %v12144_v45  ;;  %v12073_v45 = vor.u32 %v13515_v62, %v12072_v58  ;;  %v12192_v16 = vld [vmem:[%s20686_s1 + $0x1d00] sm:$0xf]  ;;  %v12440_v26 = vld [vmem:[%s20686_s1 + $0x1ef0] sm:$0xf]  ;;  %v13623_v62 = vld [vmem:[%s20686_s1 + $0x1f74] sm:$0xf0] }
 0x1d4   :  { %7277 = vmatpush.bf16.msra.mxu0 %v12089_v18  ;;  %v13547_v18 = vld [vmem:[%s20686_s1 + $0x1d14] sm:$0xf0]  ;;  %v12193_v22 = vor.u32 %v13545_v3, %v12192_v16  ;;  %v13605_v3 = vld [vmem:[%s20686_s1 + $0x1ee4] sm:$0xf0] }
 0x1d5   :  { %7290 = vmatpush.bf16.msra.mxu1 %v12153_v21  ;;  %v12264_v21 = vld [vmem:[%s20686_s1 + $0x1d90] sm:$0xf]  ;;  %v12201_v60 = vor.u32 %v13547_v18, %v12200_v35  ;;  %v7063_v35 = vpop.f32.mrf.mxu3  ;;  %v64_v18 = vld [vmem:[%s20685_s0 + $0xf8] sm:$0xff] }
 0x1d6   :  { %7303 = vmatpush.bf16.msra.mxu2 %v12217_v46  ;;  %v13563_v46 = vld [vmem:[%s20686_s1 + $0x1d94] sm:$0xf0]  ;;  %189 = vst [vmem:[#allocation1 + $0x30] ss:$2 sm:$0xff] %v64_v18  ;;  %v12257_v35 = vor.u32 %v13561_v8, %v12256_v44  ;;  %v17046_v44 = vpack.c.bf16 %v192_v1, %v192_v1  ;;  %v17048_v8 = vpack.c.bf16 %v191_v54, %v191_v54  ;;  %v12360_v54 = vld [vmem:[%s20686_s1 + $0x1e50] sm:$0xf] }
 0x1d7   :  { %7316 = vmatpush.bf16.msra.mxu3 %v12281_v61  ;;  %v12128_v61 = vld [vmem:[%s20686_s1 + $0x1c80] sm:$0xf]  ;;  %v12265_v58 = vor.u32 %v13563_v46, %v12264_v21  ;;  %v12065_v21 = vor.u32 %v13513_v34, %v12064_v12  ;;  %v193_v18 = vld.sshfl [vmem:[#allocation1 + $0x18] sm:$0xff pattern:$0x75316420] }
 0x1d8   :  { %7278 = vmatpush.bf16.msra.mxu0 %v12081_v63  ;;  %v13591_v63 = vld [vmem:[%s20686_s1 + $0x1e74] sm:$0xf0]  ;;  %v190_v46 = vld.sshfl [vmem:[#allocation1] sm:$0xff pattern:$0x75316420]  ;;  %v12129_v17 = vor.u32 %v13529_v48, %v12128_v61  ;;  %20743 = vst [vmem:[#allocation28_spill] sm:$0xff] %v17048_v8 }
 0x1d9   :  { %7291 = vmatpush.bf16.msra.mxu1 %v12145_v7  ;;  %v13607_v7 = vld [vmem:[%s20686_s1 + $0x1ef4] sm:$0xf0]  ;;  %v12377_v4 = vor.u32 %v13591_v63, %v12376_v20  ;;  %v12432_v61 = vld [vmem:[%s20686_s1 + $0x1ee0] sm:$0xf]  ;;  %v17035_v16 = vpack.c.bf16 %v190_v46, %v190_v46  ;;  %v13637_v63 = vld [vmem:[%s20686_s1 + $0x1fe4] sm:$0xf0] }
 0x1da   :  { %7304 = vmatpush.bf16.msra.mxu2 %v12209_v23  ;;  %v12504_v23 = vld [vmem:[%s20686_s1 + $0x1f70] sm:$0xf]  ;;  %v12441_v12 = vor.u32 %v13607_v7, %v12440_v26  ;;  %v12560_v20 = vld [vmem:[%s20686_s1 + $0x1fe0] sm:$0xf]  ;;  %v13587_v7 = vld [vmem:[%s20686_s1 + $0x1e54] sm:$0xf0] }
 0x1db   :  { %7317 = vmatpush.bf16.msra.mxu3 %v12273_v0  ;;  %v13639_v0 = vld [vmem:[%s20686_s1 + $0x1ff4] sm:$0xf0]  ;;  %v12505_v34 = vor.u32 %v13623_v62, %v12504_v23  ;;  %v12424_v23 = vld [vmem:[%s20686_s1 + $0x1ed0] sm:$0xf] }
 0x1dc   :  { %7279 = vmatpush.bf16.msra.mxu0 %v12073_v45  ;;  %v13589_v45 = vld [vmem:[%s20686_s1 + $0x1e64] sm:$0xf0]  ;;  %v12569_v48 = vor.u32 %v13639_v0, %v12568_v9  ;;  %v13603_v62 = vld [vmem:[%s20686_s1 + $0x1ed4] sm:$0xf0]  ;;  %v12488_v9 = vld [vmem:[%s20686_s1 + $0x1f50] sm:$0xf] }
 0x1dd   :  { %7292 = vmatpush.bf16.msra.mxu1 %v12137_v55  ;;  %v12496_v55 = vld [vmem:[%s20686_s1 + $0x1f60] sm:$0xf]  ;;  %v12369_v26 = vor.u32 %v13589_v45, %v12368_v28  ;;  %v12561_v28 = vor.u32 %v13637_v63, %v12560_v20  ;;  %v13619_v0 = vld [vmem:[%s20686_s1 + $0x1f54] sm:$0xf0]  ;;  %v13633_v20 = vld [vmem:[%s20686_s1 + $0x1fc4] sm:$0xf0] }
 0x1de   :  { %7305 = vmatpush.bf16.msra.mxu2 %v12201_v60  ;;  %v13621_v60 = vld [vmem:[%s20686_s1 + $0x1f64] sm:$0xf0]  ;;  %v13635_v46 = vld [vmem:[%s20686_s1 + $0x1fd4] sm:$0xf0]  ;;  %v12352_v45 = vld [vmem:[%s20686_s1 + $0x1e40] sm:$0xf] }
 0x1df   :  { %7318 = vmatpush.bf16.msra.mxu3 %v12265_v58  ;;  %v17056_v58 = vpack.c.bf16 %v193_v18, %v193_v18  ;;  %v12497_v1 = vor.u32 %v13621_v60, %v12496_v55  ;;  %v12544_v60 = vld [vmem:[%s20686_s1 + $0x1fc0] sm:$0xf] }
 0x1e0   :  { %7280 = vmatpush.bf16.msra.mxu0 %v12065_v21  ;;  %v12552_v21 = vld [vmem:[%s20686_s1 + $0x1fd0] sm:$0xf]  ;;  %v7074_v55 = vpop.f32.mrf.mxu0  ;;  %v65_v63 = vld [vmem:[%s20685_s0 + $0x100] sm:$0xf] }
 0x1e1   :  { %7293 = vmatpush.bf16.msra.mxu1 %v12129_v17  ;;  %20744 = vst [vmem:[#allocation29_spill] sm:$0xff] %v17056_v58  ;;  %v12361_v17 = vor.u32 %v13587_v7, %v12360_v54  ;;  %v12553_v18 = vor.u32 %v13635_v46, %v12552_v21  ;;  %v12344_v54 = vld [vmem:[%s20686_s1 + $0x1e30] sm:$0xf]  ;;  %v13615_v46 = vld [vmem:[%s20686_s1 + $0x1f34] sm:$0xf0] }
 0x1e2   :  { %7306 = vmatpush.bf16.msra.mxu2 %v12193_v22  ;;  %v12433_v22 = vor.u32 %v13605_v3, %v12432_v61  ;;  %v13601_v61 = vld [vmem:[%s20686_s1 + $0x1ec4] sm:$0xf0]  ;;  %198 = vst [vmem:[#allocation1] ss:$2 sm:$0xff] %v65_v63  ;;  %v12472_v21 = vld [vmem:[%s20686_s1 + $0x1f30] sm:$0xf] }
 0x1e3   :  { %7319 = vmatpush.bf16.msra.mxu3 %v12257_v35  ;;  %7281 = vmatmul.bf16.vlgmr.msra.gmra.mxu0 %v17035_v16  ;;  %v12425_v35 = vor.u32 %v13603_v62, %v12424_v23  ;;  %v13617_v3 = vld [vmem:[%s20686_s1 + $0x1f44] sm:$0xf0]  ;;  %v12408_v62 = vld [vmem:[%s20686_s1 + $0x1eb0] sm:$0xf] }
 0x1e4   :  { %7325 = vmatpush.bf16.msrb.mxu0 %v12377_v4  ;;  %7294 = vmatmul.bf16.vlgmr.msra.gmra.mxu1 %v17048_v8  ;;  %v12489_v4 = vor.u32 %v13619_v0, %v12488_v9  ;;  %v13599_v0 = vld [vmem:[%s20686_s1 + $0x1eb4] sm:$0xf0] }
 0x1e5   :  { %7338 = vmatpush.bf16.msrb.mxu1 %v12441_v12  ;;  %7307 = vmatmul.bf16.vlgmr.msra.gmra.mxu2 %v17046_v44  ;;  %v13585_v12 = vld [vmem:[%s20686_s1 + $0x1e44] sm:$0xf0] }
 0x1e6   :  { %7351 = vmatpush.bf16.msrb.mxu2 %v12505_v34  ;;  %7320 = vmatmul.bf16.vlgmr.msra.gmra.mxu3 %v17056_v58  ;;  %v12416_v34 = vld [vmem:[%s20686_s1 + $0x1ec0] sm:$0xf]  ;;  %v12600_v58 = vld [vmem:[%s20686_s1 + $0x2030] sm:$0xf] }
 0x1e7   :  { %7364 = vmatpush.bf16.msrb.mxu3 %v12569_v48  ;;  %v12480_v48 = vld [vmem:[%s20686_s1 + $0x1f40] sm:$0xf]  ;;  %v12417_v7 = vor.u32 %v13601_v61, %v12416_v34 }
 0x1e8   :  { %7326 = vmatpush.bf16.msrb.mxu0 %v12369_v26  ;;  %v7075_v26 = vadd.f32 %v7074_v55, %v16949_v29  ;;  %v12481_v23 = vor.u32 %v13617_v3, %v12480_v48  ;;  %v12545_v29 = vor.u32 %v13633_v20, %v12544_v60  ;;  %v12336_v34 = vld [vmem:[%s20686_s1 + $0x1e20] sm:$0xf]  ;;  %v7100_v3 = vpop.f32.mrf.mxu2  ;;  %v13597_v55 = vld [vmem:[%s20686_s1 + $0x1ea4] sm:$0xf0] }
 0x1e9   :  { %7339 = vmatpush.bf16.msrb.mxu1 %v12433_v22  ;;  %v12353_v22 = vor.u32 %v13585_v12, %v12352_v45  ;;  %v12409_v45 = vor.u32 %v13599_v0, %v12408_v62  ;;  %v12473_v12 = vor.u32 %v13615_v46, %v12472_v21  ;;  %v12400_v61 = vld [vmem:[%s20686_s1 + $0x1ea0] sm:$0xf]  ;;  %v13613_v20 = vld [vmem:[%s20686_s1 + $0x1f24] sm:$0xf0]  ;;  %v12328_v0 = vld [vmem:[%s20686_s1 + $0x1e10] sm:$0xf] }
 0x1ea   :  { %7352 = vmatpush.bf16.msrb.mxu2 %v12497_v1  ;;  %v7087_v1 = vpop.f32.mrf.mxu1  ;;  %v12464_v60 = vld [vmem:[%s20686_s1 + $0x1f20] sm:$0xf]  ;;  %v13579_v21 = vld [vmem:[%s20686_s1 + $0x1e14] sm:$0xf0]  ;;  %v12392_v46 = vld [vmem:[%s20686_s1 + $0x1e90] sm:$0xf] }
 0x1eb   :  { %7365 = vmatpush.bf16.msrb.mxu3 %v12561_v28  ;;  %v13583_v28 = vld [vmem:[%s20686_s1 + $0x1e34] sm:$0xf0]  ;;  %v7088_v9 = vadd.f32 %v7087_v1, %v7075_v26  ;;  %v7113_v26 = vpop.f32.mrf.mxu3  ;;  %v13629_v1 = vld [vmem:[%s20686_s1 + $0x1fa4] sm:$0xf0] }
 0x1ec   :  { %7327 = vmatpush.bf16.msrb.mxu0 %v12361_v17  ;;  %v12536_v17 = vld [vmem:[%s20686_s1 + $0x1fb0] sm:$0xf] }
 0x1ed   :  { %7340 = vmatpush.bf16.msrb.mxu1 %v12425_v35  ;;  %v13631_v35 = vld [vmem:[%s20686_s1 + $0x1fb4] sm:$0xf0]  ;;  %v7101_v63 = vadd.f32 %v7100_v3, %v7088_v9  ;;  %v12465_v9 = vor.u32 %v13613_v20, %v12464_v60  ;;  %v13577_v3 = vld [vmem:[%s20686_s1 + $0x1e04] sm:$0xf0] }
 0x1ee   :  { %7353 = vmatpush.bf16.msrb.mxu2 %v12489_v4  ;;  %v12345_v4 = vor.u32 %v13583_v28, %v12344_v54  ;;  %v12537_v48 = vor.u32 %v13631_v35, %v12536_v17  ;;  %v1362_v54 = vld [vmem:[%s20686_s1 + $0x2040] sm:$0xff]  ;;  %v13595_v35 = vld [vmem:[%s20686_s1 + $0x1e94] sm:$0xf0]  ;;  %v13593_v60 = vld [vmem:[%s20686_s1 + $0x1e84] sm:$0xf0] }
 0x1ef   :  { %7366 = vmatpush.bf16.msrb.mxu3 %v12553_v18  ;;  %v13581_v18 = vld [vmem:[%s20686_s1 + $0x1e24] sm:$0xf0]  ;;  %v17165_v62 = vadd.f32 %v7113_v26, %v7101_v63  ;;  %v12393_v20 = vor.u32 %v13595_v35, %v12392_v46  ;;  %v12448_v26 = vld [vmem:[%s20686_s1 + $0x1f00] sm:$0xf] }
 0x1f0   :  { %7328 = vmatpush.bf16.msrb.mxu0 %v12353_v22  ;;  %v12528_v22 = vld [vmem:[%s20686_s1 + $0x1fa0] sm:$0xf] }
 0x1f1   :  { %7341 = vmatpush.bf16.msrb.mxu1 %v12417_v7  ;;  %v7076_v7 = vpop.f32.mrf.mxu0  ;;  %v12529_v17 = vor.u32 %v13629_v1, %v12528_v22  ;;  %v13609_v22 = vld [vmem:[%s20686_s1 + $0x1f04] sm:$0xf0]  ;;  %v12512_v1 = vld [vmem:[%s20686_s1 + $0x1f80] sm:$0xf] }
 0x1f2   :  { %7354 = vmatpush.bf16.msrb.mxu2 %v12481_v23  ;;  %v12337_v23 = vor.u32 %v13581_v18, %v12336_v34  ;;  %v7089_v28 = vpop.f32.mrf.mxu1  ;;  %v12520_v34 = vld [vmem:[%s20686_s1 + $0x1f90] sm:$0xf]  ;;  %v13627_v18 = vld [vmem:[%s20686_s1 + $0x1f94] sm:$0xf0]  ;;  %v13625_v7 = vld [vmem:[%s20686_s1 + $0x1f84] sm:$0xf0] }
 0x1f3   :  { %7367 = vmatpush.bf16.msrb.mxu3 %v12545_v29  ;;  %v12401_v29 = vor.u32 %v13597_v55, %v12400_v61  ;;  %v12320_v61 = vld [vmem:[%s20686_s1 + $0x1e00] sm:$0xf]  ;;  %v12630_v28 = vld [vmem:[%s20686_s1 + $0x74] sm:$0xf]  ;;  %v7115_v46 = vpop.f32.mrf.mxu3 }
 0x1f4   :  { %7329 = vmatpush.bf16.msrb.mxu0 %v12345_v4  ;;  %v12456_v4 = vld [vmem:[%s20686_s1 + $0x1f10] sm:$0xf]  ;;  %v12384_v55 = vld [vmem:[%s20686_s1 + $0x1e80] sm:$0xf] }
 0x1f5   :  { %7342 = vmatpush.bf16.msrb.mxu1 %v12409_v45  ;;  %v13611_v45 = vld [vmem:[%s20686_s1 + $0x1f14] sm:$0xf0]  ;;  %v194_v35 = vld.sshfl [vmem:[#allocation1 + $0x20] sm:$0xff pattern:$0x75316420] }
 0x1f6   :  { %7355 = vmatpush.bf16.msrb.mxu2 %v12473_v12  ;;  %v4466_v12 = vunpack.c.l.b16 %v1362_v54  ;;  %v12457_v63 = vor.u32 %v13611_v45, %v12456_v4  ;;  %v12521_v54 = vor.u32 %v13627_v18, %v12520_v34  ;;  %v195_v4 = vld.sshfl [vmem:[#allocation1 + $0x28] sm:$0xff pattern:$0x75316420]  ;;  %v12385_v45 = vor.u32 %v13593_v60, %v12384_v55  ;;  %v196_v34 = vld.sshfl [vmem:[#allocation1 + $0x30] sm:$0xff pattern:$0x75316420] }
 0x1f7   :  { %7368 = vmatpush.bf16.msrb.mxu3 %v12537_v48  ;;  %v12329_v48 = vor.u32 %v13579_v21, %v12328_v0  ;;  %v12662_v0 = vld [vmem:[%s20686_s1 + $0x174] sm:$0xf]  ;;  %v8666_v21 = vld [vmem:[%s20686_s1 + $0x178] sm:$0xf0]  ;;  %v12628_v55 = vld [vmem:[%s20686_s1 + $0x64] sm:$0xf] }
 0x1f8   :  { %7330 = vmatpush.bf16.msrb.mxu0 %v12337_v23  ;;  %v5500_v23 = vpack.c.b16 %v4466_v12, %v4466_v12  ;;  %v12449_v12 = vor.u32 %v13609_v22, %v12448_v26  ;;  %v197_v18 = vld.sshfl [vmem:[#allocation1 + $0x38] sm:$0xff pattern:$0x75316420]  ;;  %v12678_v60 = vld [vmem:[%s20686_s1 + $0x1f4] sm:$0xf]  ;;  %v17245_v26 = vpack.c.bf16 %v196_v34, %v196_v34 }
 0x1f9   :  { %7343 = vmatpush.bf16.msrb.mxu1 %v12401_v29  ;;  %v7102_v29 = vpop.f32.mrf.mxu2  ;;  %v8530_v22 = vld [vmem:[%s20686_s1 + $0x68] sm:$0xf0] }
 0x1fa   :  { %7356 = vmatpush.bf16.msrb.mxu2 %v12465_v9  ;;  %v8538_v9 = vld [vmem:[%s20686_s1 + $0x78] sm:$0xf0]  ;;  %v12513_v29 = vor.u32 %v13625_v7, %v12512_v1  ;;  %v6540_v8 = vsel %vm6538_vm0, %v5500_v23, 0  ;;  %v12660_v1 = vld [vmem:[%s20686_s1 + $0x164] sm:$0xf]  ;;  %v17256_v7 = vpack.c.bf16 %v195_v4, %v195_v4  ;;  %v17258_v23 = vpack.c.bf16 %v197_v18, %v197_v18 }
 0x1fb   :  { %7369 = vmatpush.bf16.msrb.mxu3 %v12529_v17  ;;  %v12321_v17 = vor.u32 %v13577_v3, %v12320_v61  ;;  %v13647_v61 = vld [vmem:[%s20686_s1 + $0x2034] sm:$0xf0]  ;;  %v8669_v3 = vor.u32 %v12662_v0, %v8666_v21  ;;  %v13645_v0 = vld [vmem:[%s20686_s1 + $0x2024] sm:$0xf0]  ;;  %v8533_v46 = vor.u32 %v12628_v55, %v8530_v22  ;;  %v8522_v4 = vld [vmem:[%s20686_s1 + $0x58] sm:$0xf0] }
 0x1fc   :  { %7331 = vmatpush.bf16.msrb.mxu0 %v12329_v48  ;;  %v8541_v48 = vor.u32 %v12630_v28, %v8538_v9  ;;  %v12601_v28 = vor.u32 %v13647_v61, %v12600_v58  ;;  %v12592_v9 = vld [vmem:[%s20686_s1 + $0x2020] sm:$0xf]  ;;  %v8722_v58 = vld [vmem:[%s20686_s1 + $0x1e8] sm:$0xf0]  ;;  %v12584_v18 = vld [vmem:[%s20686_s1 + $0x2010] sm:$0xf] }
 0x1fd   :  { %7344 = vmatpush.bf16.msrb.mxu1 %v12393_v20  ;;  %v8730_v20 = vld [vmem:[%s20686_s1 + $0x1f8] sm:$0xf0]  ;;  %v12593_v34 = vor.u32 %v13645_v0, %v12592_v9  ;;  %v12624_v55 = vld [vmem:[%s20686_s1 + $0x44] sm:$0xf]  ;;  %v8514_v22 = vld [vmem:[%s20686_s1 + $0x48] sm:$0xf0] }
 0x1fe   :  { %7357 = vmatpush.bf16.msrb.mxu2 %v12457_v63  ;;  %v17243_v63 = vpack.c.bf16 %v194_v35, %v194_v35  ;;  %v8733_v21 = vor.u32 %v12678_v60, %v8730_v20  ;;  %v12626_v35 = vld [vmem:[%s20686_s1 + $0x54] sm:$0xf]  ;;  %v8714_v20 = vld [vmem:[%s20686_s1 + $0x1d8] sm:$0xf0] }
 0x1ff   :  { %7370 = vmatpush.bf16.msrb.mxu3 %v12521_v54  ;;  %v8658_v54 = vld [vmem:[%s20686_s1 + $0x168] sm:$0xf0]  ;;  %v12674_v60 = vld [vmem:[%s20686_s1 + $0x1d4] sm:$0xf] }
 0x200   :  { %7332 = vmatpush.bf16.msrb.mxu0 %v12321_v17  ;;  %v8661_v17 = vor.u32 %v12660_v1, %v8658_v54  ;;  %v12656_v1 = vld [vmem:[%s20686_s1 + $0x144] sm:$0xf]  ;;  %v8642_v54 = vld [vmem:[%s20686_s1 + $0x148] sm:$0xf0] }
 0x201   :  { %7345 = vmatpush.bf16.msrb.mxu1 %v12385_v45  ;;  %v12658_v45 = vld [vmem:[%s20686_s1 + $0x154] sm:$0xf] }
 0x202   :  { %7358 = vmatpush.bf16.msrb.mxu2 %v12449_v12  ;;  %v8650_v12 = vld [vmem:[%s20686_s1 + $0x158] sm:$0xf0] }
 0x203   :  { %7371 = vmatpush.bf16.msrb.mxu3 %v12513_v29  ;;  %7333 = vmatmul.bf16.vlgmr.msrb.gmra.mxu0 %v17243_v63  ;;  %v13643_v29 = vld [vmem:[%s20686_s1 + $0x2014] sm:$0xf0] }
 0x204   :  { %7346 = vmatmul.bf16.vlgmr.msrb.gmra.mxu1 %v17256_v7  ;;  %7429 = vmatpush.bf16.msra.mxu0 %v8733_v21  ;;  %v12585_v0 = vor.u32 %v13643_v29, %v12584_v18  ;;  %v7139_v21 = vpop.f32.mrf.mxu1  ;;  %v12654_v18 = vld [vmem:[%s20686_s1 + $0x134] sm:$0xf]  ;;  %v8634_v29 = vld [vmem:[%s20686_s1 + $0x138] sm:$0xf0] }
 0x205   :  { %7390 = vmatpush.bf16.msra.mxu1 %v8541_v48  ;;  %7359 = vmatmul.bf16.vlgmr.msrb.gmra.mxu2 %v17245_v26  ;;  %v8525_v48 = vor.u32 %v12626_v35, %v8522_v4  ;;  %v8717_v35 = vor.u32 %v12674_v60, %v8714_v20  ;;  %v12672_v4 = vld [vmem:[%s20686_s1 + $0x1c4] sm:$0xf] }
 0x206   :  { %7380 = vmatpush.bf16.msra.mxu2 %v6540_v8  ;;  %v12676_v8 = vld [vmem:[%s20686_s1 + $0x1e4] sm:$0xf]  ;;  %7372 = vmatmul.bf16.vlgmr.msrb.gmra.mxu3 %v17258_v23 }
 0x207   :  { %7416 = vmatpush.bf16.msra.mxu3 %v8669_v3  ;;  %v8725_v61 = vor.u32 %v12676_v8, %v8722_v58  ;;  %v8653_v3 = vor.u32 %v12658_v45, %v8650_v12  ;;  %v8517_v8 = vor.u32 %v12624_v55, %v8514_v22  ;;  %v8645_v58 = vor.u32 %v12656_v1, %v8642_v54  ;;  %v8706_v45 = vld [vmem:[%s20686_s1 + $0x1c8] sm:$0xf0]  ;;  %v199_v55 = vld.sshfl [vmem:[#allocation1] sm:$0xff pattern:$0x75316420] }
 0x208   :  { %v8709_v60 = vor.u32 %v12672_v4, %v8706_v45  ;;  %v8637_v22 = vor.u32 %v12654_v18, %v8634_v29  ;;  %v12620_v1 = vld [vmem:[%s20686_s1 + $0x24] sm:$0xf]  ;;  %v12670_v54 = vld [vmem:[%s20686_s1 + $0x1b4] sm:$0xf]  ;;  %v8594_v4 = vld [vmem:[%s20686_s1 + $0xe8] sm:$0xf0] }
 0x209   :  { %7391 = vmatpush.bf16.msra.mxu1 %v8533_v46  ;;  %v12576_v46 = vld [vmem:[%s20686_s1 + $0x2000] sm:$0xf]  ;;  %7430 = vmatpush.bf16.msra.mxu0 %v8725_v61  ;;  %v12646_v61 = vld [vmem:[%s20686_s1 + $0xf4] sm:$0xf] }
 0x20a   :  { %7381 = vmatpush.bf16.msra.mxu2 %v12601_v28  ;;  %v7126_v28 = vpop.f32.mrf.mxu0 }
 0x20b   :  { %7417 = vmatpush.bf16.msra.mxu3 %v8661_v17  ;;  %v7127_v9 = vadd.f32 %v7126_v28, %v17165_v62  ;;  %v13641_v17 = vld [vmem:[%s20686_s1 + $0x2004] sm:$0xf0]  ;;  %v12622_v62 = vld [vmem:[%s20686_s1 + $0x34] sm:$0xf]  ;;  %v8698_v28 = vld [vmem:[%s20686_s1 + $0x1b8] sm:$0xf0] }
 0x20c   :  { %v8701_v18 = vor.u32 %v12670_v54, %v8698_v28  ;;  %v12642_v54 = vld [vmem:[%s20686_s1 + $0xd4] sm:$0xf]  ;;  %v8586_v28 = vld [vmem:[%s20686_s1 + $0xd8] sm:$0xf0] }
 0x20d   :  { %7392 = vmatpush.bf16.msra.mxu1 %v8525_v48  ;;  %v7140_v12 = vadd.f32 %v7139_v21, %v7127_v9  ;;  %v8602_v48 = vld [vmem:[%s20686_s1 + $0xf8] sm:$0xf0]  ;;  %7431 = vmatpush.bf16.msra.mxu0 %v8717_v35  ;;  %v7152_v9 = vpop.f32.mrf.mxu2  ;;  %v8498_v21 = vld [vmem:[%s20686_s1 + $0x28] sm:$0xf0] }
 0x20e   :  { %7382 = vmatpush.bf16.msra.mxu2 %v12593_v34  ;;  %v8506_v34 = vld [vmem:[%s20686_s1 + $0x38] sm:$0xf0]  ;;  %v8501_v29 = vor.u32 %v12620_v1, %v8498_v21 }
 0x20f   :  { %7418 = vmatpush.bf16.msra.mxu3 %v8653_v3  ;;  %v12577_v3 = vor.u32 %v13641_v17, %v12576_v46  ;;  %v8509_v20 = vor.u32 %v12622_v62, %v8506_v34  ;;  %v12652_v46 = vld [vmem:[%s20686_s1 + $0x124] sm:$0xf]  ;;  %v8626_v17 = vld [vmem:[%s20686_s1 + $0x128] sm:$0xf0]  ;;  %v7153_v35 = vadd.f32 %v7152_v9, %v7140_v12  ;;  %v7141_v34 = vpop.f32.mrf.mxu1  ;;  %v8618_v1 = vld [vmem:[%s20686_s1 + $0x118] sm:$0xf0] }
 0x210   :  { %v12644_v62 = vld [vmem:[%s20686_s1 + $0xe4] sm:$0xf] }
 0x211   :  { %7393 = vmatpush.bf16.msra.mxu1 %v8517_v8  ;;  %v7165_v8 = vpop.f32.mrf.mxu3  ;;  %7432 = vmatpush.bf16.msra.mxu0 %v8709_v60  ;;  %v8597_v60 = vor.u32 %v12644_v62, %v8594_v4  ;;  %v12616_v9 = vld [vmem:[%s20686_s1 + $0x4] sm:$0xf]  ;;  %v8589_v62 = vor.u32 %v12642_v54, %v8586_v28  ;;  %v8674_v28 = vld [vmem:[%s20686_s1 + $0x188] sm:$0xf0] }
 0x212   :  { %7383 = vmatpush.bf16.msra.mxu2 %v12585_v0  ;;  %v8605_v0 = vor.u32 %v12646_v61, %v8602_v48  ;;  %v7128_v45 = vpop.f32.mrf.mxu0  ;;  %v17369_v12 = vadd.f32 %v7165_v8, %v7153_v35  ;;  %v8629_v61 = vor.u32 %v12652_v46, %v8626_v17  ;;  %v12618_v48 = vld [vmem:[%s20686_s1 + $0x14] sm:$0xf]  ;;  %v8482_v17 = vld [vmem:[%s20686_s1 + $0x8] sm:$0xf0]  ;;  %v8682_v8 = vld [vmem:[%s20686_s1 + $0x198] sm:$0xf0] }
 0x213   :  { %7419 = vmatpush.bf16.msra.mxu3 %v8645_v58  ;;  %v17361_v58 = vpack.c.bf16 %v199_v55, %v199_v55  ;;  %v12668_v55 = vld [vmem:[%s20686_s1 + $0x1a4] sm:$0xf]  ;;  %v12666_v35 = vld [vmem:[%s20686_s1 + $0x194] sm:$0xf]  ;;  %v8610_v45 = vld [vmem:[%s20686_s1 + $0x108] sm:$0xf0] }
 0x214   :  { %v12648_v4 = vld [vmem:[%s20686_s1 + $0x104] sm:$0xf] }
 0x215   :  { %7394 = vmatpush.bf16.msra.mxu1 %v8509_v20  ;;  %v8490_v20 = vld [vmem:[%s20686_s1 + $0x18] sm:$0xf0]  ;;  %7433 = vmatpush.bf16.msra.mxu0 %v8701_v18  ;;  %v12640_v34 = vld [vmem:[%s20686_s1 + $0xc4] sm:$0xf]  ;;  %v7154_v18 = vpop.f32.mrf.mxu2 }
 0x216   :  { %7384 = vmatpush.bf16.msra.mxu2 %v12577_v3  ;;  %v8690_v3 = vld [vmem:[%s20686_s1 + $0x1a8] sm:$0xf0]  ;;  %v8493_v21 = vor.u32 %v12618_v48, %v8490_v20  ;;  %v8794_v48 = vld [vmem:[%s20686_s1 + $0x278] sm:$0xf0]  ;;  %v8685_v20 = vor.u32 %v12666_v35, %v8682_v8  ;;  %v12664_v54 = vld [vmem:[%s20686_s1 + $0x184] sm:$0xf] }
 0x217   :  { %7420 = vmatpush.bf16.msra.mxu3 %v8637_v22  ;;  %v12650_v22 = vld [vmem:[%s20686_s1 + $0x114] sm:$0xf]  ;;  %v12692_v35 = vld [vmem:[%s20686_s1 + $0x264] sm:$0xf]  ;;  %v8786_v8 = vld [vmem:[%s20686_s1 + $0x268] sm:$0xf0] }
 0x218   :  { %v8621_v46 = vor.u32 %v12650_v22, %v8618_v1  ;;  %v8485_v22 = vor.u32 %v12616_v9, %v8482_v17  ;;  %v8613_v1 = vor.u32 %v12648_v4, %v8610_v45  ;;  %v12742_v9 = vld [vmem:[%s20686_s1 + $0x3f4] sm:$0xf]  ;;  %v8570_v17 = vld [vmem:[%s20686_s1 + $0xb8] sm:$0xf0]  ;;  %v8914_v4 = vld [vmem:[%s20686_s1 + $0x368] sm:$0xf0]  ;;  %v8677_v45 = vor.u32 %v12664_v54, %v8674_v28 }
 0x219   :  { %12606 = vmatmul.msk.bf16.vlgmr.msra.gmra.mxu2 %vm6534_vm1, %v17361_v58  ;;  %7395 = vmatpush.bf16.msra.mxu1 %v8501_v29  ;;  %v8578_v29 = vld [vmem:[%s20686_s1 + $0xc8] sm:$0xf0]  ;;  %v8778_v54 = vld [vmem:[%s20686_s1 + $0x258] sm:$0xf0]  ;;  %v12722_v28 = vld [vmem:[%s20686_s1 + $0x354] sm:$0xf] }
 0x21a   :  { %7403 = vmatpush.bf16.msrb.mxu2 %v8605_v0  ;;  %v8693_v0 = vor.u32 %v12668_v55, %v8690_v3  ;;  %v7167_v55 = vpop.f32.mrf.mxu3  ;;  %v12726_v3 = vld [vmem:[%s20686_s1 + $0x374] sm:$0xf]  ;;  %v8581_v18 = vor.u32 %v12640_v34, %v8578_v29 }
 0x21b   :  { %7421 = vmatpush.bf16.msra.mxu3 %v8629_v61  ;;  %v12694_v61 = vld [vmem:[%s20686_s1 + $0x274] sm:$0xf] }
 0x21c   :  { %7434 = vmatpush.bf16.msra.mxu0 %v8693_v0  ;;  %v8797_v55 = vor.u32 %v12694_v61, %v8794_v48  ;;  %v12638_v0 = vld [vmem:[%s20686_s1 + $0xb4] sm:$0xf]  ;;  %v8789_v61 = vor.u32 %v12692_v35, %v8786_v8  ;;  %v12636_v48 = vld [vmem:[%s20686_s1 + $0xa4] sm:$0xf]  ;;  %v8770_v8 = vld [vmem:[%s20686_s1 + $0x248] sm:$0xf0] }
 0x21d   :  { %7396 = vmatpush.bf16.msra.mxu1 %v8493_v21  ;;  %v8986_v21 = vld [vmem:[%s20686_s1 + $0x3f8] sm:$0xf0]  ;;  %v8573_v29 = vor.u32 %v12638_v0, %v8570_v17  ;;  %v12688_v35 = vld [vmem:[%s20686_s1 + $0x244] sm:$0xf] }
 0x21e   :  { %7404 = vmatpush.bf16.msrb.mxu2 %v8597_v60  ;;  %v8922_v60 = vld [vmem:[%s20686_s1 + $0x378] sm:$0xf0]  ;;  %v8989_v34 = vor.u32 %v12742_v9, %v8986_v21  ;;  %v12634_v21 = vld [vmem:[%s20686_s1 + $0x94] sm:$0xf] }
 0x21f   :  { %7422 = vmatpush.bf16.msra.mxu3 %v8621_v46  ;;  %v8925_v46 = vor.u32 %v12726_v3, %v8922_v60  ;;  %v12740_v3 = vld [vmem:[%s20686_s1 + $0x3e4] sm:$0xf]  ;;  %v8978_v60 = vld [vmem:[%s20686_s1 + $0x3e8] sm:$0xf0] }
 0x220   :  { %7435 = vmatpush.bf16.msra.mxu0 %v8685_v20 }
 0x221   :  { %7397 = vmatpush.bf16.msra.mxu1 %v8485_v22  ;;  %v8562_v22 = vld [vmem:[%s20686_s1 + $0xa8] sm:$0xf0] }
 0x222   :  { %7405 = vmatpush.bf16.msrb.mxu2 %v8589_v62  ;;  %v12724_v62 = vld [vmem:[%s20686_s1 + $0x364] sm:$0xf]  ;;  %v8565_v0 = vor.u32 %v12636_v48, %v8562_v22  ;;  %v8773_v48 = vor.u32 %v12688_v35, %v8770_v8  ;;  %v8962_v22 = vld [vmem:[%s20686_s1 + $0x3c8] sm:$0xf0] }
 0x223   :  { %7423 = vmatpush.bf16.msra.mxu3 %v8613_v1  ;;  %v8917_v20 = vor.u32 %v12724_v62, %v8914_v4  ;;  %v12690_v1 = vld [vmem:[%s20686_s1 + $0x254] sm:$0xf]  ;;  %v12720_v62 = vld [vmem:[%s20686_s1 + $0x344] sm:$0xf]  ;;  %v8898_v4 = vld [vmem:[%s20686_s1 + $0x348] sm:$0xf0] }
 0x224   :  { %7436 = vmatpush.bf16.msra.mxu0 %v8677_v45  ;;  %7398 = vmatmul.bf16.vlgmr.msra.gmra.mxu1 %v14079_v43  ;;  %v8781_v9 = vor.u32 %v12690_v1, %v8778_v54  ;;  %v8554_v43 = vld [vmem:[%s20686_s1 + $0x98] sm:$0xf0]  ;;  %v7178_v45 = vpop.f32.mrf.mxu0  ;;  %v8901_v1 = vor.u32 %v12720_v62, %v8898_v4  ;;  %v12684_v62 = vld [vmem:[%s20686_s1 + $0x224] sm:$0xf]  ;;  %v8754_v4 = vld [vmem:[%s20686_s1 + $0x228] sm:$0xf0] }
 0x225   :  { %7442 = vmatpush.bf16.msrb.mxu1 %v8797_v55  ;;  %v8981_v55 = vor.u32 %v12740_v3, %v8978_v60  ;;  %v7191_v3 = vpop.f32.mrf.mxu1  ;;  %v8546_v60 = vld [vmem:[%s20686_s1 + $0x88] sm:$0xf0]  ;;  %v8762_v54 = vld [vmem:[%s20686_s1 + $0x238] sm:$0xf0] }
 0x226   :  { %7406 = vmatpush.bf16.msrb.mxu2 %v8581_v18  ;;  %v8906_v18 = vld [vmem:[%s20686_s1 + $0x358] sm:$0xf0]  ;;  %7424 = vmatmul.bf16.vlgmr.msra.gmra.mxu3 %v14072_v38 }
 0x227   :  { %7468 = vmatpush.bf16.msrb.mxu3 %v8925_v46  ;;  %v12738_v46 = vld [vmem:[%s20686_s1 + $0x3d4] sm:$0xf]  ;;  %v8970_v38 = vld [vmem:[%s20686_s1 + $0x3d8] sm:$0xf0]  ;;  %v8909_v17 = vor.u32 %v12722_v28, %v8906_v18  ;;  %7437 = vmatmul.bf16.vlgmr.msra.gmra.mxu0 %v14074_v40  ;;  %v8557_v40 = vor.u32 %v12634_v21, %v8554_v43 }
 0x228   :  { %7481 = vmatpush.bf16.msrb.mxu0 %v8989_v34  ;;  %v12632_v34 = vld [vmem:[%s20686_s1 + $0x84] sm:$0xf]  ;;  %v12718_v28 = vld [vmem:[%s20686_s1 + $0x334] sm:$0xf]  ;;  %v8954_v43 = vld [vmem:[%s20686_s1 + $0x3b8] sm:$0xf0] }
 0x229   :  { %7443 = vmatpush.bf16.msrb.mxu1 %v8789_v61  ;;  %v7179_v61 = vadd.f32 %v7178_v45, %v17369_v12  ;;  %v12686_v12 = vld [vmem:[%s20686_s1 + $0x234] sm:$0xf]  ;;  %v12716_v45 = vld [vmem:[%s20686_s1 + $0x324] sm:$0xf] }
 0x22a   :  { %7407 = vmatpush.bf16.msrb.mxu2 %v8573_v29  ;;  %v8973_v29 = vor.u32 %v12738_v46, %v8970_v38  ;;  %v8549_v46 = vor.u32 %v12632_v34, %v8546_v60  ;;  %v8765_v38 = vor.u32 %v12686_v12, %v8762_v54  ;;  %v7204_v34 = vpop.f32.mrf.mxu2  ;;  %v12732_v12 = vld [vmem:[%s20686_s1 + $0x3a4] sm:$0xf]  ;;  %v8946_v54 = vld [vmem:[%s20686_s1 + $0x3a8] sm:$0xf0] }
 0x22b   :  { %7469 = vmatpush.bf16.msrb.mxu3 %v8917_v20  ;;  %v12736_v20 = vld [vmem:[%s20686_s1 + $0x3c4] sm:$0xf]  ;;  %v7192_v18 = vadd.f32 %v7191_v3, %v7179_v61  ;;  %v7217_v3 = vpop.f32.mrf.mxu3 }
 0x22c   :  { %7482 = vmatpush.bf16.msrb.mxu0 %v8981_v55  ;;  %v8890_v55 = vld [vmem:[%s20686_s1 + $0x338] sm:$0xf0]  ;;  %v8965_v21 = vor.u32 %v12736_v20, %v8962_v22  ;;  %v12708_v61 = vld [vmem:[%s20686_s1 + $0x2e4] sm:$0xf]  ;;  %v7180_v60 = vpop.f32.mrf.mxu0  ;;  %v8757_v22 = vor.u32 %v12684_v62, %v8754_v4  ;;  %v12730_v62 = vld [vmem:[%s20686_s1 + $0x394] sm:$0xf] }
 0x22d   :  { %7444 = vmatpush.bf16.msrb.mxu1 %v8781_v9  ;;  %v8858_v9 = vld [vmem:[%s20686_s1 + $0x2f8] sm:$0xf0]  ;;  %v8893_v35 = vor.u32 %v12718_v28, %v8890_v55 }
 0x22e   :  { %7408 = vmatpush.bf16.msrb.mxu2 %v8565_v0  ;;  %v12710_v0 = vld [vmem:[%s20686_s1 + $0x2f4] sm:$0xf]  ;;  %v8938_v4 = vld [vmem:[%s20686_s1 + $0x398] sm:$0xf0] }
 0x22f   :  { %7470 = vmatpush.bf16.msrb.mxu3 %v8909_v17  ;;  %v12734_v17 = vld [vmem:[%s20686_s1 + $0x3b4] sm:$0xf]  ;;  %v8861_v8 = vor.u32 %v12710_v0, %v8858_v9  ;;  %v8746_v9 = vld [vmem:[%s20686_s1 + $0x218] sm:$0xf0] }
 0x230   :  { %7483 = vmatpush.bf16.msrb.mxu0 %v8973_v29  ;;  %v8882_v29 = vld [vmem:[%s20686_s1 + $0x328] sm:$0xf0]  ;;  %v8957_v20 = vor.u32 %v12734_v17, %v8954_v43  ;;  %v12682_v0 = vld [vmem:[%s20686_s1 + $0x214] sm:$0xf]  ;;  %v8842_v17 = vld [vmem:[%s20686_s1 + $0x2d8] sm:$0xf0]  ;;  %v8949_v43 = vor.u32 %v12732_v12, %v8946_v54  ;;  %v8941_v54 = vor.u32 %v12730_v62, %v8938_v4 }
 0x231   :  { %7445 = vmatpush.bf16.msrb.mxu1 %v8773_v48  ;;  %v7205_v48 = vadd.f32 %v7204_v34, %v7192_v18  ;;  %v8885_v18 = vor.u32 %v12716_v45, %v8882_v29  ;;  %v8738_v34 = vld [vmem:[%s20686_s1 + $0x208] sm:$0xf0]  ;;  %v12712_v29 = vld [vmem:[%s20686_s1 + $0x304] sm:$0xf] }
 0x232   :  { %7409 = vmatpush.bf16.msrb.mxu2 %v8557_v40  ;;  %v8850_v40 = vld [vmem:[%s20686_s1 + $0x2e8] sm:$0xf0]  ;;  %v7206_v60 = vpop.f32.mrf.mxu2  ;;  %v12756_v62 = vld [vmem:[%s20686_s1 + $0x464] sm:$0xf] }
 0x233   :  { %7471 = vmatpush.bf16.msrb.mxu3 %v8901_v1  ;;  %v7193_v1 = vpop.f32.mrf.mxu1  ;;  %v17575_v28 = vadd.f32 %v7217_v3, %v7205_v48  ;;  %v8853_v55 = vor.u32 %v12708_v61, %v8850_v40  ;;  %v8866_v61 = vld [vmem:[%s20686_s1 + $0x308] sm:$0xf0]  ;;  %v12704_v40 = vld [vmem:[%s20686_s1 + $0x2c4] sm:$0xf]  ;;  %v12758_v3 = vld [vmem:[%s20686_s1 + $0x474] sm:$0xf]  ;;  %v7219_v12 = vpop.f32.mrf.mxu3 }
 0x234   :  { %7484 = vmatpush.bf16.msrb.mxu0 %v8965_v21  ;;  %v12714_v21 = vld [vmem:[%s20686_s1 + $0x314] sm:$0xf]  ;;  %v8834_v48 = vld [vmem:[%s20686_s1 + $0x2c8] sm:$0xf0]  ;;  %v9178_v1 = vld [vmem:[%s20686_s1 + $0x578] sm:$0xf0] }
 0x235   :  { %7446 = vmatpush.bf16.msrb.mxu1 %v8765_v38  ;;  %v12706_v38 = vld [vmem:[%s20686_s1 + $0x2d4] sm:$0xf]  ;;  %v9042_v4 = vld [vmem:[%s20686_s1 + $0x468] sm:$0xf0]  ;;  %v9034_v12 = vld [vmem:[%s20686_s1 + $0x458] sm:$0xf0] }
 0x236   :  { %7410 = vmatpush.bf16.msrb.mxu2 %v8549_v46  ;;  %v8874_v46 = vld [vmem:[%s20686_s1 + $0x318] sm:$0xf0] }
 0x237   :  { %7472 = vmatpush.bf16.msrb.mxu3 %v8893_v35  ;;  %v8749_v35 = vor.u32 %v12682_v0, %v8746_v9  ;;  %v8877_v45 = vor.u32 %v12714_v21, %v8874_v46  ;;  %v8930_v0 = vld [vmem:[%s20686_s1 + $0x388] sm:$0xf0]  ;;  %v8869_v9 = vor.u32 %v12712_v29, %v8866_v61  ;;  %v8837_v21 = vor.u32 %v12704_v40, %v8834_v48  ;;  %v12806_v46 = vld [vmem:[%s20686_s1 + $0x5f4] sm:$0xf]  ;;  %v12804_v40 = vld [vmem:[%s20686_s1 + $0x5e4] sm:$0xf] }
 0x238   :  { %7485 = vmatpush.bf16.msrb.mxu0 %v8957_v20  ;;  %v9050_v20 = vld [vmem:[%s20686_s1 + $0x478] sm:$0xf0]  ;;  %v9234_v48 = vld [vmem:[%s20686_s1 + $0x5e8] sm:$0xf0] }
 0x239   :  { %7411 = vmatmul.bf16.vlgmr.msrb.gmra.mxu2 %v14089_v47  ;;  %7447 = vmatpush.bf16.msrb.mxu1 %v8757_v22  ;;  %v8845_v47 = vor.u32 %v12706_v38, %v8842_v17  ;;  %v12790_v22 = vld [vmem:[%s20686_s1 + $0x574] sm:$0xf]  ;;  %v9242_v38 = vld [vmem:[%s20686_s1 + $0x5f8] sm:$0xf0]  ;;  %v9053_v17 = vor.u32 %v12758_v3, %v9050_v20  ;;  %v9045_v3 = vor.u32 %v12756_v62, %v9042_v4  ;;  %v12700_v20 = vld [vmem:[%s20686_s1 + $0x2a4] sm:$0xf] }
 0x23a   :  { %7455 = vmatpush.bf16.msra.mxu2 %v8861_v8  ;;  %v12680_v8 = vld [vmem:[%s20686_s1 + $0x204] sm:$0xf]  ;;  %v9245_v29 = vor.u32 %v12806_v46, %v9242_v38 }
 0x23b   :  { %7473 = vmatpush.bf16.msrb.mxu3 %v8885_v18  ;;  %v8741_v18 = vor.u32 %v12680_v8, %v8738_v34  ;;  %v8826_v8 = vld [vmem:[%s20686_s1 + $0x2b8] sm:$0xf0] }
 0x23c   :  { %7486 = vmatpush.bf16.msrb.mxu0 %v8949_v43  ;;  %v9181_v43 = vor.u32 %v12790_v22, %v9178_v1  ;;  %v8818_v22 = vld [vmem:[%s20686_s1 + $0x2a8] sm:$0xf0]  ;;  %v12754_v1 = vld [vmem:[%s20686_s1 + $0x454] sm:$0xf] }
 0x23d   :  { %7448 = vmatpush.bf16.msrb.mxu1 %v8749_v35  ;;  %v12702_v35 = vld [vmem:[%s20686_s1 + $0x2b4] sm:$0xf]  ;;  %v9037_v46 = vor.u32 %v12754_v1, %v9034_v12 }
 0x23e   :  { %7456 = vmatpush.bf16.msra.mxu2 %v8853_v55  ;;  %v12728_v55 = vld [vmem:[%s20686_s1 + $0x384] sm:$0xf]  ;;  %v8829_v61 = vor.u32 %v12702_v35, %v8826_v8  ;;  %v9154_v8 = vld [vmem:[%s20686_s1 + $0x548] sm:$0xf0]  ;;  %v12774_v12 = vld [vmem:[%s20686_s1 + $0x4f4] sm:$0xf] }
 0x23f   :  { %7474 = vmatpush.bf16.msrb.mxu3 %v8877_v45  ;;  %v12788_v45 = vld [vmem:[%s20686_s1 + $0x564] sm:$0xf]  ;;  %v8933_v34 = vor.u32 %v12728_v55, %v8930_v0  ;;  %v9237_v55 = vor.u32 %v12804_v40, %v9234_v48  ;;  %v8821_v0 = vor.u32 %v12700_v20, %v8818_v22  ;;  %v9018_v20 = vld [vmem:[%s20686_s1 + $0x438] sm:$0xf0] }
 0x240   :  { %7487 = vmatpush.bf16.msrb.mxu0 %v8941_v54  ;;  %v12786_v54 = vld [vmem:[%s20686_s1 + $0x554] sm:$0xf]  ;;  %v12784_v35 = vld [vmem:[%s20686_s1 + $0x544] sm:$0xf]  ;;  %v7230_v4 = vpop.f32.mrf.mxu0  ;;  %v9146_v22 = vld [vmem:[%s20686_s1 + $0x538] sm:$0xf0] }
 0x241   :  { %7449 = vmatpush.bf16.msrb.mxu1 %v8741_v18  ;;  %v9162_v18 = vld [vmem:[%s20686_s1 + $0x558] sm:$0xf0]  ;;  %v9157_v40 = vor.u32 %v12784_v35, %v9154_v8  ;;  %v12696_v48 = vld [vmem:[%s20686_s1 + $0x284] sm:$0xf] }
 0x242   :  { %7457 = vmatpush.bf16.msra.mxu2 %v8845_v47  ;;  %v9170_v47 = vld [vmem:[%s20686_s1 + $0x568] sm:$0xf0]  ;;  %v9165_v38 = vor.u32 %v12786_v54, %v9162_v18  ;;  %v9114_v54 = vld [vmem:[%s20686_s1 + $0x4f8] sm:$0xf0]  ;;  %v12772_v8 = vld [vmem:[%s20686_s1 + $0x4e4] sm:$0xf] }
 0x243   :  { %7475 = vmatpush.bf16.msrb.mxu3 %v8869_v9  ;;  %v9173_v60 = vor.u32 %v12788_v45, %v9170_v47  ;;  %v12802_v9 = vld [vmem:[%s20686_s1 + $0x5d4] sm:$0xf]  ;;  %v12800_v47 = vld [vmem:[%s20686_s1 + $0x5c4] sm:$0xf] }
 0x244   :  { %7450 = vmatmul.bf16.vlgmr.msrb.gmra.mxu1 %v14224_v56  ;;  %7488 = vmatpush.bf16.msrb.mxu0 %v8933_v34  ;;  %v12698_v56 = vld [vmem:[%s20686_s1 + $0x294] sm:$0xf]  ;;  %v9218_v34 = vld [vmem:[%s20686_s1 + $0x5c8] sm:$0xf0] }
 0x245   :  { %7494 = vmatpush.bf16.msra.mxu1 %v9053_v17  ;;  %v12752_v17 = vld [vmem:[%s20686_s1 + $0x444] sm:$0xf]  ;;  %v9221_v18 = vor.u32 %v12800_v47, %v9218_v34 }
 0x246   :  { %7458 = vmatpush.bf16.msra.mxu2 %v8837_v21  ;;  %7476 = vmatmul.bf16.vlgmr.msrb.gmra.mxu3 %v14201_v39  ;;  %v9226_v21 = vld [vmem:[%s20686_s1 + $0x5d8] sm:$0xf0] }
 0x247   :  { %7520 = vmatpush.bf16.msra.mxu3 %v9181_v43  ;;  %v8810_v39 = vld [vmem:[%s20686_s1 + $0x298] sm:$0xf0]  ;;  %v9026_v43 = vld [vmem:[%s20686_s1 + $0x448] sm:$0xf0]  ;;  %7489 = vmatmul.bf16.vlgmr.msrb.gmra.mxu0 %v14203_v42  ;;  %v9229_v62 = vor.u32 %v12802_v9, %v9226_v21  ;;  %v7243_v42 = vpop.f32.mrf.mxu1 }
 0x248   :  { %7533 = vmatpush.bf16.msra.mxu0 %v9245_v29  ;;  %v8813_v45 = vor.u32 %v12698_v56, %v8810_v39  ;;  %v7231_v29 = vadd.f32 %v7230_v4, %v17575_v28  ;;  %v12782_v28 = vld [vmem:[%s20686_s1 + $0x534] sm:$0xf]  ;;  %v9210_v9 = vld [vmem:[%s20686_s1 + $0x5b8] sm:$0xf0]  ;;  %v9117_v56 = vor.u32 %v12774_v12, %v9114_v54  ;;  %v9010_v39 = vld [vmem:[%s20686_s1 + $0x428] sm:$0xf0]  ;;  %v7256_v35 = vpop.f32.mrf.mxu2  ;;  %v7232_v34 = vpop.f32.mrf.mxu0 }
 0x249   :  { %7495 = vmatpush.bf16.msra.mxu1 %v9045_v3  ;;  %v8802_v3 = vld [vmem:[%s20686_s1 + $0x288] sm:$0xf0]  ;;  %v7269_v47 = vpop.f32.mrf.mxu3  ;;  %v12770_v12 = vld [vmem:[%s20686_s1 + $0x4d4] sm:$0xf]  ;;  %v9098_v54 = vld [vmem:[%s20686_s1 + $0x4d8] sm:$0xf0] }
 0x24a   :  { %7459 = vmatpush.bf16.msra.mxu2 %v8829_v61  ;;  %v9029_v61 = vor.u32 %v12752_v17, %v9026_v43  ;;  %v7244_v1 = vadd.f32 %v7243_v42, %v7231_v29  ;;  %v12780_v17 = vld [vmem:[%s20686_s1 + $0x524] sm:$0xf]  ;;  %v9138_v43 = vld [vmem:[%s20686_s1 + $0x528] sm:$0xf0] }
 0x24b   :  { %7521 = vmatpush.bf16.msra.mxu3 %v9173_v60  ;;  %v12750_v60 = vld [vmem:[%s20686_s1 + $0x434] sm:$0xf]  ;;  %v12796_v29 = vld [vmem:[%s20686_s1 + $0x5a4] sm:$0xf]  ;;  %v9141_v42 = vor.u32 %v12780_v17, %v9138_v43  ;;  %v9090_v43 = vld [vmem:[%s20686_s1 + $0x4c8] sm:$0xf0] }
 0x24c   :  { %7534 = vmatpush.bf16.msra.mxu0 %v9237_v55  ;;  %v8805_v55 = vor.u32 %v12696_v48, %v8802_v3  ;;  %v9021_v21 = vor.u32 %v12750_v60, %v9018_v20  ;;  %v12746_v48 = vld [vmem:[%s20686_s1 + $0x414] sm:$0xf]  ;;  %v12768_v17 = vld [vmem:[%s20686_s1 + $0x4c4] sm:$0xf] }
 0x24d   :  { %7496 = vmatpush.bf16.msra.mxu1 %v9037_v46  ;;  %v9149_v46 = vor.u32 %v12782_v28, %v9146_v22  ;;  %v9002_v28 = vld [vmem:[%s20686_s1 + $0x418] sm:$0xf0]  ;;  %v12778_v22 = vld [vmem:[%s20686_s1 + $0x514] sm:$0xf] }
 0x24e   :  { %7460 = vmatpush.bf16.msra.mxu2 %v8821_v0  ;;  %v12798_v0 = vld [vmem:[%s20686_s1 + $0x5b4] sm:$0xf] }
 0x24f   :  { %7522 = vmatpush.bf16.msra.mxu3 %v9165_v38  ;;  %v12748_v38 = vld [vmem:[%s20686_s1 + $0x424] sm:$0xf]  ;;  %v9213_v4 = vor.u32 %v12798_v0, %v9210_v9  ;;  %v7245_v3 = vpop.f32.mrf.mxu1  ;;  %v9194_v0 = vld [vmem:[%s20686_s1 + $0x598] sm:$0xf0] }
 0x250   :  { %7535 = vmatpush.bf16.msra.mxu0 %v9229_v62  ;;  %v9106_v62 = vld [vmem:[%s20686_s1 + $0x4e8] sm:$0xf0]  ;;  %v9498_v3 = vld [vmem:[%s20686_s1 + $0x7f8] sm:$0xf0] }
 0x251   :  { %7497 = vmatpush.bf16.msra.mxu1 %v9029_v61  ;;  %v9202_v61 = vld [vmem:[%s20686_s1 + $0x5a8] sm:$0xf0]  ;;  %v9109_v20 = vor.u32 %v12772_v8, %v9106_v62  ;;  %v9306_v8 = vld [vmem:[%s20686_s1 + $0x678] sm:$0xf0]  ;;  %v12854_v62 = vld [vmem:[%s20686_s1 + $0x774] sm:$0xf]  ;;  %v7271_v34 = vpop.f32.mrf.mxu3 }
 0x252   :  { %7461 = vmatpush.bf16.msra.mxu2 %v8813_v45  ;;  %v7257_v45 = vadd.f32 %v7256_v35, %v7244_v1  ;;  %v9130_v1 = vld [vmem:[%s20686_s1 + $0x518] sm:$0xf0]  ;;  %v12822_v35 = vld [vmem:[%s20686_s1 + $0x674] sm:$0xf] }
 0x253   :  { %7523 = vmatpush.bf16.msra.mxu3 %v9157_v40  ;;  %v9013_v40 = vor.u32 %v12748_v38, %v9010_v39  ;;  %v9133_v9 = vor.u32 %v12778_v22, %v9130_v1  ;;  %v12776_v38 = vld [vmem:[%s20686_s1 + $0x504] sm:$0xf]  ;;  %v9122_v39 = vld [vmem:[%s20686_s1 + $0x508] sm:$0xf0]  ;;  %v12766_v22 = vld [vmem:[%s20686_s1 + $0x4b4] sm:$0xf] }
 0x254   :  { %7536 = vmatpush.bf16.msra.mxu0 %v9221_v18  ;;  %v17777_v60 = vadd.f32 %v7269_v47, %v7257_v45  ;;  %v9205_v18 = vor.u32 %v12796_v29, %v9202_v61  ;;  %v9434_v47 = vld [vmem:[%s20686_s1 + $0x778] sm:$0xf0]  ;;  %v12792_v29 = vld [vmem:[%s20686_s1 + $0x584] sm:$0xf]  ;;  %v9186_v61 = vld [vmem:[%s20686_s1 + $0x588] sm:$0xf0] }
 0x255   :  { %7498 = vmatpush.bf16.msra.mxu1 %v9021_v21  ;;  %v12744_v21 = vld [vmem:[%s20686_s1 + $0x404] sm:$0xf]  ;;  %v9437_v1 = vor.u32 %v12854_v62, %v9434_v47  ;;  %v12850_v62 = vld [vmem:[%s20686_s1 + $0x754] sm:$0xf] }
 0x256   :  { %7462 = vmatpush.bf16.msra.mxu2 %v8805_v55  ;;  %v12794_v55 = vld [vmem:[%s20686_s1 + $0x594] sm:$0xf] }
 0x257   :  { %7524 = vmatpush.bf16.msra.mxu3 %v9149_v46  ;;  %v8994_v46 = vld [vmem:[%s20686_s1 + $0x408] sm:$0xf0]  ;;  %v9197_v45 = vor.u32 %v12794_v55, %v9194_v0  ;;  %v9189_v55 = vor.u32 %v12792_v29, %v9186_v61  ;;  %v12852_v0 = vld [vmem:[%s20686_s1 + $0x764] sm:$0xf]  ;;  %v12866_v47 = vld [vmem:[%s20686_s1 + $0x7d4] sm:$0xf] }
 0x258   :  { %7537 = vmatpush.bf16.msra.mxu0 %v9213_v4  ;;  %v7258_v4 = vpop.f32.mrf.mxu2  ;;  %v12762_v61 = vld [vmem:[%s20686_s1 + $0x494] sm:$0xf] }
 0x259   :  { %7463 = vmatmul.bf16.vlgmr.msra.gmra.mxu2 %v14233_v59  ;;  %7499 = vmatpush.bf16.msra.mxu1 %v9013_v40  ;;  %v9005_v59 = vor.u32 %v12746_v48, %v9002_v28  ;;  %v8997_v40 = vor.u32 %v12744_v21, %v8994_v46  ;;  %v12870_v48 = vld [vmem:[%s20686_s1 + $0x7f4] sm:$0xf]  ;;  %v9309_v28 = vor.u32 %v12822_v35, %v9306_v8  ;;  %v12868_v21 = vld [vmem:[%s20686_s1 + $0x7e4] sm:$0xf]  ;;  %v9490_v46 = vld [vmem:[%s20686_s1 + $0x7e8] sm:$0xf0] }
 0x25a   :  { %7507 = vmatpush.bf16.msrb.mxu2 %v9117_v56  ;;  %v9101_v56 = vor.u32 %v12770_v12, %v9098_v54  ;;  %v9082_v12 = vld [vmem:[%s20686_s1 + $0x4b8] sm:$0xf0]  ;;  %v12820_v54 = vld [vmem:[%s20686_s1 + $0x664] sm:$0xf]  ;;  %v12818_v35 = vld [vmem:[%s20686_s1 + $0x654] sm:$0xf] }
 0x25b   :  { %7525 = vmatpush.bf16.msra.mxu3 %v9141_v42  ;;  %v9125_v42 = vor.u32 %v12776_v38, %v9122_v39  ;;  %v9085_v38 = vor.u32 %v12766_v22, %v9082_v12  ;;  %v12764_v39 = vld [vmem:[%s20686_s1 + $0x4a4] sm:$0xf]  ;;  %v9290_v8 = vld [vmem:[%s20686_s1 + $0x658] sm:$0xf0] }
 0x25c   :  { %7538 = vmatpush.bf16.msra.mxu0 %v9205_v18  ;;  %v9298_v18 = vld [vmem:[%s20686_s1 + $0x668] sm:$0xf0]  ;;  %v9418_v4 = vld [vmem:[%s20686_s1 + $0x758] sm:$0xf0]  ;;  %v9293_v29 = vor.u32 %v12818_v35, %v9290_v8  ;;  %v12864_v22 = vld [vmem:[%s20686_s1 + $0x7c4] sm:$0xf] }
 0x25d   :  { %7500 = vmatpush.bf16.msra.mxu1 %v9005_v59  ;;  %v9426_v59 = vld [vmem:[%s20686_s1 + $0x768] sm:$0xf0]  ;;  %v12862_v35 = vld [vmem:[%s20686_s1 + $0x7b4] sm:$0xf]  ;;  %v9466_v8 = vld [vmem:[%s20686_s1 + $0x7b8] sm:$0xf0] }
 0x25e   :  { %7508 = vmatpush.bf16.msrb.mxu2 %v9109_v20  ;;  %v9093_v20 = vor.u32 %v12768_v17, %v9090_v43  ;;  %v9429_v17 = vor.u32 %v12852_v0, %v9426_v59  ;;  %v9074_v43 = vld [vmem:[%s20686_s1 + $0x4a8] sm:$0xf0] }
 0x25f   :  { %7526 = vmatpush.bf16.msra.mxu3 %v9133_v9  ;;  %v9501_v9 = vor.u32 %v12870_v48, %v9498_v3  ;;  %v9077_v34 = vor.u32 %v12764_v39, %v9074_v43  ;;  %v9282_v48 = vld [vmem:[%s20686_s1 + $0x648] sm:$0xf0]  ;;  %v12848_v3 = vld [vmem:[%s20686_s1 + $0x744] sm:$0xf]  ;;  %v9370_v39 = vld [vmem:[%s20686_s1 + $0x6f8] sm:$0xf0] }
 0x260   :  { %7539 = vmatpush.bf16.msra.mxu0 %v9197_v45  ;;  %v9493_v45 = vor.u32 %v12868_v21, %v9490_v46  ;;  %v12814_v21 = vld [vmem:[%s20686_s1 + $0x634] sm:$0xf]  ;;  %v9274_v46 = vld [vmem:[%s20686_s1 + $0x638] sm:$0xf0] }
 0x261   :  { %7501 = vmatpush.bf16.msra.mxu1 %v8997_v40  ;;  %v9421_v40 = vor.u32 %v12850_v62, %v9418_v4  ;;  %v9277_v4 = vor.u32 %v12814_v21, %v9274_v46  ;;  %v9386_v21 = vld [vmem:[%s20686_s1 + $0x718] sm:$0xf0]  ;;  %v12834_v46 = vld [vmem:[%s20686_s1 + $0x6d4] sm:$0xf] }
 0x262   :  { %7509 = vmatpush.bf16.msrb.mxu2 %v9101_v56  ;;  %v9301_v56 = vor.u32 %v12820_v54, %v9298_v18  ;;  %v12760_v18 = vld [vmem:[%s20686_s1 + $0x484] sm:$0xf] }
 0x263   :  { %7527 = vmatpush.bf16.msra.mxu3 %v9125_v42  ;;  %v12816_v42 = vld [vmem:[%s20686_s1 + $0x644] sm:$0xf] }
 0x264   :  { %7540 = vmatpush.bf16.msra.mxu0 %v9189_v55  ;;  %7502 = vmatmul.bf16.vlgmr.msra.gmra.mxu1 %v14406_v25  ;;  %v9482_v25 = vld [vmem:[%s20686_s1 + $0x7d8] sm:$0xf0]  ;;  %v9285_v54 = vor.u32 %v12816_v42, %v9282_v48  ;;  %v9058_v55 = vld [vmem:[%s20686_s1 + $0x488] sm:$0xf0]  ;;  %v9469_v42 = vor.u32 %v12862_v35, %v9466_v8 }
 0x265   :  { %7546 = vmatpush.bf16.msrb.mxu1 %v9309_v28  ;;  %v9485_v28 = vor.u32 %v12866_v47, %v9482_v25  ;;  %v9061_v62 = vor.u32 %v12760_v18, %v9058_v55  ;;  %v12812_v25 = vld [vmem:[%s20686_s1 + $0x624] sm:$0xf]  ;;  %v12810_v18 = vld [vmem:[%s20686_s1 + $0x614] sm:$0xf]  ;;  %v9258_v55 = vld [vmem:[%s20686_s1 + $0x618] sm:$0xf0] }
 0x266   :  { %7510 = vmatpush.bf16.msrb.mxu2 %v9093_v20  ;;  %7528 = vmatmul.bf16.vlgmr.msra.gmra.mxu3 %v14419_v30  ;;  %v9066_v30 = vld [vmem:[%s20686_s1 + $0x498] sm:$0xf0]  ;;  %v9410_v20 = vld [vmem:[%s20686_s1 + $0x748] sm:$0xf0] }
 0x267   :  { %7572 = vmatpush.bf16.msrb.mxu3 %v9437_v1  ;;  %7541 = vmatmul.bf16.vlgmr.msra.gmra.mxu0 %v14433_v36  ;;  %v9474_v1 = vld [vmem:[%s20686_s1 + $0x7c8] sm:$0xf0]  ;;  %v7282_v36 = vpop.f32.mrf.mxu0  ;;  %v9069_v12 = vor.u32 %v12762_v61, %v9066_v30  ;;  %v9413_v59 = vor.u32 %v12848_v3, %v9410_v20  ;;  %v12860_v3 = vld [vmem:[%s20686_s1 + $0x7a4] sm:$0xf] }
 0x268   :  { %7585 = vmatpush.bf16.msrb.mxu0 %v9501_v9  ;;  %v7283_v0 = vadd.f32 %v7282_v36, %v17777_v60  ;;  %v7295_v9 = vpop.f32.mrf.mxu1  ;;  %v12838_v60 = vld [vmem:[%s20686_s1 + $0x6f4] sm:$0xf]  ;;  %v9394_v61 = vld [vmem:[%s20686_s1 + $0x728] sm:$0xf0]  ;;  %v7308_v48 = vpop.f32.mrf.mxu2 }
 0x269   :  { %7547 = vmatpush.bf16.msrb.mxu1 %v9301_v56  ;;  %v9402_v56 = vld [vmem:[%s20686_s1 + $0x738] sm:$0xf0]  ;;  %v9373_v47 = vor.u32 %v12838_v60, %v9370_v39  ;;  %v9362_v30 = vld [vmem:[%s20686_s1 + $0x6e8] sm:$0xf0]  ;;  %v12858_v60 = vld [vmem:[%s20686_s1 + $0x794] sm:$0xf] }
 0x26a   :  { %7511 = vmatpush.bf16.msrb.mxu2 %v9085_v38  ;;  %v12846_v38 = vld [vmem:[%s20686_s1 + $0x734] sm:$0xf]  ;;  %v7296_v43 = vadd.f32 %v7295_v9, %v7283_v0  ;;  %v9458_v20 = vld [vmem:[%s20686_s1 + $0x7a8] sm:$0xf0]  ;;  %v9450_v39 = vld [vmem:[%s20686_s1 + $0x798] sm:$0xf0] }
 0x26b   :  { %7573 = vmatpush.bf16.msrb.mxu3 %v9429_v17  ;;  %v9477_v17 = vor.u32 %v12864_v22, %v9474_v1  ;;  %v7321_v22 = vpop.f32.mrf.mxu3  ;;  %v12842_v0 = vld [vmem:[%s20686_s1 + $0x714] sm:$0xf] }
 0x26c   :  { %7586 = vmatpush.bf16.msrb.mxu0 %v9493_v45  ;;  %v9405_v45 = vor.u32 %v12846_v38, %v9402_v56  ;;  %v9354_v38 = vld [vmem:[%s20686_s1 + $0x6d8] sm:$0xf0]  ;;  %v9461_v56 = vor.u32 %v12860_v3, %v9458_v20  ;;  %v9389_v35 = vor.u32 %v12842_v0, %v9386_v21  ;;  %v12856_v3 = vld [vmem:[%s20686_s1 + $0x784] sm:$0xf]  ;;  %v9442_v20 = vld [vmem:[%s20686_s1 + $0x788] sm:$0xf0] }
 0x26d   :  { %7548 = vmatpush.bf16.msrb.mxu1 %v9293_v29  ;;  %v12844_v29 = vld [vmem:[%s20686_s1 + $0x724] sm:$0xf]  ;;  %v9357_v8 = vor.u32 %v12834_v46, %v9354_v38  ;;  %v9682_v46 = vld [vmem:[%s20686_s1 + $0x968] sm:$0xf0]  ;;  %v9445_v38 = vor.u32 %v12856_v3, %v9442_v20 }
 0x26e   :  { %7512 = vmatpush.bf16.msrb.mxu2 %v9077_v34  ;;  %v9266_v34 = vld [vmem:[%s20686_s1 + $0x628] sm:$0xf0]  ;;  %v12884_v0 = vld [vmem:[%s20686_s1 + $0x864] sm:$0xf] }
 0x26f   :  { %7574 = vmatpush.bf16.msrb.mxu3 %v9421_v40  ;;  %v12836_v40 = vld [vmem:[%s20686_s1 + $0x6e4] sm:$0xf]  ;;  %v9269_v1 = vor.u32 %v12812_v25, %v9266_v34  ;;  %v7284_v36 = vpop.f32.mrf.mxu0  ;;  %v12886_v25 = vld [vmem:[%s20686_s1 + $0x874] sm:$0xf]  ;;  %v9453_v34 = vor.u32 %v12858_v60, %v9450_v39  ;;  %v9666_v20 = vld [vmem:[%s20686_s1 + $0x948] sm:$0xf0] }
 0x270   :  { %7587 = vmatpush.bf16.msrb.mxu0 %v9485_v28  ;;  %v7309_v28 = vadd.f32 %v7308_v48, %v7296_v43  ;;  %v12808_v43 = vld [vmem:[%s20686_s1 + $0x604] sm:$0xf]  ;;  %v9754_v36 = vld [vmem:[%s20686_s1 + $0x9f8] sm:$0xf0] }
 0x271   :  { %7549 = vmatpush.bf16.msrb.mxu1 %v9285_v54  ;;  %v9365_v54 = vor.u32 %v12836_v40, %v9362_v30  ;;  %v9690_v40 = vld [vmem:[%s20686_s1 + $0x978] sm:$0xf0]  ;;  %v7310_v30 = vpop.f32.mrf.mxu2  ;;  %v12916_v21 = vld [vmem:[%s20686_s1 + $0x964] sm:$0xf] }
 0x272   :  { %7513 = vmatpush.bf16.msrb.mxu2 %v9069_v12  ;;  %v9397_v12 = vor.u32 %v12844_v29, %v9394_v61  ;;  %v17982_v9 = vadd.f32 %v7321_v22, %v7309_v28  ;;  %v9562_v29 = vld [vmem:[%s20686_s1 + $0x878] sm:$0xf0]  ;;  %v12918_v61 = vld [vmem:[%s20686_s1 + $0x974] sm:$0xf]  ;;  %v12932_v39 = vld [vmem:[%s20686_s1 + $0x9e4] sm:$0xf] }
 0x273   :  { %7575 = vmatpush.bf16.msrb.mxu3 %v9413_v59  ;;  %v7297_v59 = vpop.f32.mrf.mxu1  ;;  %v7323_v48 = vpop.f32.mrf.mxu3  ;;  %v12826_v30 = vld [vmem:[%s20686_s1 + $0x694] sm:$0xf]  ;;  %v12912_v3 = vld [vmem:[%s20686_s1 + $0x944] sm:$0xf] }
 0x274   :  { %7588 = vmatpush.bf16.msrb.mxu0 %v9477_v17  ;;  %v9261_v17 = vor.u32 %v12810_v18, %v9258_v55  ;;  %v12830_v18 = vld [vmem:[%s20686_s1 + $0x6b4] sm:$0xf]  ;;  %v9338_v55 = vld [vmem:[%s20686_s1 + $0x6b8] sm:$0xf0]  ;;  %v9554_v59 = vld [vmem:[%s20686_s1 + $0x868] sm:$0xf0] }
 0x275   :  { %7550 = vmatpush.bf16.msrb.mxu1 %v9277_v4  ;;  %v9378_v4 = vld [vmem:[%s20686_s1 + $0x708] sm:$0xf0]  ;;  %v9341_v60 = vor.u32 %v12830_v18, %v9338_v55  ;;  %v9669_v18 = vor.u32 %v12912_v3, %v9666_v20 }
 0x276   :  { %7514 = vmatpush.bf16.msrb.mxu2 %v9061_v62  ;;  %v12840_v62 = vld [vmem:[%s20686_s1 + $0x704] sm:$0xf]  ;;  %v9538_v48 = vld [vmem:[%s20686_s1 + $0x848] sm:$0xf0] }
 0x277   :  { %7576 = vmatpush.bf16.msrb.mxu3 %v9405_v45  ;;  %v12832_v45 = vld [vmem:[%s20686_s1 + $0x6c4] sm:$0xf]  ;;  %v9381_v28 = vor.u32 %v12840_v62, %v9378_v4  ;;  %v12882_v62 = vld [vmem:[%s20686_s1 + $0x854] sm:$0xf]  ;;  %v9546_v4 = vld [vmem:[%s20686_s1 + $0x858] sm:$0xf0] }
 0x278   :  { %7589 = vmatpush.bf16.msrb.mxu0 %v9469_v42  ;;  %v9314_v55 = vld [vmem:[%s20686_s1 + $0x688] sm:$0xf0] }
 0x279   :  { %7515 = vmatmul.bf16.vlgmr.msrb.gmra.mxu2 %v14423_v27  ;;  %7551 = vmatpush.bf16.msrb.mxu1 %v9269_v1  ;;  %v9250_v27 = vld [vmem:[%s20686_s1 + $0x608] sm:$0xf0]  ;;  %v12934_v1 = vld [vmem:[%s20686_s1 + $0x9f4] sm:$0xf] }
 0x27a   :  { %7559 = vmatpush.bf16.msra.mxu2 %v9373_v47  ;;  %v9346_v47 = vld [vmem:[%s20686_s1 + $0x6c8] sm:$0xf0]  ;;  %v9253_v42 = vor.u32 %v12808_v43, %v9250_v27  ;;  %v9557_v43 = vor.u32 %v12884_v0, %v9554_v59  ;;  %v12878_v0 = vld [vmem:[%s20686_s1 + $0x834] sm:$0xf] }
 0x27b   :  { %7577 = vmatpush.bf16.msrb.mxu3 %v9397_v12  ;;  %v9349_v22 = vor.u32 %v12832_v45, %v9346_v47  ;;  %v9565_v12 = vor.u32 %v12886_v25, %v9562_v29  ;;  %v9330_v27 = vld [vmem:[%s20686_s1 + $0x6a8] sm:$0xf0]  ;;  %v12914_v45 = vld [vmem:[%s20686_s1 + $0x954] sm:$0xf]  ;;  %v9674_v47 = vld [vmem:[%s20686_s1 + $0x958] sm:$0xf0] }
 0x27c   :  { %7590 = vmatpush.bf16.msrb.mxu0 %v9461_v56  ;;  %v9757_v56 = vor.u32 %v12934_v1, %v9754_v36  ;;  %v9738_v29 = vld [vmem:[%s20686_s1 + $0x9d8] sm:$0xf0]  ;;  %v12928_v1 = vld [vmem:[%s20686_s1 + $0x9c4] sm:$0xf]  ;;  %v9730_v36 = vld [vmem:[%s20686_s1 + $0x9c8] sm:$0xf0] }
 0x27d   :  { %7552 = vmatpush.bf16.msrb.mxu1 %v9261_v17  ;;  %v9746_v17 = vld [vmem:[%s20686_s1 + $0x9e8] sm:$0xf0] }
 0x27e   :  { %7560 = vmatpush.bf16.msra.mxu2 %v9365_v54  ;;  %v9693_v54 = vor.u32 %v12918_v61, %v9690_v40  ;;  %v9749_v25 = vor.u32 %v12932_v39, %v9746_v17  ;;  %v9549_v61 = vor.u32 %v12882_v62, %v9546_v4  ;;  %v9677_v40 = vor.u32 %v12914_v45, %v9674_v47  ;;  %v12876_v4 = vld [vmem:[%s20686_s1 + $0x824] sm:$0xf]  ;;  %v9522_v47 = vld [vmem:[%s20686_s1 + $0x828] sm:$0xf0] }
 0x27f   :  { %7578 = vmatpush.bf16.msrb.mxu3 %v9389_v35  ;;  %v9685_v35 = vor.u32 %v12916_v21, %v9682_v46  ;;  %v9530_v46 = vld [vmem:[%s20686_s1 + $0x838] sm:$0xf0]  ;;  %v9733_v39 = vor.u32 %v12928_v1, %v9730_v36  ;;  %v9525_v3 = vor.u32 %v12876_v4, %v9522_v47  ;;  %v12982_v4 = vld [vmem:[%s20686_s1 + $0xb74] sm:$0xf] }
 0x280   :  { %7591 = vmatpush.bf16.msrb.mxu0 %v9453_v34  ;;  %v9946_v47 = vld [vmem:[%s20686_s1 + $0xb78] sm:$0xf0] }
 0x281   :  { %7553 = vmatpush.bf16.msrb.mxu1 %v9253_v42  ;;  %v12880_v42 = vld [vmem:[%s20686_s1 + $0x844] sm:$0xf]  ;;  %v7347_v21 = vpop.f32.mrf.mxu1 }
 0x282   :  { %7561 = vmatpush.bf16.msra.mxu2 %v9357_v8  ;;  %v12828_v8 = vld [vmem:[%s20686_s1 + $0x6a4] sm:$0xf] }
 0x283   :  { %7579 = vmatpush.bf16.msrb.mxu3 %v9381_v28  ;;  %v9333_v34 = vor.u32 %v12828_v8, %v9330_v27  ;;  %v9722_v8 = vld [vmem:[%s20686_s1 + $0x9b8] sm:$0xf0]  ;;  %v9533_v27 = vor.u32 %v12878_v0, %v9530_v46 }
 0x284   :  { %7554 = vmatmul.bf16.vlgmr.msrb.gmra.mxu1 %v14635_v33  ;;  %7592 = vmatpush.bf16.msrb.mxu0 %v9445_v38  ;;  %v12930_v33 = vld [vmem:[%s20686_s1 + $0x9d4] sm:$0xf]  ;;  %v9610_v0 = vld [vmem:[%s20686_s1 + $0x8d8] sm:$0xf0] }
 0x285   :  { %7598 = vmatpush.bf16.msra.mxu1 %v9565_v12  ;;  %v9741_v28 = vor.u32 %v12930_v33, %v9738_v29  ;;  %v7334_v12 = vpop.f32.mrf.mxu0  ;;  %v12910_v38 = vld [vmem:[%s20686_s1 + $0x934] sm:$0xf]  ;;  %v12900_v29 = vld [vmem:[%s20686_s1 + $0x8e4] sm:$0xf]  ;;  %v9706_v46 = vld [vmem:[%s20686_s1 + $0x998] sm:$0xf0] }
 0x286   :  { %7562 = vmatpush.bf16.msra.mxu2 %v9349_v22  ;;  %7580 = vmatmul.bf16.vlgmr.msrb.gmra.mxu3 %v14648_v32  ;;  %v9322_v32 = vld [vmem:[%s20686_s1 + $0x698] sm:$0xf0]  ;;  %v7335_v59 = vadd.f32 %v7334_v12, %v17982_v9 }
 0x287   :  { %7624 = vmatpush.bf16.msra.mxu3 %v9693_v54  ;;  %7593 = vmatmul.bf16.vlgmr.msrb.gmra.mxu0 %v14665_v6  ;;  %v9325_v22 = vor.u32 %v12826_v30, %v9322_v32  ;;  %v9541_v54 = vor.u32 %v12880_v42, %v9538_v48  ;;  %v12824_v6 = vld [vmem:[%s20686_s1 + $0x684] sm:$0xf]  ;;  %v9626_v9 = vld [vmem:[%s20686_s1 + $0x8f8] sm:$0xf0]  ;;  %v9714_v48 = vld [vmem:[%s20686_s1 + $0x9a8] sm:$0xf0] }
 0x288   :  { %7637 = vmatpush.bf16.msra.mxu0 %v9757_v56  ;;  %v9658_v56 = vld [vmem:[%s20686_s1 + $0x938] sm:$0xf0]  ;;  %v7348_v17 = vadd.f32 %v7347_v21, %v7335_v59  ;;  %v7360_v33 = vpop.f32.mrf.mxu2  ;;  %v12924_v42 = vld [vmem:[%s20686_s1 + $0x9a4] sm:$0xf]  ;;  %v12922_v21 = vld [vmem:[%s20686_s1 + $0x994] sm:$0xf] }
 0x289   :  { %7599 = vmatpush.bf16.msra.mxu1 %v9557_v43  ;;  %v9317_v43 = vor.u32 %v12824_v6, %v9314_v55  ;;  %v9661_v62 = vor.u32 %v12910_v38, %v9658_v56  ;;  %v7373_v32 = vpop.f32.mrf.mxu3  ;;  %v9514_v12 = vld [vmem:[%s20686_s1 + $0x818] sm:$0xf0]  ;;  %v7349_v6 = vpop.f32.mrf.mxu1  ;;  %v12898_v55 = vld [vmem:[%s20686_s1 + $0x8d4] sm:$0xf]  ;;  %v9717_v59 = vor.u32 %v12924_v42, %v9714_v48  ;;  %v12872_v56 = vld [vmem:[%s20686_s1 + $0x804] sm:$0xf] }
 0x28a   :  { %7563 = vmatpush.bf16.msra.mxu2 %v9341_v60  ;;  %v12902_v60 = vld [vmem:[%s20686_s1 + $0x8f4] sm:$0xf]  ;;  %v7361_v30 = vadd.f32 %v7360_v33, %v7348_v17  ;;  %v9634_v17 = vld [vmem:[%s20686_s1 + $0x908] sm:$0xf0]  ;;  %v12996_v6 = vld [vmem:[%s20686_s1 + $0xbe4] sm:$0xf] }
 0x28b   :  { %7625 = vmatpush.bf16.msra.mxu3 %v9685_v35  ;;  %v12926_v35 = vld [vmem:[%s20686_s1 + $0x9b4] sm:$0xf]  ;;  %v9629_v45 = vor.u32 %v12902_v60, %v9626_v9  ;;  %v9506_v60 = vld [vmem:[%s20686_s1 + $0x808] sm:$0xf0]  ;;  %v12904_v9 = vld [vmem:[%s20686_s1 + $0x904] sm:$0xf] }
 0x28c   :  { %7638 = vmatpush.bf16.msra.mxu0 %v9749_v25  ;;  %v12908_v25 = vld [vmem:[%s20686_s1 + $0x924] sm:$0xf]  ;;  %v18175_v1 = vadd.f32 %v7373_v32, %v7361_v30  ;;  %v10010_v30 = vld [vmem:[%s20686_s1 + $0xbf8] sm:$0xf0]  ;;  %v12894_v48 = vld [vmem:[%s20686_s1 + $0x8b4] sm:$0xf] }
 0x28d   :  { %7600 = vmatpush.bf16.msra.mxu1 %v9549_v61  ;;  %v9618_v61 = vld [vmem:[%s20686_s1 + $0x8e8] sm:$0xf0] }
 0x28e   :  { %7564 = vmatpush.bf16.msra.mxu2 %v9333_v34  ;;  %v9650_v34 = vld [vmem:[%s20686_s1 + $0x928] sm:$0xf0]  ;;  %v9621_v36 = vor.u32 %v12900_v29, %v9618_v61  ;;  %v9509_v29 = vor.u32 %v12872_v56, %v9506_v60  ;;  %v9637_v61 = vor.u32 %v12904_v9, %v9634_v17  ;;  %v9802_v56 = vld [vmem:[%s20686_s1 + $0xa58] sm:$0xf0]  ;;  %v12978_v9 = vld [vmem:[%s20686_s1 + $0xb54] sm:$0xf] }
 0x28f   :  { %7626 = vmatpush.bf16.msra.mxu3 %v9677_v40  ;;  %v9725_v40 = vor.u32 %v12926_v35, %v9722_v8  ;;  %v9653_v20 = vor.u32 %v12908_v25, %v9650_v34  ;;  %v9602_v35 = vld [vmem:[%s20686_s1 + $0x8c8] sm:$0xf0]  ;;  %v12920_v25 = vld [vmem:[%s20686_s1 + $0x984] sm:$0xf] }
 0x290   :  { %7639 = vmatpush.bf16.msra.mxu0 %v9741_v28  ;;  %v12874_v28 = vld [vmem:[%s20686_s1 + $0x814] sm:$0xf]  ;;  %v7362_v8 = vpop.f32.mrf.mxu2  ;;  %v9698_v34 = vld [vmem:[%s20686_s1 + $0x988] sm:$0xf0] }
 0x291   :  { %7601 = vmatpush.bf16.msra.mxu1 %v9541_v54  ;;  %v12906_v54 = vld [vmem:[%s20686_s1 + $0x914] sm:$0xf]  ;;  %v7375_v33 = vpop.f32.mrf.mxu3 }
 0x292   :  { %7565 = vmatpush.bf16.msra.mxu2 %v9325_v22  ;;  %v7336_v22 = vpop.f32.mrf.mxu0  ;;  %v12992_v33 = vld [vmem:[%s20686_s1 + $0xbc4] sm:$0xf] }
 0x293   :  { %7627 = vmatpush.bf16.msra.mxu3 %v9669_v18  ;;  %v9642_v18 = vld [vmem:[%s20686_s1 + $0x918] sm:$0xf0]  ;;  %v9810_v22 = vld [vmem:[%s20686_s1 + $0xa68] sm:$0xf0] }
 0x294   :  { %7640 = vmatpush.bf16.msra.mxu0 %v9733_v39  ;;  %v9645_v38 = vor.u32 %v12906_v54, %v9642_v18  ;;  %v9613_v39 = vor.u32 %v12898_v55, %v9610_v0  ;;  %v9938_v54 = vld [vmem:[%s20686_s1 + $0xb68] sm:$0xf0] }
 0x295   :  { %7602 = vmatpush.bf16.msra.mxu1 %v9533_v27  ;;  %v12950_v27 = vld [vmem:[%s20686_s1 + $0xa74] sm:$0xf]  ;;  %v10002_v55 = vld [vmem:[%s20686_s1 + $0xbe8] sm:$0xf0] }
 0x296   :  { %7566 = vmatpush.bf16.msra.mxu2 %v9317_v43  ;;  %v12896_v43 = vld [vmem:[%s20686_s1 + $0x8c4] sm:$0xf]  ;;  %v10005_v17 = vor.u32 %v12996_v6, %v10002_v55  ;;  %v9978_v6 = vld [vmem:[%s20686_s1 + $0xbb8] sm:$0xf0] }
 0x297   :  { %7628 = vmatpush.bf16.msra.mxu3 %v9661_v62  ;;  %v9818_v62 = vld [vmem:[%s20686_s1 + $0xa78] sm:$0xf0]  ;;  %v9605_v32 = vor.u32 %v12896_v43, %v9602_v35 }
 0x298   :  { %7641 = vmatpush.bf16.msra.mxu0 %v9725_v40  ;;  %v12998_v40 = vld [vmem:[%s20686_s1 + $0xbf4] sm:$0xf]  ;;  %v9821_v42 = vor.u32 %v12950_v27, %v9818_v62  ;;  %v9994_v35 = vld [vmem:[%s20686_s1 + $0xbd8] sm:$0xf0] }
 0x299   :  { %7567 = vmatmul.bf16.vlgmr.msra.gmra.mxu2 %v14652_v5  ;;  %7603 = vmatpush.bf16.msra.mxu1 %v9525_v3  ;;  %v9517_v5 = vor.u32 %v12874_v28, %v9514_v12  ;;  %v9949_v3 = vor.u32 %v12982_v4, %v9946_v47  ;;  %v12948_v28 = vld [vmem:[%s20686_s1 + $0xa64] sm:$0xf]  ;;  %v10013_v18 = vor.u32 %v12998_v40, %v10010_v30  ;;  %v12890_v62 = vld [vmem:[%s20686_s1 + $0x894] sm:$0xf]  ;;  %v9570_v30 = vld [vmem:[%s20686_s1 + $0x888] sm:$0xf0] }
 0x29a   :  { %7611 = vmatpush.bf16.msrb.mxu2 %v9629_v45  ;;  %v9709_v45 = vor.u32 %v12922_v21, %v9706_v46  ;;  %v12980_v12 = vld [vmem:[%s20686_s1 + $0xb64] sm:$0xf] }
 0x29b   :  { %7629 = vmatpush.bf16.msra.mxu3 %v9653_v20  ;;  %v9594_v20 = vld [vmem:[%s20686_s1 + $0x8b8] sm:$0xf0]  ;;  %v12892_v21 = vld [vmem:[%s20686_s1 + $0x8a4] sm:$0xf]  ;;  %v9941_v46 = vor.u32 %v12980_v12, %v9938_v54 }
 0x29c   :  { %7642 = vmatpush.bf16.msra.mxu0 %v9717_v59  ;;  %v9597_v0 = vor.u32 %v12894_v48, %v9594_v20  ;;  %v9813_v59 = vor.u32 %v12948_v28, %v9810_v22  ;;  %v7386_v60 = vpop.f32.mrf.mxu2  ;;  %v12944_v4 = vld [vmem:[%s20686_s1 + $0xa44] sm:$0xf]  ;;  %v9786_v48 = vld [vmem:[%s20686_s1 + $0xa38] sm:$0xf0]  ;;  %v12966_v28 = vld [vmem:[%s20686_s1 + $0xaf4] sm:$0xf] }
 0x29d   :  { %7604 = vmatpush.bf16.msra.mxu1 %v9517_v5  ;;  %v9586_v5 = vld [vmem:[%s20686_s1 + $0x8a8] sm:$0xf0]  ;;  %v18285_v43 = vadd.f32 %v7386_v60, %v18175_v1  ;;  %v12976_v47 = vld [vmem:[%s20686_s1 + $0xb44] sm:$0xf]  ;;  %v9914_v20 = vld [vmem:[%s20686_s1 + $0xb38] sm:$0xf0] }
 0x29e   :  { %7612 = vmatpush.bf16.msrb.mxu2 %v9621_v36  ;;  %v9701_v36 = vor.u32 %v12920_v25, %v9698_v34  ;;  %v9589_v8 = vor.u32 %v12892_v21, %v9586_v5  ;;  %v9922_v25 = vld [vmem:[%s20686_s1 + $0xb48] sm:$0xf0]  ;;  %v12888_v40 = vld [vmem:[%s20686_s1 + $0x884] sm:$0xf]  ;;  %v9882_v22 = vld [vmem:[%s20686_s1 + $0xaf8] sm:$0xf0] }
 0x29f   :  { %7630 = vmatpush.bf16.msra.mxu3 %v9645_v38  ;;  %v12946_v38 = vld [vmem:[%s20686_s1 + $0xa54] sm:$0xf]  ;;  %v9573_v55 = vor.u32 %v12888_v40, %v9570_v30  ;;  %v9885_v21 = vor.u32 %v12966_v28, %v9882_v22  ;;  %v9778_v5 = vld [vmem:[%s20686_s1 + $0xa28] sm:$0xf0]  ;;  %v12964_v60 = vld [vmem:[%s20686_s1 + $0xae4] sm:$0xf] }
 0x2a0   :  { %7643 = vmatpush.bf16.msra.mxu0 %v9709_v45  ;;  %v9805_v27 = vor.u32 %v12946_v38, %v9802_v56  ;;  %v9794_v45 = vld [vmem:[%s20686_s1 + $0xa48] sm:$0xf0]  ;;  %v12972_v38 = vld [vmem:[%s20686_s1 + $0xb24] sm:$0xf]  ;;  %v13014_v22 = vld [vmem:[%s20686_s1 + $0xc74] sm:$0xf] }
 0x2a1   :  { %7605 = vmatpush.bf16.msra.mxu1 %v9509_v29  ;;  %v9986_v29 = vld [vmem:[%s20686_s1 + $0xbc8] sm:$0xf0]  ;;  %v18343_v54 = vpop.f32.mrf.mxu1  ;;  %v12936_v30 = vld [vmem:[%s20686_s1 + $0xa04] sm:$0xf] }
 0x2a2   :  { %7613 = vmatpush.bf16.msrb.mxu2 %v9613_v39  ;;  %v9930_v39 = vld [vmem:[%s20686_s1 + $0xb58] sm:$0xf0]  ;;  %v9906_v56 = vld [vmem:[%s20686_s1 + $0xb28] sm:$0xf0] }
 0x2a3   :  { %7631 = vmatpush.bf16.msra.mxu3 %v9637_v61  ;;  %v9933_v1 = vor.u32 %v12978_v9, %v9930_v39  ;;  %v9797_v61 = vor.u32 %v12944_v4, %v9794_v45  ;;  %v9874_v9 = vld [vmem:[%s20686_s1 + $0xae8] sm:$0xf0]  ;;  %v12970_v4 = vld [vmem:[%s20686_s1 + $0xb14] sm:$0xf]  ;;  %v9898_v45 = vld [vmem:[%s20686_s1 + $0xb18] sm:$0xf0] }
 0x2a4   :  { %7644 = vmatpush.bf16.msra.mxu0 %v9701_v36  ;;  %7606 = vmatmul.bf16.vlgmr.msra.gmra.mxu1 %v14861_v49  ;;  %v12994_v49 = vld [vmem:[%s20686_s1 + $0xbd4] sm:$0xf]  ;;  %v9989_v36 = vor.u32 %v12992_v33, %v9986_v29  ;;  %v7388_v12 = vpop.f32.mrf.mxu2  ;;  %v9858_v28 = vld [vmem:[%s20686_s1 + $0xac8] sm:$0xf0] }
 0x2a5   :  { %7650 = vmatpush.bf16.msrb.mxu1 %v9821_v42  ;;  %v9997_v34 = vor.u32 %v12994_v49, %v9994_v35  ;;  %v12942_v42 = vld [vmem:[%s20686_s1 + $0xa34] sm:$0xf]  ;;  %v9970_v49 = vld [vmem:[%s20686_s1 + $0xba8] sm:$0xf0]  ;;  %v10074_v12 = vld [vmem:[%s20686_s1 + $0xc78] sm:$0xf0] }
 0x2a6   :  { %7614 = vmatpush.bf16.msrb.mxu2 %v9605_v32  ;;  %7632 = vmatmul.bf16.vlgmr.msra.gmra.mxu3 %v14874_v52  ;;  %v9578_v52 = vld [vmem:[%s20686_s1 + $0x898] sm:$0xf0]  ;;  %v9925_v32 = vor.u32 %v12976_v47, %v9922_v25  ;;  %v12962_v47 = vld [vmem:[%s20686_s1 + $0xad4] sm:$0xf] }
 0x2a7   :  { %7676 = vmatpush.bf16.msrb.mxu3 %v9949_v3  ;;  %7645 = vmatmul.bf16.vlgmr.msra.gmra.mxu0 %v14891_v57  ;;  %v9581_v57 = vor.u32 %v12890_v62, %v9578_v52  ;;  %v12974_v3 = vld [vmem:[%s20686_s1 + $0xb34] sm:$0xf]  ;;  %v9877_v62 = vor.u32 %v12964_v60, %v9874_v9  ;;  %v9770_v52 = vld [vmem:[%s20686_s1 + $0xa18] sm:$0xf0] }
 0x2a8   :  { %7689 = vmatpush.bf16.msrb.mxu0 %v10013_v18  ;;  %v12990_v18 = vld [vmem:[%s20686_s1 + $0xbb4] sm:$0xf]  ;;  %v9866_v25 = vld [vmem:[%s20686_s1 + $0xad8] sm:$0xf0] }
 0x2a9   :  { %7651 = vmatpush.bf16.msrb.mxu1 %v9813_v59  ;;  %v9917_v59 = vor.u32 %v12974_v3, %v9914_v20  ;;  %v9981_v39 = vor.u32 %v12990_v18, %v9978_v6  ;;  %v18375_v35 = vpop.f32.mrf.mxu3  ;;  %v7401_v33 = vpop.f32.mrf.mxu1  ;;  %v12986_v29 = vld [vmem:[%s20686_s1 + $0xb94] sm:$0xf]  ;;  %v9890_v3 = vld [vmem:[%s20686_s1 + $0xb08] sm:$0xf0]  ;;  %v12960_v20 = vld [vmem:[%s20686_s1 + $0xac4] sm:$0xf] }
 0x2aa   :  { %7615 = vmatpush.bf16.msrb.mxu2 %v9597_v0  ;;  %v9789_v0 = vor.u32 %v12942_v42, %v9786_v48  ;;  %v9762_v42 = vld [vmem:[%s20686_s1 + $0xa08] sm:$0xf0]  ;;  %v12968_v48 = vld [vmem:[%s20686_s1 + $0xb04] sm:$0xf]  ;;  %v13046_v18 = vld [vmem:[%s20686_s1 + $0xd74] sm:$0xf] }
 0x2ab   :  { %7677 = vmatpush.bf16.msrb.mxu3 %v9941_v46  ;;  %v12940_v46 = vld [vmem:[%s20686_s1 + $0xa24] sm:$0xf]  ;;  %v10202_v6 = vld [vmem:[%s20686_s1 + $0xd78] sm:$0xf0]  ;;  %v13062_v60 = vld [vmem:[%s20686_s1 + $0xdf4] sm:$0xf] }
 0x2ac   :  { %7690 = vmatpush.bf16.msrb.mxu0 %v10005_v17  ;;  %v12988_v17 = vld [vmem:[%s20686_s1 + $0xba4] sm:$0xf]  ;;  %v10266_v9 = vld [vmem:[%s20686_s1 + $0xdf8] sm:$0xf0] }
 0x2ad   :  { %7652 = vmatpush.bf16.msrb.mxu1 %v9805_v27  ;;  %v9909_v27 = vor.u32 %v12972_v38, %v9906_v56  ;;  %v13654_v38 = vld [vmem:[%s20687_s2] sm:$0x3]  ;;  %v13060_v33 = vld [vmem:[%s20686_s1 + $0xde4] sm:$0xf] }
 0x2ae   :  { %7616 = vmatpush.bf16.msrb.mxu2 %v9589_v8  ;;  %v9781_v8 = vor.u32 %v12940_v46, %v9778_v5  ;;  %v9893_v46 = vor.u32 %v12968_v48, %v9890_v3  ;;  %v9861_v5 = vor.u32 %v12960_v20, %v9858_v28  ;;  %v1366_v56 = vperm.slane %v13654_v38, 1  ;;  %v10186_v48 = vld [vmem:[%s20686_s1 + $0xd58] sm:$0xf0] }
 0x2af   :  { %7678 = vmatpush.bf16.msrb.mxu3 %v9933_v1  ;;  %v12938_v1 = vld [vmem:[%s20686_s1 + $0xa14] sm:$0xf] }
 0x2b0   :  { %7691 = vmatpush.bf16.msrb.mxu0 %v9997_v34  ;;  %v9973_v34 = vor.u32 %v12988_v17, %v9970_v49  ;;  %v9773_v40 = vor.u32 %v12938_v1, %v9770_v52  ;;  %v10205_v17 = vor.u32 %v13046_v18, %v10202_v6  ;;  %v12958_v49 = vld [vmem:[%s20686_s1 + $0xab4] sm:$0xf]  ;;  %v13044_v1 = vld [vmem:[%s20686_s1 + $0xd64] sm:$0xf]  ;;  %v10194_v52 = vld [vmem:[%s20686_s1 + $0xd68] sm:$0xf0] }
 0x2b1   :  { %7653 = vmatpush.bf16.msrb.mxu1 %v9797_v61  ;;  %v18402_v61 = vpop.f32.mrf.mxu0  ;;  %v9834_v6 = vld [vmem:[%s20686_s1 + $0xa98] sm:$0xf0] }
 0x2b2   :  { %7617 = vmatpush.bf16.msrb.mxu2 %v9581_v57  ;;  %v9962_v57 = vld [vmem:[%s20686_s1 + $0xb98] sm:$0xf0] }
 0x2b3   :  { %7679 = vmatpush.bf16.msrb.mxu3 %v9925_v32  ;;  %v9901_v32 = vor.u32 %v12970_v4, %v9898_v45 }
 0x2b4   :  { %7692 = vmatpush.bf16.msrb.mxu0 %v9989_v36  ;;  %v9965_v36 = vor.u32 %v12986_v29, %v9962_v57  ;;  %v10258_v29 = vld [vmem:[%s20686_s1 + $0xde8] sm:$0xf0] }
 0x2b5   :  { %7654 = vmatpush.bf16.msrb.mxu1 %v9789_v0  ;;  %v9765_v0 = vor.u32 %v12936_v30, %v9762_v42  ;;  %v12956_v30 = vld [vmem:[%s20686_s1 + $0xaa4] sm:$0xf]  ;;  %v13042_v42 = vld [vmem:[%s20686_s1 + $0xd54] sm:$0xf]  ;;  %v10261_v20 = vor.u32 %v13060_v33, %v10258_v29  ;;  %v10234_v33 = vld [vmem:[%s20686_s1 + $0xdb8] sm:$0xf0] }
 0x2b6   :  { %7618 = vmatpush.bf16.msrb.mxu2 %v9573_v55  ;;  %v7427_v55 = vpop.f32.mrf.mxu3  ;;  %v10189_v18 = vor.u32 %v13042_v42, %v10186_v48  ;;  %v10162_v42 = vld [vmem:[%s20686_s1 + $0xd28] sm:$0xf0]  ;;  %v13028_v48 = vld [vmem:[%s20686_s1 + $0xce4] sm:$0xf] }
 0x2b7   :  { %7680 = vmatpush.bf16.msrb.mxu3 %v9917_v59  ;;  %v12984_v59 = vld [vmem:[%s20686_s1 + $0xb84] sm:$0xf] }
 0x2b8   :  { %7693 = vmatpush.bf16.msrb.mxu0 %v9981_v39  ;;  %v10077_v39 = vor.u32 %v13014_v22, %v10074_v12  ;;  %v13058_v22 = vld [vmem:[%s20686_s1 + $0xdd4] sm:$0xf]  ;;  %v13008_v55 = vld [vmem:[%s20686_s1 + $0xc44] sm:$0xf] }
 0x2b9   :  { %7619 = vmatmul.bf16.vlgmr.msrb.gmra.mxu2 %v14878_v53  ;;  %7655 = vmatpush.bf16.msrb.mxu1 %v9781_v8  ;;  %v9869_v53 = vor.u32 %v12962_v47, %v9866_v25  ;;  %v9850_v8 = vld [vmem:[%s20686_s1 + $0xab8] sm:$0xf0]  ;;  %v7440_v45 = vpop.f32.mrf.mxu0  ;;  %v10269_v47 = vor.u32 %v13062_v60, %v10266_v9  ;;  %v13056_v60 = vld [vmem:[%s20686_s1 + $0xdc4] sm:$0xf]  ;;  %v10242_v9 = vld [vmem:[%s20686_s1 + $0xdc8] sm:$0xf0] }
 0x2ba   :  { %7663 = vmatpush.bf16.msra.mxu2 %v9885_v21  ;;  %v9954_v21 = vld [vmem:[%s20686_s1 + $0xb88] sm:$0xf0]  ;;  %v9853_v25 = vor.u32 %v12958_v49, %v9850_v8  ;;  %v10042_v8 = vld [vmem:[%s20686_s1 + $0xc38] sm:$0xf0] }
 0x2bb   :  { %7681 = vmatpush.bf16.msrb.mxu3 %v9909_v27  ;;  %v13012_v27 = vld [vmem:[%s20686_s1 + $0xc64] sm:$0xf]  ;;  %v9957_v4 = vor.u32 %v12984_v59, %v9954_v21  ;;  %v10178_v21 = vld [vmem:[%s20686_s1 + $0xd48] sm:$0xf0] }
 0x2bc   :  { %7694 = vmatpush.bf16.msrb.mxu0 %v9973_v34  ;;  %v7400_v34 = vadd.f32 %v18343_v54, %v1366_v56  ;;  %v9842_v54 = vld [vmem:[%s20686_s1 + $0xaa8] sm:$0xf0]  ;;  %v7412_v3 = vpop.f32.mrf.mxu2  ;;  %v13040_v59 = vld [vmem:[%s20686_s1 + $0xd44] sm:$0xf] }
 0x2bd   :  { %7656 = vmatpush.bf16.msrb.mxu1 %v9773_v40  ;;  %v10197_v40 = vor.u32 %v13044_v1, %v10194_v52  ;;  %v13030_v52 = vld [vmem:[%s20686_s1 + $0xcf4] sm:$0xf] }
 0x2be   :  { %7664 = vmatpush.bf16.msra.mxu2 %v9877_v62  ;;  %v10066_v62 = vld [vmem:[%s20686_s1 + $0xc68] sm:$0xf0]  ;;  %v7413_v28 = vadd.f32 %v7412_v3, %v7400_v34  ;;  %v13054_v34 = vld [vmem:[%s20686_s1 + $0xdb4] sm:$0xf] }
 0x2bf   :  { %7682 = vmatpush.bf16.msrb.mxu3 %v9901_v32  ;;  %v10069_v57 = vor.u32 %v13012_v27, %v10066_v62  ;;  %v13010_v32 = vld [vmem:[%s20686_s1 + $0xc54] sm:$0xf]  ;;  %v10170_v62 = vld [vmem:[%s20686_s1 + $0xd38] sm:$0xf0]  ;;  %v10130_v3 = vld [vmem:[%s20686_s1 + $0xce8] sm:$0xf0] }
 0x2c0   :  { %7695 = vmatpush.bf16.msrb.mxu0 %v9965_v36  ;;  %v10250_v36 = vld [vmem:[%s20686_s1 + $0xdd8] sm:$0xf0]  ;;  %v13038_v27 = vld [vmem:[%s20686_s1 + $0xd34] sm:$0xf] }
 0x2c1   :  { %7657 = vmatpush.bf16.msrb.mxu1 %v9765_v0  ;;  %v10050_v0 = vld [vmem:[%s20686_s1 + $0xc48] sm:$0xf0]  ;;  %v7451_v49 = vpop.f32.mrf.mxu1 }
 0x2c2   :  { %7665 = vmatpush.bf16.msra.mxu2 %v9869_v53  ;;  %v10058_v53 = vld [vmem:[%s20686_s1 + $0xc58] sm:$0xf0] }
 0x2c3   :  { %7683 = vmatpush.bf16.msrb.mxu3 %v9893_v46  ;;  %v10061_v12 = vor.u32 %v13010_v32, %v10058_v53  ;;  %v7426_v46 = vadd.f32 %v18375_v35, %v7413_v28  ;;  %v10181_v35 = vor.u32 %v13040_v59, %v10178_v21  ;;  %v10034_v32 = vld [vmem:[%s20686_s1 + $0xc28] sm:$0xf0]  ;;  %v13036_v53 = vld [vmem:[%s20686_s1 + $0xd24] sm:$0xf]  ;;  %v10154_v59 = vld [vmem:[%s20686_s1 + $0xd18] sm:$0xf0] }
 0x2c4   :  { %7658 = vmatmul.bf16.vlgmr.msrb.gmra.mxu1 %v15090_v24  ;;  %7696 = vmatpush.bf16.msrb.mxu0 %v9957_v4  ;;  %v9845_v24 = vor.u32 %v12956_v30, %v9842_v54  ;;  %v10138_v4 = vld [vmem:[%s20686_s1 + $0xcf8] sm:$0xf0]  ;;  %v7414_v45 = vpop.f32.mrf.mxu2  ;;  %v18562_v30 = vpop.f32.mrf.mxu0  ;;  %v13052_v28 = vld [vmem:[%s20686_s1 + $0xda4] sm:$0xf]  ;;  %v13026_v21 = vld [vmem:[%s20686_s1 + $0xcd4] sm:$0xf] }
 0x2c5   :  { %7702 = vmatpush.bf16.msra.mxu1 %v10077_v39  ;;  %v7439_v56 = vadd.f32 %v18402_v61, %v7426_v46  ;;  %v10053_v39 = vor.u32 %v13008_v55, %v10050_v0  ;;  %v9826_v61 = vld [vmem:[%s20686_s1 + $0xa88] sm:$0xf0]  ;;  %v10141_v54 = vor.u32 %v13030_v52, %v10138_v4  ;;  %v10026_v55 = vld [vmem:[%s20686_s1 + $0xc18] sm:$0xf0]  ;;  %v13034_v0 = vld [vmem:[%s20686_s1 + $0xd14] sm:$0xf] }
 0x2c6   :  { %7666 = vmatpush.bf16.msra.mxu2 %v9861_v5  ;;  %7684 = vmatmul.bf16.vlgmr.msrb.gmra.mxu3 %v15103_v31  ;;  %v12954_v31 = vld [vmem:[%s20686_s1 + $0xa94] sm:$0xf]  ;;  %v10253_v5 = vor.u32 %v13058_v22, %v10250_v36  ;;  %v10226_v22 = vld [vmem:[%s20686_s1 + $0xda8] sm:$0xf0]  ;;  %v10122_v46 = vld [vmem:[%s20686_s1 + $0xcd8] sm:$0xf0] }
 0x2c7   :  { %7728 = vmatpush.bf16.msra.mxu3 %v10205_v17  ;;  %7697 = vmatmul.bf16.vlgmr.msrb.gmra.mxu0 %v15120_v13  ;;  %v9837_v38 = vor.u32 %v12954_v31, %v9834_v6  ;;  %v12952_v13 = vld [vmem:[%s20686_s1 + $0xa84] sm:$0xf]  ;;  %v13006_v17 = vld [vmem:[%s20686_s1 + $0xc34] sm:$0xf]  ;;  %v18545_v1 = vadd.f32 %v7451_v49, %v7439_v56  ;;  %v10133_v6 = vor.u32 %v13028_v48, %v10130_v3  ;;  %v10218_v56 = vld [vmem:[%s20686_s1 + $0xd98] sm:$0xf0] }
 0x2c8   :  { %7741 = vmatpush.bf16.msra.mxu0 %v10269_v47  ;;  %v10245_v47 = vor.u32 %v13056_v60, %v10242_v9  ;;  %v10045_v29 = vor.u32 %v13006_v17, %v10042_v8  ;;  %v10157_v60 = vor.u32 %v13034_v0, %v10154_v59  ;;  %v13000_v9 = vld [vmem:[%s20686_s1 + $0xc04] sm:$0xf]  ;;  %v10146_v17 = vld [vmem:[%s20686_s1 + $0xd08] sm:$0xf0]  ;;  %v13110_v52 = vld [vmem:[%s20686_s1 + $0xf74] sm:$0xf] }
 0x2c9   :  { %7703 = vmatpush.bf16.msra.mxu1 %v10069_v57  ;;  %v10173_v57 = vor.u32 %v13038_v27, %v10170_v62  ;;  %v7453_v31 = vpop.f32.mrf.mxu1  ;;  %v13024_v49 = vld [vmem:[%s20686_s1 + $0xcc4] sm:$0xf]  ;;  %v10114_v8 = vld [vmem:[%s20686_s1 + $0xcc8] sm:$0xf0]  ;;  %v13078_v27 = vld [vmem:[%s20686_s1 + $0xe74] sm:$0xf] }
 0x2ca   :  { %7667 = vmatpush.bf16.msra.mxu2 %v9853_v25  ;;  %v9829_v25 = vor.u32 %v12952_v13, %v9826_v61  ;;  %v10125_v61 = vor.u32 %v13026_v21, %v10122_v46  ;;  %v10330_v62 = vld [vmem:[%s20686_s1 + $0xe78] sm:$0xf0]  ;;  %v13076_v3 = vld [vmem:[%s20686_s1 + $0xe64] sm:$0xf]  ;;  %v10514_v31 = vld [vmem:[%s20686_s1 + $0xfe8] sm:$0xf0] }
 0x2cb   :  { %7729 = vmatpush.bf16.msra.mxu3 %v10197_v40  ;;  %v13004_v40 = vld [vmem:[%s20686_s1 + $0xc24] sm:$0xf]  ;;  %v10458_v45 = vld [vmem:[%s20686_s1 + $0xf78] sm:$0xf0]  ;;  %v10098_v21 = vld [vmem:[%s20686_s1 + $0xca8] sm:$0xf0] }
 0x2cc   :  { %7742 = vmatpush.bf16.msra.mxu0 %v10261_v20  ;;  %v10237_v20 = vor.u32 %v13054_v34, %v10234_v33  ;;  %v10037_v36 = vor.u32 %v13004_v40, %v10034_v32  ;;  %v7492_v13 = vpop.f32.mrf.mxu0  ;;  %v10522_v40 = vld [vmem:[%s20686_s1 + $0xff8] sm:$0xf0]  ;;  %v10333_v32 = vor.u32 %v13078_v27, %v10330_v62  ;;  %v13020_v0 = vld [vmem:[%s20686_s1 + $0xca4] sm:$0xf]  ;;  %v13074_v46 = vld [vmem:[%s20686_s1 + $0xe54] sm:$0xf] }
 0x2cd   :  { %7704 = vmatpush.bf16.msra.mxu1 %v10061_v12  ;;  %v10165_v12 = vor.u32 %v13036_v53, %v10162_v42  ;;  %v13022_v53 = vld [vmem:[%s20686_s1 + $0xcb4] sm:$0xf]  ;;  %v10461_v42 = vor.u32 %v13110_v52, %v10458_v45  ;;  %v10106_v48 = vld [vmem:[%s20686_s1 + $0xcb8] sm:$0xf0]  ;;  %v13104_v27 = vld [vmem:[%s20686_s1 + $0xf44] sm:$0xf] }
 0x2ce   :  { %7668 = vmatpush.bf16.msra.mxu2 %v9845_v24  ;;  %v18579_v24 = vpop.f32.mrf.mxu3 }
 0x2cf   :  { %7730 = vmatpush.bf16.msra.mxu3 %v10189_v18  ;;  %v13002_v18 = vld [vmem:[%s20686_s1 + $0xc14] sm:$0xf] }
 0x2d0   :  { %7743 = vmatpush.bf16.msra.mxu0 %v10253_v5  ;;  %v10229_v5 = vor.u32 %v13052_v28, %v10226_v22  ;;  %v13108_v22 = vld [vmem:[%s20686_s1 + $0xf64] sm:$0xf] }
 0x2d1   :  { %7705 = vmatpush.bf16.msra.mxu1 %v10053_v39  ;;  %v10018_v39 = vld [vmem:[%s20686_s1 + $0xc08] sm:$0xf0] }
 0x2d2   :  { %7669 = vmatpush.bf16.msra.mxu2 %v9837_v38  ;;  %v13050_v38 = vld [vmem:[%s20686_s1 + $0xd94] sm:$0xf]  ;;  %v10021_v33 = vor.u32 %v13000_v9, %v10018_v39 }
 0x2d3   :  { %7731 = vmatpush.bf16.msra.mxu3 %v10181_v35  ;;  %v13032_v35 = vld [vmem:[%s20686_s1 + $0xd04] sm:$0xf]  ;;  %v10221_v4 = vor.u32 %v13050_v38, %v10218_v56  ;;  %v13106_v56 = vld [vmem:[%s20686_s1 + $0xf54] sm:$0xf] }
 0x2d4   :  { %7744 = vmatpush.bf16.msra.mxu0 %v10245_v47  ;;  %v13048_v47 = vld [vmem:[%s20686_s1 + $0xd84] sm:$0xf]  ;;  %v13122_v39 = vld [vmem:[%s20686_s1 + $0xfd4] sm:$0xf] }
 0x2d5   :  { %7706 = vmatpush.bf16.msra.mxu1 %v10045_v29  ;;  %v10149_v29 = vor.u32 %v13032_v35, %v10146_v17  ;;  %v10101_v35 = vor.u32 %v13020_v0, %v10098_v21  ;;  %v10090_v17 = vld [vmem:[%s20686_s1 + $0xc98] sm:$0xf0]  ;;  %v13100_v0 = vld [vmem:[%s20686_s1 + $0xf24] sm:$0xf] }
 0x2d6   :  { %7670 = vmatpush.bf16.msra.mxu2 %v9829_v25  ;;  %v10210_v25 = vld [vmem:[%s20686_s1 + $0xd88] sm:$0xf0]  ;;  %v7479_v34 = vpop.f32.mrf.mxu3  ;;  %v13092_v21 = vld [vmem:[%s20686_s1 + $0xee4] sm:$0xf] }
 0x2d7   :  { %7732 = vmatpush.bf16.msra.mxu3 %v10173_v57  ;;  %v13126_v57 = vld [vmem:[%s20686_s1 + $0xff4] sm:$0xf]  ;;  %v10213_v28 = vor.u32 %v13048_v47, %v10210_v25  ;;  %v13016_v25 = vld [vmem:[%s20686_s1 + $0xc84] sm:$0xf] }
 0x2d8   :  { %7745 = vmatpush.bf16.msra.mxu0 %v10237_v20  ;;  %v10322_v20 = vld [vmem:[%s20686_s1 + $0xe68] sm:$0xf0] }
 0x2d9   :  { %7671 = vmatmul.bf16.vlgmr.msra.gmra.mxu2 %v15107_v2  ;;  %7707 = vmatpush.bf16.msra.mxu1 %v10037_v36  ;;  %v10029_v2 = vor.u32 %v13002_v18, %v10026_v55  ;;  %v10450_v36 = vld [vmem:[%s20686_s1 + $0xf68] sm:$0xf0]  ;;  %v13124_v18 = vld [vmem:[%s20686_s1 + $0xfe4] sm:$0xf]  ;;  %v10325_v55 = vor.u32 %v13076_v3, %v10322_v20  ;;  %v13118_v20 = vld [vmem:[%s20686_s1 + $0xfb4] sm:$0xf] }
 0x2da   :  { %7715 = vmatpush.bf16.msrb.mxu2 %v10141_v54  ;;  %v10117_v54 = vor.u32 %v13024_v49, %v10114_v8  ;;  %v10453_v59 = vor.u32 %v13108_v22, %v10450_v36  ;;  %v13072_v49 = vld [vmem:[%s20686_s1 + $0xe44] sm:$0xf]  ;;  %v10306_v8 = vld [vmem:[%s20686_s1 + $0xe48] sm:$0xf0] }
 0x2db   :  { %7733 = vmatpush.bf16.msra.mxu3 %v10165_v12  ;;  %v10525_v12 = vor.u32 %v13126_v57, %v10522_v40  ;;  %v10309_v47 = vor.u32 %v13072_v49, %v10306_v8  ;;  %v10298_v57 = vld [vmem:[%s20686_s1 + $0xe38] sm:$0xf0]  ;;  %v13102_v40 = vld [vmem:[%s20686_s1 + $0xf34] sm:$0xf] }
 0x2dc   :  { %7746 = vmatpush.bf16.msra.mxu0 %v10229_v5  ;;  %v10314_v5 = vld [vmem:[%s20686_s1 + $0xe58] sm:$0xf0]  ;;  %v7464_v38 = vpop.f32.mrf.mxu2  ;;  %v13114_v8 = vld [vmem:[%s20686_s1 + $0xf94] sm:$0xf] }
 0x2dd   :  { %7708 = vmatpush.bf16.msra.mxu1 %v10029_v2  ;;  %v10442_v2 = vld [vmem:[%s20686_s1 + $0xf58] sm:$0xf0]  ;;  %v7465_v9 = vadd.f32 %v7464_v38, %v18545_v1  ;;  %v10317_v13 = vor.u32 %v13074_v46, %v10314_v5  ;;  %v10386_v46 = vld [vmem:[%s20686_s1 + $0xee8] sm:$0xf0]  ;;  %v13116_v38 = vld [vmem:[%s20686_s1 + $0xfa4] sm:$0xf] }
 0x2de   :  { %7716 = vmatpush.bf16.msrb.mxu2 %v10133_v6  ;;  %v10109_v6 = vor.u32 %v13022_v53, %v10106_v48  ;;  %v13094_v53 = vld [vmem:[%s20686_s1 + $0xef4] sm:$0xf] }
 0x2df   :  { %7734 = vmatpush.bf16.msra.mxu3 %v10157_v60  ;;  %v10517_v60 = vor.u32 %v13124_v18, %v10514_v31  ;;  %v7478_v1 = vadd.f32 %v18579_v24, %v7465_v9  ;;  %v10434_v24 = vld [vmem:[%s20686_s1 + $0xf48] sm:$0xf0] }
 0x2e0   :  { %7747 = vmatpush.bf16.msra.mxu0 %v10221_v4  ;;  %v13120_v4 = vld [vmem:[%s20686_s1 + $0xfc4] sm:$0xf] }
 0x2e1   :  { %7709 = vmatpush.bf16.msra.mxu1 %v10021_v33  ;;  %v7491_v52 = vadd.f32 %v18562_v30, %v7478_v1  ;;  %v10082_v30 = vld [vmem:[%s20686_s1 + $0xc88] sm:$0xf0]  ;;  %v7503_v34 = vpop.f32.mrf.mxu1  ;;  %v10437_v33 = vor.u32 %v13104_v27, %v10434_v24  ;;  %v10410_v1 = vld [vmem:[%s20686_s1 + $0xf18] sm:$0xf0] }
 0x2e2   :  { %7717 = vmatpush.bf16.msrb.mxu2 %v10125_v61  ;;  %v13018_v61 = vld [vmem:[%s20686_s1 + $0xc94] sm:$0xf]  ;;  %v10085_v22 = vor.u32 %v13016_v25, %v10082_v30  ;;  %v10474_v27 = vld [vmem:[%s20686_s1 + $0xf98] sm:$0xf0]  ;;  %v13088_v25 = vld [vmem:[%s20686_s1 + $0xec4] sm:$0xf] }
 0x2e3   :  { %7735 = vmatpush.bf16.msra.mxu3 %v10149_v29  ;;  %v10093_v45 = vor.u32 %v13018_v61, %v10090_v17  ;;  %v13070_v29 = vld [vmem:[%s20686_s1 + $0xe34] sm:$0xf]  ;;  %v10378_v17 = vld [vmem:[%s20686_s1 + $0xed8] sm:$0xf0]  ;;  %v10370_v30 = vld [vmem:[%s20686_s1 + $0xec8] sm:$0xf0] }
 0x2e4   :  { %7748 = vmatpush.bf16.msra.mxu0 %v10213_v28  ;;  %7710 = vmatmul.bf16.vlgmr.msra.gmra.mxu1 %v15318_v10  ;;  %v10506_v10 = vld [vmem:[%s20686_s1 + $0xfd8] sm:$0xf0]  ;;  %v7466_v48 = vpop.f32.mrf.mxu2  ;;  %v10301_v36 = vor.u32 %v13070_v29, %v10298_v57  ;;  %v13174_v57 = vld [vmem:[%s20686_s1 + $0x1174] sm:$0xf] }
 0x2e5   :  { %7754 = vmatpush.bf16.msrb.mxu1 %v10333_v32  ;;  %v10509_v62 = vor.u32 %v13122_v39, %v10506_v10  ;;  %v10426_v32 = vld [vmem:[%s20686_s1 + $0xf38] sm:$0xf0]  ;;  %v10389_v39 = vor.u32 %v13092_v21, %v10386_v46  ;;  %v13066_v10 = vld [vmem:[%s20686_s1 + $0xe14] sm:$0xf]  ;;  %v10706_v21 = vld [vmem:[%s20686_s1 + $0x1168] sm:$0xf0] }
 0x2e6   :  { %7718 = vmatpush.bf16.msrb.mxu2 %v10117_v54  ;;  %7736 = vmatmul.bf16.vlgmr.msra.gmra.mxu3 %v15331_v51  ;;  %v10445_v51 = vor.u32 %v13106_v56, %v10442_v2  ;;  %v18747_v54 = vadd.f32 %v7503_v34, %v7491_v52  ;;  %v10490_v28 = vld [vmem:[%s20686_s1 + $0xfb8] sm:$0xf0]  ;;  %v10429_v18 = vor.u32 %v13102_v40, %v10426_v32  ;;  %v10482_v56 = vld [vmem:[%s20686_s1 + $0xfa8] sm:$0xf0]  ;;  %v13142_v34 = vld [vmem:[%s20686_s1 + $0x1074] sm:$0xf] }
 0x2e7   :  { %7780 = vmatpush.bf16.msrb.mxu3 %v10461_v42  ;;  %7749 = vmatmul.bf16.vlgmr.msra.gmra.mxu0 %v15348_v14  ;;  %v10498_v14 = vld [vmem:[%s20686_s1 + $0xfc8] sm:$0xf0]  ;;  %v10394_v42 = vld [vmem:[%s20686_s1 + $0xef8] sm:$0xf0]  ;;  %v10493_v5 = vor.u32 %v13118_v20, %v10490_v28  ;;  %v10485_v49 = vor.u32 %v13116_v38, %v10482_v56  ;;  %v10373_v20 = vor.u32 %v13088_v25, %v10370_v30  ;;  %v13190_v28 = vld [vmem:[%s20686_s1 + $0x11f4] sm:$0xf] }
 0x2e8   :  { %7793 = vmatpush.bf16.msrb.mxu0 %v10525_v12  ;;  %v10501_v3 = vor.u32 %v13120_v4, %v10498_v14  ;;  %v18764_v12 = vpop.f32.mrf.mxu0  ;;  %v10397_v31 = vor.u32 %v13094_v53, %v10394_v42  ;;  %v10586_v29 = vld [vmem:[%s20686_s1 + $0x1078] sm:$0xf0]  ;;  %v13112_v53 = vld [vmem:[%s20686_s1 + $0xf84] sm:$0xf]  ;;  %v10466_v42 = vld [vmem:[%s20686_s1 + $0xf88] sm:$0xf0] }
 0x2e9   :  { %7755 = vmatpush.bf16.msrb.mxu1 %v10325_v55  ;;  %v10290_v55 = vld [vmem:[%s20686_s1 + $0xe28] sm:$0xf0]  ;;  %v7505_v61 = vpop.f32.mrf.mxu1  ;;  %v10714_v40 = vld [vmem:[%s20686_s1 + $0x1178] sm:$0xf0]  ;;  %v10469_v46 = vor.u32 %v13112_v53, %v10466_v42  ;;  %v13188_v56 = vld [vmem:[%s20686_s1 + $0x11e4] sm:$0xf] }
 0x2ea   :  { %7719 = vmatpush.bf16.msrb.mxu2 %v10109_v6  ;;  %v13068_v6 = vld [vmem:[%s20686_s1 + $0xe24] sm:$0xf]  ;;  %v10570_v61 = vld [vmem:[%s20686_s1 + $0x1058] sm:$0xf0]  ;;  %v13134_v42 = vld [vmem:[%s20686_s1 + $0x1034] sm:$0xf] }
 0x2eb   :  { %7781 = vmatpush.bf16.msrb.mxu3 %v10453_v59  ;;  %v10418_v59 = vld [vmem:[%s20686_s1 + $0xf28] sm:$0xf0]  ;;  %v10293_v2 = vor.u32 %v13068_v6, %v10290_v55  ;;  %v10362_v6 = vld [vmem:[%s20686_s1 + $0xeb8] sm:$0xf0]  ;;  %v13140_v55 = vld [vmem:[%s20686_s1 + $0x1064] sm:$0xf] }
 0x2ec   :  { %7794 = vmatpush.bf16.msrb.mxu0 %v10517_v60  ;;  %v18790_v60 = vpop.f32.mrf.mxu3  ;;  %v10421_v9 = vor.u32 %v13100_v0, %v10418_v59  ;;  %v10578_v0 = vld [vmem:[%s20686_s1 + $0x1068] sm:$0xf0]  ;;  %v13172_v59 = vld [vmem:[%s20686_s1 + $0x1164] sm:$0xf]  ;;  %v20745_v25 = vld [vmem:[#allocation6_spill] sm:$0xff] }
 0x2ed   :  { %7756 = vmatpush.bf16.msrb.mxu1 %v10317_v13  ;;  %v13098_v13 = vld [vmem:[%s20686_s1 + $0xf14] sm:$0xf]  ;;  %v13080_v53 = vld [vmem:[%s20686_s1 + $0xe84] sm:$0xf] }
 0x2ee   :  { %7720 = vmatpush.bf16.msrb.mxu2 %v10101_v35  ;;  %v10282_v35 = vld [vmem:[%s20686_s1 + $0xe18] sm:$0xf0]  ;;  %v10413_v4 = vor.u32 %v13098_v13, %v10410_v1  ;;  %v13138_v13 = vld [vmem:[%s20686_s1 + $0x1054] sm:$0xf] }
 0x2ef   :  { %7782 = vmatpush.bf16.msrb.mxu3 %v10445_v51  ;;  %v13090_v51 = vld [vmem:[%s20686_s1 + $0xed4] sm:$0xf]  ;;  %v10285_v24 = vor.u32 %v13066_v10, %v10282_v35  ;;  %v13084_v10 = vld [vmem:[%s20686_s1 + $0xea4] sm:$0xf]  ;;  %v10354_v35 = vld [vmem:[%s20686_s1 + $0xea8] sm:$0xf0] }
 0x2f0   :  { %7795 = vmatpush.bf16.msrb.mxu0 %v10509_v62  ;;  %v13064_v62 = vld [vmem:[%s20686_s1 + $0xe04] sm:$0xf]  ;;  %v7544_v52 = vpop.f32.mrf.mxu0  ;;  %v10381_v14 = vor.u32 %v13090_v51, %v10378_v17  ;;  %v13170_v1 = vld [vmem:[%s20686_s1 + $0x1154] sm:$0xf]  ;;  %v10698_v51 = vld [vmem:[%s20686_s1 + $0x1158] sm:$0xf0] }
 0x2f1   :  { %7757 = vmatpush.bf16.msrb.mxu1 %v10309_v47  ;;  %v10402_v47 = vld [vmem:[%s20686_s1 + $0xf08] sm:$0xf0]  ;;  %v10701_v52 = vor.u32 %v13170_v1, %v10698_v51 }
 0x2f2   :  { %7721 = vmatpush.bf16.msrb.mxu2 %v10093_v45  ;;  %v13096_v45 = vld [vmem:[%s20686_s1 + $0xf04] sm:$0xf]  ;;  %v10738_v1 = vld [vmem:[%s20686_s1 + $0x11a8] sm:$0xf0] }
 0x2f3   :  { %7783 = vmatpush.bf16.msrb.mxu3 %v10437_v33  ;;  %v10477_v33 = vor.u32 %v13114_v8, %v10474_v27  ;;  %v10357_v8 = vor.u32 %v13084_v10, %v10354_v35  ;;  %v13186_v27 = vld [vmem:[%s20686_s1 + $0x11d4] sm:$0xf]  ;;  %v10642_v10 = vld [vmem:[%s20686_s1 + $0x10e8] sm:$0xf0] }
 0x2f4   :  { %7796 = vmatpush.bf16.msrb.mxu0 %v10501_v3  ;;  %v7531_v48 = vpop.f32.mrf.mxu3  ;;  %v10405_v3 = vor.u32 %v13096_v45, %v10402_v47  ;;  %v13168_v45 = vld [vmem:[%s20686_s1 + $0x1144] sm:$0xf]  ;;  %v10690_v47 = vld [vmem:[%s20686_s1 + $0x1148] sm:$0xf0] }
 0x2f5   :  { %7758 = vmatpush.bf16.msrb.mxu1 %v10301_v36  ;;  %v10589_v36 = vor.u32 %v13142_v34, %v10586_v29  ;;  %v10754_v29 = vld [vmem:[%s20686_s1 + $0x11c8] sm:$0xf0] }
 0x2f6   :  { %7722 = vmatpush.bf16.msrb.mxu2 %v10085_v22  ;;  %v10778_v22 = vld [vmem:[%s20686_s1 + $0x11f8] sm:$0xf0] }
 0x2f7   :  { %7784 = vmatpush.bf16.msrb.mxu3 %v10429_v18  ;;  %v10717_v18 = vor.u32 %v13174_v57, %v10714_v40 }
 0x2f8   :  { %7797 = vmatpush.bf16.msrb.mxu0 %v10493_v5  ;;  %v10781_v5 = vor.u32 %v13190_v28, %v10778_v22  ;;  %v10682_v28 = vld [vmem:[%s20686_s1 + $0x1138] sm:$0xf0]  ;;  %v13158_v22 = vld [vmem:[%s20686_s1 + $0x10f4] sm:$0xf] }
 0x2f9   :  { %7723 = vmatmul.bf16.vlgmr.msrb.gmra.mxu2 %v15335_v15  ;;  %7759 = vmatpush.bf16.msrb.mxu1 %v10293_v2  ;;  %v10274_v15 = vld [vmem:[%s20686_s1 + $0xe08] sm:$0xf0] }
 0x2fa   :  { %7767 = vmatpush.bf16.msra.mxu2 %v10397_v31  ;;  %v10277_v32 = vor.u32 %v13064_v62, %v10274_v15  ;;  %v13086_v31 = vld [vmem:[%s20686_s1 + $0xeb4] sm:$0xf]  ;;  %v10770_v2 = vld [vmem:[%s20686_s1 + $0x11e8] sm:$0xf0]  ;;  %v10573_v62 = vor.u32 %v13138_v13, %v10570_v61  ;;  %v13180_v61 = vld [vmem:[%s20686_s1 + $0x11a4] sm:$0xf] }
 0x2fb   :  { %7785 = vmatpush.bf16.msrb.mxu3 %v10421_v9  ;;  %v10365_v38 = vor.u32 %v13086_v31, %v10362_v6  ;;  %v10581_v9 = vor.u32 %v13140_v55, %v10578_v0  ;;  %v10562_v15 = vld [vmem:[%s20686_s1 + $0x1048] sm:$0xf0]  ;;  %v13182_v55 = vld [vmem:[%s20686_s1 + $0x11b4] sm:$0xf]  ;;  %v10746_v0 = vld [vmem:[%s20686_s1 + $0x11b8] sm:$0xf0] }
 0x2fc   :  { %7798 = vmatpush.bf16.msrb.mxu0 %v10485_v49  ;;  %v7516_v17 = vpop.f32.mrf.mxu2  ;;  %v10773_v49 = vor.u32 %v13188_v56, %v10770_v2  ;;  %v10546_v56 = vld [vmem:[%s20686_s1 + $0x1028] sm:$0xf0]  ;;  %v13164_v2 = vld [vmem:[%s20686_s1 + $0x1124] sm:$0xf]  ;;  %v10749_v35 = vor.u32 %v13182_v55, %v10746_v0 }
 0x2fd   :  { %7760 = vmatpush.bf16.msrb.mxu1 %v10285_v24  ;;  %v10762_v24 = vld [vmem:[%s20686_s1 + $0x11d8] sm:$0xf0] }
 0x2fe   :  { %7768 = vmatpush.bf16.msra.mxu2 %v10389_v39  ;;  %v10709_v39 = vor.u32 %v13172_v59, %v10706_v21  ;;  %v10765_v30 = vor.u32 %v13186_v27, %v10762_v24  ;;  %v10538_v27 = vld [vmem:[%s20686_s1 + $0x1018] sm:$0xf0]  ;;  %v13162_v24 = vld [vmem:[%s20686_s1 + $0x1114] sm:$0xf] }
 0x2ff   :  { %7786 = vmatpush.bf16.msrb.mxu3 %v10413_v4  ;;  %v13136_v4 = vld [vmem:[%s20686_s1 + $0x1044] sm:$0xf] }
 0x300   :  { %7799 = vmatpush.bf16.msrb.mxu0 %v10477_v33  ;;  %v13184_v33 = vld [vmem:[%s20686_s1 + $0x11c4] sm:$0xf]  ;;  %v10565_v40 = vor.u32 %v13136_v4, %v10562_v15  ;;  %v10741_v4 = vor.u32 %v13180_v61, %v10738_v1  ;;  %v10730_v15 = vld [vmem:[%s20686_s1 + $0x1198] sm:$0xf0]  ;;  %v11026_v61 = vld [vmem:[%s20686_s1 + $0x13e8] sm:$0xf0] }
 0x301   :  { %7761 = vmatpush.bf16.msrb.mxu1 %v10277_v32  ;;  %v7555_v57 = vpop.f32.mrf.mxu1  ;;  %v10693_v32 = vor.u32 %v13168_v45, %v10690_v47  ;;  %v10757_v31 = vor.u32 %v13184_v33, %v10754_v29  ;;  %v10658_v29 = vld [vmem:[%s20686_s1 + $0x1108] sm:$0xf0] }
 0x302   :  { %7769 = vmatpush.bf16.msra.mxu2 %v10381_v14 }
 0x303   :  { %7787 = vmatpush.bf16.msrb.mxu3 %v10405_v3  ;;  %v10554_v3 = vld [vmem:[%s20686_s1 + $0x1038] sm:$0xf0] }
 0x304   :  { %7762 = vmatmul.bf16.vlgmr.msrb.gmra.mxu1 %v15544_v11  ;;  %7800 = vmatpush.bf16.msrb.mxu0 %v10469_v46  ;;  %v7517_v11 = vadd.f32 %v7516_v17, %v18747_v54  ;;  %v10346_v54 = vld [vmem:[%s20686_s1 + $0xe98] sm:$0xf0]  ;;  %v10557_v59 = vor.u32 %v13134_v42, %v10554_v3  ;;  %v13132_v46 = vld [vmem:[%s20686_s1 + $0x1024] sm:$0xf] }
 0x305   :  { %7806 = vmatpush.bf16.msra.mxu1 %v10589_v36  ;;  %v10650_v36 = vld [vmem:[%s20686_s1 + $0x10f8] sm:$0xf0]  ;;  %v10549_v51 = vor.u32 %v13132_v46, %v10546_v56  ;;  %v10834_v56 = vld [vmem:[%s20686_s1 + $0x1268] sm:$0xf0] }
 0x306   :  { %7770 = vmatpush.bf16.msra.mxu2 %v10373_v20  ;;  %7788 = vmatmul.bf16.vlgmr.msrb.gmra.mxu3 %v15557_v19  ;;  %v13082_v19 = vld [vmem:[%s20686_s1 + $0xe94] sm:$0xf]  ;;  %v7530_v14 = vadd.f32 %v18790_v60, %v7517_v11  ;;  %v10970_v3 = vld [vmem:[%s20686_s1 + $0x1378] sm:$0xf0] }
 0x307   :  { %7832 = vmatpush.bf16.msra.mxu3 %v10717_v18  ;;  %7801 = vmatmul.bf16.vlgmr.msrb.gmra.mxu0 %v20745_v25  ;;  %v10349_v60 = vor.u32 %v13082_v19, %v10346_v54  ;;  %v13166_v20 = vld [vmem:[%s20686_s1 + $0x1134] sm:$0xf]  ;;  %v7518_v18 = vpop.f32.mrf.mxu2  ;;  %v10634_v54 = vld [vmem:[%s20686_s1 + $0x10d8] sm:$0xf0]  ;;  %v13128_v25 = vld [vmem:[%s20686_s1 + $0x1004] sm:$0xf] }
 0x308   :  { %7845 = vmatpush.bf16.msra.mxu0 %v10781_v5  ;;  %v7543_v34 = vadd.f32 %v18764_v12, %v7530_v14  ;;  %v10338_v12 = vld [vmem:[%s20686_s1 + $0xe88] sm:$0xf0]  ;;  %v10685_v21 = vor.u32 %v13166_v20, %v10682_v28  ;;  %v18972_v5 = vpop.f32.mrf.mxu0  ;;  %v13154_v19 = vld [vmem:[%s20686_s1 + $0x10d4] sm:$0xf]  ;;  %v13176_v20 = vld [vmem:[%s20686_s1 + $0x1184] sm:$0xf] }
 0x309   :  { %7807 = vmatpush.bf16.msra.mxu1 %v10581_v9  ;;  %v10341_v6 = vor.u32 %v13080_v53, %v10338_v12  ;;  %v10674_v9 = vld [vmem:[%s20686_s1 + $0x1128] sm:$0xf0]  ;;  %v18989_v13 = vpop.f32.mrf.mxu3  ;;  %v7557_v11 = vpop.f32.mrf.mxu1  ;;  %v13178_v14 = vld [vmem:[%s20686_s1 + $0x1194] sm:$0xf]  ;;  %v10637_v33 = vor.u32 %v13154_v19, %v10634_v54  ;;  %v10842_v53 = vld [vmem:[%s20686_s1 + $0x1278] sm:$0xf0] }
 0x30a   :  { %7771 = vmatpush.bf16.msra.mxu2 %v10365_v38  ;;  %v18946_v48 = vadd.f32 %v7555_v57, %v7543_v34  ;;  %v10653_v38 = vor.u32 %v13158_v22, %v10650_v36  ;;  %v10677_v17 = vor.u32 %v13164_v2, %v10674_v9  ;;  %v13160_v34 = vld [vmem:[%s20686_s1 + $0x1104] sm:$0xf]  ;;  %v13238_v12 = vld [vmem:[%s20686_s1 + $0x1374] sm:$0xf]  ;;  %v10733_v42 = vor.u32 %v13178_v14, %v10730_v15  ;;  %v10722_v28 = vld [vmem:[%s20686_s1 + $0x1188] sm:$0xf0] }
 0x30b   :  { %7833 = vmatpush.bf16.msra.mxu3 %v10709_v39  ;;  %v13156_v39 = vld [vmem:[%s20686_s1 + $0x10e4] sm:$0xf]  ;;  %v10661_v18 = vor.u32 %v13160_v34, %v10658_v29  ;;  %v10618_v46 = vld [vmem:[%s20686_s1 + $0x10b8] sm:$0xf0]  ;;  %v10725_v2 = vor.u32 %v13176_v20, %v10722_v28  ;;  %v10610_v11 = vld [vmem:[%s20686_s1 + $0x10a8] sm:$0xf0] }
 0x30c   :  { %7846 = vmatpush.bf16.msra.mxu0 %v10773_v49  ;;  %v13130_v49 = vld [vmem:[%s20686_s1 + $0x1014] sm:$0xf]  ;;  %v13152_v57 = vld [vmem:[%s20686_s1 + $0x10c4] sm:$0xf]  ;;  %v10954_v19 = vld [vmem:[%s20686_s1 + $0x1358] sm:$0xf0] }
 0x30d   :  { %7808 = vmatpush.bf16.msra.mxu1 %v10573_v62  ;;  %v10666_v62 = vld [vmem:[%s20686_s1 + $0x1118] sm:$0xf0]  ;;  %v10541_v45 = vor.u32 %v13130_v49, %v10538_v27  ;;  %v13236_v9 = vld [vmem:[%s20686_s1 + $0x1364] sm:$0xf]  ;;  %v20748_v14 = vld [vmem:[#allocation8_spill] sm:$0xff] }
 0x30e   :  { %7772 = vmatpush.bf16.msra.mxu2 %v10357_v8  ;;  %v10645_v8 = vor.u32 %v13156_v39, %v10642_v10  ;;  %v10669_v47 = vor.u32 %v13162_v24, %v10666_v62  ;;  %v10962_v39 = vld [vmem:[%s20686_s1 + $0x1368] sm:$0xf0]  ;;  %v10826_v27 = vld [vmem:[%s20686_s1 + $0x1258] sm:$0xf0]  ;;  %v20747_v24 = vld [vmem:[#allocation7_spill] sm:$0xff] }
 0x30f   :  { %7834 = vmatpush.bf16.msra.mxu3 %v10701_v52  ;;  %v20746_v52 = vld [vmem:[#allocation5_spill] sm:$0xff]  ;;  %v10965_v49 = vor.u32 %v13236_v9, %v10962_v39  ;;  %v10818_v29 = vld [vmem:[%s20686_s1 + $0x1248] sm:$0xf0]  ;;  %v13144_v28 = vld [vmem:[%s20686_s1 + $0x1084] sm:$0xf] }
 0x310   :  { %7847 = vmatpush.bf16.msra.mxu0 %v10765_v30  ;;  %v10530_v30 = vld [vmem:[%s20686_s1 + $0x1008] sm:$0xf0]  ;;  %v13250_v15 = vld [vmem:[%s20686_s1 + $0x13d4] sm:$0xf] }
 0x311   :  { %7809 = vmatpush.bf16.msra.mxu1 %v10565_v40  ;;  %v10626_v40 = vld [vmem:[%s20686_s1 + $0x10c8] sm:$0xf0]  ;;  %v7583_v22 = vpop.f32.mrf.mxu3  ;;  %v10533_v36 = vor.u32 %v13128_v25, %v10530_v30  ;;  %v13146_v30 = vld [vmem:[%s20686_s1 + $0x1094] sm:$0xf] }
 0x312   :  { %7773 = vmatpush.bf16.msra.mxu2 %v10349_v60  ;;  %v7596_v60 = vpop.f32.mrf.mxu0  ;;  %v10629_v55 = vor.u32 %v13152_v57, %v10626_v40  ;;  %v20749_v57 = vld [vmem:[#allocation10_spill] sm:$0xff]  ;;  %v13232_v40 = vld [vmem:[%s20686_s1 + $0x1344] sm:$0xf] }
 0x313   :  { %7835 = vmatpush.bf16.msra.mxu3 %v10693_v32  ;;  %v13206_v32 = vld [vmem:[%s20686_s1 + $0x1274] sm:$0xf]  ;;  %v10602_v60 = vld [vmem:[%s20686_s1 + $0x1098] sm:$0xf0] }
 0x314   :  { %7848 = vmatpush.bf16.msra.mxu0 %v10757_v31  ;;  %v13254_v31 = vld [vmem:[%s20686_s1 + $0x13f4] sm:$0xf]  ;;  %v10845_v0 = vor.u32 %v13206_v32, %v10842_v53 }
 0x315   :  { %7810 = vmatpush.bf16.msra.mxu1 %v10557_v59  ;;  %v13150_v59 = vld [vmem:[%s20686_s1 + $0x10b4] sm:$0xf] }
 0x316   :  { %7774 = vmatpush.bf16.msra.mxu2 %v10341_v6  ;;  %v11034_v6 = vld [vmem:[%s20686_s1 + $0x13f8] sm:$0xf0]  ;;  %v10621_v1 = vor.u32 %v13150_v59, %v10618_v46 }
 0x317   :  { %7836 = vmatpush.bf16.msra.mxu3 %v10685_v21  ;;  %v10973_v21 = vor.u32 %v13238_v12, %v10970_v3  ;;  %v11037_v10 = vor.u32 %v13254_v31, %v11034_v6  ;;  %v13248_v12 = vld [vmem:[%s20686_s1 + $0x13c4] sm:$0xf]  ;;  %v10605_v3 = vor.u32 %v13146_v30, %v10602_v60  ;;  %v10810_v31 = vld [vmem:[%s20686_s1 + $0x1238] sm:$0xf0]  ;;  %v13230_v6 = vld [vmem:[%s20686_s1 + $0x1334] sm:$0xf] }
 0x318   :  { %7849 = vmatpush.bf16.msra.mxu0 %v10749_v35  ;;  %v13252_v35 = vld [vmem:[%s20686_s1 + $0x13e4] sm:$0xf]  ;;  %v10906_v59 = vld [vmem:[%s20686_s1 + $0x12f8] sm:$0xf0]  ;;  %v13242_v60 = vld [vmem:[%s20686_s1 + $0x1394] sm:$0xf] }
 0x319   :  { %7775 = vmatmul.bf16.vlgmr.msra.gmra.mxu2 %v20746_v52  ;;  %7811 = vmatpush.bf16.msra.mxu1 %v10549_v51  ;;  %v13234_v52 = vld [vmem:[%s20686_s1 + $0x1354] sm:$0xf]  ;;  %v11029_v54 = vor.u32 %v13252_v35, %v11026_v61  ;;  %v13196_v61 = vld [vmem:[%s20686_s1 + $0x1224] sm:$0xf]  ;;  %v10890_v30 = vld [vmem:[%s20686_s1 + $0x12d8] sm:$0xf0] }
 0x31a   :  { %7819 = vmatpush.bf16.msrb.mxu2 %v10653_v38  ;;  %v13204_v38 = vld [vmem:[%s20686_s1 + $0x1264] sm:$0xf]  ;;  %v10957_v34 = vor.u32 %v13234_v52, %v10954_v19 }
 0x31b   :  { %7837 = vmatpush.bf16.msra.mxu3 %v10677_v17  ;;  %v10837_v51 = vor.u32 %v13204_v38, %v10834_v56  ;;  %v13148_v17 = vld [vmem:[%s20686_s1 + $0x10a4] sm:$0xf]  ;;  %v13246_v38 = vld [vmem:[%s20686_s1 + $0x13b4] sm:$0xf]  ;;  %v11002_v56 = vld [vmem:[%s20686_s1 + $0x13b8] sm:$0xf0] }
 0x31c   :  { %7850 = vmatpush.bf16.msra.mxu0 %v10741_v4  ;;  %v7568_v62 = vpop.f32.mrf.mxu2 }
 0x31d   :  { %7812 = vmatpush.bf16.msra.mxu1 %v10541_v45  ;;  %v7569_v4 = vadd.f32 %v7568_v62, %v18946_v48  ;;  %v11018_v45 = vld [vmem:[%s20686_s1 + $0x13d8] sm:$0xf0] }
 0x31e   :  { %7820 = vmatpush.bf16.msrb.mxu2 %v10645_v8  ;;  %v13202_v8 = vld [vmem:[%s20686_s1 + $0x1254] sm:$0xf]  ;;  %v11021_v32 = vor.u32 %v13250_v15, %v11018_v45 }
 0x31f   :  { %7838 = vmatpush.bf16.msra.mxu3 %v10669_v47  ;;  %v10613_v47 = vor.u32 %v13148_v17, %v10610_v11  ;;  %v10829_v25 = vor.u32 %v13202_v8, %v10826_v27  ;;  %v7582_v48 = vadd.f32 %v18989_v13, %v7569_v4  ;;  %v10946_v13 = vld [vmem:[%s20686_s1 + $0x1348] sm:$0xf0]  ;;  %v11005_v8 = vor.u32 %v13246_v38, %v11002_v56  ;;  %v13244_v27 = vld [vmem:[%s20686_s1 + $0x13a4] sm:$0xf]  ;;  %v13194_v4 = vld [vmem:[%s20686_s1 + $0x1214] sm:$0xf] }
 0x320   :  { %7851 = vmatpush.bf16.msra.mxu0 %v10733_v42  ;;  %v11010_v42 = vld [vmem:[%s20686_s1 + $0x13c8] sm:$0xf0]  ;;  %v13226_v15 = vld [vmem:[%s20686_s1 + $0x1314] sm:$0xf] }
 0x321   :  { %7813 = vmatpush.bf16.msra.mxu1 %v10533_v36  ;;  %v19136_v53 = vadd.f32 %v18972_v5, %v7582_v48  ;;  %v10594_v5 = vld [vmem:[%s20686_s1 + $0x1088] sm:$0xf0]  ;;  %v19150_v22 = vpop.f32.mrf.mxu1  ;;  %v10949_v36 = vor.u32 %v13232_v40, %v10946_v13  ;;  %v11013_v46 = vor.u32 %v13248_v12, %v11010_v42  ;;  %v13224_v42 = vld [vmem:[%s20686_s1 + $0x1304] sm:$0xf]  ;;  %v13318_v56 = vld [vmem:[%s20686_s1 + $0x15f4] sm:$0xf] }
 0x322   :  { %7821 = vmatpush.bf16.msrb.mxu2 %v10637_v33  ;;  %v13200_v33 = vld [vmem:[%s20686_s1 + $0x1244] sm:$0xf]  ;;  %v10930_v17 = vld [vmem:[%s20686_s1 + $0x1328] sm:$0xf0] }
 0x323   :  { %7839 = vmatpush.bf16.msra.mxu3 %v10661_v18  ;;  %v10821_v20 = vor.u32 %v13200_v33, %v10818_v29  ;;  %v13198_v18 = vld [vmem:[%s20686_s1 + $0x1234] sm:$0xf]  ;;  %v10898_v11 = vld [vmem:[%s20686_s1 + $0x12e8] sm:$0xf0]  ;;  %v10986_v33 = vld [vmem:[%s20686_s1 + $0x1398] sm:$0xf0] }
 0x324   :  { %7852 = vmatpush.bf16.msra.mxu0 %v10725_v2  ;;  %7814 = vmatmul.bf16.vlgmr.msra.gmra.mxu1 %v20747_v24  ;;  %v10597_v2 = vor.u32 %v13144_v28, %v10594_v5  ;;  %v10813_v9 = vor.u32 %v13198_v18, %v10810_v31  ;;  %v19176_v39 = vpop.f32.mrf.mxu0  ;;  %v10994_v24 = vld [vmem:[%s20686_s1 + $0x13a8] sm:$0xf0]  ;;  %v13270_v5 = vld [vmem:[%s20686_s1 + $0x1474] sm:$0xf]  ;;  %v11098_v18 = vld [vmem:[%s20686_s1 + $0x1478] sm:$0xf0] }
 0x325   :  { %7858 = vmatpush.bf16.msrb.mxu1 %v10845_v0  ;;  %v13222_v0 = vld [vmem:[%s20686_s1 + $0x12f4] sm:$0xf]  ;;  %v10997_v48 = vor.u32 %v13244_v27, %v10994_v24  ;;  %v10786_v12 = vld [vmem:[%s20686_s1 + $0x1208] sm:$0xf0]  ;;  %v13316_v24 = vld [vmem:[%s20686_s1 + $0x15e4] sm:$0xf] }
 0x326   :  { %7822 = vmatpush.bf16.msrb.mxu2 %v10629_v55  ;;  %7840 = vmatmul.bf16.vlgmr.msra.gmra.mxu3 %v20748_v14  ;;  %v10938_v55 = vld [vmem:[%s20686_s1 + $0x1338] sm:$0xf0]  ;;  %v10909_v35 = vor.u32 %v13222_v0, %v10906_v59  ;;  %v10882_v28 = vld [vmem:[%s20686_s1 + $0x12c8] sm:$0xf0]  ;;  %v13302_v31 = vld [vmem:[%s20686_s1 + $0x1574] sm:$0xf] }
 0x327   :  { %7884 = vmatpush.bf16.msrb.mxu3 %v10973_v21  ;;  %7853 = vmatmul.bf16.vlgmr.msra.gmra.mxu0 %v20749_v57  ;;  %v7570_v21 = vpop.f32.mrf.mxu2  ;;  %v10794_v14 = vld [vmem:[%s20686_s1 + $0x1218] sm:$0xf0]  ;;  %v13192_v57 = vld [vmem:[%s20686_s1 + $0x1204] sm:$0xf]  ;;  %v10978_v59 = vld [vmem:[%s20686_s1 + $0x1388] sm:$0xf0] }
 0x328   :  { %7897 = vmatpush.bf16.msrb.mxu0 %v11037_v10  ;;  %v10941_v10 = vor.u32 %v13230_v6, %v10938_v55  ;;  %v10797_v29 = vor.u32 %v13194_v4, %v10794_v14  ;;  %v11226_v6 = vld [vmem:[%s20686_s1 + $0x1578] sm:$0xf0]  ;;  %v10789_v55 = vor.u32 %v13192_v57, %v10786_v12  ;;  %v13240_v0 = vld [vmem:[%s20686_s1 + $0x1384] sm:$0xf]  ;;  %v10866_v14 = vld [vmem:[%s20686_s1 + $0x12a8] sm:$0xf0] }
 0x329   :  { %7859 = vmatpush.bf16.msrb.mxu1 %v10837_v51  ;;  %v13228_v51 = vld [vmem:[%s20686_s1 + $0x1324] sm:$0xf]  ;;  %v19202_v52 = vpop.f32.mrf.mxu3  ;;  %v7609_v45 = vpop.f32.mrf.mxu1  ;;  %v10858_v57 = vld [vmem:[%s20686_s1 + $0x1298] sm:$0xf0] }
 0x32a   :  { %7823 = vmatpush.bf16.msrb.mxu2 %v10621_v1  ;;  %v10802_v1 = vld [vmem:[%s20686_s1 + $0x1228] sm:$0xf0]  ;;  %v10933_v19 = vor.u32 %v13228_v51, %v10930_v17  ;;  %v13300_v17 = vld [vmem:[%s20686_s1 + $0x1564] sm:$0xf]  ;;  %v7608_v45 = vadd.f32 %v19150_v22, %v19136_v53 }
 0x32b   :  { %7885 = vmatpush.bf16.msrb.mxu3 %v10965_v49  ;;  %v13220_v49 = vld [vmem:[%s20686_s1 + $0x12e4] sm:$0xf]  ;;  %v10805_v62 = vor.u32 %v13196_v61, %v10802_v1  ;;  %v10874_v61 = vld [vmem:[%s20686_s1 + $0x12b8] sm:$0xf0]  ;;  %v11090_v51 = vld [vmem:[%s20686_s1 + $0x1468] sm:$0xf0] }
 0x32c   :  { %7898 = vmatpush.bf16.msrb.mxu0 %v11029_v54  ;;  %v10901_v54 = vor.u32 %v13220_v49, %v10898_v11  ;;  %v7648_v40 = vpop.f32.mrf.mxu0  ;;  %v13268_v1 = vld [vmem:[%s20686_s1 + $0x1464] sm:$0xf]  ;;  %v11218_v49 = vld [vmem:[%s20686_s1 + $0x1568] sm:$0xf0]  ;;  %v10981_v11 = vor.u32 %v13240_v0, %v10978_v59  ;;  %v11066_v0 = vld [vmem:[%s20686_s1 + $0x1438] sm:$0xf0] }
 0x32d   :  { %7860 = vmatpush.bf16.msrb.mxu1 %v10829_v25  ;;  %v13218_v25 = vld [vmem:[%s20686_s1 + $0x12d4] sm:$0xf]  ;;  %v13212_v4 = vld [vmem:[%s20686_s1 + $0x12a4] sm:$0xf] }
 0x32e   :  { %7824 = vmatpush.bf16.msrb.mxu2 %v10613_v47  ;;  %v10922_v47 = vld [vmem:[%s20686_s1 + $0x1318] sm:$0xf0]  ;;  %v10869_v22 = vor.u32 %v13212_v4, %v10866_v14  ;;  %v13264_v40 = vld [vmem:[%s20686_s1 + $0x1444] sm:$0xf]  ;;  %v13294_v59 = vld [vmem:[%s20686_s1 + $0x1534] sm:$0xf] }
 0x32f   :  { %7886 = vmatpush.bf16.msrb.mxu3 %v10957_v34  ;;  %v20750_v34 = vld [vmem:[#allocation9_spill] sm:$0xff]  ;;  %v10925_v13 = vor.u32 %v13226_v15, %v10922_v47  ;;  %v11082_v47 = vld [vmem:[%s20686_s1 + $0x1458] sm:$0xf0]  ;;  %v13296_v12 = vld [vmem:[%s20686_s1 + $0x1544] sm:$0xf] }
 0x330   :  { %7899 = vmatpush.bf16.msrb.mxu0 %v11021_v32  ;;  %v10893_v32 = vor.u32 %v13218_v25, %v10890_v30  ;;  %v13266_v15 = vld [vmem:[%s20686_s1 + $0x1454] sm:$0xf]  ;;  %v11210_v30 = vld [vmem:[%s20686_s1 + $0x1558] sm:$0xf0]  ;;  %v13308_v4 = vld [vmem:[%s20686_s1 + $0x15a4] sm:$0xf] }
 0x331   :  { %7861 = vmatpush.bf16.msrb.mxu1 %v10821_v20  ;;  %v13216_v20 = vld [vmem:[%s20686_s1 + $0x12c4] sm:$0xf]  ;;  %v7635_v21 = vpop.f32.mrf.mxu3  ;;  %v13298_v25 = vld [vmem:[%s20686_s1 + $0x1554] sm:$0xf]  ;;  %v11250_v14 = vld [vmem:[%s20686_s1 + $0x15a8] sm:$0xf0] }
 0x332   :  { %7825 = vmatpush.bf16.msrb.mxu2 %v10605_v3  ;;  %v10914_v3 = vld [vmem:[%s20686_s1 + $0x1308] sm:$0xf0]  ;;  %v10885_v38 = vor.u32 %v13216_v20, %v10882_v28  ;;  %v13312_v28 = vld [vmem:[%s20686_s1 + $0x15c4] sm:$0xf]  ;;  %v11194_v21 = vld [vmem:[%s20686_s1 + $0x1538] sm:$0xf0] }
 0x333   :  { %7887 = vmatpush.bf16.msrb.mxu3 %v10949_v36  ;;  %v10989_v36 = vor.u32 %v13242_v60, %v10986_v33  ;;  %v11274_v60 = vld [vmem:[%s20686_s1 + $0x15d8] sm:$0xf0]  ;;  %v11085_v33 = vor.u32 %v13266_v15, %v11082_v47  ;;  %v13258_v47 = vld [vmem:[%s20686_s1 + $0x1414] sm:$0xf] }
 0x334   :  { %7900 = vmatpush.bf16.msrb.mxu0 %v11013_v46  ;;  %v10917_v46 = vor.u32 %v13224_v42, %v10914_v3  ;;  %v11202_v42 = vld [vmem:[%s20686_s1 + $0x1548] sm:$0xf0] }
 0x335   :  { %7862 = vmatpush.bf16.msrb.mxu1 %v10813_v9  ;;  %v11101_v9 = vor.u32 %v13270_v5, %v11098_v18  ;;  %v11266_v5 = vld [vmem:[%s20686_s1 + $0x15c8] sm:$0xf0] }
 0x336   :  { %7826 = vmatpush.bf16.msrb.mxu2 %v10597_v2  ;;  %v11290_v2 = vld [vmem:[%s20686_s1 + $0x15f8] sm:$0xf0] }
 0x337   :  { %7888 = vmatpush.bf16.msrb.mxu3 %v10941_v10  ;;  %v11229_v10 = vor.u32 %v13302_v31, %v11226_v6  ;;  %v11205_v31 = vor.u32 %v13296_v12, %v11202_v42  ;;  %v13262_v6 = vld [vmem:[%s20686_s1 + $0x1434] sm:$0xf]  ;;  %v13288_v12 = vld [vmem:[%s20686_s1 + $0x1504] sm:$0xf] }
 0x338   :  { %7901 = vmatpush.bf16.msrb.mxu0 %v11005_v8  ;;  %v11293_v8 = vor.u32 %v13318_v56, %v11290_v2  ;;  %v11269_v2 = vor.u32 %v13312_v28, %v11266_v5  ;;  %v11138_v28 = vld [vmem:[%s20686_s1 + $0x14c8] sm:$0xf0]  ;;  %v13334_v5 = vld [vmem:[%s20686_s1 + $0x1674] sm:$0xf] }
 0x339   :  { %7827 = vmatmul.bf16.vlgmr.msrb.gmra.mxu2 %v20750_v34  ;;  %7863 = vmatpush.bf16.msrb.mxu1 %v10805_v62  ;;  %v11282_v62 = vld [vmem:[%s20686_s1 + $0x15e8] sm:$0xf0]  ;;  %v13314_v34 = vld [vmem:[%s20686_s1 + $0x15d4] sm:$0xf] }
 0x33a   :  { %7871 = vmatpush.bf16.msra.mxu2 %v10909_v35  ;;  %v13214_v35 = vld [vmem:[%s20686_s1 + $0x12b4] sm:$0xf]  ;;  %v11285_v53 = vor.u32 %v13316_v24, %v11282_v62  ;;  %v11277_v3 = vor.u32 %v13314_v34, %v11274_v60  ;;  %v13284_v24 = vld [vmem:[%s20686_s1 + $0x14e4] sm:$0xf]  ;;  %v11154_v62 = vld [vmem:[%s20686_s1 + $0x14e8] sm:$0xf0] }
 0x33b   :  { %7889 = vmatpush.bf16.msrb.mxu3 %v10933_v19  ;;  %v10877_v27 = vor.u32 %v13214_v35, %v10874_v61  ;;  %v11093_v19 = vor.u32 %v13268_v1, %v11090_v51  ;;  %v11258_v35 = vld [vmem:[%s20686_s1 + $0x15b8] sm:$0xf0]  ;;  %v11069_v61 = vor.u32 %v13262_v6, %v11066_v0  ;;  %v11197_v1 = vor.u32 %v13294_v59, %v11194_v21  ;;  %v13260_v51 = vld [vmem:[%s20686_s1 + $0x1424] sm:$0xf]  ;;  %v13282_v34 = vld [vmem:[%s20686_s1 + $0x14d4] sm:$0xf] }
 0x33c   :  { %7902 = vmatpush.bf16.msrb.mxu0 %v10997_v48  ;;  %v7620_v48 = vpop.f32.mrf.mxu2  ;;  %v11146_v60 = vld [vmem:[%s20686_s1 + $0x14d8] sm:$0xf0]  ;;  %v11234_v6 = vld [vmem:[%s20686_s1 + $0x1588] sm:$0xf0] }
 0x33d   :  { %7864 = vmatpush.bf16.msrb.mxu1 %v10797_v29  ;;  %v11213_v29 = vor.u32 %v13298_v25, %v11210_v30  ;;  %v11157_v30 = vor.u32 %v13284_v24, %v11154_v62  ;;  %v11538_v24 = vld [vmem:[%s20686_s1 + $0x17e8] sm:$0xf0] }
 0x33e   :  { %7872 = vmatpush.bf16.msra.mxu2 %v10901_v54  ;;  %v11221_v54 = vor.u32 %v13300_v17, %v11218_v49 }
 0x33f   :  { %7890 = vmatpush.bf16.msrb.mxu3 %v10925_v13 }
 0x340   :  { %7903 = vmatpush.bf16.msrb.mxu0 %v10989_v36 }
 0x341   :  { %7865 = vmatpush.bf16.msrb.mxu1 %v10789_v55  ;;  %v7659_v36 = vpop.f32.mrf.mxu1 }
 0x342   :  { %7873 = vmatpush.bf16.msra.mxu2 %v10893_v32  ;;  %v11074_v32 = vld [vmem:[%s20686_s1 + $0x1448] sm:$0xf0] }
 0x343   :  { %7891 = vmatpush.bf16.msrb.mxu3 %v10917_v46  ;;  %v11077_v18 = vor.u32 %v13264_v40, %v11074_v32  ;;  %v13286_v46 = vld [vmem:[%s20686_s1 + $0x14f4] sm:$0xf]  ;;  %v11042_v32 = vld [vmem:[%s20686_s1 + $0x1408] sm:$0xf0] }
 0x344   :  { %7866 = vmatmul.bf16.vlgmr.msrb.gmra.mxu1 %v15970_v37  ;;  %7904 = vmatpush.bf16.msrb.mxu0 %v10981_v11  ;;  %v7621_v37 = vadd.f32 %v7620_v48, %v7608_v45  ;;  %v7622_v56 = vpop.f32.mrf.mxu2  ;;  %v19385_v17 = vpop.f32.mrf.mxu0  ;;  %v11058_v11 = vld [vmem:[%s20686_s1 + $0x1428] sm:$0xf0]  ;;  %v11050_v48 = vld [vmem:[%s20686_s1 + $0x1418] sm:$0xf0] }
 0x345   :  { %7910 = vmatpush.bf16.msra.mxu1 %v11101_v9  ;;  %v11061_v15 = vor.u32 %v13260_v51, %v11058_v11  ;;  %v11474_v11 = vld [vmem:[%s20686_s1 + $0x1768] sm:$0xf0] }
 0x346   :  { %7874 = vmatpush.bf16.msra.mxu2 %v10885_v38  ;;  %7892 = vmatmul.bf16.vlgmr.msrb.gmra.mxu3 %v15981_v50  ;;  %v13210_v50 = vld [vmem:[%s20686_s1 + $0x1294] sm:$0xf]  ;;  %v7634_v13 = vadd.f32 %v19202_v52, %v7621_v37  ;;  %v11162_v38 = vld [vmem:[%s20686_s1 + $0x14f8] sm:$0xf0] }
 0x347   :  { %7936 = vmatpush.bf16.msra.mxu3 %v11229_v10  ;;  %7905 = vmatmul.bf16.vlgmr.msrb.gmra.mxu0 %v15991_v41  ;;  %v10861_v52 = vor.u32 %v13210_v50, %v10858_v57  ;;  %v13208_v41 = vld [vmem:[%s20686_s1 + $0x1284] sm:$0xf]  ;;  %v13310_v10 = vld [vmem:[%s20686_s1 + $0x15b4] sm:$0xf]  ;;  %v11165_v49 = vor.u32 %v13286_v46, %v11162_v38  ;;  %v11178_v37 = vld [vmem:[%s20686_s1 + $0x1518] sm:$0xf0]  ;;  %v11053_v57 = vor.u32 %v13258_v47, %v11050_v48 }
 0x348   :  { %7949 = vmatpush.bf16.msra.mxu0 %v11293_v8  ;;  %v7647_v20 = vadd.f32 %v19176_v39, %v7634_v13  ;;  %v10850_v39 = vld [vmem:[%s20686_s1 + $0x1288] sm:$0xf0]  ;;  %v13292_v8 = vld [vmem:[%s20686_s1 + $0x1524] sm:$0xf]  ;;  %v11242_v50 = vld [vmem:[%s20686_s1 + $0x1598] sm:$0xf0] }
 0x349   :  { %7911 = vmatpush.bf16.msra.mxu1 %v11093_v19  ;;  %v10853_v9 = vor.u32 %v13208_v41, %v10850_v39  ;;  %v11261_v19 = vor.u32 %v13310_v10, %v11258_v35  ;;  %v7661_v25 = vpop.f32.mrf.mxu1  ;;  %v13256_v13 = vld [vmem:[%s20686_s1 + $0x1404] sm:$0xf]  ;;  %v11482_v41 = vld [vmem:[%s20686_s1 + $0x1778] sm:$0xf0]  ;;  %v13382_v46 = vld [vmem:[%s20686_s1 + $0x17f4] sm:$0xf] }
 0x34a   :  { %7875 = vmatpush.bf16.msra.mxu2 %v10877_v27  ;;  %v19359_v55 = vadd.f32 %v7659_v36, %v7647_v20  ;;  %v11186_v27 = vld [vmem:[%s20686_s1 + $0x1528] sm:$0xf0]  ;;  %v11354_v36 = vld [vmem:[%s20686_s1 + $0x1678] sm:$0xf0]  ;;  %v13304_v39 = vld [vmem:[%s20686_s1 + $0x1584] sm:$0xf]  ;;  %v11045_v59 = vor.u32 %v13256_v13, %v11042_v32 }
 0x34b   :  { %7937 = vmatpush.bf16.msra.mxu3 %v11221_v54  ;;  %v19402_v54 = vpop.f32.mrf.mxu3  ;;  %v11189_v45 = vor.u32 %v13292_v8, %v11186_v27  ;;  %v11170_v20 = vld [vmem:[%s20686_s1 + $0x1508] sm:$0xf0]  ;;  %v11546_v38 = vld [vmem:[%s20686_s1 + $0x17f8] sm:$0xf0]  ;;  %v11237_v51 = vor.u32 %v13304_v39, %v11234_v6  ;;  %v13380_v27 = vld [vmem:[%s20686_s1 + $0x17e4] sm:$0xf] }
 0x34c   :  { %7950 = vmatpush.bf16.msra.mxu0 %v11285_v53  ;;  %v13290_v53 = vld [vmem:[%s20686_s1 + $0x1514] sm:$0xf]  ;;  %v7700_v42 = vpop.f32.mrf.mxu0  ;;  %v11173_v21 = vor.u32 %v13288_v12, %v11170_v20  ;;  %v11130_v35 = vld [vmem:[%s20686_s1 + $0x14b8] sm:$0xf0]  ;;  %v11549_v8 = vor.u32 %v13382_v46, %v11546_v38  ;;  %v20752_v25 = vld [vmem:[#allocation12_spill] sm:$0xff] }
 0x34d   :  { %7912 = vmatpush.bf16.msra.mxu1 %v11085_v33  ;;  %v11253_v33 = vor.u32 %v13308_v4, %v11250_v14  ;;  %v11181_v40 = vor.u32 %v13290_v53, %v11178_v37  ;;  %v13276_v4 = vld [vmem:[%s20686_s1 + $0x14a4] sm:$0xf]  ;;  %v11338_v47 = vld [vmem:[%s20686_s1 + $0x1658] sm:$0xf0]  ;;  %v13362_v48 = vld [vmem:[%s20686_s1 + $0x1754] sm:$0xf]  ;;  %v11541_v37 = vor.u32 %v13380_v27, %v11538_v24 }
 0x34e   :  { %7876 = vmatpush.bf16.msra.mxu2 %v10869_v22  ;;  %v20751_v22 = vld [vmem:[#allocation11_spill] sm:$0xff]  ;;  %v11466_v53 = vld [vmem:[%s20686_s1 + $0x1758] sm:$0xf0]  ;;  %v11330_v12 = vld [vmem:[%s20686_s1 + $0x1648] sm:$0xf0] }
 0x34f   :  { %7938 = vmatpush.bf16.msra.mxu3 %v11213_v29  ;;  %v13306_v29 = vld [vmem:[%s20686_s1 + $0x1594] sm:$0xf]  ;;  %v11114_v13 = vld [vmem:[%s20686_s1 + $0x1498] sm:$0xf0]  ;;  %v13328_v32 = vld [vmem:[%s20686_s1 + $0x1644] sm:$0xf] }
 0x350   :  { %7951 = vmatpush.bf16.msra.mxu0 %v11277_v3  ;;  %v11149_v3 = vor.u32 %v13282_v34, %v11146_v60  ;;  %v20753_v34 = vld [vmem:[#allocation13_spill] sm:$0xff]  ;;  %v20754_v42 = vld [vmem:[#allocation15_spill] sm:$0xff]  ;;  %v11450_v46 = vld [vmem:[%s20686_s1 + $0x1738] sm:$0xf0] }
 0x351   :  { %7913 = vmatpush.bf16.msra.mxu1 %v11077_v18  ;;  %v13366_v18 = vld [vmem:[%s20686_s1 + $0x1774] sm:$0xf]  ;;  %v11314_v27 = vld [vmem:[%s20686_s1 + $0x1628] sm:$0xf0]  ;;  %v13356_v24 = vld [vmem:[%s20686_s1 + $0x1724] sm:$0xf] }
 0x352   :  { %7877 = vmatpush.bf16.msra.mxu2 %v10861_v52  ;;  %v13280_v52 = vld [vmem:[%s20686_s1 + $0x14c4] sm:$0xf]  ;;  %v11485_v10 = vor.u32 %v13366_v18, %v11482_v41  ;;  %v13378_v60 = vld [vmem:[%s20686_s1 + $0x17d4] sm:$0xf]  ;;  %v11333_v18 = vor.u32 %v13328_v32, %v11330_v12 }
 0x353   :  { %7939 = vmatpush.bf16.msra.mxu3 %v11205_v31  ;;  %v11245_v31 = vor.u32 %v13306_v29, %v11242_v50  ;;  %v7687_v0 = vpop.f32.mrf.mxu3  ;;  %v11141_v56 = vor.u32 %v13280_v52, %v11138_v28  ;;  %v13376_v28 = vld [vmem:[%s20686_s1 + $0x17c4] sm:$0xf]  ;;  %v13326_v6 = vld [vmem:[%s20686_s1 + $0x1634] sm:$0xf] }
 0x354   :  { %7952 = vmatpush.bf16.msra.mxu0 %v11269_v2  ;;  %v11357_v2 = vor.u32 %v13334_v5, %v11354_v36  ;;  %v11522_v5 = vld [vmem:[%s20686_s1 + $0x17c8] sm:$0xf0]  ;;  %v11322_v0 = vld [vmem:[%s20686_s1 + $0x1638] sm:$0xf0]  ;;  %v13350_v38 = vld [vmem:[%s20686_s1 + $0x16f4] sm:$0xf] }
 0x355   :  { %7914 = vmatpush.bf16.msra.mxu1 %v11069_v61  ;;  %v13332_v61 = vld [vmem:[%s20686_s1 + $0x1664] sm:$0xf] }
 0x356   :  { %7878 = vmatpush.bf16.msra.mxu2 %v10853_v9  ;;  %v13278_v9 = vld [vmem:[%s20686_s1 + $0x14b4] sm:$0xf]  ;;  %v13320_v32 = vld [vmem:[%s20686_s1 + $0x1604] sm:$0xf] }
 0x357   :  { %7940 = vmatpush.bf16.msra.mxu3 %v11197_v1  ;;  %v11346_v1 = vld [vmem:[%s20686_s1 + $0x1668] sm:$0xf0]  ;;  %v11133_v62 = vor.u32 %v13278_v9, %v11130_v35  ;;  %v11525_v9 = vor.u32 %v13376_v28, %v11522_v5  ;;  %v11514_v35 = vld [vmem:[%s20686_s1 + $0x17b8] sm:$0xf0]  ;;  %v13344_v28 = vld [vmem:[%s20686_s1 + $0x16c4] sm:$0xf] }
 0x358   :  { %7953 = vmatpush.bf16.msra.mxu0 %v11261_v19  ;;  %v11349_v19 = vor.u32 %v13332_v61, %v11346_v1  ;;  %v11325_v1 = vor.u32 %v13326_v6, %v11322_v0  ;;  %v11394_v5 = vld [vmem:[%s20686_s1 + $0x16c8] sm:$0xf0]  ;;  %v13368_v6 = vld [vmem:[%s20686_s1 + $0x1784] sm:$0xf] }
 0x359   :  { %7879 = vmatmul.bf16.vlgmr.msra.gmra.mxu2 %v20751_v22  ;;  %7915 = vmatpush.bf16.msra.mxu1 %v11061_v15  ;;  %v11122_v15 = vld [vmem:[%s20686_s1 + $0x14a8] sm:$0xf0] }
 0x35a   :  { %7923 = vmatpush.bf16.msrb.mxu2 %v11165_v49  ;;  %v13364_v49 = vld [vmem:[%s20686_s1 + $0x1764] sm:$0xf]  ;;  %v11125_v29 = vor.u32 %v13276_v4, %v11122_v15  ;;  %v11410_v4 = vld [vmem:[%s20686_s1 + $0x16e8] sm:$0xf0] }
 0x35b   :  { %7941 = vmatpush.bf16.msra.mxu3 %v11189_v45  ;;  %v11477_v14 = vor.u32 %v13364_v49, %v11474_v11  ;;  %v13330_v45 = vld [vmem:[%s20686_s1 + $0x1654] sm:$0xf]  ;;  %v13372_v15 = vld [vmem:[%s20686_s1 + $0x17a4] sm:$0xf]  ;;  %v11490_v0 = vld [vmem:[%s20686_s1 + $0x1788] sm:$0xf0] }
 0x35c   :  { %7954 = vmatpush.bf16.msra.mxu0 %v11253_v33  ;;  %v11530_v33 = vld [vmem:[%s20686_s1 + $0x17d8] sm:$0xf0]  ;;  %v11341_v50 = vor.u32 %v13330_v45, %v11338_v47  ;;  %v11506_v45 = vld [vmem:[%s20686_s1 + $0x17a8] sm:$0xf0] }
 0x35d   :  { %7916 = vmatpush.bf16.msra.mxu1 %v11053_v57  ;;  %v13274_v57 = vld [vmem:[%s20686_s1 + $0x1494] sm:$0xf]  ;;  %v11533_v20 = vor.u32 %v13378_v60, %v11530_v33  ;;  %v11434_v60 = vld [vmem:[%s20686_s1 + $0x1718] sm:$0xf0] }
 0x35e   :  { %7924 = vmatpush.bf16.msrb.mxu2 %v11157_v30  ;;  %v7672_v30 = vpop.f32.mrf.mxu2  ;;  %v11117_v36 = vor.u32 %v13274_v57, %v11114_v13  ;;  %v13346_v33 = vld [vmem:[%s20686_s1 + $0x16d4] sm:$0xf]  ;;  %v20755_v57 = vld [vmem:[#allocation14_spill] sm:$0xff] }
 0x35f   :  { %7942 = vmatpush.bf16.msra.mxu3 %v11181_v40  ;;  %v7673_v22 = vadd.f32 %v7672_v30, %v19359_v55  ;;  %v11469_v40 = vor.u32 %v13362_v48, %v11466_v53  ;;  %v13322_v53 = vld [vmem:[%s20686_s1 + $0x1614] sm:$0xf] }
 0x360   :  { %7955 = vmatpush.bf16.msra.mxu0 %v11245_v31  ;;  %v13272_v31 = vld [vmem:[%s20686_s1 + $0x1484] sm:$0xf] }
 0x361   :  { %7917 = vmatpush.bf16.msra.mxu1 %v11045_v59  ;;  %v7686_v55 = vadd.f32 %v19402_v54, %v7673_v22  ;;  %v11458_v54 = vld [vmem:[%s20686_s1 + $0x1748] sm:$0xf0]  ;;  %v7711_v41 = vpop.f32.mrf.mxu1  ;;  %v13358_v59 = vld [vmem:[%s20686_s1 + $0x1734] sm:$0xf] }
 0x362   :  { %7925 = vmatpush.bf16.msrb.mxu2 %v11149_v3  ;;  %v13360_v3 = vld [vmem:[%s20686_s1 + $0x1744] sm:$0xf]  ;;  %v11453_v49 = vor.u32 %v13358_v59, %v11450_v46  ;;  %v13354_v22 = vld [vmem:[%s20686_s1 + $0x1714] sm:$0xf] }
 0x363   :  { %7943 = vmatpush.bf16.msra.mxu3 %v11173_v21  ;;  %v7699_v52 = vadd.f32 %v19385_v17, %v7686_v55  ;;  %v11106_v17 = vld [vmem:[%s20686_s1 + $0x1488] sm:$0xf0]  ;;  %v11461_v39 = vor.u32 %v13360_v3, %v11458_v54  ;;  %v13370_v55 = vld [vmem:[%s20686_s1 + $0x1794] sm:$0xf] }
 0x364   :  { %7956 = vmatpush.bf16.msra.mxu0 %v11237_v51  ;;  %7918 = vmatmul.bf16.vlgmr.msra.gmra.mxu1 %v20752_v25  ;;  %v11109_v61 = vor.u32 %v13272_v31, %v11106_v17  ;;  %v19587_v51 = vpop.f32.mrf.mxu0  ;;  %v11298_v54 = vld [vmem:[%s20686_s1 + $0x1608] sm:$0xf0]  ;;  %v11610_v31 = vld [vmem:[%s20686_s1 + $0x1878] sm:$0xf0]  ;;  %v13430_v17 = vld [vmem:[%s20686_s1 + $0x1974] sm:$0xf] }
 0x365   :  { %7962 = vmatpush.bf16.msrb.mxu1 %v11357_v2  ;;  %v19570_v21 = vadd.f32 %v7711_v41, %v7699_v52  ;;  %v11426_v52 = vld [vmem:[%s20686_s1 + $0x1708] sm:$0xf0]  ;;  %v11738_v41 = vld [vmem:[%s20686_s1 + $0x1978] sm:$0xf0] }
 0x366   :  { %7926 = vmatpush.bf16.msrb.mxu2 %v11141_v56  ;;  %7944 = vmatmul.bf16.vlgmr.msra.gmra.mxu3 %v20753_v34  ;;  %v11418_v56 = vld [vmem:[%s20686_s1 + $0x16f8] sm:$0xf0]  ;;  %v7674_v2 = vpop.f32.mrf.mxu2 }
 0x367   :  { %7988 = vmatpush.bf16.msrb.mxu3 %v11485_v10  ;;  %7957 = vmatmul.bf16.vlgmr.msra.gmra.mxu0 %v20754_v42  ;;  %v13374_v10 = vld [vmem:[%s20686_s1 + $0x17b4] sm:$0xf]  ;;  %v11421_v11 = vor.u32 %v13350_v38, %v11418_v56  ;;  %v11437_v42 = vor.u32 %v13354_v22, %v11434_v60  ;;  %v11397_v38 = vor.u32 %v13344_v28, %v11394_v5  ;;  %v11802_v2 = vld [vmem:[%s20686_s1 + $0x19f8] sm:$0xf0] }
 0x368   :  { %8001 = vmatpush.bf16.msrb.mxu0 %v11549_v8  ;;  %v13324_v8 = vld [vmem:[%s20686_s1 + $0x1624] sm:$0xf]  ;;  %v13446_v56 = vld [vmem:[%s20686_s1 + $0x19f4] sm:$0xf]  ;;  %v11722_v22 = vld [vmem:[%s20686_s1 + $0x1958] sm:$0xf0] }
 0x369   :  { %7963 = vmatpush.bf16.msrb.mxu1 %v11349_v19  ;;  %v13348_v19 = vld [vmem:[%s20686_s1 + $0x16e4] sm:$0xf]  ;;  %v11317_v47 = vor.u32 %v13324_v8, %v11314_v27  ;;  %v19613_v25 = vpop.f32.mrf.mxu3  ;;  %v7713_v34 = vpop.f32.mrf.mxu1  ;;  %v11730_v8 = vld [vmem:[%s20686_s1 + $0x1968] sm:$0xf0]  ;;  %v11493_v27 = vor.u32 %v13368_v6, %v11490_v0  ;;  %v20757_v60 = vld [vmem:[#allocation17_spill] sm:$0xff] }
 0x36a   :  { %7927 = vmatpush.bf16.msrb.mxu2 %v11133_v62  ;;  %v11442_v62 = vld [vmem:[%s20686_s1 + $0x1728] sm:$0xf0]  ;;  %v11413_v48 = vor.u32 %v13348_v19, %v11410_v4  ;;  %v13444_v19 = vld [vmem:[%s20686_s1 + $0x19e4] sm:$0xf]  ;;  %v13390_v6 = vld [vmem:[%s20686_s1 + $0x1834] sm:$0xf] }
 0x36b   :  { %7989 = vmatpush.bf16.msrb.mxu3 %v11477_v14  ;;  %v11517_v14 = vor.u32 %v13374_v10, %v11514_v35  ;;  %v11445_v30 = vor.u32 %v13356_v24, %v11442_v62  ;;  %v11741_v10 = vor.u32 %v13430_v17, %v11738_v41  ;;  %v13342_v35 = vld [vmem:[%s20686_s1 + $0x16b4] sm:$0xf]  ;;  %v11805_v24 = vor.u32 %v13446_v56, %v11802_v2  ;;  %v11794_v4 = vld [vmem:[%s20686_s1 + $0x19e8] sm:$0xf0]  ;;  %v11674_v2 = vld [vmem:[%s20686_s1 + $0x18f8] sm:$0xf0] }
 0x36c   :  { %8002 = vmatpush.bf16.msrb.mxu0 %v11541_v37  ;;  %v11306_v37 = vld [vmem:[%s20686_s1 + $0x1618] sm:$0xf0]  ;;  %v7752_v12 = vpop.f32.mrf.mxu0  ;;  %v13414_v56 = vld [vmem:[%s20686_s1 + $0x18f4] sm:$0xf] }
 0x36d   :  { %7964 = vmatpush.bf16.msrb.mxu1 %v11341_v50  ;;  %v11509_v50 = vor.u32 %v13372_v15, %v11506_v45  ;;  %v11309_v13 = vor.u32 %v13322_v53, %v11306_v37  ;;  %v13340_v45 = vld [vmem:[%s20686_s1 + $0x16a4] sm:$0xf]  ;;  %v11594_v53 = vld [vmem:[%s20686_s1 + $0x1858] sm:$0xf0]  ;;  %v13426_v37 = vld [vmem:[%s20686_s1 + $0x1954] sm:$0xf] }
 0x36e   :  { %7928 = vmatpush.bf16.msrb.mxu2 %v11125_v29  ;;  %v11402_v29 = vld [vmem:[%s20686_s1 + $0x16d8] sm:$0xf0]  ;;  %v13392_v12 = vld [vmem:[%s20686_s1 + $0x1844] sm:$0xf] }
 0x36f   :  { %7990 = vmatpush.bf16.msrb.mxu3 %v11469_v40  ;;  %v11498_v40 = vld [vmem:[%s20686_s1 + $0x1798] sm:$0xf0]  ;;  %v11405_v3 = vor.u32 %v13346_v33, %v11402_v29  ;;  %v11797_v33 = vor.u32 %v13444_v19, %v11794_v4  ;;  %v13420_v19 = vld [vmem:[%s20686_s1 + $0x1924] sm:$0xf]  ;;  %v11698_v4 = vld [vmem:[%s20686_s1 + $0x1928] sm:$0xf0] }
 0x370   :  { %8003 = vmatpush.bf16.msrb.mxu0 %v11533_v20  ;;  %v13352_v20 = vld [vmem:[%s20686_s1 + $0x1704] sm:$0xf] }
 0x371   :  { %7965 = vmatpush.bf16.msrb.mxu1 %v11333_v18  ;;  %v11501_v18 = vor.u32 %v13370_v55, %v11498_v40  ;;  %v7739_v59 = vpop.f32.mrf.mxu3  ;;  %v11429_v46 = vor.u32 %v13352_v20, %v11426_v52  ;;  %v11786_v55 = vld [vmem:[%s20686_s1 + $0x19d8] sm:$0xf0]  ;;  %v11714_v20 = vld [vmem:[%s20686_s1 + $0x1948] sm:$0xf0]  ;;  %v20758_v52 = vld [vmem:[#allocation19_spill] sm:$0xff] }
 0x372   :  { %7929 = vmatpush.bf16.msrb.mxu2 %v11117_v36  ;;  %v13398_v36 = vld [vmem:[%s20686_s1 + $0x1874] sm:$0xf]  ;;  %v11578_v59 = vld [vmem:[%s20686_s1 + $0x1838] sm:$0xf0] }
 0x373   :  { %7991 = vmatpush.bf16.msrb.mxu3 %v11461_v39  ;;  %v11301_v39 = vor.u32 %v13320_v32, %v11298_v54  ;;  %v13338_v32 = vld [vmem:[%s20686_s1 + $0x1694] sm:$0xf]  ;;  %v13424_v54 = vld [vmem:[%s20686_s1 + $0x1944] sm:$0xf] }
 0x374   :  { %8004 = vmatpush.bf16.msrb.mxu0 %v11525_v9  ;;  %v11613_v9 = vor.u32 %v13398_v36, %v11610_v31  ;;  %v13440_v36 = vld [vmem:[%s20686_s1 + $0x19c4] sm:$0xf]  ;;  %v11717_v41 = vor.u32 %v13424_v54, %v11714_v20  ;;  %v11554_v54 = vld [vmem:[%s20686_s1 + $0x1808] sm:$0xf0] }
 0x375   :  { %7966 = vmatpush.bf16.msrb.mxu1 %v11325_v1  ;;  %v13396_v1 = vld [vmem:[%s20686_s1 + $0x1864] sm:$0xf] }
 0x376   :  { %7930 = vmatpush.bf16.msrb.mxu2 %v11109_v61  ;;  %v11386_v61 = vld [vmem:[%s20686_s1 + $0x16b8] sm:$0xf0]  ;;  %v13416_v20 = vld [vmem:[%s20686_s1 + $0x1904] sm:$0xf] }
 0x377   :  { %7992 = vmatpush.bf16.msrb.mxu3 %v11453_v49  ;;  %v11602_v49 = vld [vmem:[%s20686_s1 + $0x1868] sm:$0xf0]  ;;  %v11389_v62 = vor.u32 %v13342_v35, %v11386_v61  ;;  %v13438_v61 = vld [vmem:[%s20686_s1 + $0x19b4] sm:$0xf] }
 0x378   :  { %8005 = vmatpush.bf16.msrb.mxu0 %v11517_v14  ;;  %v11605_v14 = vor.u32 %v13396_v1, %v11602_v49  ;;  %v11770_v1 = vld [vmem:[%s20686_s1 + $0x19b8] sm:$0xf0]  ;;  %v11581_v49 = vor.u32 %v13390_v6, %v11578_v59  ;;  %v11746_v6 = vld [vmem:[%s20686_s1 + $0x1988] sm:$0xf0] }
 0x379   :  { %7931 = vmatmul.bf16.vlgmr.msrb.gmra.mxu2 %v20755_v57  ;;  %7967 = vmatpush.bf16.msrb.mxu1 %v11317_v47  ;;  %v11378_v47 = vld [vmem:[%s20686_s1 + $0x16a8] sm:$0xf0]  ;;  %v13442_v57 = vld [vmem:[%s20686_s1 + $0x19d4] sm:$0xf] }
 0x37a   :  { %7975 = vmatpush.bf16.msra.mxu2 %v11421_v11  ;;  %v13428_v11 = vld [vmem:[%s20686_s1 + $0x1964] sm:$0xf]  ;;  %v11789_v28 = vor.u32 %v13442_v57, %v11786_v55  ;;  %v20759_v57 = vld [vmem:[#allocation18_spill] sm:$0xff]  ;;  %v13410_v55 = vld [vmem:[%s20686_s1 + $0x18d4] sm:$0xf] }
 0x37b   :  { %7993 = vmatpush.bf16.msrb.mxu3 %v11445_v30  ;;  %v11733_v15 = vor.u32 %v13428_v11, %v11730_v8  ;;  %v13394_v30 = vld [vmem:[%s20686_s1 + $0x1854] sm:$0xf]  ;;  %v13388_v8 = vld [vmem:[%s20686_s1 + $0x1824] sm:$0xf] }
 0x37c   :  { %8006 = vmatpush.bf16.msrb.mxu0 %v11509_v50  ;;  %v7724_v34 = vpop.f32.mrf.mxu2  ;;  %v11381_v50 = vor.u32 %v13340_v45, %v11378_v47  ;;  %v11597_v40 = vor.u32 %v13394_v30, %v11594_v53  ;;  %v11773_v45 = vor.u32 %v13438_v61, %v11770_v1  ;;  %v13436_v30 = vld [vmem:[%s20686_s1 + $0x19a4] sm:$0xf]  ;;  %v11642_v1 = vld [vmem:[%s20686_s1 + $0x18b8] sm:$0xf0] }
 0x37d   :  { %7968 = vmatpush.bf16.msrb.mxu1 %v11309_v13  ;;  %v7725_v29 = vadd.f32 %v7724_v34, %v19570_v21  ;;  %v11725_v13 = vor.u32 %v13426_v37, %v11722_v22  ;;  %v11370_v21 = vld [vmem:[%s20686_s1 + $0x1698] sm:$0xf0]  ;;  %v11701_v37 = vor.u32 %v13420_v19, %v11698_v4  ;;  %v13386_v22 = vld [vmem:[%s20686_s1 + $0x1814] sm:$0xf]  ;;  %v13508_v4 = vld [vmem:[%s20686_s1 + $0x1be4] sm:$0xf] }
 0x37e   :  { %7976 = vmatpush.bf16.msra.mxu2 %v11413_v48  ;;  %v20756_v48 = vld [vmem:[#allocation16_spill] sm:$0xff] }
 0x37f   :  { %7994 = vmatpush.bf16.msrb.mxu3 %v11437_v42  ;;  %v7738_v42 = vadd.f32 %v19613_v25, %v7725_v29  ;;  %v11373_v25 = vor.u32 %v13338_v32, %v11370_v21  ;;  %v13418_v29 = vld [vmem:[%s20686_s1 + $0x1914] sm:$0xf]  ;;  %v11754_v21 = vld [vmem:[%s20686_s1 + $0x1998] sm:$0xf0] }
 0x380   :  { %8007 = vmatpush.bf16.msrb.mxu0 %v11501_v18  ;;  %v11778_v18 = vld [vmem:[%s20686_s1 + $0x19c8] sm:$0xf0]  ;;  %v13434_v32 = vld [vmem:[%s20686_s1 + $0x1994] sm:$0xf] }
 0x381   :  { %7969 = vmatpush.bf16.msrb.mxu1 %v11301_v39  ;;  %v7751_v5 = vadd.f32 %v19587_v51, %v7738_v42  ;;  %v7763_v31 = vpop.f32.mrf.mxu1  ;;  %v13336_v39 = vld [vmem:[%s20686_s1 + $0x1684] sm:$0xf]  ;;  %v11362_v51 = vld [vmem:[%s20686_s1 + $0x1688] sm:$0xf0] }
 0x382   :  { %7977 = vmatpush.bf16.msra.mxu2 %v11405_v3  ;;  %v11586_v3 = vld [vmem:[%s20686_s1 + $0x1848] sm:$0xf0]  ;;  %v11365_v35 = vor.u32 %v13336_v39, %v11362_v51  ;;  %v11994_v39 = vld [vmem:[%s20686_s1 + $0x1b78] sm:$0xf0]  ;;  %v13432_v51 = vld [vmem:[%s20686_s1 + $0x1984] sm:$0xf] }
 0x383   :  { %7995 = vmatpush.bf16.msrb.mxu3 %v11429_v46  ;;  %v11589_v17 = vor.u32 %v13392_v12, %v11586_v3  ;;  %v19769_v0 = vadd.f32 %v7763_v31, %v7751_v5  ;;  %v13422_v46 = vld [vmem:[%s20686_s1 + $0x1934] sm:$0xf]  ;;  %v13384_v3 = vld [vmem:[%s20686_s1 + $0x1804] sm:$0xf]  ;;  %v11682_v5 = vld [vmem:[%s20686_s1 + $0x1908] sm:$0xf0] }
 0x384   :  { %7970 = vmatmul.bf16.vlgmr.msrb.gmra.mxu1 %v20756_v48  ;;  %8008 = vmatpush.bf16.msrb.mxu0 %v11493_v27  ;;  %v19795_v27 = vpop.f32.mrf.mxu0  ;;  %v11762_v48 = vld [vmem:[%s20686_s1 + $0x19a8] sm:$0xf0]  ;;  %v11866_v31 = vld [vmem:[%s20686_s1 + $0x1a78] sm:$0xf0] }
 0x385   :  { %8014 = vmatpush.bf16.msra.mxu1 %v11613_v9  ;;  %v7726_v9 = vpop.f32.mrf.mxu2 }
 0x386   :  { %7978 = vmatpush.bf16.msra.mxu2 %v11397_v38  ;;  %7996 = vmatmul.bf16.vlgmr.msrb.gmra.mxu3 %v20757_v60  ;;  %v11706_v38 = vld [vmem:[%s20686_s1 + $0x1938] sm:$0xf0] }
 0x387   :  { %8040 = vmatpush.bf16.msra.mxu3 %v11741_v10  ;;  %8009 = vmatmul.bf16.vlgmr.msrb.gmra.mxu0 %v20758_v52  ;;  %v11781_v10 = vor.u32 %v13440_v36, %v11778_v18  ;;  %v11709_v11 = vor.u32 %v13422_v46, %v11706_v38  ;;  %v11650_v36 = vld [vmem:[%s20686_s1 + $0x18c8] sm:$0xf0]  ;;  %v13462_v18 = vld [vmem:[%s20686_s1 + $0x1a74] sm:$0xf]  ;;  %v11557_v46 = vor.u32 %v13384_v3, %v11554_v54  ;;  %v11626_v3 = vld [vmem:[%s20686_s1 + $0x1898] sm:$0xf0] }
 0x388   :  { %8053 = vmatpush.bf16.msra.mxu0 %v11805_v24  ;;  %v11677_v24 = vor.u32 %v13414_v56, %v11674_v2  ;;  %v11685_v38 = vor.u32 %v13416_v20, %v11682_v5  ;;  %v13510_v56 = vld [vmem:[%s20686_s1 + $0x1bf4] sm:$0xf]  ;;  %v12058_v2 = vld [vmem:[%s20686_s1 + $0x1bf8] sm:$0xf0]  ;;  %v13456_v54 = vld [vmem:[%s20686_s1 + $0x1a44] sm:$0xf] }
 0x389   :  { %8015 = vmatpush.bf16.msra.mxu1 %v11605_v14  ;;  %v13412_v14 = vld [vmem:[%s20686_s1 + $0x18e4] sm:$0xf]  ;;  %v19812_v47 = vpop.f32.mrf.mxu3  ;;  %v7765_v34 = vpop.f32.mrf.mxu1  ;;  %v12061_v19 = vor.u32 %v13510_v56, %v12058_v2  ;;  %v11842_v20 = vld [vmem:[%s20686_s1 + $0x1a48] sm:$0xf0]  ;;  %v11962_v56 = vld [vmem:[%s20686_s1 + $0x1b38] sm:$0xf0] }
 0x38a   :  { %7979 = vmatpush.bf16.msra.mxu2 %v11389_v62  ;;  %v11570_v62 = vld [vmem:[%s20686_s1 + $0x1828] sm:$0xf0]  ;;  %v13478_v2 = vld [vmem:[%s20686_s1 + $0x1af4] sm:$0xf] }
 0x38b   :  { %8041 = vmatpush.bf16.msra.mxu3 %v11733_v15  ;;  %v11666_v15 = vld [vmem:[%s20686_s1 + $0x18e8] sm:$0xf0]  ;;  %v11573_v53 = vor.u32 %v13388_v8, %v11570_v62  ;;  %v11749_v8 = vor.u32 %v13432_v51, %v11746_v6  ;;  %v13454_v6 = vld [vmem:[%s20686_s1 + $0x1a34] sm:$0xf] }
 0x38c   :  { %8054 = vmatpush.bf16.msra.mxu0 %v11797_v33  ;;  %v11669_v60 = vor.u32 %v13412_v14, %v11666_v15  ;;  %v11562_v33 = vld [vmem:[%s20686_s1 + $0x1818] sm:$0xf0]  ;;  %v7804_v52 = vpop.f32.mrf.mxu0  ;;  %v11986_v62 = vld [vmem:[%s20686_s1 + $0x1b68] sm:$0xf0] }
 0x38d   :  { %8016 = vmatpush.bf16.msra.mxu1 %v11597_v40  ;;  %v11658_v40 = vld [vmem:[%s20686_s1 + $0x18d8] sm:$0xf0]  ;;  %v11565_v12 = vor.u32 %v13386_v22, %v11562_v33  ;;  %v12050_v14 = vld [vmem:[%s20686_s1 + $0x1be8] sm:$0xf0]  ;;  %v13490_v33 = vld [vmem:[%s20686_s1 + $0x1b54] sm:$0xf] }
 0x38e   :  { %7980 = vmatpush.bf16.msra.mxu2 %v11381_v50  ;;  %v11690_v50 = vld [vmem:[%s20686_s1 + $0x1918] sm:$0xf0]  ;;  %v20760_v34 = vld [vmem:[#allocation20_spill] sm:$0xff]  ;;  %v20762_v52 = vld [vmem:[#allocation23_spill] sm:$0xff] }
 0x38f   :  { %8042 = vmatpush.bf16.msra.mxu3 %v11725_v13  ;;  %v11765_v13 = vor.u32 %v13436_v30, %v11762_v48  ;;  %v11693_v42 = vor.u32 %v13418_v29, %v11690_v50  ;;  %v13404_v30 = vld [vmem:[%s20686_s1 + $0x18a4] sm:$0xf]  ;;  %v11850_v22 = vld [vmem:[%s20686_s1 + $0x1a58] sm:$0xf0]  ;;  %v12053_v50 = vor.u32 %v13508_v4, %v12050_v14  ;;  %v11826_v4 = vld [vmem:[%s20686_s1 + $0x1a28] sm:$0xf0] }
 0x390   :  { %8055 = vmatpush.bf16.msra.mxu0 %v11789_v28  ;;  %v11661_v28 = vor.u32 %v13410_v55, %v11658_v40  ;;  %v11978_v29 = vld [vmem:[%s20686_s1 + $0x1b58] sm:$0xf0]  ;;  %v20761_v55 = vld [vmem:[#allocation21_spill] sm:$0xff]  ;;  %v13484_v14 = vld [vmem:[%s20686_s1 + $0x1b24] sm:$0xf] }
 0x391   :  { %8017 = vmatpush.bf16.msra.mxu1 %v11589_v17  ;;  %v13494_v17 = vld [vmem:[%s20686_s1 + $0x1b74] sm:$0xf]  ;;  %v7791_v59 = vpop.f32.mrf.mxu3 }
 0x392   :  { %7981 = vmatpush.bf16.msra.mxu2 %v11373_v25  ;;  %v13408_v25 = vld [vmem:[%s20686_s1 + $0x18c4] sm:$0xf]  ;;  %v11997_v61 = vor.u32 %v13494_v17, %v11994_v39  ;;  %v13506_v40 = vld [vmem:[%s20686_s1 + $0x1bd4] sm:$0xf]  ;;  %v11845_v17 = vor.u32 %v13456_v54, %v11842_v20  ;;  %v11834_v59 = vld [vmem:[%s20686_s1 + $0x1a38] sm:$0xf0] }
 0x393   :  { %8043 = vmatpush.bf16.msra.mxu3 %v11717_v41  ;;  %v11757_v41 = vor.u32 %v13434_v32, %v11754_v21  ;;  %v11653_v9 = vor.u32 %v13408_v25, %v11650_v36  ;;  %v13504_v36 = vld [vmem:[%s20686_s1 + $0x1bc4] sm:$0xf] }
 0x394   :  { %8056 = vmatpush.bf16.msra.mxu0 %v11781_v10  ;;  %v11869_v10 = vor.u32 %v13462_v18, %v11866_v31  ;;  %v12034_v18 = vld [vmem:[%s20686_s1 + $0x1bc8] sm:$0xf0]  ;;  %v13448_v54 = vld [vmem:[%s20686_s1 + $0x1a04] sm:$0xf] }
 0x395   :  { %8018 = vmatpush.bf16.msra.mxu1 %v11581_v49  ;;  %v13460_v49 = vld [vmem:[%s20686_s1 + $0x1a64] sm:$0xf] }
 0x396   :  { %7982 = vmatpush.bf16.msra.mxu2 %v11365_v35  ;;  %v13406_v35 = vld [vmem:[%s20686_s1 + $0x18b4] sm:$0xf] }
 0x397   :  { %8044 = vmatpush.bf16.msra.mxu3 %v11709_v11  ;;  %v11858_v11 = vld [vmem:[%s20686_s1 + $0x1a68] sm:$0xf0]  ;;  %v11645_v15 = vor.u32 %v13406_v35, %v11642_v1  ;;  %v12037_v35 = vor.u32 %v13504_v36, %v12034_v18  ;;  %v12026_v1 = vld [vmem:[%s20686_s1 + $0x1bb8] sm:$0xf0]  ;;  %v13472_v36 = vld [vmem:[%s20686_s1 + $0x1ac4] sm:$0xf] }
 0x398   :  { %8057 = vmatpush.bf16.msra.mxu0 %v11773_v45  ;;  %v11861_v45 = vor.u32 %v13460_v49, %v11858_v11  ;;  %v11837_v11 = vor.u32 %v13454_v6, %v11834_v59  ;;  %v11906_v18 = vld [vmem:[%s20686_s1 + $0x1ac8] sm:$0xf0]  ;;  %v13496_v6 = vld [vmem:[%s20686_s1 + $0x1b84] sm:$0xf] }
 0x399   :  { %7983 = vmatmul.bf16.vlgmr.msra.gmra.mxu2 %v20759_v57  ;;  %8019 = vmatpush.bf16.msra.mxu1 %v11573_v53  ;;  %v11634_v53 = vld [vmem:[%s20686_s1 + $0x18a8] sm:$0xf0] }
 0x39a   :  { %8027 = vmatpush.bf16.msrb.mxu2 %v11677_v24  ;;  %v13492_v24 = vld [vmem:[%s20686_s1 + $0x1b64] sm:$0xf]  ;;  %v11637_v32 = vor.u32 %v13404_v30, %v11634_v53  ;;  %v11922_v30 = vld [vmem:[%s20686_s1 + $0x1ae8] sm:$0xf0] }
 0x39b   :  { %8045 = vmatpush.bf16.msra.mxu3 %v11701_v37  ;;  %v11989_v48 = vor.u32 %v13492_v24, %v11986_v62  ;;  %v13458_v37 = vld [vmem:[%s20686_s1 + $0x1a54] sm:$0xf]  ;;  %v13500_v53 = vld [vmem:[%s20686_s1 + $0x1ba4] sm:$0xf]  ;;  %v12002_v59 = vld [vmem:[%s20686_s1 + $0x1b88] sm:$0xf0] }
 0x39c   :  { %8058 = vmatpush.bf16.msra.mxu0 %v11765_v13  ;;  %v12042_v13 = vld [vmem:[%s20686_s1 + $0x1bd8] sm:$0xf0]  ;;  %v11853_v21 = vor.u32 %v13458_v37, %v11850_v22  ;;  %v12018_v37 = vld [vmem:[%s20686_s1 + $0x1ba8] sm:$0xf0] }
 0x39d   :  { %8020 = vmatpush.bf16.msra.mxu1 %v11565_v12  ;;  %v13402_v12 = vld [vmem:[%s20686_s1 + $0x1894] sm:$0xf]  ;;  %v12045_v5 = vor.u32 %v13506_v40, %v12042_v13  ;;  %v11946_v40 = vld [vmem:[%s20686_s1 + $0x1b18] sm:$0xf0] }
 0x39e   :  { %8028 = vmatpush.bf16.msrb.mxu2 %v11669_v60  ;;  %v7776_v60 = vpop.f32.mrf.mxu2  ;;  %v11629_v31 = vor.u32 %v13402_v12, %v11626_v3  ;;  %v13474_v13 = vld [vmem:[%s20686_s1 + $0x1ad4] sm:$0xf]  ;;  %v20763_v12 = vld [vmem:[#allocation22_spill] sm:$0xff] }
 0x39f   :  { %8046 = vmatpush.bf16.msra.mxu3 %v11693_v42  ;;  %v7777_v57 = vadd.f32 %v7776_v60, %v19769_v0  ;;  %v11981_v42 = vor.u32 %v13490_v33, %v11978_v29  ;;  %v13450_v29 = vld [vmem:[%s20686_s1 + $0x1a14] sm:$0xf] }
 0x3a0   :  { %8059 = vmatpush.bf16.msra.mxu0 %v11757_v41  ;;  %v13400_v41 = vld [vmem:[%s20686_s1 + $0x1884] sm:$0xf] }
 0x3a1   :  { %8021 = vmatpush.bf16.msra.mxu1 %v11557_v46  ;;  %v7790_v0 = vadd.f32 %v19812_v47, %v7777_v57  ;;  %v11970_v47 = vld [vmem:[%s20686_s1 + $0x1b48] sm:$0xf0]  ;;  %v7815_v39 = vpop.f32.mrf.mxu1  ;;  %v13486_v46 = vld [vmem:[%s20686_s1 + $0x1b34] sm:$0xf] }
 0x3a2   :  { %8029 = vmatpush.bf16.msrb.mxu2 %v11661_v28  ;;  %v13488_v28 = vld [vmem:[%s20686_s1 + $0x1b44] sm:$0xf]  ;;  %v11965_v24 = vor.u32 %v13486_v46, %v11962_v56  ;;  %v13482_v57 = vld [vmem:[%s20686_s1 + $0x1b14] sm:$0xf] }
 0x3a3   :  { %8047 = vmatpush.bf16.msra.mxu3 %v11685_v38  ;;  %v7803_v25 = vadd.f32 %v19795_v27, %v7790_v0  ;;  %v11618_v27 = vld [vmem:[%s20686_s1 + $0x1888] sm:$0xf0]  ;;  %v11973_v51 = vor.u32 %v13488_v28, %v11970_v47  ;;  %v13498_v0 = vld [vmem:[%s20686_s1 + $0x1b94] sm:$0xf] }
 0x3a4   :  { %8060 = vmatpush.bf16.msra.mxu0 %v11749_v8  ;;  %8022 = vmatmul.bf16.vlgmr.msra.gmra.mxu1 %v20760_v34  ;;  %v11621_v49 = vor.u32 %v13400_v41, %v11618_v27  ;;  %v19997_v8 = vpop.f32.mrf.mxu0  ;;  %v11810_v47 = vld [vmem:[%s20686_s1 + $0x1a08] sm:$0xf0]  ;;  %v12122_v41 = vld [vmem:[%s20686_s1 + $0x1c78] sm:$0xf0]  ;;  %v13558_v27 = vld [vmem:[%s20686_s1 + $0x1d74] sm:$0xf] }
 0x3a5   :  { %8066 = vmatpush.bf16.msrb.mxu1 %v11869_v10  ;;  %v19980_v38 = vadd.f32 %v7815_v39, %v7803_v25  ;;  %v11938_v25 = vld [vmem:[%s20686_s1 + $0x1b08] sm:$0xf0]  ;;  %v12250_v39 = vld [vmem:[%s20686_s1 + $0x1d78] sm:$0xf0] }
 0x3a6   :  { %8030 = vmatpush.bf16.msrb.mxu2 %v11653_v9  ;;  %8048 = vmatmul.bf16.vlgmr.msra.gmra.mxu3 %v20761_v55  ;;  %v11930_v9 = vld [vmem:[%s20686_s1 + $0x1af8] sm:$0xf0]  ;;  %v7778_v10 = vpop.f32.mrf.mxu2 }
 0x3a7   :  { %8092 = vmatpush.bf16.msrb.mxu3 %v11997_v61  ;;  %8061 = vmatmul.bf16.vlgmr.msra.gmra.mxu0 %v20762_v52  ;;  %v13502_v61 = vld [vmem:[%s20686_s1 + $0x1bb4] sm:$0xf]  ;;  %v11933_v62 = vor.u32 %v13478_v2, %v11930_v9  ;;  %v11949_v52 = vor.u32 %v13482_v57, %v11946_v40  ;;  %v11909_v2 = vor.u32 %v13472_v36, %v11906_v18  ;;  %v12314_v10 = vld [vmem:[%s20686_s1 + $0x1df8] sm:$0xf0] }
 0x3a8   :  { %8105 = vmatpush.bf16.msrb.mxu0 %v12061_v19  ;;  %v13452_v19 = vld [vmem:[%s20686_s1 + $0x1a24] sm:$0xf]  ;;  %v13574_v9 = vld [vmem:[%s20686_s1 + $0x1df4] sm:$0xf]  ;;  %v12234_v57 = vld [vmem:[%s20686_s1 + $0x1d58] sm:$0xf0] }
 0x3a9   :  { %8067 = vmatpush.bf16.msrb.mxu1 %v11861_v45  ;;  %v13476_v45 = vld [vmem:[%s20686_s1 + $0x1ae4] sm:$0xf]  ;;  %v11829_v22 = vor.u32 %v13452_v19, %v11826_v4  ;;  %v20023_v34 = vpop.f32.mrf.mxu3  ;;  %v7817_v55 = vpop.f32.mrf.mxu1  ;;  %v12242_v19 = vld [vmem:[%s20686_s1 + $0x1d68] sm:$0xf0]  ;;  %v12005_v4 = vor.u32 %v13496_v6, %v12002_v59  ;;  %v20765_v40 = vld [vmem:[#allocation25_spill] sm:$0xff] }
 0x3aa   :  { %8031 = vmatpush.bf16.msrb.mxu2 %v11645_v15  ;;  %v11954_v15 = vld [vmem:[%s20686_s1 + $0x1b28] sm:$0xf0]  ;;  %v11925_v33 = vor.u32 %v13476_v45, %v11922_v30  ;;  %v13572_v45 = vld [vmem:[%s20686_s1 + $0x1de4] sm:$0xf]  ;;  %v13518_v6 = vld [vmem:[%s20686_s1 + $0x1c34] sm:$0xf] }
 0x3ab   :  { %8093 = vmatpush.bf16.msrb.mxu3 %v11989_v48  ;;  %v12029_v48 = vor.u32 %v13502_v61, %v12026_v1  ;;  %v11957_v60 = vor.u32 %v13484_v14, %v11954_v15  ;;  %v12253_v61 = vor.u32 %v13558_v27, %v12250_v39  ;;  %v13470_v1 = vld [vmem:[%s20686_s1 + $0x1ab4] sm:$0xf]  ;;  %v12317_v14 = vor.u32 %v13574_v9, %v12314_v10  ;;  %v12306_v30 = vld [vmem:[%s20686_s1 + $0x1de8] sm:$0xf0]  ;;  %v12186_v10 = vld [vmem:[%s20686_s1 + $0x1cf8] sm:$0xf0] }
 0x3ac   :  { %8106 = vmatpush.bf16.msrb.mxu0 %v12053_v50  ;;  %v11818_v50 = vld [vmem:[%s20686_s1 + $0x1a18] sm:$0xf0]  ;;  %v7856_v20 = vpop.f32.mrf.mxu0  ;;  %v13542_v9 = vld [vmem:[%s20686_s1 + $0x1cf4] sm:$0xf] }
 0x3ad   :  { %8068 = vmatpush.bf16.msrb.mxu1 %v11853_v21  ;;  %v12021_v21 = vor.u32 %v13500_v53, %v12018_v37  ;;  %v11821_v3 = vor.u32 %v13450_v29, %v11818_v50  ;;  %v13468_v37 = vld [vmem:[%s20686_s1 + $0x1aa4] sm:$0xf]  ;;  %v12106_v29 = vld [vmem:[%s20686_s1 + $0x1c58] sm:$0xf0]  ;;  %v13554_v50 = vld [vmem:[%s20686_s1 + $0x1d54] sm:$0xf] }
 0x3ae   :  { %8032 = vmatpush.bf16.msrb.mxu2 %v11637_v32  ;;  %v11914_v32 = vld [vmem:[%s20686_s1 + $0x1ad8] sm:$0xf0]  ;;  %v13520_v20 = vld [vmem:[%s20686_s1 + $0x1c44] sm:$0xf] }
 0x3af   :  { %8094 = vmatpush.bf16.msrb.mxu3 %v11981_v42  ;;  %v12010_v42 = vld [vmem:[%s20686_s1 + $0x1b98] sm:$0xf0]  ;;  %v11917_v28 = vor.u32 %v13474_v13, %v11914_v32  ;;  %v12309_v13 = vor.u32 %v13572_v45, %v12306_v30  ;;  %v13548_v45 = vld [vmem:[%s20686_s1 + $0x1d24] sm:$0xf]  ;;  %v12210_v30 = vld [vmem:[%s20686_s1 + $0x1d28] sm:$0xf0] }
 0x3b0   :  { %8107 = vmatpush.bf16.msrb.mxu0 %v12045_v5  ;;  %v13480_v5 = vld [vmem:[%s20686_s1 + $0x1b04] sm:$0xf] }
 0x3b1   :  { %8069 = vmatpush.bf16.msrb.mxu1 %v11845_v17  ;;  %v12013_v17 = vor.u32 %v13498_v0, %v12010_v42  ;;  %v7843_v46 = vpop.f32.mrf.mxu3  ;;  %v11941_v56 = vor.u32 %v13480_v5, %v11938_v25  ;;  %v12298_v0 = vld [vmem:[%s20686_s1 + $0x1dd8] sm:$0xf0]  ;;  %v12226_v5 = vld [vmem:[%s20686_s1 + $0x1d48] sm:$0xf0]  ;;  %v20766_v25 = vld [vmem:[#allocation27_spill] sm:$0xff] }
 0x3b2   :  { %8033 = vmatpush.bf16.msrb.mxu2 %v11629_v31  ;;  %v13526_v31 = vld [vmem:[%s20686_s1 + $0x1c74] sm:$0xf]  ;;  %v12090_v46 = vld [vmem:[%s20686_s1 + $0x1c38] sm:$0xf0] }
 0x3b3   :  { %8095 = vmatpush.bf16.msrb.mxu3 %v11973_v51  ;;  %v11813_v51 = vor.u32 %v13448_v54, %v11810_v47  ;;  %v13466_v54 = vld [vmem:[%s20686_s1 + $0x1a94] sm:$0xf]  ;;  %v13552_v47 = vld [vmem:[%s20686_s1 + $0x1d44] sm:$0xf] }
 0x3b4   :  { %8108 = vmatpush.bf16.msrb.mxu0 %v12037_v35  ;;  %v12125_v35 = vor.u32 %v13526_v31, %v12122_v41  ;;  %v13568_v31 = vld [vmem:[%s20686_s1 + $0x1dc4] sm:$0xf]  ;;  %v12229_v39 = vor.u32 %v13552_v47, %v12226_v5  ;;  %v12066_v47 = vld [vmem:[%s20686_s1 + $0x1c08] sm:$0xf0] }
 0x3b5   :  { %8070 = vmatpush.bf16.msrb.mxu1 %v11837_v11  ;;  %v13524_v11 = vld [vmem:[%s20686_s1 + $0x1c64] sm:$0xf] }
 0x3b6   :  { %8034 = vmatpush.bf16.msrb.mxu2 %v11621_v49  ;;  %v11898_v49 = vld [vmem:[%s20686_s1 + $0x1ab8] sm:$0xf0]  ;;  %v13544_v5 = vld [vmem:[%s20686_s1 + $0x1d04] sm:$0xf] }
 0x3b7   :  { %8096 = vmatpush.bf16.msrb.mxu3 %v11965_v24  ;;  %v12114_v24 = vld [vmem:[%s20686_s1 + $0x1c68] sm:$0xf0]  ;;  %v11901_v15 = vor.u32 %v13470_v1, %v11898_v49  ;;  %v13566_v49 = vld [vmem:[%s20686_s1 + $0x1db4] sm:$0xf] }
 0x3b8   :  { %8109 = vmatpush.bf16.msrb.mxu0 %v12029_v48  ;;  %v12117_v48 = vor.u32 %v13524_v11, %v12114_v24  ;;  %v12282_v11 = vld [vmem:[%s20686_s1 + $0x1db8] sm:$0xf0]  ;;  %v12093_v24 = vor.u32 %v13518_v6, %v12090_v46  ;;  %v12258_v6 = vld [vmem:[%s20686_s1 + $0x1d88] sm:$0xf0] }
 0x3b9   :  { %8035 = vmatmul.bf16.vlgmr.msrb.gmra.mxu2 %v20763_v12  ;;  %8071 = vmatpush.bf16.msrb.mxu1 %v11829_v22  ;;  %v11890_v22 = vld [vmem:[%s20686_s1 + $0x1aa8] sm:$0xf0]  ;;  %v13570_v12 = vld [vmem:[%s20686_s1 + $0x1dd4] sm:$0xf] }
 0x3ba   :  { %8079 = vmatpush.bf16.msra.mxu2 %v11933_v62  ;;  %v13556_v62 = vld [vmem:[%s20686_s1 + $0x1d64] sm:$0xf]  ;;  %v12301_v36 = vor.u32 %v13570_v12, %v12298_v0  ;;  %v20767_v12 = vld [vmem:[#allocation26_spill] sm:$0xff]  ;;  %v13538_v0 = vld [vmem:[%s20686_s1 + $0x1cd4] sm:$0xf] }
 0x3bb   :  { %8097 = vmatpush.bf16.msrb.mxu3 %v11957_v60  ;;  %v12245_v53 = vor.u32 %v13556_v62, %v12242_v19  ;;  %v13522_v60 = vld [vmem:[%s20686_s1 + $0x1c54] sm:$0xf]  ;;  %v13516_v19 = vld [vmem:[%s20686_s1 + $0x1c24] sm:$0xf] }
 0x3bc   :  { %8110 = vmatpush.bf16.msrb.mxu0 %v12021_v21  ;;  %v7828_v55 = vpop.f32.mrf.mxu2  ;;  %v11893_v21 = vor.u32 %v13468_v37, %v11890_v22  ;;  %v12109_v42 = vor.u32 %v13522_v60, %v12106_v29  ;;  %v12285_v37 = vor.u32 %v13566_v49, %v12282_v11  ;;  %v13564_v60 = vld [vmem:[%s20686_s1 + $0x1da4] sm:$0xf]  ;;  %v12154_v11 = vld [vmem:[%s20686_s1 + $0x1cb8] sm:$0xf0] }
 0x3bd   :  { %8072 = vmatpush.bf16.msrb.mxu1 %v11821_v3  ;;  %v7829_v32 = vadd.f32 %v7828_v55, %v19980_v38  ;;  %v12237_v3 = vor.u32 %v13554_v50, %v12234_v57  ;;  %v11882_v38 = vld [vmem:[%s20686_s1 + $0x1a98] sm:$0xf0]  ;;  %v12213_v50 = vor.u32 %v13548_v45, %v12210_v30  ;;  %v13514_v57 = vld [vmem:[%s20686_s1 + $0x1c14] sm:$0xf] }
 0x3be   :  { %8080 = vmatpush.bf16.msra.mxu2 %v11925_v33  ;;  %v20764_v33 = vld [vmem:[#allocation24_spill] sm:$0xff] }
 0x3bf   :  { %8098 = vmatpush.bf16.msrb.mxu3 %v11949_v52  ;;  %v7842_v52 = vadd.f32 %v20023_v34, %v7829_v32  ;;  %v11885_v34 = vor.u32 %v13466_v54, %v11882_v38  ;;  %v13546_v32 = vld [vmem:[%s20686_s1 + $0x1d14] sm:$0xf]  ;;  %v12266_v38 = vld [vmem:[%s20686_s1 + $0x1d98] sm:$0xf0] }
 0x3c0   :  { %8111 = vmatpush.bf16.msrb.mxu0 %v12013_v17  ;;  %v12290_v17 = vld [vmem:[%s20686_s1 + $0x1dc8] sm:$0xf0]  ;;  %v13562_v54 = vld [vmem:[%s20686_s1 + $0x1d94] sm:$0xf] }
 0x3c1   :  { %8073 = vmatpush.bf16.msrb.mxu1 %v11813_v51  ;;  %v7855_v18 = vadd.f32 %v19997_v8, %v7842_v52  ;;  %v7867_v41 = vpop.f32.mrf.mxu1  ;;  %v13464_v51 = vld [vmem:[%s20686_s1 + $0x1a84] sm:$0xf]  ;;  %v11874_v8 = vld [vmem:[%s20686_s1 + $0x1a88] sm:$0xf0] }
 0x3c2   :  { %8081 = vmatpush.bf16.msra.mxu2 %v11917_v28  ;;  %v12098_v28 = vld [vmem:[%s20686_s1 + $0x1c48] sm:$0xf0]  ;;  %v11877_v1 = vor.u32 %v13464_v51, %v11874_v8  ;;  %v12506_v51 = vld [vmem:[%s20686_s1 + $0x1f78] sm:$0xf0]  ;;  %v13560_v8 = vld [vmem:[%s20686_s1 + $0x1d84] sm:$0xf] }
 0x3c3   :  { %8099 = vmatpush.bf16.msrb.mxu3 %v11941_v56  ;;  %v12101_v27 = vor.u32 %v13520_v20, %v12098_v28  ;;  %v20179_v59 = vadd.f32 %v7867_v41, %v7855_v18  ;;  %v13550_v56 = vld [vmem:[%s20686_s1 + $0x1d34] sm:$0xf]  ;;  %v13512_v28 = vld [vmem:[%s20686_s1 + $0x1c04] sm:$0xf]  ;;  %v12194_v18 = vld [vmem:[%s20686_s1 + $0x1d08] sm:$0xf0] }
 0x3c4   :  { %8074 = vmatmul.bf16.vlgmr.msrb.gmra.mxu1 %v20764_v33  ;;  %8112 = vmatpush.bf16.msrb.mxu0 %v12005_v4  ;;  %v20205_v4 = vpop.f32.mrf.mxu0  ;;  %v12274_v33 = vld [vmem:[%s20686_s1 + $0x1da8] sm:$0xf0]  ;;  %v12378_v41 = vld [vmem:[%s20686_s1 + $0x1e78] sm:$0xf0] }
 0x3c5   :  { %8118 = vmatpush.bf16.msra.mxu1 %v12125_v35  ;;  %v7830_v35 = vpop.f32.mrf.mxu2 }
 0x3c6   :  { %8082 = vmatpush.bf16.msra.mxu2 %v11909_v2  ;;  %8100 = vmatmul.bf16.vlgmr.msrb.gmra.mxu3 %v20765_v40  ;;  %v12218_v2 = vld [vmem:[%s20686_s1 + $0x1d38] sm:$0xf0]  ;;  %v13534_v35 = vld [vmem:[%s20686_s1 + $0x1cb4] sm:$0xf] }
 0x3c7   :  { %8144 = vmatpush.bf16.msra.mxu3 %v12253_v61  ;;  %8113 = vmatmul.bf16.vlgmr.msrb.gmra.mxu0 %v20766_v25  ;;  %v12293_v61 = vor.u32 %v13568_v31, %v12290_v17  ;;  %v12221_v62 = vor.u32 %v13550_v56, %v12218_v2  ;;  %v12162_v31 = vld [vmem:[%s20686_s1 + $0x1cc8] sm:$0xf0]  ;;  %v13590_v17 = vld [vmem:[%s20686_s1 + $0x1e74] sm:$0xf]  ;;  %v12069_v56 = vor.u32 %v13512_v28, %v12066_v47  ;;  %v13616_v28 = vld [vmem:[%s20686_s1 + $0x1f44] sm:$0xf] }
 0x3c8   :  { %8157 = vmatpush.bf16.msra.mxu0 %v12317_v14  ;;  %v12189_v14 = vor.u32 %v13542_v9, %v12186_v10  ;;  %v12197_v2 = vor.u32 %v13544_v5, %v12194_v18  ;;  %v12381_v10 = vor.u32 %v13590_v17, %v12378_v41  ;;  %v12157_v30 = vor.u32 %v13534_v35, %v12154_v11  ;;  %v13528_v5 = vld [vmem:[%s20686_s1 + $0x1c84] sm:$0xf] }
 0x3c9   :  { %8119 = vmatpush.bf16.msra.mxu1 %v12117_v48  ;;  %v13540_v48 = vld [vmem:[%s20686_s1 + $0x1ce4] sm:$0xf]  ;;  %v20222_v22 = vpop.f32.mrf.mxu3  ;;  %v7869_v55 = vpop.f32.mrf.mxu1 }
 0x3ca   :  { %8083 = vmatpush.bf16.msra.mxu2 %v11901_v15  ;;  %v12082_v15 = vld [vmem:[%s20686_s1 + $0x1c28] sm:$0xf0] }
 0x3cb   :  { %8145 = vmatpush.bf16.msra.mxu3 %v12245_v53  ;;  %v12178_v53 = vld [vmem:[%s20686_s1 + $0x1ce8] sm:$0xf0]  ;;  %v12085_v29 = vor.u32 %v13516_v19, %v12082_v15  ;;  %v12261_v19 = vor.u32 %v13560_v8, %v12258_v6  ;;  %v12474_v6 = vld [vmem:[%s20686_s1 + $0x1f38] sm:$0xf0] }
 0x3cc   :  { %8158 = vmatpush.bf16.msra.mxu0 %v12309_v13  ;;  %v12181_v40 = vor.u32 %v13540_v48, %v12178_v53  ;;  %v12074_v13 = vld [vmem:[%s20686_s1 + $0x1c18] sm:$0xf0]  ;;  %v7908_v25 = vpop.f32.mrf.mxu0  ;;  %v12498_v15 = vld [vmem:[%s20686_s1 + $0x1f68] sm:$0xf0]  ;;  %v13532_v53 = vld [vmem:[%s20686_s1 + $0x1ca4] sm:$0xf] }
 0x3cd   :  { %8120 = vmatpush.bf16.msra.mxu1 %v12109_v42  ;;  %v12170_v42 = vld [vmem:[%s20686_s1 + $0x1cd8] sm:$0xf0]  ;;  %v12077_v20 = vor.u32 %v13514_v57, %v12074_v13 }
 0x3ce   :  { %8084 = vmatpush.bf16.msra.mxu2 %v11893_v21  ;;  %v12202_v21 = vld [vmem:[%s20686_s1 + $0x1d18] sm:$0xf0] }
 0x3cf   :  { %8146 = vmatpush.bf16.msra.mxu3 %v12237_v3  ;;  %v12277_v3 = vor.u32 %v13564_v60, %v12274_v33  ;;  %v12205_v52 = vor.u32 %v13546_v32, %v12202_v21  ;;  %v12562_v60 = vld [vmem:[%s20686_s1 + $0x1fe8] sm:$0xf0]  ;;  %v12362_v57 = vld [vmem:[%s20686_s1 + $0x1e58] sm:$0xf0] }
 0x3d0   :  { %8159 = vmatpush.bf16.msra.mxu0 %v12301_v36  ;;  %v12173_v36 = vor.u32 %v13538_v0, %v12170_v42  ;;  %v12490_v13 = vld [vmem:[%s20686_s1 + $0x1f58] sm:$0xf0]  ;;  %v13634_v42 = vld [vmem:[%s20686_s1 + $0x1fd4] sm:$0xf] }
 0x3d1   :  { %8121 = vmatpush.bf16.msra.mxu1 %v12101_v27  ;;  %v13622_v27 = vld [vmem:[%s20686_s1 + $0x1f74] sm:$0xf]  ;;  %v7895_v46 = vpop.f32.mrf.mxu3 }
 0x3d2   :  { %8085 = vmatpush.bf16.msra.mxu2 %v11885_v34  ;;  %v13536_v34 = vld [vmem:[%s20686_s1 + $0x1cc4] sm:$0xf]  ;;  %v12509_v49 = vor.u32 %v13622_v27, %v12506_v51  ;;  %v13582_v27 = vld [vmem:[%s20686_s1 + $0x1e34] sm:$0xf] }
 0x3d3   :  { %8147 = vmatpush.bf16.msra.mxu3 %v12229_v39  ;;  %v12269_v39 = vor.u32 %v13562_v54, %v12266_v38  ;;  %v12165_v9 = vor.u32 %v13536_v34, %v12162_v31  ;;  %v12138_v54 = vld [vmem:[%s20686_s1 + $0x1c98] sm:$0xf0]  ;;  %v13584_v38 = vld [vmem:[%s20686_s1 + $0x1e44] sm:$0xf]  ;;  %v12130_v34 = vld [vmem:[%s20686_s1 + $0x1c88] sm:$0xf0] }
 0x3d4   :  { %8160 = vmatpush.bf16.msra.mxu0 %v12293_v61  ;;  %v13638_v61 = vld [vmem:[%s20686_s1 + $0x1ff4] sm:$0xf]  ;;  %v13632_v31 = vld [vmem:[%s20686_s1 + $0x1fc4] sm:$0xf] }
 0x3d5   :  { %8122 = vmatpush.bf16.msra.mxu1 %v12093_v24  ;;  %v13588_v24 = vld [vmem:[%s20686_s1 + $0x1e64] sm:$0xf]  ;;  %v13614_v51 = vld [vmem:[%s20686_s1 + $0x1f34] sm:$0xf] }
 0x3d6   :  { %8086 = vmatpush.bf16.msra.mxu2 %v11877_v1  ;;  %v12570_v1 = vld [vmem:[%s20686_s1 + $0x1ff8] sm:$0xf0]  ;;  %v13606_v46 = vld [vmem:[%s20686_s1 + $0x1ef4] sm:$0xf]  ;;  %v12477_v11 = vor.u32 %v13614_v51, %v12474_v6 }
 0x3d7   :  { %8148 = vmatpush.bf16.msra.mxu3 %v12221_v62  ;;  %v12370_v62 = vld [vmem:[%s20686_s1 + $0x1e68] sm:$0xf0]  ;;  %v12573_v45 = vor.u32 %v13638_v61, %v12570_v1  ;;  %v13630_v61 = vld [vmem:[%s20686_s1 + $0x1fb4] sm:$0xf]  ;;  %v12538_v1 = vld [vmem:[%s20686_s1 + $0x1fb8] sm:$0xf0] }
 0x3d8   :  { %8161 = vmatpush.bf16.msra.mxu0 %v12285_v37  ;;  %v12373_v48 = vor.u32 %v13588_v24, %v12370_v62  ;;  %v13636_v37 = vld [vmem:[%s20686_s1 + $0x1fe4] sm:$0xf]  ;;  %v13598_v51 = vld [vmem:[%s20686_s1 + $0x1eb4] sm:$0xf]  ;;  %v12410_v6 = vld [vmem:[%s20686_s1 + $0x1eb8] sm:$0xf0] }
 0x3d9   :  { %8087 = vmatmul.bf16.vlgmr.msra.gmra.mxu2 %v20767_v12  ;;  %8123 = vmatpush.bf16.msra.mxu1 %v12085_v29  ;;  %v12146_v29 = vld [vmem:[%s20686_s1 + $0x1ca8] sm:$0xf0]  ;;  %v12565_v21 = vor.u32 %v13636_v37, %v12562_v60  ;;  %v13580_v62 = vld [vmem:[%s20686_s1 + $0x1e24] sm:$0xf] }
 0x3da   :  { %8131 = vmatpush.bf16.msrb.mxu2 %v12189_v14  ;;  %v13620_v14 = vld [vmem:[%s20686_s1 + $0x1f64] sm:$0xf]  ;;  %v12149_v12 = vor.u32 %v13532_v53, %v12146_v29 }
 0x3db   :  { %8149 = vmatpush.bf16.msra.mxu3 %v12213_v50  ;;  %v12501_v33 = vor.u32 %v13620_v14, %v12498_v15  ;;  %v13586_v50 = vld [vmem:[%s20686_s1 + $0x1e54] sm:$0xf]  ;;  %v13612_v14 = vld [vmem:[%s20686_s1 + $0x1f24] sm:$0xf]  ;;  %v12466_v15 = vld [vmem:[%s20686_s1 + $0x1f28] sm:$0xf0] }
 0x3dc   :  { %8162 = vmatpush.bf16.msra.mxu0 %v12277_v3  ;;  %v7880_v55 = vpop.f32.mrf.mxu2  ;;  %v12365_v0 = vor.u32 %v13586_v50, %v12362_v57  ;;  %v13628_v60 = vld [vmem:[%s20686_s1 + $0x1fa4] sm:$0xf]  ;;  %v12469_v29 = vor.u32 %v13612_v14, %v12466_v15  ;;  %v13578_v57 = vld [vmem:[%s20686_s1 + $0x1e14] sm:$0xf] }
 0x3dd   :  { %8124 = vmatpush.bf16.msra.mxu1 %v12077_v20  ;;  %v7881_v32 = vadd.f32 %v7880_v55, %v20179_v59  ;;  %v12354_v20 = vld [vmem:[%s20686_s1 + $0x1e48] sm:$0xf0]  ;;  %v12330_v55 = vld [vmem:[%s20686_s1 + $0x1e18] sm:$0xf0] }
 0x3de   :  { %8132 = vmatpush.bf16.msrb.mxu2 %v12181_v40  ;;  %v13618_v40 = vld [vmem:[%s20686_s1 + $0x1f54] sm:$0xf]  ;;  %v12357_v18 = vor.u32 %v13584_v38, %v12354_v20 }
 0x3df   :  { %8150 = vmatpush.bf16.msra.mxu3 %v12205_v52  ;;  %v7894_v59 = vadd.f32 %v20222_v22, %v7881_v32  ;;  %v12493_v3 = vor.u32 %v13618_v40, %v12490_v13  ;;  %v20768_v52 = vld [vmem:[#allocation29_spill] sm:$0xff]  ;;  %v12482_v22 = vld [vmem:[%s20686_s1 + $0x1f48] sm:$0xf0]  ;;  %v12458_v32 = vld [vmem:[%s20686_s1 + $0x1f18] sm:$0xf0] }
 0x3e0   :  { %8163 = vmatpush.bf16.msra.mxu0 %v12269_v39  ;;  %v12485_v41 = vor.u32 %v13616_v28, %v12482_v22  ;;  %v12346_v39 = vld [vmem:[%s20686_s1 + $0x1e38] sm:$0xf0]  ;;  %v13610_v40 = vld [vmem:[%s20686_s1 + $0x1f14] sm:$0xf]  ;;  %v13576_v28 = vld [vmem:[%s20686_s1 + $0x1e04] sm:$0xf] }
 0x3e1   :  { %8125 = vmatpush.bf16.msra.mxu1 %v12069_v56  ;;  %v7907_v47 = vadd.f32 %v20205_v4, %v7894_v59  ;;  %v12546_v4 = vld [vmem:[%s20686_s1 + $0x1fc8] sm:$0xf0]  ;;  %v7919_v17 = vpop.f32.mrf.mxu1  ;;  %v12442_v56 = vld [vmem:[%s20686_s1 + $0x1ef8] sm:$0xf0]  ;;  %v12349_v35 = vor.u32 %v13582_v27, %v12346_v39  ;;  %v12333_v59 = vor.u32 %v13578_v57, %v12330_v55  ;;  %v12461_v20 = vor.u32 %v13610_v40, %v12458_v32 }
 0x3e2   :  { %8133 = vmatpush.bf16.msrb.mxu2 %v12173_v36  ;;  %v12445_v24 = vor.u32 %v13606_v46, %v12442_v56  ;;  %v12322_v22 = vld [vmem:[%s20686_s1 + $0x1e08] sm:$0xf0]  ;;  %v13646_v56 = vld [vmem:[%s20686_s1 + $0x2034] sm:$0xf]  ;;  %v20543_v32 = vmax.f32 %v18285_v43, 0.0 }
 0x3e3   :  { %8151 = vmatpush.bf16.msra.mxu3 %v12197_v2  ;;  %v20390_v8 = vadd.f32 %v7919_v17, %v7907_v47  ;;  %v13608_v47 = vld [vmem:[%s20686_s1 + $0x1f04] sm:$0xf]  ;;  %v12514_v17 = vld [vmem:[%s20686_s1 + $0x1f88] sm:$0xf0]  ;;  %v20553_v43 = vld [vmem:[%s20692_s7] sm:$0xf] }
 0x3e4   :  { %8164 = vmatpush.bf16.msra.mxu0 %v12261_v19  ;;  %8126 = vmatmul.bf16.vlgmr.msra.gmra.mxu1 %v17035_v16  ;;  %v13530_v16 = vld [vmem:[%s20686_s1 + $0x1c94] sm:$0xf]  ;;  %v7882_v2 = vpop.f32.mrf.mxu2  ;;  %v12338_v19 = vld [vmem:[%s20686_s1 + $0x1e28] sm:$0xf0] }
 0x3e5   :  { %8170 = vmatpush.bf16.msrb.mxu1 %v12381_v10  ;;  %v12141_v36 = vor.u32 %v13530_v16, %v12138_v54  ;;  %v12133_v10 = vor.u32 %v13528_v5, %v12130_v34  ;;  %v12341_v53 = vor.u32 %v13580_v62, %v12338_v19  ;;  %v13655_v16 = vld [vmem:[%s20686_s1 + $0x2040] sm:$0xff]  ;;  %v12522_v54 = vld [vmem:[%s20686_s1 + $0x1f98] sm:$0xf0]  ;;  %v12450_v5 = vld [vmem:[%s20686_s1 + $0x1f08] sm:$0xf0] }
 0x3e6   :  { %8134 = vmatpush.bf16.msrb.mxu2 %v12165_v9  ;;  %8152 = vmatmul.bf16.vlgmr.msra.gmra.mxu3 %v17046_v44  ;;  %v12554_v44 = vld [vmem:[%s20686_s1 + $0x1fd8] sm:$0xf0]  ;;  %v12549_v9 = vor.u32 %v13632_v31, %v12546_v4  ;;  %v12325_v31 = vor.u32 %v13576_v28, %v12322_v22  ;;  %v13624_v4 = vld [vmem:[%s20686_s1 + $0x1f84] sm:$0xf]  ;;  %v12453_v27 = vor.u32 %v13608_v47, %v12450_v5 }
 0x3e7   :  { %8196 = vmatpush.bf16.msrb.mxu3 %v12509_v49  ;;  %8165 = vmatmul.bf16.vlgmr.msra.gmra.mxu0 %v20768_v52  ;;  %v12557_v25 = vor.u32 %v13634_v42, %v12554_v44  ;;  %v20407_v49 = vpop.f32.mrf.mxu0  ;;  %v4467_v42 = vunpack.c.h.b16 %v13655_v16  ;;  %v12602_v2 = vld [vmem:[%s20686_s1 + $0x2038] sm:$0xf0] }
 0x3e8   :  { %8209 = vmatpush.bf16.msrb.mxu0 %v12573_v45  ;;  %v13604_v45 = vld [vmem:[%s20686_s1 + $0x1ee4] sm:$0xf] }
 0x3e9   :  { %8171 = vmatpush.bf16.msrb.mxu1 %v12373_v48  ;;  %v12541_v48 = vor.u32 %v13630_v61, %v12538_v1  ;;  %v20427_v37 = vpop.f32.mrf.mxu3  ;;  %v7921_v13 = vpop.f32.mrf.mxu1  ;;  %v13596_v61 = vld [vmem:[%s20686_s1 + $0x1ea4] sm:$0xf]  ;;  %v12402_v1 = vld [vmem:[%s20686_s1 + $0x1ea8] sm:$0xf0] }
 0x3ea   :  { %8135 = vmatpush.bf16.msrb.mxu2 %v12157_v30  ;;  %v12434_v30 = vld [vmem:[%s20686_s1 + $0x1ee8] sm:$0xf0]  ;;  %v12405_v14 = vor.u32 %v13596_v61, %v12402_v1 }
 0x3eb   :  { %8197 = vmatpush.bf16.msrb.mxu3 %v12501_v33  ;;  %v12530_v33 = vld [vmem:[%s20686_s1 + $0x1fa8] sm:$0xf0]  ;;  %v12437_v50 = vor.u32 %v13604_v45, %v12434_v30  ;;  %v12394_v45 = vld [vmem:[%s20686_s1 + $0x1e98] sm:$0xf0] }
 0x3ec   :  { %8210 = vmatpush.bf16.msrb.mxu0 %v12565_v21  ;;  %v13602_v21 = vld [vmem:[%s20686_s1 + $0x1ed4] sm:$0xf]  ;;  %v12533_v44 = vor.u32 %v13628_v60, %v12530_v33 }
 0x3ed   :  { %8172 = vmatpush.bf16.msrb.mxu1 %v12365_v0  ;;  %v20769_v0 = vld [vmem:[#allocation28_spill] sm:$0xff] }
 0x3ee   :  { %8136 = vmatpush.bf16.msrb.mxu2 %v12149_v12  ;;  %v12426_v12 = vld [vmem:[%s20686_s1 + $0x1ed8] sm:$0xf0] }
 0x3ef   :  { %8198 = vmatpush.bf16.msrb.mxu3 %v12493_v3  ;;  %v13626_v3 = vld [vmem:[%s20686_s1 + $0x1f94] sm:$0xf]  ;;  %v7960_v38 = vpop.f32.mrf.mxu0  ;;  %v12429_v52 = vor.u32 %v13602_v21, %v12426_v12 }
 0x3f0   :  { %8211 = vmatpush.bf16.msrb.mxu0 %v12557_v25  ;;  %v13600_v25 = vld [vmem:[%s20686_s1 + $0x1ec4] sm:$0xf]  ;;  %v12525_v34 = vor.u32 %v13626_v3, %v12522_v54 }
 0x3f1   :  { %8173 = vmatpush.bf16.msrb.mxu1 %v12357_v18  ;;  %v5501_v18 = vpack.c.b16 %v4467_v42, %v4467_v42 }
 0x3f2   :  { %8137 = vmatpush.bf16.msrb.mxu2 %v12141_v36  ;;  %v12418_v36 = vld [vmem:[%s20686_s1 + $0x1ec8] sm:$0xf0] }
 0x3f3   :  { %8199 = vmatpush.bf16.msrb.mxu3 %v12485_v41  ;;  %v7947_v41 = vpop.f32.mrf.mxu3  ;;  %v12421_v39 = vor.u32 %v13600_v25, %v12418_v36  ;;  %v6543_v46 = vsel %vm6538_vm0, %v5501_v18, 0 }
 0x3f4   :  { %8212 = vmatpush.bf16.msrb.mxu0 %v12549_v9  ;;  %v12517_v9 = vor.u32 %v13624_v4, %v12514_v17 }
 0x3f5   :  { %8174 = vmatpush.bf16.msrb.mxu1 %v12349_v35  ;;  %v12605_v35 = vor.u32 %v13646_v56, %v12602_v2 }
 0x3f6   :  { %8138 = vmatpush.bf16.msrb.mxu2 %v12133_v10  ;;  %v12413_v10 = vor.u32 %v13598_v51, %v12410_v6 }
 0x3f7   :  { %8200 = vmatpush.bf16.msrb.mxu3 %v12477_v11  ;;  %v13644_v11 = vld [vmem:[%s20686_s1 + $0x2024] sm:$0xf] }
 0x3f8   :  { %8213 = vmatpush.bf16.msrb.mxu0 %v12541_v48 }
 0x3f9   :  { %8139 = vmatmul.bf16.vlgmr.msrb.gmra.mxu2 %v20769_v0  ;;  %8175 = vmatpush.bf16.msrb.mxu1 %v12341_v53 }
 0x3fa   :  { %8183 = vmatpush.bf16.msra.mxu2 %v12445_v24  ;;  %v12594_v24 = vld [vmem:[%s20686_s1 + $0x2028] sm:$0xf0] }
 0x3fb   :  { %8201 = vmatpush.bf16.msrb.mxu3 %v12469_v29  ;;  %v12597_v15 = vor.u32 %v13644_v11, %v12594_v24 }
 0x3fc   :  { %8214 = vmatpush.bf16.msrb.mxu0 %v12533_v44  ;;  %v7932_v62 = vpop.f32.mrf.mxu2 }
 0x3fd   :  { %8176 = vmatpush.bf16.msrb.mxu1 %v12333_v59  ;;  %v7933_v19 = vadd.f32 %v7932_v62, %v20390_v8  ;;  %v12586_v8 = vld [vmem:[%s20686_s1 + $0x2018] sm:$0xf0] }
 0x3fe   :  { %8184 = vmatpush.bf16.msra.mxu2 %v12437_v50  ;;  %v13640_v50 = vld [vmem:[%s20686_s1 + $0x2004] sm:$0xf] }
 0x3ff   :  { %8202 = vmatpush.bf16.msrb.mxu3 %v12461_v20  ;;  %v7946_v30 = vadd.f32 %v20427_v37, %v7933_v19  ;;  %v12386_v37 = vld [vmem:[%s20686_s1 + $0x1e88] sm:$0xf0] }
 0x400   :  { %8215 = vmatpush.bf16.msrb.mxu0 %v12525_v34 }
 0x401   :  { %8177 = vmatpush.bf16.msrb.mxu1 %v12325_v31  ;;  %v7959_v48 = vadd.f32 %v20407_v49, %v7946_v30  ;;  %v7971_v60 = vpop.f32.mrf.mxu1  ;;  %v12578_v49 = vld [vmem:[%s20686_s1 + $0x2008] sm:$0xf0] }
 0x402   :  { %8185 = vmatpush.bf16.msra.mxu2 %v12429_v52  ;;  %v12581_v40 = vor.u32 %v13640_v50, %v12578_v49 }
 0x403   :  { %8203 = vmatpush.bf16.msrb.mxu3 %v12453_v27  ;;  %v7972_v29 = vadd.f32 %v7971_v60, %v7959_v48 }
 0x404   :  { %8178 = vmatmul.bf16.vlgmr.msrb.gmra.mxu1 %v17243_v63  ;;  %8216 = vmatpush.bf16.msrb.mxu0 %v12517_v9  ;;  %v13594_v63 = vld [vmem:[%s20686_s1 + $0x1e94] sm:$0xf]  ;;  %v7934_v57 = vpop.f32.mrf.mxu2  ;;  %v8010_v13 = vpop.f32.mrf.mxu0 }
 0x405   :  { %v12397_v53 = vor.u32 %v13594_v63, %v12394_v45 }
 0x406   :  { %8186 = vmatpush.bf16.msra.mxu2 %v12421_v39  ;;  %8204 = vmatmul.bf16.vlgmr.msrb.gmra.mxu3 %v17245_v26  ;;  %v13642_v26 = vld [vmem:[%s20686_s1 + $0x2014] sm:$0xf] }
 0x407   :  { %8225 = vmatpush.bf16.msra.mxu3 %v6543_v46  ;;  %8217 = vmatmul.bf16.vlgmr.msrb.gmra.mxu0 %v17258_v23  ;;  %v12589_v33 = vor.u32 %v13642_v26, %v12586_v8  ;;  %v13592_v23 = vld [vmem:[%s20686_s1 + $0x1e84] sm:$0xf] }
 0x408   :  { %v12389_v55 = vor.u32 %v13592_v23, %v12386_v37 }
 0x409   :  { %v7997_v21 = vpop.f32.mrf.mxu3  ;;  %v7973_v12 = vpop.f32.mrf.mxu1 }
 0x40a   :  { %8187 = vmatpush.bf16.msra.mxu2 %v12413_v10 }
 0x40b   :  { %8226 = vmatpush.bf16.msra.mxu3 %v12605_v35 }
 0x40c   :  { %v8012_v0 = vpop.f32.mrf.mxu0 }
 0x40e   :  { %8188 = vmatpush.bf16.msra.mxu2 %v12405_v14 }
 0x40f   :  { %8227 = vmatpush.bf16.msra.mxu3 %v12597_v15 }
 0x411   :  { %v7999_v16 = vpop.f32.mrf.mxu3 }
 0x412   :  { %8189 = vmatpush.bf16.msra.mxu2 %v12397_v53 }
 0x413   :  { %8228 = vmatpush.bf16.msra.mxu3 %v12589_v33 }
 0x416   :  { %8190 = vmatpush.bf16.msra.mxu2 %v12389_v55 }
 0x417   :  { %8229 = vmatpush.bf16.msra.mxu3 %v12581_v40 }
 0x419   :  { %8191 = vmatmul.bf16.vlgmr.msra.gmra.mxu2 %v17256_v7 }
 0x41a   :  { %12608 = vmatpush.msk.msrb.mxu2 %vm6538_vm0, %v20543_v32  ;;  %12607 = vmatmul.msk.bf16.vlgmr.msra.gmra.mxu3 %vm6534_vm1, %v17361_v58 }
 0x41c   :  { %v7984_v42 = vpop.f32.mrf.mxu2 }
 0x41d   :  { %v7985_v44 = vadd.f32 %v7984_v42, %v7972_v29  ;;  %v8395_v42 = vld [vmem:[%s20690_s5 + $0x78] sm:$0xff] }
 0x41e   :  { %8416 = vmatpush.msra.mxu0 %v8395_v42 }
 0x41f   :  { %v7998_v59 = vadd.f32 %v7997_v21, %v7985_v44  ;;  %v8394_v44 = vld [vmem:[%s20690_s5 + $0x70] sm:$0xff] }
 0x420   :  { %8417 = vmatpush.msra.mxu0 %v8394_v44  ;;  %v13649_v44 = vld [vmem:[%s20691_s6] ss:$0 sm:$0xff] }
 0x421   :  { %v8011_v3 = vadd.f32 %v8010_v13, %v7998_v59  ;;  %v8023_v54 = vpop.f32.mrf.mxu1  ;;  %v8392_v59 = vld [vmem:[%s20690_s5 + $0x60] sm:$0xff] }
 0x423   :  { %v8024_v7 = vadd.f32 %v8023_v54, %v8011_v3  ;;  %v8391_v3 = vld [vmem:[%s20690_s5 + $0x58] sm:$0xff]  ;;  %v8390_v54 = vld [vmem:[%s20690_s5 + $0x50] sm:$0xff] }
 0x424   :  { %v7986_v38 = vpop.f32.mrf.mxu2  ;;  %v8062_v20 = vpop.f32.mrf.mxu0 }
 0x425   :  { %v8388_v38 = vld [vmem:[%s20690_s5 + $0x40] sm:$0xff] }
 0x429   :  { %12609 = vmatmul.msk.f32.vlgmr.msrb.gmra.mxu2 %vm8244_vm2, %v20553_v43  ;;  %v8049_v58 = vpop.f32.mrf.mxu3  ;;  %v8025_v52 = vpop.f32.mrf.mxu1 }
 0x42a   :  { %v8385_v52 = vld [vmem:[%s20690_s5 + $0x28] sm:$0xff] }
 0x42c   :  { %v8064_v28 = vpop.f32.mrf.mxu0 }
 0x42d   :  { %v8384_v28 = vld [vmem:[%s20690_s5 + $0x20] sm:$0xff] }
 0x431   :  { %v8051_v22 = vpop.f32.mrf.mxu3 }
 0x432   :  { %v8383_v22 = vld [vmem:[%s20690_s5 + $0x18] sm:$0xff] }
 0x43c   :  { %v8036_v47 = vpop.f32.mrf.mxu2 }
 0x43d   :  { %v8037_v5 = vadd.f32 %v8036_v47, %v8024_v7  ;;  %v8389_v7 = vld [vmem:[%s20690_s5 + $0x48] sm:$0xff] }
 0x43f   :  { %v8050_v25 = vadd.f32 %v8049_v58, %v8037_v5  ;;  %v8386_v58 = vld [vmem:[%s20690_s5 + $0x30] sm:$0xff] }
 0x440   :  { %v8382_v5 = vld [vmem:[%s20690_s5 + $0x10] sm:$0xff] }
 0x441   :  { %v8063_v36 = vadd.f32 %v8062_v20, %v8050_v25  ;;  %v8075_v18 = vpop.f32.mrf.mxu1  ;;  %v8387_v20 = vld [vmem:[%s20690_s5 + $0x38] sm:$0xff] }
 0x443   :  { %v8076_v34 = vadd.f32 %v8075_v18, %v8063_v36  ;;  %v8381_v36 = vld [vmem:[%s20690_s5 + $0x8] sm:$0xff]  ;;  %v8380_v18 = vld [vmem:[%s20690_s5] sm:$0xff] }
 0x444   :  { %v8038_v31 = vpop.f32.mrf.mxu2  ;;  %v8114_v4 = vpop.f32.mrf.mxu0 }
 0x445   :  { %v8411_v31 = vld [vmem:[%s20690_s5 + $0xf8] sm:$0xff] }
 0x446   :  { %8436 = vmatpush.msra.mxu1 %v8411_v31 }
 0x449   :  { %v8101_v17 = vpop.f32.mrf.mxu3  ;;  %v8077_v41 = vpop.f32.mrf.mxu1 }
 0x44c   :  { %v8116_v27 = vpop.f32.mrf.mxu0 }
 0x451   :  { %v8103_v39 = vpop.f32.mrf.mxu3 }
 0x45c   :  { %v8088_v51 = vpop.f32.mrf.mxu2 }
 0x45d   :  { %v8089_v6 = vadd.f32 %v8088_v51, %v8076_v34 }
 0x45f   :  { %v8102_v46 = vadd.f32 %v8101_v17, %v8089_v6 }
 0x461   :  { %v8115_v56 = vadd.f32 %v8114_v4, %v8102_v46  ;;  %v8127_v2 = vpop.f32.mrf.mxu1  ;;  %v8410_v4 = vld [vmem:[%s20690_s5 + $0xf0] sm:$0xff] }
 0x462   :  { %8437 = vmatpush.msra.mxu1 %v8410_v4 }
 0x463   :  { %v8128_v63 = vadd.f32 %v8127_v2, %v8115_v56  ;;  %v8364_v56 = vld [vmem:[%s20688_s3] sm:$0x3] }
 0x464   :  { %v8090_v9 = vpop.f32.mrf.mxu2  ;;  %v8166_v10 = vpop.f32.mrf.mxu0 }
 0x465   :  { %v8366_v9 = vperm.slane %v8364_v56, 0 }
 0x469   :  { %v8153_v35 = vpop.f32.mrf.mxu3  ;;  %v8129_v61 = vpop.f32.mrf.mxu1 }
 0x46c   :  { %v8168_v1 = vpop.f32.mrf.mxu0 }
 0x471   :  { %v8155_v11 = vpop.f32.mrf.mxu3 }
 0x47c   :  { %v8140_v24 = vpop.f32.mrf.mxu2 }
 0x47d   :  { %v8141_v30 = vadd.f32 %v8140_v24, %v8128_v63  ;;  %v8409_v24 = vld [vmem:[%s20690_s5 + $0xe8] sm:$0xff]  ;;  %v8404_v63 = vld [vmem:[%s20690_s5 + $0xc0] sm:$0xff] }
 0x47e   :  { %8438 = vmatpush.msra.mxu1 %v8409_v24 }
 0x47f   :  { %v8154_v8 = vadd.f32 %v8153_v35, %v8141_v30  ;;  %v8402_v30 = vld [vmem:[%s20690_s5 + $0xb0] sm:$0xff] }
 0x481   :  { %v8179_v62 = vpop.f32.mrf.mxu1  ;;  %v8167_v53 = vadd.f32 %v8166_v10, %v8154_v8  ;;  %v8400_v8 = vld [vmem:[%s20690_s5 + $0xa0] sm:$0xff] }
 0x483   :  { %v8180_v60 = vadd.f32 %v8179_v62, %v8167_v53  ;;  %v8408_v62 = vld [vmem:[%s20690_s5 + $0xe0] sm:$0xff]  ;;  %v8398_v53 = vld [vmem:[%s20690_s5 + $0x90] sm:$0xff] }
 0x484   :  { %v8142_v19 = vpop.f32.mrf.mxu2  ;;  %v8218_v14 = vpop.f32.mrf.mxu0  ;;  %8439 = vmatpush.msra.mxu1 %v8408_v62 }
 0x485   :  { %v8407_v19 = vld [vmem:[%s20690_s5 + $0xd8] sm:$0xff] }
 0x486   :  { %8440 = vmatpush.msra.mxu1 %v8407_v19 }
 0x489   :  { %v8205_v15 = vpop.f32.mrf.mxu3  ;;  %v8181_v45 = vpop.f32.mrf.mxu1 }
 0x48a   :  { %v8403_v45 = vld [vmem:[%s20690_s5 + $0xb8] sm:$0xff] }
 0x48c   :  { %v8220_v26 = vpop.f32.mrf.mxu0 }
 0x48d   :  { %v8401_v26 = vld [vmem:[%s20690_s5 + $0xa8] sm:$0xff] }
 0x491   :  { %v8207_v48 = vpop.f32.mrf.mxu3 }
 0x492   :  { %v8399_v48 = vld [vmem:[%s20690_s5 + $0x98] sm:$0xff] }
 0x49c   :  { %v8192_v33 = vpop.f32.mrf.mxu2 }
 0x49d   :  { %v8193_v23 = vadd.f32 %v8192_v33, %v8180_v60  ;;  %v8231_v37 = vpop.f32.mrf.mxu3  ;;  %v8397_v60 = vld [vmem:[%s20690_s5 + $0x88] sm:$0xff]  ;;  %v8396_v33 = vld [vmem:[%s20690_s5 + $0x80] sm:$0xff] }
 0x49f   :  { %v8206_v29 = vadd.f32 %v8205_v15, %v8193_v23  ;;  %v8405_v15 = vld [vmem:[%s20690_s5 + $0xc8] sm:$0xff] }
 0x4a1   :  { %v8219_v50 = vadd.f32 %v8218_v14, %v8206_v29  ;;  %v8406_v14 = vld [vmem:[%s20690_s5 + $0xd0] sm:$0xff] }
 0x4a2   :  { %8441 = vmatpush.msra.mxu1 %v8406_v14 }
 0x4a3   :  { %v8232_v49 = vadd.f32 %v8231_v37, %v8219_v50 }
 0x4a4   :  { %v8194_v57 = vpop.f32.mrf.mxu2  ;;  %8442 = vmatpush.msra.mxu1 %v8405_v15 }
 0x4a5   :  { %v8236_v55 = vmax.f32 %v8232_v49, 0.0  ;;  %v8233_v40 = vpop.f32.mrf.mxu3 }
 0x4a6   :  { %8443 = vmatpush.msra.mxu1 %v8404_v63 }
 0x4a7   :  { %v8239_v13 = vrot.slane %v8236_v55, 4  ;;  %12610 = vmatpush.msk.msrb.mxu3 %vm6538_vm0, %v8236_v55 }
 0x4a8   :  { %12611 = vmatmul.msk.f32.vlgmr.msrb.gmra.mxu3 %vm8244_vm2, %v20553_v43  ;;  %8444 = vmatpush.msra.mxu1 %v8403_v45 }
 0x4a9   :  { %v8240_v21 = vsel %vm6538_vm0, %v20543_v32, %v8239_v13  ;;  %v8367_v13 = vperm.slane %v8364_v56, 1 }
 0x4aa   :  { %8242 = vst [vmem:[#allocation2] sm:$0xff] %v8240_v21  ;;  %8445 = vmatpush.msra.mxu1 %v8402_v30 }
 0x4ac   :  { %v8269_v12 = vpop.f32.mrf.mxu2  ;;  %8446 = vmatpush.msra.mxu1 %v8401_v26 }
 0x4ad   :  { %v8292_v0 = vsub.f32 %v20543_v32, %v8269_v12  ;;  %v8393_v32 = vld [vmem:[%s20690_s5 + $0x68] sm:$0xff]  ;;  %s13682_s5 = smov [#allocation2]  }
 0x4ae   :  { %8418 = vmatpush.msra.mxu0 %v8393_v32  ;;  %8447 = vmatpush.msra.mxu1 %v8400_v8  ;;  %s8465_s20 = sshll.u32 %s13682_s5, 4  ;;  %s8466_s20 = int_to_ptr.vmem [resolvable:$true] %s8465_s20 }
 0x4af   :  { %v8294_v16 = vmul.f32 %v8292_v0, %v8292_v0  ;;  %8470 = dma.vmem_to_hbm [thread:$0]  %s8466_s20, 128, %s8468_s22, [#allocation3]  }
 0x4b0   :  { %8419 = vmatpush.msra.mxu0 %v8392_v59  ;;  %8448 = vmatpush.msra.mxu1 %v8399_v48 }
 0x4b1   :  { %12612 = vmatpush.msk.msra.mxu2 %vm6538_vm0, %v8294_v16 }
 0x4b2   :  { %12613 = vmatmul.msk.f32.vlgmr.msra.gmra.mxu2 %vm8244_vm2, %v20553_v43  ;;  %8420 = vmatpush.msra.mxu0 %v8391_v3 }
 0x4b3   :  { %8449 = vmatpush.msra.mxu1 %v8398_v53 }
 0x4b4   :  { %8421 = vmatpush.msra.mxu0 %v8390_v54 }
 0x4b5   :  { %8450 = vmatpush.msra.mxu1 %v8397_v60 }
 0x4b6   :  { %8422 = vmatpush.msra.mxu0 %v8389_v7 }
 0x4b7   :  { %8451 = vmatpush.msra.mxu1 %v8396_v33 }
 0x4b8   :  { %8423 = vmatpush.msra.mxu0 %v8388_v38 }
 0x4ba   :  { %8424 = vmatpush.msra.mxu0 %v8387_v20 }
 0x4bc   :  { %8425 = vmatpush.msra.mxu0 %v8386_v58 }
 0x4be   :  { %8426 = vmatpush.msra.mxu0 %v8385_v52 }
 0x4c0   :  { %8427 = vmatpush.msra.mxu0 %v8384_v28 }
 0x4c2   :  { %8428 = vmatpush.msra.mxu0 %v8383_v22 }
 0x4c4   :  { %8429 = vmatpush.msra.mxu0 %v8382_v5 }
 0x4c6   :  { %8430 = vmatpush.msra.mxu0 %v8381_v36 }
 0x4c8   :  { %8431 = vmatpush.msra.mxu0 %v8380_v18 }
 0x52b   :  { %v8289_v47 = vpop.f32.mrf.mxu3 }
 0x52c   :  { %v20608_v25 = vsub.f32 %v8236_v55, %v8289_v47 }
 0x52e   :  { %v8295_v34 = vmul.f32 %v20608_v25, %v20608_v25 }
 0x530   :  { %12614 = vmatpush.msk.msra.mxu3 %vm6538_vm0, %v8295_v34 }
 0x531   :  { %12615 = vmatmul.msk.f32.vlgmr.msra.gmra.mxu3 %vm8244_vm2, %v20553_v43  ;;  %v8372_v43 = vld [vmem:[%s20689_s4] sm:$0x3] }
 0x532   :  { %v8374_v61 = vperm.slane %v8372_v43, 0 }
 0x535   :  { %v8319_v17 = vpop.f32.mrf.mxu2 }
 0x536   :  { %v8320_v41 = vadd.f32 1e-05, %v8319_v17 }
 0x538   :  { %13650 = vrsqrt.f32 %v8320_v41  ;;  %vm8348_vm3 = vweird.f32 %v8320_v41 }
 0x53e   :  { %v13651_v27 = vpop.eup %13650 }
 0x53f   :  { %v8343_v39 = vmul.f32 %v13651_v27, %v8320_v41  ;;  %vm8349_vm4 = vweird.f32 %v13651_v27 }
 0x540   :  { %vm8350_vm5 = vmor %vm8348_vm3, %vm8349_vm4 }
 0x541   :  { %v8344_v51 = vmul.f32 %v13651_v27, %v8343_v39 }
 0x543   :  { %v8345_v6 = vmul.f32 0.5, %v8344_v51 }
 0x545   :  { %v8346_v46 = vsub.f32 1.5, %v8345_v6 }
 0x547   :  { %v8347_v2 = vmul.f32 %v13651_v27, %v8346_v46 }
 0x549   :  { %v8351_v10 = vsel %vm8350_vm5, %v13651_v27, %v8347_v2 }
 0x54a   :  { %v8362_v35 = vmul.f32 %v8351_v10, %v8292_v0  ;;  %v8375_v0 = vperm.slane %v8372_v43, 1 }
 0x54c   :  { %v8370_v1 = vmul.f32 %v8366_v9, %v8362_v35 }
 0x54e   :  { %v8378_v11 = vadd.f32 %v8374_v61, %v8370_v1 }
 0x550   :  { %8432 = vmatmul.f32.vlgmr.msra.gmra.mxu0 %v8378_v11 }
 0x5b4   :  { %v8339_v23 = vpop.f32.mrf.mxu3 }
 0x5b5   :  { %v8340_v37 = vadd.f32 1e-05, %v8339_v23 }
 0x5b7   :  { %13652 = vrsqrt.f32 %v8340_v37  ;;  %vm8358_vm7 = vweird.f32 %v8340_v37 }
 0x5bd   :  { %v13653_v29 = vpop.eup %13652 }
 0x5be   :  { %v8353_v50 = vmul.f32 %v13653_v29, %v8340_v37  ;;  %vm8359_vm6 = vweird.f32 %v13653_v29 }
 0x5bf   :  { %vm8360_vm8 = vmor %vm8358_vm7, %vm8359_vm6 }
 0x5c0   :  { %v8354_v49 = vmul.f32 %v13653_v29, %v8353_v50 }
 0x5c2   :  { %v8355_v57 = vmul.f32 0.5, %v8354_v49 }
 0x5c4   :  { %v8356_v55 = vsub.f32 1.5, %v8355_v57 }
 0x5c6   :  { %v8357_v40 = vmul.f32 %v13653_v29, %v8356_v55 }
 0x5c8   :  { %v8361_v21 = vsel %vm8360_vm8, %v13653_v29, %v8357_v40 }
 0x5c9   :  { %v8363_v12 = vmul.f32 %v8361_v21, %v20608_v25 }
 0x5cb   :  { %v8371_v16 = vmul.f32 %v8367_v13, %v8363_v12 }
 0x5cd   :  { %v8379_v42 = vadd.f32 %v8375_v0, %v8371_v16  ;;  %v8433_v32 = vpop.f32.mrf.mxu0 }
 0x5ce   :  { %v8434_v59 = vadd.f32 %v13649_v44, %v8433_v32 }
 0x5cf   :  { %8452 = vmatmul.f32.vlgmr.msra.gmra.mxu1 %v8379_v42 }
 0x64c   :  { %v8453_v3 = vpop.f32.mrf.mxu1 }
 0x64d   :  { %v8454_v54 = vadd.f32 %v8453_v3, %v8434_v59 }
 0x64f   :  { %8457 = vst.msk [vmem:[%s20693_s8] sm:$0xf] %vm8456_vm9, %v8454_v54 }
 0x650   :  { %13680 = dma.done.wait [#allocation3], 128  }
 0x651   :  { %13681 = vsyncadd [#allocation3], 4294967168 }
 0x652   :  { %8477 = vsyncpa [#allocation3], 1 }

</bundles_post_ra>
